<compile_context>
chip_gen: v5e
topology: v5e:2x2
jax: 0.10.0
libtpu: 0.0.40
codegen_flags: <defaults>
</compile_context>

<pallas_src>
import functools
import math

import jax
import jax.numpy as jnp
from jax.experimental import pallas as pl
from jax.experimental.pallas import tpu as pltpu


# ----------------------------------------------------------------------------
# Small in-kernel helpers (traced inside the Pallas kernel)
# ----------------------------------------------------------------------------

def _mm(a_f32, w_bf16, b_f32=None):
    """bf16 x bf16 MXU matmul with f32 accumulation, optional f32 bias."""
    y = jax.lax.dot_general(
        a_f32.astype(jnp.bfloat16), w_bf16,
        dimension_numbers=(((1,), (0,)), ((), ())),
        preferred_element_type=jnp.float32)
    if b_f32 is not None:
        y = y + b_f32
    return y


def _layernorm(x, g, b):
    mu = jnp.mean(x, axis=-1, keepdims=True)
    var = jnp.mean(jnp.square(x - mu), axis=-1, keepdims=True)
    return (x - mu) * jax.lax.rsqrt(var + 1e-5) * g + b


# ----------------------------------------------------------------------------
# The single fused kernel: VAE + transformer block + mean pool + decoder heads
# (gridded over batch; one batch row per grid step / per TensorCore on v7x)
# ----------------------------------------------------------------------------

def _fused_kernel(xflat_ref, h0_ref,
                  vew_ref, veb_ref, vhw_ref, vhb_ref,
                  ln1g_ref, ln1b_ref,
                  wqkv_ref, bqkv_ref, wo_ref, bo_ref,
                  ln2g_ref, ln2b_ref,
                  w1_ref, b1_ref, w2_ref, b2_ref,
                  decw_ref, decb_ref,
                  musig_ref, out_ref, heads_ref,
                  *, tq):
    # -------------------------- VAE branch (per batch row) ------------------
    xf = xflat_ref[0]                                           # [1, F] f32
    hv = jnp.maximum(_mm(xf, vew_ref[...], veb_ref[...]), 0.0)  # [1, Hv]
    ml = _mm(hv, vhw_ref[...], vhb_ref[...])                    # [1, 2L]
    two_lat = ml.shape[1]
    lane = jax.lax.broadcasted_iota(jnp.int32, ml.shape, 1)
    # first half -> mu (identity), second half -> sigma = exp(0.5 * logvar)
    musig_ref[0] = jnp.where(lane < two_lat // 2, ml, jnp.exp(0.5 * ml))

    # -------------------------- transformer block ---------------------------
    S, D = h0_ref.shape[1], h0_ref.shape[2]
    h0 = h0_ref[0]                                              # [S, D] f32

    hn = _layernorm(h0, ln1g_ref[...], ln1b_ref[...])
    qkv = _mm(hn, wqkv_ref[...], bqkv_ref[...])                 # [S, 3D] f32
    # 1/sqrt(D) is already folded into the Q slice of wqkv (init time).
    q = qkv[:, 0 * D:1 * D]
    kb = qkv[:, 1 * D:2 * D].astype(jnp.bfloat16)
    vb = qkv[:, 2 * D:3 * D].astype(jnp.bfloat16)

    # Q-blocked attention: per-chunk scores/probs stay register/VMEM resident.
    chunks = []
    for i in range(S // tq):                                    # static, small
        qc = q[i * tq:(i + 1) * tq, :].astype(jnp.bfloat16)     # [tq, D]
        s = jax.lax.dot_general(                                # [tq, S]
            qc, kb, dimension_numbers=(((1,), (1,)), ((), ())),
            preferred_element_type=jnp.float32)
        m = jnp.max(s, axis=-1, keepdims=True)
        p = jnp.exp(s - m)
        denom = jnp.sum(p, axis=-1, keepdims=True)
        p = p * pl.reciprocal(denom, approx=True)               # EUP, off VALU
        chunks.append(jax.lax.dot_general(                      # [tq, D]
            p.astype(jnp.bfloat16), vb,
            dimension_numbers=(((1,), (0,)), ((), ())),
            preferred_element_type=jnp.float32))
    attn = jnp.concatenate(chunks, axis=0)                      # [S, D]

    h1 = h0 + _mm(attn, wo_ref[...], bo_ref[...])               # residual

    hn2 = _layernorm(h1, ln2g_ref[...], ln2b_ref[...])
    mfc = jax.nn.gelu(_mm(hn2, w1_ref[...], b1_ref[...]), approximate=True)
    h2 = h1 + _mm(mfc, w2_ref[...], b2_ref[...])                # residual

    out_ref[0] = h2

    # -------------------------- decoder heads -------------------------------
    pooled = jnp.mean(h2, axis=0, keepdims=True)                # [1, D]
    heads_ref[0] = _mm(pooled, decw_ref[...], decb_ref[...])    # [1, 5*head]


def fused_forward(x_flat3, h0, params, *, tq=64):
    B, _, F = x_flat3.shape
    S, D = h0.shape[1], h0.shape[2]
    Hv = params["vae_enc_w"].shape[1]
    two_lat = params["vae_head_w"].shape[1]
    n_out = params["dec_w"].shape[1]
    assert S % tq == 0

    wspec = lambda shape: pl.BlockSpec(shape, lambda b: (0, 0))

    return pl.pallas_call(
        functools.partial(_fused_kernel, tq=tq),
        grid=(B,),
        out_shape=(jax.ShapeDtypeStruct((B, 1, two_lat), jnp.float32),
                   jax.ShapeDtypeStruct((B, S, D), jnp.float32),
                   jax.ShapeDtypeStruct((B, 1, n_out), jnp.float32)),
        in_specs=[
            pl.BlockSpec((1, 1, F), lambda b: (b, 0, 0)),    # x row (VAE)
            pl.BlockSpec((1, S, D), lambda b: (b, 0, 0)),    # token proj h0
            wspec((F, Hv)), wspec((1, Hv)),                  # vae enc
            wspec((Hv, two_lat)), wspec((1, two_lat)),       # vae mu/logvar
            wspec((1, D)), wspec((1, D)),                    # ln1
            wspec((D, 3 * D)), wspec((1, 3 * D)),            # fused qkv
            wspec((D, D)), wspec((1, D)),                    # wo
            wspec((1, D)), wspec((1, D)),                    # ln2
            wspec((D, 4 * D)), wspec((1, 4 * D)),            # mlp1
            wspec((4 * D, D)), wspec((1, D)),                # mlp2
            wspec((D, n_out)), wspec((1, n_out)),            # decoder heads
        ],
        out_specs=(pl.BlockSpec((1, 1, two_lat), lambda b: (b, 0, 0)),
                   pl.BlockSpec((1, S, D), lambda b: (b, 0, 0)),
                   pl.BlockSpec((1, 1, n_out), lambda b: (b, 0, 0))),
        compiler_params=pltpu.CompilerParams(
            dimension_semantics=("parallel",)),
    )(x_flat3, h0,
      params["vae_enc_w"], params["vae_enc_b"],
      params["vae_head_w"], params["vae_head_b"],
      params["ln1_g"], params["ln1_b"],
      params["wqkv"], params["bqkv"], params["wo"], params["bo"],
      params["ln2_g"], params["ln2_b"],
      params["mlp1_w"], params["mlp1_b"], params["mlp2_w"], params["mlp2_b"],
      params["dec_w"], params["dec_b"])


# ----------------------------------------------------------------------------
# Parameter initialization (deterministic, synthetic)
# ----------------------------------------------------------------------------

def init_params(key, *, in_features, n_chan, d_model, vae_hidden, latent,
                head_dim):
    ks = jax.random.split(key, 8)

    def wf(k, i, o, scale=0.02):
        return jax.random.normal(k, (i, o), jnp.float32) * scale

    # Fold the 1/sqrt(D) attention scale into the Q columns of the fused QKV
    # weight (and it would apply to the Q bias slice too, which is zero here),
    # so the kernel never scales anything at runtime.
    attn_scale = 1.0 / math.sqrt(d_model)
    wqkv = wf(ks[3], d_model, 3 * d_model)
    wqkv = wqkv.at[:, :d_model].multiply(attn_scale)

    return {
        # VAE encoder (MXU weights in bf16, biases f32)
        "vae_enc_w": wf(ks[0], in_features, vae_hidden).astype(jnp.bfloat16),
        "vae_enc_b": jnp.zeros((1, vae_hidden), jnp.float32),
        "vae_head_w": wf(ks[1], vae_hidden, 2 * latent).astype(jnp.bfloat16),
        "vae_head_b": jnp.zeros((1, 2 * latent), jnp.float32),
        # Token projection (tiny C=4 contraction, computed in XLA), f32
        "tok_w": wf(ks[2], n_chan, d_model),
        "tok_b": jnp.zeros((1, d_model), jnp.float32),
        # Transformer block
        "ln1_g": jnp.ones((1, d_model), jnp.float32),
        "ln1_b": jnp.zeros((1, d_model), jnp.float32),
        "wqkv": wqkv.astype(jnp.bfloat16),
        "bqkv": jnp.zeros((1, 3 * d_model), jnp.float32),
        "wo": wf(ks[4], d_model, d_model).astype(jnp.bfloat16),
        "bo": jnp.zeros((1, d_model), jnp.float32),
        "ln2_g": jnp.ones((1, d_model), jnp.float32),
        "ln2_b": jnp.zeros((1, d_model), jnp.float32),
        "mlp1_w": wf(ks[5], d_model, 4 * d_model).astype(jnp.bfloat16),
        "mlp1_b": jnp.zeros((1, 4 * d_model), jnp.float32),
        "mlp2_w": wf(ks[6], 4 * d_model, d_model).astype(jnp.bfloat16),
        "mlp2_b": jnp.zeros((1, d_model), jnp.float32),
        # Decoder: 5 heads (tu, tv, lu, lv, le) in one lane-contiguous slab
        "dec_w": wf(ks[7], d_model, 5 * head_dim).astype(jnp.bfloat16),
        "dec_b": jnp.zeros((1, 5 * head_dim), jnp.float32),
    }


# ----------------------------------------------------------------------------
# Forward pass
# ----------------------------------------------------------------------------

def combined_forward(x, params, *, latent, head_dim, tq=64):
    B, C, H, W = x.shape
    x = x.astype(jnp.float32)
    S = H * W

    # Lane-dense views of x (pure reshapes, no transpose).
    x_cs = x.reshape(B, C, S)                 # [B, C, S]  (S=256 on lanes)
    x_flat3 = x.reshape(B, 1, C * S)          # [B, 1, F]  (F=1024 on lanes)

    # Tiny (K=C=4) token projection runs in XLA so the kernel is fed a
    # lane-contiguous h0 [B, S, D] instead of a lane-sparse [S, 4] token block.
    h0 = jnp.einsum("bcs,cd->bsd", x_cs, params["tok_w"]) + params["tok_b"]

    musig, transformer_output, heads = fused_forward(x_flat3, h0, params, tq=tq)

    musig = musig.reshape(B, 2 * latent)
    mu = musig[:, :latent]
    sigma = musig[:, latent:]

    heads = heads.reshape(B, 5 * head_dim)
    tu = heads[:, 0 * head_dim:1 * head_dim]
    tv = heads[:, 1 * head_dim:2 * head_dim]
    lu = heads[:, 2 * head_dim:3 * head_dim]
    lv = heads[:, 3 * head_dim:4 * head_dim]
    le = heads[:, 4 * head_dim:5 * head_dim]

    return (mu, sigma, transformer_output, tu, tv, lu, lv, le)


# ----------------------------------------------------------------------------
# Main
# ----------------------------------------------------------------------------

if __name__ == "__main__":
    B, C, H, W = 2, 4, 16, 16
    D_MODEL = 32
    VAE_HIDDEN = 64
    LATENT = 16
    HEAD_DIM = 8

    key = jax.random.PRNGKey(0)
    kx, kp = jax.random.split(key)
    x = jax.random.normal(kx, (B, C, H, W), jnp.float32)

    params = init_params(
        kp,
        in_features=C * H * W,
        n_chan=C,
        d_model=D_MODEL,
        vae_hidden=VAE_HIDDEN,
        latent=LATENT,
        head_dim=HEAD_DIM,
    )

    fwd = jax.jit(functools.partial(combined_forward,
                                    latent=LATENT, head_dim=HEAD_DIM, tq=64))
    outs = fwd(x, params)
    outs = jax.block_until_ready(outs)

    # Light sanity checks on shapes / finiteness.
    mu, sigma, t_out, tu, tv, lu, lv, le = outs
    assert mu.shape == (B, LATENT)
    assert sigma.shape == (B, LATENT)
    assert t_out.shape == (B, H * W, D_MODEL)
    for o in (tu, tv, lu, lv, le):
        assert o.shape == (B, HEAD_DIM)
    assert bool(jnp.all(sigma > 0.0))
    for o in outs:
        assert bool(jnp.all(jnp.isfinite(o)))

    print("KERNEL_OK")
</pallas_src>

<mosaic_0001>
module attributes {stable_mosaic.version = 11 : i64} {
  func.func @_fused_kernel(%arg0: i32, %arg1: memref<1x1x1024xf32, #tpu.memory_space<vmem>>, %arg2: memref<1x256x32xf32, #tpu.memory_space<vmem>>, %arg3: memref<1024x64xbf16, #tpu.memory_space<vmem>>, %arg4: memref<1x64xf32, #tpu.memory_space<vmem>>, %arg5: memref<64x32xbf16, #tpu.memory_space<vmem>>, %arg6: memref<1x32xf32, #tpu.memory_space<vmem>>, %arg7: memref<1x32xf32, #tpu.memory_space<vmem>>, %arg8: memref<1x32xf32, #tpu.memory_space<vmem>>, %arg9: memref<32x96xbf16, #tpu.memory_space<vmem>>, %arg10: memref<1x96xf32, #tpu.memory_space<vmem>>, %arg11: memref<32x32xbf16, #tpu.memory_space<vmem>>, %arg12: memref<1x32xf32, #tpu.memory_space<vmem>>, %arg13: memref<1x32xf32, #tpu.memory_space<vmem>>, %arg14: memref<1x32xf32, #tpu.memory_space<vmem>>, %arg15: memref<32x128xbf16, #tpu.memory_space<vmem>>, %arg16: memref<1x128xf32, #tpu.memory_space<vmem>>, %arg17: memref<128x32xbf16, #tpu.memory_space<vmem>>, %arg18: memref<1x32xf32, #tpu.memory_space<vmem>>, %arg19: memref<32x40xbf16, #tpu.memory_space<vmem>>, %arg20: memref<1x40xf32, #tpu.memory_space<vmem>>, %arg21: memref<1x1x32xf32, #tpu.memory_space<vmem>>, %arg22: memref<1x256x32xf32, #tpu.memory_space<vmem>>, %arg23: memref<1x1x40xf32, #tpu.memory_space<vmem>>) attributes {dimension_semantics = [#tpu.dimension_semantics<parallel>], iteration_bounds = array<i64: 2>, scalar_prefetch = 0 : i64, scratch_operands = 0 : i64, tpu.core_type = #tpu.core_type<tc>, window_params = [{transform_indices = @transform_0, window_bounds = array<i64: 1, 1, 1024>}, {transform_indices = @transform_1, window_bounds = array<i64: 1, 256, 32>}, {pipeline_mode = #tpu.pipeline_mode<synchronous>, transform_indices = @transform_2, window_bounds = array<i64: 1024, 64>}, {pipeline_mode = #tpu.pipeline_mode<synchronous>, transform_indices = @transform_3, window_bounds = array<i64: 1, 64>}, {pipeline_mode = #tpu.pipeline_mode<synchronous>, transform_indices = @transform_4, window_bounds = array<i64: 64, 32>}, {pipeline_mode = #tpu.pipeline_mode<synchronous>, transform_indices = @transform_5, window_bounds = array<i64: 1, 32>}, {pipeline_mode = #tpu.pipeline_mode<synchronous>, transform_indices = @transform_6, window_bounds = array<i64: 1, 32>}, {pipeline_mode = #tpu.pipeline_mode<synchronous>, transform_indices = @transform_7, window_bounds = array<i64: 1, 32>}, {pipeline_mode = #tpu.pipeline_mode<synchronous>, transform_indices = @transform_8, window_bounds = array<i64: 32, 96>}, {pipeline_mode = #tpu.pipeline_mode<synchronous>, transform_indices = @transform_9, window_bounds = array<i64: 1, 96>}, {pipeline_mode = #tpu.pipeline_mode<synchronous>, transform_indices = @transform_10, window_bounds = array<i64: 32, 32>}, {pipeline_mode = #tpu.pipeline_mode<synchronous>, transform_indices = @transform_11, window_bounds = array<i64: 1, 32>}, {pipeline_mode = #tpu.pipeline_mode<synchronous>, transform_indices = @transform_12, window_bounds = array<i64: 1, 32>}, {pipeline_mode = #tpu.pipeline_mode<synchronous>, transform_indices = @transform_13, window_bounds = array<i64: 1, 32>}, {pipeline_mode = #tpu.pipeline_mode<synchronous>, transform_indices = @transform_14, window_bounds = array<i64: 32, 128>}, {pipeline_mode = #tpu.pipeline_mode<synchronous>, transform_indices = @transform_15, window_bounds = array<i64: 1, 128>}, {pipeline_mode = #tpu.pipeline_mode<synchronous>, transform_indices = @transform_16, window_bounds = array<i64: 128, 32>}, {pipeline_mode = #tpu.pipeline_mode<synchronous>, transform_indices = @transform_17, window_bounds = array<i64: 1, 32>}, {pipeline_mode = #tpu.pipeline_mode<synchronous>, transform_indices = @transform_18, window_bounds = array<i64: 32, 40>}, {pipeline_mode = #tpu.pipeline_mode<synchronous>, transform_indices = @transform_19, window_bounds = array<i64: 1, 40>}, {transform_indices = @transform_20, window_bounds = array<i64: 1, 1, 32>}, {transform_indices = @transform_21, window_bounds = array<i64: 1, 256, 32>}, {transform_indices = @transform_22, window_bounds = array<i64: 1, 1, 40>}]} {
    %c0 = arith.constant 0 : index
    %c0_0 = arith.constant 0 : index
    %c0_1 = arith.constant 0 : index
    %0 = vector.load %arg1[%c0, %c0_0, %c0_1] : memref<1x1x1024xf32, #tpu.memory_space<vmem>>, vector<1x1x1024xf32>
    %1 = vector.shape_cast %0 : vector<1x1x1024xf32> to vector<1x1024xf32>
    %c0_2 = arith.constant 0 : index
    %c0_3 = arith.constant 0 : index
    %2 = vector.load %arg3[%c0_2, %c0_3] : memref<1024x64xbf16, #tpu.memory_space<vmem>>, vector<1024x64xbf16>
    %c0_4 = arith.constant 0 : index
    %c0_5 = arith.constant 0 : index
    %3 = vector.load %arg4[%c0_4, %c0_5] : memref<1x64xf32, #tpu.memory_space<vmem>>, vector<1x64xf32>
    %4 = arith.truncf %1 : vector<1x1024xf32> to vector<1x1024xbf16>
    %cst = arith.constant dense<0.000000e+00> : vector<1x64xf32>
    %5 = tpu.matmul %4, %2, %cst {dimension_numbers = #tpu.dot_dimension_numbers<[1], [0], [0], [1], [0, 0, 1, 1], [], []>} : vector<1x1024xbf16>, vector<1024x64xbf16>, vector<1x64xf32> -> vector<1x64xf32>
    %6 = arith.addf %5, %3 : vector<1x64xf32>
    %cst_6 = arith.constant 0.000000e+00 : f32
    %7 = vector.broadcast %cst_6 : f32 to vector<1x64xf32>
    %8 = arith.maximumf %6, %7 : vector<1x64xf32>
    %c0_7 = arith.constant 0 : index
    %c0_8 = arith.constant 0 : index
    %9 = vector.load %arg5[%c0_7, %c0_8] : memref<64x32xbf16, #tpu.memory_space<vmem>>, vector<64x32xbf16>
    %c0_9 = arith.constant 0 : index
    %c0_10 = arith.constant 0 : index
    %10 = vector.load %arg6[%c0_9, %c0_10] : memref<1x32xf32, #tpu.memory_space<vmem>>, vector<1x32xf32>
    %11 = arith.truncf %8 : vector<1x64xf32> to vector<1x64xbf16>
    %cst_11 = arith.constant dense<0.000000e+00> : vector<1x32xf32>
    %12 = tpu.matmul %11, %9, %cst_11 {dimension_numbers = #tpu.dot_dimension_numbers<[1], [0], [0], [1], [0, 0, 1, 1], [], []>} : vector<1x64xbf16>, vector<64x32xbf16>, vector<1x32xf32> -> vector<1x32xf32>
    %13 = arith.addf %12, %10 : vector<1x32xf32>
    %14 = tpu.iota {dimensions = array<i32: 1>} : vector<1x32xi32>
    %c16_i32 = arith.constant 16 : i32
    %15 = vector.broadcast %c16_i32 : i32 to vector<1x32xi32>
    %16 = arith.cmpi slt, %14, %15 : vector<1x32xi32>
    %cst_12 = arith.constant 5.000000e-01 : f32
    %17 = vector.broadcast %cst_12 : f32 to vector<1x32xf32>
    %18 = arith.mulf %17, %13 : vector<1x32xf32>
    %19 = math.exp %18 : vector<1x32xf32>
    %20 = arith.select %16, %13, %19 : vector<1x32xi1>, vector<1x32xf32>
    %c0_13 = arith.constant 0 : index
    %c0_14 = arith.constant 0 : index
    %c0_15 = arith.constant 0 : index
    %21 = vector.load %arg21[%c0_13, %c0_14, %c0_15] : memref<1x1x32xf32, #tpu.memory_space<vmem>>, vector<1x1x32xf32>
    %22 = vector.shape_cast %21 : vector<1x1x32xf32> to vector<1x32xf32>
    %23 = vector.shape_cast %20 : vector<1x32xf32> to vector<1x1x32xf32>
    tpu.vector_store %arg21[%c0_13, %c0_14, %c0_15], %23 {strides = array<i32>} : memref<1x1x32xf32, #tpu.memory_space<vmem>>, vector<1x1x32xf32>,
    %c0_16 = arith.constant 0 : index
    %c0_17 = arith.constant 0 : index
    %c0_18 = arith.constant 0 : index
    %24 = vector.load %arg2[%c0_16, %c0_17, %c0_18] : memref<1x256x32xf32, #tpu.memory_space<vmem>>, vector<1x256x32xf32>
    %25 = vector.shape_cast %24 : vector<1x256x32xf32> to vector<256x32xf32>
    %c0_19 = arith.constant 0 : index
    %c0_20 = arith.constant 0 : index
    %26 = vector.load %arg7[%c0_19, %c0_20] : memref<1x32xf32, #tpu.memory_space<vmem>>, vector<1x32xf32>
    %c0_21 = arith.constant 0 : index
    %c0_22 = arith.constant 0 : index
    %27 = vector.load %arg8[%c0_21, %c0_22] : memref<1x32xf32, #tpu.memory_space<vmem>>, vector<1x32xf32>
    %cst_23 = arith.constant dense<0.000000e+00> : vector<256xf32>
    %28 = vector.multi_reduction <add>, %25, %cst_23 [1] : vector<256x32xf32> to vector<256xf32>
    %29 = vector.shape_cast %28 : vector<256xf32> to vector<256x1xf32>
    %cst_24 = arith.constant 3.200000e+01 : f32
    %30 = vector.broadcast %cst_24 : f32 to vector<256x1xf32>
    %31 = arith.divf %29, %30 : vector<256x1xf32>
    %32 = vector.broadcast %31 : vector<256x1xf32> to vector<256x32xf32>
    %33 = arith.subf %25, %32 : vector<256x32xf32>
    %34 = arith.mulf %33, %33 : vector<256x32xf32>
    %cst_25 = arith.constant dense<0.000000e+00> : vector<256xf32>
    %35 = vector.multi_reduction <add>, %34, %cst_25 [1] : vector<256x32xf32> to vector<256xf32>
    %36 = vector.shape_cast %35 : vector<256xf32> to vector<256x1xf32>
    %cst_26 = arith.constant 3.200000e+01 : f32
    %37 = vector.broadcast %cst_26 : f32 to vector<256x1xf32>
    %38 = arith.divf %36, %37 : vector<256x1xf32>
    %39 = vector.broadcast %31 : vector<256x1xf32> to vector<256x32xf32>
    %40 = arith.subf %25, %39 : vector<256x32xf32>
    %cst_27 = arith.constant 9.99999974E-6 : f32
    %41 = vector.broadcast %cst_27 : f32 to vector<256x1xf32>
    %42 = arith.addf %38, %41 : vector<256x1xf32>
    %43 = math.rsqrt %42 : vector<256x1xf32>
    %44 = vector.broadcast %43 : vector<256x1xf32> to vector<256x32xf32>
    %45 = arith.mulf %40, %44 : vector<256x32xf32>
    %46 = vector.broadcast %26 : vector<1x32xf32> to vector<256x32xf32>
    %47 = arith.mulf %45, %46 : vector<256x32xf32>
    %48 = vector.broadcast %27 : vector<1x32xf32> to vector<256x32xf32>
    %49 = arith.addf %47, %48 : vector<256x32xf32>
    %c0_28 = arith.constant 0 : index
    %c0_29 = arith.constant 0 : index
    %50 = vector.load %arg9[%c0_28, %c0_29] : memref<32x96xbf16, #tpu.memory_space<vmem>>, vector<32x96xbf16>
    %c0_30 = arith.constant 0 : index
    %c0_31 = arith.constant 0 : index
    %51 = vector.load %arg10[%c0_30, %c0_31] : memref<1x96xf32, #tpu.memory_space<vmem>>, vector<1x96xf32>
    %52 = arith.truncf %49 : vector<256x32xf32> to vector<256x32xbf16>
    %cst_32 = arith.constant dense<0.000000e+00> : vector<256x96xf32>
    %53 = tpu.matmul %52, %50, %cst_32 {dimension_numbers = #tpu.dot_dimension_numbers<[1], [0], [0], [1], [0, 0, 1, 1], [], []>} : vector<256x32xbf16>, vector<32x96xbf16>, vector<256x96xf32> -> vector<256x96xf32>
    %54 = vector.broadcast %51 : vector<1x96xf32> to vector<256x96xf32>
    %55 = arith.addf %53, %54 : vector<256x96xf32>
    %56 = vector.extract_strided_slice %55 {offsets = [0, 0], sizes = [256, 32], strides = [1, 1]} : vector<256x96xf32> to vector<256x32xf32>
    %57 = vector.extract_strided_slice %55 {offsets = [0, 32], sizes = [256, 32], strides = [1, 1]} : vector<256x96xf32> to vector<256x32xf32>
    %58 = arith.truncf %57 : vector<256x32xf32> to vector<256x32xbf16>
    %59 = vector.extract_strided_slice %55 {offsets = [0, 64], sizes = [256, 32], strides = [1, 1]} : vector<256x96xf32> to vector<256x32xf32>
    %60 = arith.truncf %59 : vector<256x32xf32> to vector<256x32xbf16>
    %61 = vector.extract_strided_slice %56 {offsets = [0, 0], sizes = [64, 32], strides = [1, 1]} : vector<256x32xf32> to vector<64x32xf32>
    %62 = arith.truncf %61 : vector<64x32xf32> to vector<64x32xbf16>
    %cst_33 = arith.constant dense<0.000000e+00> : vector<64x256xf32>
    %63 = tpu.matmul %62, %58, %cst_33 {dimension_numbers = #tpu.dot_dimension_numbers<[1], [1], [0], [0], [0, 0, 1, 0], [], []>} : vector<64x32xbf16>, vector<256x32xbf16>, vector<64x256xf32> -> vector<64x256xf32>
    %cst_34 = arith.constant dense<0xFF800000> : vector<64xf32>
    %64 = vector.multi_reduction <maximumf>, %63, %cst_34 [1] : vector<64x256xf32> to vector<64xf32>
    %65 = vector.shape_cast %64 : vector<64xf32> to vector<64x1xf32>
    %66 = vector.broadcast %65 : vector<64x1xf32> to vector<64x256xf32>
    %67 = arith.subf %63, %66 : vector<64x256xf32>
    %68 = math.exp %67 : vector<64x256xf32>
    %cst_35 = arith.constant dense<0.000000e+00> : vector<64xf32>
    %69 = vector.multi_reduction <add>, %68, %cst_35 [1] : vector<64x256xf32> to vector<64xf32>
    %70 = vector.shape_cast %69 : vector<64xf32> to vector<64x1xf32>
    %71 = tpu.reciprocal %70 {approx = true} : vector<64x1xf32> -> vector<64x1xf32>
    %72 = vector.broadcast %71 : vector<64x1xf32> to vector<64x256xf32>
    %73 = arith.mulf %68, %72 : vector<64x256xf32>
    %74 = arith.truncf %73 : vector<64x256xf32> to vector<64x256xbf16>
    %cst_36 = arith.constant dense<0.000000e+00> : vector<64x32xf32>
    %75 = tpu.matmul %74, %60, %cst_36 {dimension_numbers = #tpu.dot_dimension_numbers<[1], [0], [0], [1], [0, 0, 1, 1], [], []>} : vector<64x256xbf16>, vector<256x32xbf16>, vector<64x32xf32> -> vector<64x32xf32>
    %76 = vector.extract_strided_slice %56 {offsets = [64, 0], sizes = [64, 32], strides = [1, 1]} : vector<256x32xf32> to vector<64x32xf32>
    %77 = arith.truncf %76 : vector<64x32xf32> to vector<64x32xbf16>
    %cst_37 = arith.constant dense<0.000000e+00> : vector<64x256xf32>
    %78 = tpu.matmul %77, %58, %cst_37 {dimension_numbers = #tpu.dot_dimension_numbers<[1], [1], [0], [0], [0, 0, 1, 0], [], []>} : vector<64x32xbf16>, vector<256x32xbf16>, vector<64x256xf32> -> vector<64x256xf32>
    %cst_38 = arith.constant dense<0xFF800000> : vector<64xf32>
    %79 = vector.multi_reduction <maximumf>, %78, %cst_38 [1] : vector<64x256xf32> to vector<64xf32>
    %80 = vector.shape_cast %79 : vector<64xf32> to vector<64x1xf32>
    %81 = vector.broadcast %80 : vector<64x1xf32> to vector<64x256xf32>
    %82 = arith.subf %78, %81 : vector<64x256xf32>
    %83 = math.exp %82 : vector<64x256xf32>
    %cst_39 = arith.constant dense<0.000000e+00> : vector<64xf32>
    %84 = vector.multi_reduction <add>, %83, %cst_39 [1] : vector<64x256xf32> to vector<64xf32>
    %85 = vector.shape_cast %84 : vector<64xf32> to vector<64x1xf32>
    %86 = tpu.reciprocal %85 {approx = true} : vector<64x1xf32> -> vector<64x1xf32>
    %87 = vector.broadcast %86 : vector<64x1xf32> to vector<64x256xf32>
    %88 = arith.mulf %83, %87 : vector<64x256xf32>
    %89 = arith.truncf %88 : vector<64x256xf32> to vector<64x256xbf16>
    %cst_40 = arith.constant dense<0.000000e+00> : vector<64x32xf32>
    %90 = tpu.matmul %89, %60, %cst_40 {dimension_numbers = #tpu.dot_dimension_numbers<[1], [0], [0], [1], [0, 0, 1, 1], [], []>} : vector<64x256xbf16>, vector<256x32xbf16>, vector<64x32xf32> -> vector<64x32xf32>
    %91 = vector.extract_strided_slice %56 {offsets = [128, 0], sizes = [64, 32], strides = [1, 1]} : vector<256x32xf32> to vector<64x32xf32>
    %92 = arith.truncf %91 : vector<64x32xf32> to vector<64x32xbf16>
    %cst_41 = arith.constant dense<0.000000e+00> : vector<64x256xf32>
    %93 = tpu.matmul %92, %58, %cst_41 {dimension_numbers = #tpu.dot_dimension_numbers<[1], [1], [0], [0], [0, 0, 1, 0], [], []>} : vector<64x32xbf16>, vector<256x32xbf16>, vector<64x256xf32> -> vector<64x256xf32>
    %cst_42 = arith.constant dense<0xFF800000> : vector<64xf32>
    %94 = vector.multi_reduction <maximumf>, %93, %cst_42 [1] : vector<64x256xf32> to vector<64xf32>
    %95 = vector.shape_cast %94 : vector<64xf32> to vector<64x1xf32>
    %96 = vector.broadcast %95 : vector<64x1xf32> to vector<64x256xf32>
    %97 = arith.subf %93, %96 : vector<64x256xf32>
    %98 = math.exp %97 : vector<64x256xf32>
    %cst_43 = arith.constant dense<0.000000e+00> : vector<64xf32>
    %99 = vector.multi_reduction <add>, %98, %cst_43 [1] : vector<64x256xf32> to vector<64xf32>
    %100 = vector.shape_cast %99 : vector<64xf32> to vector<64x1xf32>
    %101 = tpu.reciprocal %100 {approx = true} : vector<64x1xf32> -> vector<64x1xf32>
    %102 = vector.broadcast %101 : vector<64x1xf32> to vector<64x256xf32>
    %103 = arith.mulf %98, %102 : vector<64x256xf32>
    %104 = arith.truncf %103 : vector<64x256xf32> to vector<64x256xbf16>
    %cst_44 = arith.constant dense<0.000000e+00> : vector<64x32xf32>
    %105 = tpu.matmul %104, %60, %cst_44 {dimension_numbers = #tpu.dot_dimension_numbers<[1], [0], [0], [1], [0, 0, 1, 1], [], []>} : vector<64x256xbf16>, vector<256x32xbf16>, vector<64x32xf32> -> vector<64x32xf32>
    %106 = vector.extract_strided_slice %56 {offsets = [192, 0], sizes = [64, 32], strides = [1, 1]} : vector<256x32xf32> to vector<64x32xf32>
    %107 = arith.truncf %106 : vector<64x32xf32> to vector<64x32xbf16>
    %cst_45 = arith.constant dense<0.000000e+00> : vector<64x256xf32>
    %108 = tpu.matmul %107, %58, %cst_45 {dimension_numbers = #tpu.dot_dimension_numbers<[1], [1], [0], [0], [0, 0, 1, 0], [], []>} : vector<64x32xbf16>, vector<256x32xbf16>, vector<64x256xf32> -> vector<64x256xf32>
    %cst_46 = arith.constant dense<0xFF800000> : vector<64xf32>
    %109 = vector.multi_reduction <maximumf>, %108, %cst_46 [1] : vector<64x256xf32> to vector<64xf32>
    %110 = vector.shape_cast %109 : vector<64xf32> to vector<64x1xf32>
    %111 = vector.broadcast %110 : vector<64x1xf32> to vector<64x256xf32>
    %112 = arith.subf %108, %111 : vector<64x256xf32>
    %113 = math.exp %112 : vector<64x256xf32>
    %cst_47 = arith.constant dense<0.000000e+00> : vector<64xf32>
    %114 = vector.multi_reduction <add>, %113, %cst_47 [1] : vector<64x256xf32> to vector<64xf32>
    %115 = vector.shape_cast %114 : vector<64xf32> to vector<64x1xf32>
    %116 = tpu.reciprocal %115 {approx = true} : vector<64x1xf32> -> vector<64x1xf32>
    %117 = vector.broadcast %116 : vector<64x1xf32> to vector<64x256xf32>
    %118 = arith.mulf %113, %117 : vector<64x256xf32>
    %119 = arith.truncf %118 : vector<64x256xf32> to vector<64x256xbf16>
    %cst_48 = arith.constant dense<0.000000e+00> : vector<64x32xf32>
    %120 = tpu.matmul %119, %60, %cst_48 {dimension_numbers = #tpu.dot_dimension_numbers<[1], [0], [0], [1], [0, 0, 1, 1], [], []>} : vector<64x256xbf16>, vector<256x32xbf16>, vector<64x32xf32> -> vector<64x32xf32>
    %121 = tpu.concatenate %75, %90, %105, %120 in 0 : vector<64x32xf32>, vector<64x32xf32>, vector<64x32xf32>, vector<64x32xf32> -> vector<256x32xf32>
    %c0_49 = arith.constant 0 : index
    %c0_50 = arith.constant 0 : index
    %122 = vector.load %arg11[%c0_49, %c0_50] : memref<32x32xbf16, #tpu.memory_space<vmem>>, vector<32x32xbf16>
    %c0_51 = arith.constant 0 : index
    %c0_52 = arith.constant 0 : index
    %123 = vector.load %arg12[%c0_51, %c0_52] : memref<1x32xf32, #tpu.memory_space<vmem>>, vector<1x32xf32>
    %124 = arith.truncf %121 : vector<256x32xf32> to vector<256x32xbf16>
    %cst_53 = arith.constant dense<0.000000e+00> : vector<256x32xf32>
    %125 = tpu.matmul %124, %122, %cst_53 {dimension_numbers = #tpu.dot_dimension_numbers<[1], [0], [0], [1], [0, 0, 1, 1], [], []>} : vector<256x32xbf16>, vector<32x32xbf16>, vector<256x32xf32> -> vector<256x32xf32>
    %126 = vector.broadcast %123 : vector<1x32xf32> to vector<256x32xf32>
    %127 = arith.addf %125, %126 : vector<256x32xf32>
    %128 = arith.addf %25, %127 : vector<256x32xf32>
    %c0_54 = arith.constant 0 : index
    %c0_55 = arith.constant 0 : index
    %129 = vector.load %arg13[%c0_54, %c0_55] : memref<1x32xf32, #tpu.memory_space<vmem>>, vector<1x32xf32>
    %c0_56 = arith.constant 0 : index
    %c0_57 = arith.constant 0 : index
    %130 = vector.load %arg14[%c0_56, %c0_57] : memref<1x32xf32, #tpu.memory_space<vmem>>, vector<1x32xf32>
    %cst_58 = arith.constant dense<0.000000e+00> : vector<256xf32>
    %131 = vector.multi_reduction <add>, %128, %cst_58 [1] : vector<256x32xf32> to vector<256xf32>
    %132 = vector.shape_cast %131 : vector<256xf32> to vector<256x1xf32>
    %cst_59 = arith.constant 3.200000e+01 : f32
    %133 = vector.broadcast %cst_59 : f32 to vector<256x1xf32>
    %134 = arith.divf %132, %133 : vector<256x1xf32>
    %135 = vector.broadcast %134 : vector<256x1xf32> to vector<256x32xf32>
    %136 = arith.subf %128, %135 : vector<256x32xf32>
    %137 = arith.mulf %136, %136 : vector<256x32xf32>
    %cst_60 = arith.constant dense<0.000000e+00> : vector<256xf32>
    %138 = vector.multi_reduction <add>, %137, %cst_60 [1] : vector<256x32xf32> to vector<256xf32>
    %139 = vector.shape_cast %138 : vector<256xf32> to vector<256x1xf32>
    %cst_61 = arith.constant 3.200000e+01 : f32
    %140 = vector.broadcast %cst_61 : f32 to vector<256x1xf32>
    %141 = arith.divf %139, %140 : vector<256x1xf32>
    %142 = vector.broadcast %134 : vector<256x1xf32> to vector<256x32xf32>
    %143 = arith.subf %128, %142 : vector<256x32xf32>
    %cst_62 = arith.constant 9.99999974E-6 : f32
    %144 = vector.broadcast %cst_62 : f32 to vector<256x1xf32>
    %145 = arith.addf %141, %144 : vector<256x1xf32>
    %146 = math.rsqrt %145 : vector<256x1xf32>
    %147 = vector.broadcast %146 : vector<256x1xf32> to vector<256x32xf32>
    %148 = arith.mulf %143, %147 : vector<256x32xf32>
    %149 = vector.broadcast %129 : vector<1x32xf32> to vector<256x32xf32>
    %150 = arith.mulf %148, %149 : vector<256x32xf32>
    %151 = vector.broadcast %130 : vector<1x32xf32> to vector<256x32xf32>
    %152 = arith.addf %150, %151 : vector<256x32xf32>
    %c0_63 = arith.constant 0 : index
    %c0_64 = arith.constant 0 : index
    %153 = vector.load %arg15[%c0_63, %c0_64] : memref<32x128xbf16, #tpu.memory_space<vmem>>, vector<32x128xbf16>
    %c0_65 = arith.constant 0 : index
    %c0_66 = arith.constant 0 : index
    %154 = vector.load %arg16[%c0_65, %c0_66] : memref<1x128xf32, #tpu.memory_space<vmem>>, vector<1x128xf32>
    %155 = arith.truncf %152 : vector<256x32xf32> to vector<256x32xbf16>
    %cst_67 = arith.constant dense<0.000000e+00> : vector<256x128xf32>
    %156 = tpu.matmul %155, %153, %cst_67 {dimension_numbers = #tpu.dot_dimension_numbers<[1], [0], [0], [1], [0, 0, 1, 1], [], []>} : vector<256x32xbf16>, vector<32x128xbf16>, vector<256x128xf32> -> vector<256x128xf32>
    %157 = vector.broadcast %154 : vector<1x128xf32> to vector<256x128xf32>
    %158 = arith.addf %156, %157 : vector<256x128xf32>
    %159 = arith.mulf %158, %158 : vector<256x128xf32>
    %160 = arith.mulf %158, %159 : vector<256x128xf32>
    %cst_68 = arith.constant 4.471500e-02 : f32
    %161 = vector.broadcast %cst_68 : f32 to vector<256x128xf32>
    %162 = arith.mulf %161, %160 : vector<256x128xf32>
    %163 = arith.addf %158, %162 : vector<256x128xf32>
    %cst_69 = arith.constant 0.797884583 : f32
    %164 = vector.broadcast %cst_69 : f32 to vector<256x128xf32>
    %165 = arith.mulf %164, %163 : vector<256x128xf32>
    %166 = math.tanh %165 : vector<256x128xf32>
    %cst_70 = arith.constant 1.000000e+00 : f32
    %167 = vector.broadcast %cst_70 : f32 to vector<256x128xf32>
    %168 = arith.addf %167, %166 : vector<256x128xf32>
    %cst_71 = arith.constant 5.000000e-01 : f32
    %169 = vector.broadcast %cst_71 : f32 to vector<256x128xf32>
    %170 = arith.mulf %169, %168 : vector<256x128xf32>
    %171 = arith.mulf %158, %170 : vector<256x128xf32>
    %c0_72 = arith.constant 0 : index
    %c0_73 = arith.constant 0 : index
    %172 = vector.load %arg17[%c0_72, %c0_73] : memref<128x32xbf16, #tpu.memory_space<vmem>>, vector<128x32xbf16>
    %c0_74 = arith.constant 0 : index
    %c0_75 = arith.constant 0 : index
    %173 = vector.load %arg18[%c0_74, %c0_75] : memref<1x32xf32, #tpu.memory_space<vmem>>, vector<1x32xf32>
    %174 = arith.truncf %171 : vector<256x128xf32> to vector<256x128xbf16>
    %cst_76 = arith.constant dense<0.000000e+00> : vector<256x32xf32>
    %175 = tpu.matmul %174, %172, %cst_76 {dimension_numbers = #tpu.dot_dimension_numbers<[1], [0], [0], [1], [0, 0, 1, 1], [], []>} : vector<256x128xbf16>, vector<128x32xbf16>, vector<256x32xf32> -> vector<256x32xf32>
    %176 = vector.broadcast %173 : vector<1x32xf32> to vector<256x32xf32>
    %177 = arith.addf %175, %176 : vector<256x32xf32>
    %178 = arith.addf %128, %177 : vector<256x32xf32>
    %c0_77 = arith.constant 0 : index
    %c0_78 = arith.constant 0 : index
    %c0_79 = arith.constant 0 : index
    %179 = vector.load %arg22[%c0_77, %c0_78, %c0_79] : memref<1x256x32xf32, #tpu.memory_space<vmem>>, vector<1x256x32xf32>
    %180 = vector.shape_cast %179 : vector<1x256x32xf32> to vector<256x32xf32>
    %181 = vector.shape_cast %178 : vector<256x32xf32> to vector<1x256x32xf32>
    tpu.vector_store %arg22[%c0_77, %c0_78, %c0_79], %181 {strides = array<i32>} : memref<1x256x32xf32, #tpu.memory_space<vmem>>, vector<1x256x32xf32>,
    %cst_80 = arith.constant dense<0.000000e+00> : vector<32xf32>
    %182 = vector.multi_reduction <add>, %178, %cst_80 [0] : vector<256x32xf32> to vector<32xf32>
    %183 = vector.shape_cast %182 : vector<32xf32> to vector<1x32xf32>
    %cst_81 = arith.constant 2.560000e+02 : f32
    %184 = vector.broadcast %cst_81 : f32 to vector<1x32xf32>
    %185 = arith.divf %183, %184 : vector<1x32xf32>
    %c0_82 = arith.constant 0 : index
    %c0_83 = arith.constant 0 : index
    %186 = vector.load %arg19[%c0_82, %c0_83] : memref<32x40xbf16, #tpu.memory_space<vmem>>, vector<32x40xbf16>
    %c0_84 = arith.constant 0 : index
    %c0_85 = arith.constant 0 : index
    %187 = vector.load %arg20[%c0_84, %c0_85] : memref<1x40xf32, #tpu.memory_space<vmem>>, vector<1x40xf32>
    %188 = arith.truncf %185 : vector<1x32xf32> to vector<1x32xbf16>
    %cst_86 = arith.constant dense<0.000000e+00> : vector<1x40xf32>
    %189 = tpu.matmul %188, %186, %cst_86 {dimension_numbers = #tpu.dot_dimension_numbers<[1], [0], [0], [1], [0, 0, 1, 1], [], []>} : vector<1x32xbf16>, vector<32x40xbf16>, vector<1x40xf32> -> vector<1x40xf32>
    %190 = arith.addf %189, %187 : vector<1x40xf32>
    %c0_87 = arith.constant 0 : index
    %c0_88 = arith.constant 0 : index
    %c0_89 = arith.constant 0 : index
    %191 = vector.load %arg23[%c0_87, %c0_88, %c0_89] : memref<1x1x40xf32, #tpu.memory_space<vmem>>, vector<1x1x40xf32>
    %192 = vector.shape_cast %191 : vector<1x1x40xf32> to vector<1x40xf32>
    %193 = vector.shape_cast %190 : vector<1x40xf32> to vector<1x1x40xf32>
    tpu.vector_store %arg23[%c0_87, %c0_88, %c0_89], %193 {strides = array<i32>} : memref<1x1x40xf32, #tpu.memory_space<vmem>>, vector<1x1x40xf32>,
    return
  }
  func.func @transform_0(%arg0: i32) -> (i32, i32, i32) {
    %c0_i32 = arith.constant 0 : i32
    %c0_i32_0 = arith.constant 0 : i32
    %c0_i32_1 = arith.constant 0 : i32
    return %arg0, %c0_i32, %c0_i32_0 : i32, i32, i32
  }
  func.func @transform_1(%arg0: i32) -> (i32, i32, i32) {
    %c0_i32 = arith.constant 0 : i32
    %c0_i32_0 = arith.constant 0 : i32
    %c0_i32_1 = arith.constant 0 : i32
    return %arg0, %c0_i32, %c0_i32_0 : i32, i32, i32
  }
  func.func @transform_2(%arg0: i32) -> (i32, i32) {
    %c0_i32 = arith.constant 0 : i32
    %c0_i32_0 = arith.constant 0 : i32
    %c0_i32_1 = arith.constant 0 : i32
    return %c0_i32, %c0_i32_0 : i32, i32
  }
  func.func @transform_3(%arg0: i32) -> (i32, i32) {
    %c0_i32 = arith.constant 0 : i32
    %c0_i32_0 = arith.constant 0 : i32
    %c0_i32_1 = arith.constant 0 : i32
    return %c0_i32, %c0_i32_0 : i32, i32
  }
  func.func @transform_4(%arg0: i32) -> (i32, i32) {
    %c0_i32 = arith.constant 0 : i32
    %c0_i32_0 = arith.constant 0 : i32
    %c0_i32_1 = arith.constant 0 : i32
    return %c0_i32, %c0_i32_0 : i32, i32
  }
  func.func @transform_5(%arg0: i32) -> (i32, i32) {
    %c0_i32 = arith.constant 0 : i32
    %c0_i32_0 = arith.constant 0 : i32
    %c0_i32_1 = arith.constant 0 : i32
    return %c0_i32, %c0_i32_0 : i32, i32
  }
  func.func @transform_6(%arg0: i32) -> (i32, i32) {
    %c0_i32 = arith.constant 0 : i32
    %c0_i32_0 = arith.constant 0 : i32
    %c0_i32_1 = arith.constant 0 : i32
    return %c0_i32, %c0_i32_0 : i32, i32
  }
  func.func @transform_7(%arg0: i32) -> (i32, i32) {
    %c0_i32 = arith.constant 0 : i32
    %c0_i32_0 = arith.constant 0 : i32
    %c0_i32_1 = arith.constant 0 : i32
    return %c0_i32, %c0_i32_0 : i32, i32
  }
  func.func @transform_8(%arg0: i32) -> (i32, i32) {
    %c0_i32 = arith.constant 0 : i32
    %c0_i32_0 = arith.constant 0 : i32
    %c0_i32_1 = arith.constant 0 : i32
    return %c0_i32, %c0_i32_0 : i32, i32
  }
  func.func @transform_9(%arg0: i32) -> (i32, i32) {
    %c0_i32 = arith.constant 0 : i32
    %c0_i32_0 = arith.constant 0 : i32
    %c0_i32_1 = arith.constant 0 : i32
    return %c0_i32, %c0_i32_0 : i32, i32
  }
  func.func @transform_10(%arg0: i32) -> (i32, i32) {
    %c0_i32 = arith.constant 0 : i32
    %c0_i32_0 = arith.constant 0 : i32
    %c0_i32_1 = arith.constant 0 : i32
    return %c0_i32, %c0_i32_0 : i32, i32
  }
  func.func @transform_11(%arg0: i32) -> (i32, i32) {
    %c0_i32 = arith.constant 0 : i32
    %c0_i32_0 = arith.constant 0 : i32
    %c0_i32_1 = arith.constant 0 : i32
    return %c0_i32, %c0_i32_0 : i32, i32
  }
  func.func @transform_12(%arg0: i32) -> (i32, i32) {
    %c0_i32 = arith.constant 0 : i32
    %c0_i32_0 = arith.constant 0 : i32
    %c0_i32_1 = arith.constant 0 : i32
    return %c0_i32, %c0_i32_0 : i32, i32
  }
  func.func @transform_13(%arg0: i32) -> (i32, i32) {
    %c0_i32 = arith.constant 0 : i32
    %c0_i32_0 = arith.constant 0 : i32
    %c0_i32_1 = arith.constant 0 : i32
    return %c0_i32, %c0_i32_0 : i32, i32
  }
  func.func @transform_14(%arg0: i32) -> (i32, i32) {
    %c0_i32 = arith.constant 0 : i32
    %c0_i32_0 = arith.constant 0 : i32
    %c0_i32_1 = arith.constant 0 : i32
    return %c0_i32, %c0_i32_0 : i32, i32
  }
  func.func @transform_15(%arg0: i32) -> (i32, i32) {
    %c0_i32 = arith.constant 0 : i32
    %c0_i32_0 = arith.constant 0 : i32
    %c0_i32_1 = arith.constant 0 : i32
    return %c0_i32, %c0_i32_0 : i32, i32
  }
  func.func @transform_16(%arg0: i32) -> (i32, i32) {
    %c0_i32 = arith.constant 0 : i32
    %c0_i32_0 = arith.constant 0 : i32
    %c0_i32_1 = arith.constant 0 : i32
    return %c0_i32, %c0_i32_0 : i32, i32
  }
  func.func @transform_17(%arg0: i32) -> (i32, i32) {
    %c0_i32 = arith.constant 0 : i32
    %c0_i32_0 = arith.constant 0 : i32
    %c0_i32_1 = arith.constant 0 : i32
    return %c0_i32, %c0_i32_0 : i32, i32
  }
  func.func @transform_18(%arg0: i32) -> (i32, i32) {
    %c0_i32 = arith.constant 0 : i32
    %c0_i32_0 = arith.constant 0 : i32
    %c0_i32_1 = arith.constant 0 : i32
    return %c0_i32, %c0_i32_0 : i32, i32
  }
  func.func @transform_19(%arg0: i32) -> (i32, i32) {
    %c0_i32 = arith.constant 0 : i32
    %c0_i32_0 = arith.constant 0 : i32
    %c0_i32_1 = arith.constant 0 : i32
    return %c0_i32, %c0_i32_0 : i32, i32
  }
  func.func @transform_20(%arg0: i32) -> (i32, i32, i32) {
    %c0_i32 = arith.constant 0 : i32
    %c0_i32_0 = arith.constant 0 : i32
    %c0_i32_1 = arith.constant 0 : i32
    return %arg0, %c0_i32, %c0_i32_0 : i32, i32, i32
  }
  func.func @transform_21(%arg0: i32) -> (i32, i32, i32) {
    %c0_i32 = arith.constant 0 : i32
    %c0_i32_0 = arith.constant 0 : i32
    %c0_i32_1 = arith.constant 0 : i32
    return %arg0, %c0_i32, %c0_i32_0 : i32, i32, i32
  }
  func.func @transform_22(%arg0: i32) -> (i32, i32, i32) {
    %c0_i32 = arith.constant 0 : i32
    %c0_i32_0 = arith.constant 0 : i32
    %c0_i32_1 = arith.constant 0 : i32
    return %arg0, %c0_i32, %c0_i32_0 : i32, i32, i32
  }
}

</mosaic_0001>

<bundles_post_ra>
// kernel: combined_forward.1
= control target key start
LH: loop header
LB: loop body
LE: loop exit
PB: predicated region body
PF: predicated region fallthrough
CT: control target
= control target key end

     0   :  { %s10053_s0 = inlined_call_operand.vmem [shape: f32[2,1,1024], index: 0, kind: input, shape index: {}]   ;;  %s10054_s1 = inlined_call_operand.vmem [shape: f32[2,256,32], index: 1, kind: input, shape index: {}]   ;;  %s10055_s2 = inlined_call_operand.vmem [shape: bf16[1024,64], index: 2, kind: input, shape index: {}]   ;;  %s10056_s3 = inlined_call_operand.vmem [shape: f32[1,64], index: 3, kind: input, shape index: {}]   ;;  %s10057_s4 = inlined_call_operand.vmem [shape: bf16[64,32], index: 4, kind: input, shape index: {}]   ;;  %s10058_s5 = inlined_call_operand.vmem [shape: f32[1,32], index: 5, kind: input, shape index: {}]   ;;  %s10059_s6 = inlined_call_operand.vmem [shape: f32[1,32], index: 6, kind: input, shape index: {}]   ;;  %s10060_s7 = inlined_call_operand.vmem [shape: f32[1,32], index: 7, kind: input, shape index: {}]   ;;  %s10061_s8 = inlined_call_operand.vmem [shape: bf16[32,96], index: 8, kind: input, shape index: {}]   ;;  %s10062_s9 = inlined_call_operand.vmem [shape: f32[1,96], index: 9, kind: input, shape index: {}]   ;;  %s10063_s10 = inlined_call_operand.vmem [shape: bf16[32,32], index: 10, kind: input, shape index: {}]   ;;  %s10064_s11 = inlined_call_operand.vmem [shape: f32[1,32], index: 11, kind: input, shape index: {}]   ;;  %s10065_s12 = inlined_call_operand.vmem [shape: f32[1,32], index: 12, kind: input, shape index: {}]   ;;  %s10066_s13 = inlined_call_operand.vmem [shape: f32[1,32], index: 13, kind: input, shape index: {}]   ;;  %s10067_s14 = inlined_call_operand.vmem [shape: bf16[32,128], index: 14, kind: input, shape index: {}]   ;;  %s10068_s15 = inlined_call_operand.vmem [shape: f32[1,128], index: 15, kind: input, shape index: {}]   ;;  %s10069_s16 = inlined_call_operand.vmem [shape: bf16[128,32], index: 16, kind: input, shape index: {}]   ;;  %s10070_s17 = inlined_call_operand.vmem [shape: f32[1,32], index: 17, kind: input, shape index: {}]   ;;  %s10071_s18 = inlined_call_operand.vmem [shape: bf16[32,40], index: 18, kind: input, shape index: {}]   ;;  %s10072_s19 = inlined_call_operand.vmem [shape: f32[1,40], index: 19, kind: input, shape index: {}]   ;;  %s10073_s20 = inlined_call_operand.vmem [shape: f32[2,1,32], index: 20, kind: output, shape index: {0}]   ;;  %s10074_s21 = inlined_call_operand.vmem [shape: f32[2,256,32], index: 21, kind: output, shape index: {1}]   ;;  %s10075_s22 = inlined_call_operand.vmem [shape: f32[2,1,40], index: 22, kind: output, shape index: {2}]  }
   0x1   :  { %10097 = sst [smem:[#allocation15_spill]] %s10053_s0 }
   0x2   :  { %10098 = sst [smem:[#allocation16_spill]] %s10054_s1 }
   0x3   :  { %10099 = sst [smem:[#allocation17_spill]] %s10055_s2 }
   0x4   :  { %10100 = sst [smem:[#allocation18_spill]] %s10056_s3  ;;  %s6601_s3 = smov 0  }
   0x5   :  { %10101 = sst [smem:[#allocation19_spill]] %s10057_s4 }
   0x6   :  { %10102 = sst [smem:[#allocation20_spill]] %s10058_s5 }
   0x7   :  { %10103 = sst [smem:[#allocation21_spill]] %s10059_s6 }
   0x8 LB: > { %s5505_s28 = sadd.s32 4294967295, %s6480_s3   ;;  %p5509_p0 = scmp.ge.s32.totalorder %s6480_s3, 1  ;;  %s6480_s3 = sphi %s6601_s3, %s33_s3  }
   0x9   : > { %p626_p1 = scmp.lt.s32.totalorder %s6480_s3, 3 }
   0xb   : > { %p627_p2 = pnand %p5509_p0, %p626_p1 }
   0xd   : > { %630 = sbr.rel (%p627_p2) target bundleno = 3858 (0xf12), region = 100 }
  0x12   : > { %p698_p3 = scmp.lt.s32.totalorder %s5505_s28, 1  ;;  %vm1457_vm0 = vcmask 261120   ;;  %s10104_s0 = sld [smem:[#allocation16_spill]]  ;;  %v6482_v14 = vmov 32.0  }
  0x13   : > { %6041 = vrcp.f32 %v6482_v14  ;;  %s10106_s24 = sld [smem:[#allocation17_spill]]  ;;  %s6484_s5 = smov 64  }
  0x14   : > { %s10211_s28 = smov (!%p698_p3, %s5505_s28), 1  ;;  %s10107_s27 = sld [smem:[#allocation15_spill]] }
  0x15   : > { %s10079_s29 = sshll.u32 %s10211_s28, 8  ;;  %s5510_s6 = sshll.u32 %s10211_s28, 3 }
  0x16   : > { %s10110_s2 = sld [smem:[#allocation21_spill]]  ;;  %s709_s1 = scalar_lea.vmem %s10073_s20, %s10211_s28 }
  0x17   : > { %s10140_s25 = sld [smem:[#allocation19_spill]] }
  0x18   : > { %s6617_s23 = scalar_lea.vmem %s10104_s0, %s10079_s29  ;;  %s6483_s0 = smov 96  }
  0x19   : > { %v1425_v0 = vld [vmem:[%s6617_s23 + $0x10] sm:$0xff]  ;;  %v1423_v1 = vld [vmem:[%s6617_s23] sm:$0xff]  ;;  %v1426_v6 = vld [vmem:[%s6617_s23 + $0x18] sm:$0xff]  ;;  %v6042_v15 = vpop.eup %6041  ;;  %s10139_s29 = sld [smem:[#allocation18_spill]] }
  0x1a   : > { %v1464_v2 = vsel %vm1457_vm0, %v1425_v0, 0.0  ;;  %v1458_v3 = vsel %vm1457_vm0, %v1423_v1, 0.0  ;;  %v1427_v4 = vld [vmem:[%s6617_s23 + $0x20] sm:$0xff]  ;;  %v1424_v7 = vld [vmem:[%s6617_s23 + $0x8] sm:$0xff]  ;;  %v1467_v9 = vsel %vm1457_vm0, %v1426_v6, 0.0  ;;  %v1429_v12 = vld [vmem:[%s6617_s23 + $0x30] sm:$0xff]  ;;  %vm1559_vm1 = vweird.f32 %v6042_v15  ;;  %s6742_s30 = scalar_lea.vmem %s10107_s27, %s5510_s6  ;;  %s717_s27 = scalar_lea.vmem %s10075_s22, %s10211_s28 }
  0x1b   : > { %1465 = vadd.xlane.f32.xlu1 %v1464_v2  ;;  %1459 = vadd.xlane.f32.xlu0 %v1458_v3  ;;  %v1470_v5 = vsel %vm1457_vm0, %v1427_v4, 0.0  ;;  %v1428_v8 = vld [vmem:[%s6617_s23 + $0x28] sm:$0xff]  ;;  %v1461_v10 = vsel %vm1457_vm0, %v1424_v7, 0.0  ;;  %v1476_v13 = vsel %vm1457_vm0, %v1429_v12, 0.0  ;;  %v1555_v16 = vmul.f32 32.0, %v6042_v15  ;;  %v6646_v34 = vld [vmem:[%s6617_s23 + $0x38] sm:$0xff] }
  0x1c   : > { %1471 = vadd.xlane.f32.xlu2 %v1470_v5  ;;  %v1473_v11 = vsel %vm1457_vm0, %v1428_v8, 0.0  ;;  %v1479_v40 = vsel %vm1457_vm0, %v6646_v34, 0.0  ;;  %v6668_v47 = vld [vmem:[%s6617_s23 + $0x40] sm:$0xff]  ;;  %v5984_v54 = vld [vmem:[%s10106_s24 + $0x178] sm:$0xff]  ;;  %v5983_v58 = vld [vmem:[%s10106_s24 + $0x170] sm:$0xff]  ;;  %s10148_s26 = sld [smem:[#allocation20_spill]] }
  0x1d   : > { %v1556_v17 = vsub.f32 1.0, %v1555_v16  ;;  %v1482_v51 = vsel %vm1457_vm0, %v6668_v47, 0.0  ;;  %v6685_v57 = vld [vmem:[%s6617_s23 + $0x58] sm:$0xff]  ;;  %1323 = vmatpush.bf16.msra.mxu1 %v5984_v54  ;;  %v6691_v59 = vld [vmem:[%s6617_s23 + $0x48] sm:$0xff]  ;;  %v6706_v2 = vld [vmem:[%s6617_s23 + $0x60] sm:$0xff]  ;;  %s10192_s6 = sshll.u32 %s10211_s28, 8 }
  0x1e   : > { %v1491_v61 = vsel %vm1457_vm0, %v6685_v57, 0.0  ;;  %v1485_v63 = vsel %vm1457_vm0, %v6691_v59, 0.0  ;;  %v6709_v3 = vld [vmem:[%s6617_s23 + $0x50] sm:$0xff]  ;;  %v5978_v14 = vld [vmem:[%s10106_s24 + $0x148] sm:$0xff]  ;;  %v6748_v16 = vld [vmem:[%s6742_s30] sm:$0xff]  ;;  %s9635_s4 = scalar_lea.vmem %s10074_s21, %s10192_s6 }
  0x1f   : > { %v1557_v18 = vmul.f32 %v6042_v15, %v1556_v17  ;;  %v855_v17 = vperm.slane %v6748_v16, 5 }
  0x21   : > { %v1558_v19 = vadd.f32 %v6042_v15, %v1557_v18  ;;  %1324 = vmatpush.bf16.msra.mxu1 %v5983_v58  ;;  %v871_v18 = vpack.c.bf16 %v855_v17, %v855_v17 }
  0x23   : > { %1468 = vadd.xlane.f32.xlu1 %v1467_v9  ;;  %1462 = vadd.xlane.f32.xlu0 %v1461_v10  ;;  %v6633_v20 = vsel %vm1559_vm1, %v6042_v15, %v1558_v19  ;;  %v6722_v9 = vld [vmem:[%s6617_s23 + $0x70] sm:$0xff]  ;;  %v5977_v15 = vld [vmem:[%s10106_s24 + $0x140] sm:$0xff] }
  0x24   : > { %1474 = vadd.xlane.f32.xlu2 %v1473_v11  ;;  %10105 = vst [vmem:[#allocation2_spill] sm:$0xff] %v6633_v20  ;;  %v1500_v10 = vsel %vm1457_vm0, %v6722_v9, 0.0  ;;  %v5981_v11 = vld [vmem:[%s10106_s24 + $0x160] sm:$0xff] }
  0x2c   : > { %1477 = vadd.xlane.f32.xlu2 %v1476_v13  ;;  %v5979_v13 = vld [vmem:[%s10106_s24 + $0x150] sm:$0xff] }
  0x8e   : > { %v1466_v21 = vpop.xlane.xlu1 %1465  ;;  %v1460_v22 = vpop.xlane.xlu0 %1459 }
  0x8f   : > { %v1561_v23 = vmul.f32 %v6633_v20, %v1460_v22  ;;  %v1472_v24 = vpop.xlane.xlu2 %1471  ;;  %v1563_v33 = vmul.f32 %v6633_v20, %v1466_v21  ;;  %v6006_v21 = vld [vmem:[%s10061_s8 + $0x8] sm:$0xff] }
  0x90   : > { %v1565_v32 = vmul.f32 %v6633_v20, %v1472_v24  ;;  %v6005_v24 = vld [vmem:[%s10061_s8] sm:$0xff] }
  0x91   : > { %v6636_v25 = vsub.f32 %v1423_v1, %v1561_v23  ;;  %v6660_v42 = vsub.f32 %v1425_v0, %v1563_v33  ;;  %v5982_v0 = vld [vmem:[%s10106_s24 + $0x168] sm:$0xff] }
  0x92   : > { %v6652_v38 = vsub.f32 %v1427_v4, %v1565_v32  ;;  %1325 = vmatpush.bf16.msra.mxu1 %v5982_v0  ;;  %v1494_v4 = vsel %vm1457_vm0, %v6706_v2, 0.0 }
  0x93   : > { %v1625_v26 = vmul.f32 %v6636_v25, %v6636_v25  ;;  %v1627_v48 = vmul.f32 %v6660_v42, %v6660_v42 }
  0x94   : > { %v1629_v46 = vmul.f32 %v6652_v38, %v6652_v38 }
  0x95   : > { %v1657_v27 = vsel %vm1457_vm0, %v1625_v26, 0.0  ;;  %v1663_v52 = vsel %vm1457_vm0, %v1627_v48, 0.0 }
  0x96   : > { %v1469_v28 = vpop.xlane.xlu1 %1468  ;;  %1658 = vadd.xlane.f32.xlu0 %v1657_v27  ;;  %v1463_v29 = vpop.xlane.xlu0 %1462  ;;  %v1669_v50 = vsel %vm1457_vm0, %v1629_v46, 0.0  ;;  %1326 = vmatpush.bf16.msra.mxu1 %v5981_v11 }
  0x97   : > { %v1564_v30 = vmul.f32 %v6633_v20, %v1469_v28  ;;  %v1562_v31 = vmul.f32 %v6633_v20, %v1463_v29  ;;  %v1475_v37 = vpop.xlane.xlu2 %1474 }
  0x98   : > { %v1566_v45 = vmul.f32 %v6633_v20, %v1475_v37 }
  0x99   : > { %v6648_v35 = vsub.f32 %v1426_v6, %v1564_v30  ;;  %v6650_v36 = vsub.f32 %v1424_v7, %v1562_v31  ;;  %v1488_v6 = vsel %vm1457_vm0, %v6709_v3, 0.0  ;;  %v6717_v7 = vld [vmem:[%s6617_s23 + $0x68] sm:$0xff] }
  0x9a   : > { %v6672_v49 = vsub.f32 %v1428_v8, %v1566_v45  ;;  %v1497_v8 = vsel %vm1457_vm0, %v6717_v7, 0.0 }
  0x9b   : > { %v1628_v39 = vmul.f32 %v6648_v35, %v6648_v35  ;;  %v1626_v41 = vmul.f32 %v6650_v36, %v6650_v36 }
  0x9c   : > { %v1630_v56 = vmul.f32 %v6672_v49, %v6672_v49 }
  0x9d   : > { %v1666_v43 = vsel %vm1457_vm0, %v1628_v39, 0.0  ;;  %v1660_v44 = vsel %vm1457_vm0, %v1626_v41, 0.0 }
  0x9e   : > { %1667 = vadd.xlane.f32.xlu2 %v1666_v43  ;;  %1480 = vadd.xlane.f32.xlu0 %v1479_v40  ;;  %v1672_v62 = vsel %vm1457_vm0, %v1630_v56, 0.0 }
  0x9f   : > { %1661 = vadd.xlane.f32.xlu1 %v1660_v44  ;;  %v1478_v53 = vpop.xlane.xlu2 %1477 }
  0xa0   : > { %v1567_v55 = vmul.f32 %v6633_v20, %v1478_v53 }
  0xa2   : > { %v6693_v60 = vsub.f32 %v1429_v12, %v1567_v55  ;;  %v5980_v12 = vld [vmem:[%s10106_s24 + $0x158] sm:$0xff] }
  0xa3   : > { %1327 = vmatpush.bf16.msra.mxu1 %v5980_v12 }
  0xa4   : > { %v1631_v1 = vmul.f32 %v6693_v60, %v6693_v60 }
  0xa6   : > { %1670 = vadd.xlane.f32.xlu2 %v1669_v50  ;;  %1483 = vadd.xlane.f32.xlu0 %v1482_v51  ;;  %v1675_v5 = vsel %vm1457_vm0, %v1631_v1, 0.0 }
  0xa7   : > { %1664 = vadd.xlane.f32.xlu1 %v1663_v52  ;;  %1328 = vmatpush.bf16.msra.mxu1 %v5979_v13 }
  0xab   : > { %1329 = vmatpush.bf16.msra.mxu1 %v5978_v14 }
  0xae   : > { %1492 = vadd.xlane.f32.xlu2 %v1491_v61  ;;  %1673 = vadd.xlane.f32.xlu0 %v1672_v62 }
  0xaf   : > { %1486 = vadd.xlane.f32.xlu1 %v1485_v63  ;;  %1330 = vmatpush.bf16.msra.mxu1 %v5977_v15 }
  0xb2   : > { %1331 = vmatmul.bf16.vlgmr.msra.gmra.mxu1 %v871_v18 }
  0xb3   : > { %2329 = vmatpush.bf16.msrb.mxu1 %v6006_v21 }
  0xb6   : > { %1495 = vadd.xlane.f32.xlu2 %v1494_v4  ;;  %1676 = vadd.xlane.f32.xlu0 %v1675_v5 }
  0xb7   : > { %1489 = vadd.xlane.f32.xlu1 %v1488_v6  ;;  %2330 = vmatpush.bf16.msrb.mxu1 %v6005_v24  ;;  %v6812_v24 = vld [vmem:[%s6617_s23 + $0x78] sm:$0xff] }
  0xbe   : > { %1498 = vadd.xlane.f32.xlu0 %v1497_v8 }
  0xc6   : > { %1501 = vadd.xlane.f32.xlu0 %v1500_v10 }
 0x109   : > { %v1659_v19 = vpop.xlane.xlu0 %1658 }
 0x10a   : > { %v1753_v22 = vmul.f32 %v1659_v19, %v6633_v20 }
 0x10c   : > { %v1785_v23 = vadd.f32 1e-05, %v1753_v22 }
 0x10e   : > { %6043 = vrsqrt.f32 %v1785_v23  ;;  %vm1823_vm3 = vweird.f32 %v1785_v23 }
 0x111   : > { %v1668_v26 = vpop.xlane.xlu2 %1667  ;;  %v1481_v27 = vpop.xlane.xlu0 %1480 }
 0x112   : > { %v1756_v28 = vmul.f32 %v1668_v26, %v6633_v20  ;;  %v1662_v29 = vpop.xlane.xlu1 %1661  ;;  %v1568_v30 = vmul.f32 %v6633_v20, %v1481_v27 }
 0x113   : > { %v1754_v31 = vmul.f32 %v1662_v29, %v6633_v20 }
 0x114   : > { %v6044_v32 = vpop.eup %6043  ;;  %v6761_v33 = vadd.f32 1e-05, %v1756_v28  ;;  %v6764_v37 = vsub.f32 %v6646_v34, %v1568_v30  ;;  %v6821_v28 = vld [vmem:[%s10110_s2] ss:$0 sm:$0xff] }
 0x115   : > { %v1818_v39 = vmul.f32 %v6044_v32, %v1785_v23  ;;  %v1786_v40 = vadd.f32 1e-05, %v1754_v31  ;;  %vm1824_vm2 = vweird.f32 %v6044_v32 }
 0x116   : > { %6045 = vrsqrt.f32 %v6761_v33  ;;  %v1632_v41 = vmul.f32 %v6764_v37, %v6764_v37  ;;  %vm6787_vm6 = vmor %vm1823_vm3, %vm1824_vm2  ;;  %vm1853_vm10 = vweird.f32 %v6761_v33 }
 0x117   : > { %v1819_v43 = vmul.f32 %v6044_v32, %v1818_v39  ;;  %6047 = vrsqrt.f32 %v1786_v40  ;;  %vm1833_vm4 = vweird.f32 %v1786_v40 }
 0x118   : > { %v1678_v44 = vsel %vm1457_vm0, %v1632_v41, 0.0 }
 0x119   : > { %v1820_v45 = vmul.f32 0.5, %v1819_v43  ;;  %v1671_v46 = vpop.xlane.xlu2 %1670  ;;  %1679 = vadd.xlane.f32.xlu1 %v1678_v44  ;;  %v1484_v48 = vpop.xlane.xlu0 %1483 }
 0x11a   : > { %v1665_v50 = vpop.xlane.xlu1 %1664  ;;  %v1569_v51 = vmul.f32 %v6633_v20, %v1484_v48  ;;  %v1757_v56 = vmul.f32 %v1671_v46, %v6633_v20 }
 0x11b   : > { %v1821_v34 = vsub.f32 1.5, %v1820_v45  ;;  %v1755_v52 = vmul.f32 %v1665_v50, %v6633_v20 }
 0x11c   : > { %v6772_v53 = vpop.eup %6045  ;;  %v6775_v54 = vsub.f32 %v6668_v47, %v1569_v51  ;;  %v6785_v47 = vadd.f32 1e-05, %v1757_v56 }
 0x11d   : > { %v6048_v55 = vpop.eup %6047  ;;  %v6778_v58 = vadd.f32 1e-05, %v1755_v52  ;;  %v1822_v62 = vmul.f32 %v6044_v32, %v1821_v34  ;;  %v1848_v63 = vmul.f32 %v6772_v53, %v6761_v33  ;;  %vm1854_vm11 = vweird.f32 %v6772_v53 }
 0x11e   : > { %v1828_v61 = vmul.f32 %v6048_v55, %v1786_v40  ;;  %v1633_v1 = vmul.f32 %v6775_v54, %v6775_v54  ;;  %vm1834_vm5 = vweird.f32 %v6048_v55  ;;  %vm6879_vm13 = vmor %vm1853_vm10, %vm1854_vm11  ;;  %vm1863_vm1 = vweird.f32 %v6785_v47 }
 0x11f   : > { %6049 = vrsqrt.f32 %v6778_v58  ;;  %v1826_v14 = vsel %vm6787_vm6, %v6044_v32, %v1822_v62  ;;  %v1849_v15 = vmul.f32 %v6772_v53, %v1848_v63  ;;  %vm1835_vm7 = vmor %vm1833_vm4, %vm1834_vm5  ;;  %v1503_v32 = vsel %vm1457_vm0, %v6812_v24, 0.0 }
 0x120   : > { %v1829_v0 = vmul.f32 %v6048_v55, %v1828_v61  ;;  %v1681_v12 = vsel %vm1457_vm0, %v1633_v1, 0.0  ;;  %6051 = vrsqrt.f32 %v6785_v47  ;;  %v2137_v26 = vmul.f32 %v1826_v14, %v6636_v25  ;;  %v6861_v1 = vld [vmem:[%s6617_s23 + $0x80] sm:$0xff] }
 0x121   : > { %v1493_v4 = vpop.xlane.xlu2 %1492  ;;  %v1674_v5 = vpop.xlane.xlu0 %1673  ;;  %1682 = vadd.xlane.f32.xlu1 %v1681_v12  ;;  %v1850_v29 = vmul.f32 0.5, %v1849_v15  ;;  %vm1843_vm8 = vweird.f32 %v6778_v58  ;;  %v1506_v12 = vsel %vm1457_vm0, %v6861_v1, 0.0 }
 0x122   : > { %v1830_v8 = vmul.f32 0.5, %v1829_v0  ;;  %v1572_v10 = vmul.f32 %v6633_v20, %v1493_v4  ;;  %v1487_v11 = vpop.xlane.xlu1 %1486  ;;  %v1758_v13 = vmul.f32 %v1674_v5, %v6633_v20  ;;  %v2172_v50 = vmul.f32 %v6821_v28, %v2137_v26 }
 0x123   : > { %v1570_v17 = vmul.f32 %v6633_v20, %v1487_v11  ;;  %v1851_v34 = vsub.f32 1.5, %v1850_v29  ;;  %v6901_v29 = vld [vmem:[%s6617_s23 + $0x98] sm:$0xff] }
 0x124   : > { %v1831_v18 = vsub.f32 1.5, %v1830_v8  ;;  %v6799_v19 = vsub.f32 %v6685_v57, %v1572_v10  ;;  %v6801_v21 = vadd.f32 1e-05, %v1758_v13 }
 0x125   : > { %v6803_v22 = vpop.eup %6049  ;;  %v6809_v23 = vsub.f32 %v6691_v59, %v1570_v17  ;;  %v1852_v6 = vmul.f32 %v6772_v53, %v1851_v34  ;;  %v6925_v34 = vld [vmem:[%s6617_s23 + $0xa0] sm:$0xff] }
 0x126   : > { %v1832_v27 = vmul.f32 %v6048_v55, %v1831_v18  ;;  %v1838_v57 = vmul.f32 %v6803_v22, %v6778_v58  ;;  %6053 = vrsqrt.f32 %v6801_v21  ;;  %v1636_v59 = vmul.f32 %v6799_v19, %v6799_v19  ;;  %v6843_v51 = vpop.eup %6051 }
 0x127   : > { %v1634_v25 = vmul.f32 %v6809_v23, %v6809_v23  ;;  %vm1844_vm9 = vweird.f32 %v6803_v22  ;;  %vm1873_vm14 = vweird.f32 %v6801_v21  ;;  %vm1864_vm2 = vweird.f32 %v6843_v51 }
 0x128   : > { %v1836_v30 = vsel %vm1835_vm7, %v6048_v55, %v1832_v27  ;;  %v1839_v31 = vmul.f32 %v6803_v22, %v1838_v57  ;;  %v1690_v41 = vsel %vm1457_vm0, %v1636_v59, 0.0  ;;  %vm6866_vm12 = vmor %vm1843_vm8, %vm1844_vm9  ;;  %v1856_v27 = vsel %vm6879_vm13, %v6772_v53, %v1852_v6 }
 0x129   : > { %v2138_v39 = vmul.f32 %v1836_v30, %v6650_v36  ;;  %v1496_v40 = vpop.xlane.xlu2 %1495  ;;  %v6833_v43 = vpop.xlane.xlu0 %1676  ;;  %1691 = vadd.xlane.f32.xlu0 %v1690_v41  ;;  %v1684_v46 = vsel %vm1457_vm0, %v1634_v25, 0.0  ;;  %v6841_v36 = vld [vmem:[%s10060_s7] ss:$0 sm:$0xff]  ;;  %1504 = vadd.xlane.f32.xlu1 %v1503_v32  ;;  %v2140_v32 = vmul.f32 %v1856_v27, %v6648_v35  ;;  %vm1865_vm4 = vmor %vm1863_vm1, %vm1864_vm2 }
 0x12a   : > { %v1840_v44 = vmul.f32 0.5, %v1839_v31  ;;  %v1573_v45 = vmul.f32 %v6633_v20, %v1496_v40  ;;  %v1490_v48 = vpop.xlane.xlu1 %1489  ;;  %1685 = vadd.xlane.f32.xlu2 %v1684_v46  ;;  %v6905_v31 = vld [vmem:[%s6617_s23 + $0x88] sm:$0xff] }
 0x12b   : > { %v1571_v52 = vmul.f32 %v6633_v20, %v1490_v48  ;;  %v2173_v55 = vmul.f32 %v6821_v28, %v2138_v39  ;;  %v1515_v39 = vsel %vm1457_vm0, %v6901_v29, 0.0  ;;  %v2175_v35 = vmul.f32 %v6821_v28, %v2140_v32 }
 0x12c   : > { %v6848_v56 = vpop.eup %6053  ;;  %v1841_v61 = vsub.f32 1.5, %v1840_v44  ;;  %v6851_v62 = vsub.f32 %v6706_v2, %v1573_v45  ;;  %v2207_v2 = vadd.f32 %v6841_v36, %v2172_v50 }
 0x12d   : > { %v1868_v63 = vmul.f32 %v6848_v56, %v6801_v21  ;;  %v6858_v0 = vsub.f32 %v6709_v3, %v1571_v52  ;;  %v2208_v33 = vadd.f32 %v6841_v36, %v2173_v55  ;;  %v1858_v3 = vmul.f32 %v6843_v51, %v6785_v47  ;;  %v6931_v55 = vld [vmem:[%s6617_s23 + $0x90] sm:$0xff] }
 0x12e   : > { %v1842_v4 = vmul.f32 %v6803_v22, %v1841_v61  ;;  %v1637_v8 = vmul.f32 %v6851_v62, %v6851_v62  ;;  %vm1874_vm15 = vweird.f32 %v6848_v56  ;;  %v2210_v21 = vadd.f32 %v6841_v36, %v2175_v35 }
 0x12f   : > { %v1635_v10 = vmul.f32 %v6858_v0, %v6858_v0  ;;  %v2244_v11 = vpack.c.bf16 %v2208_v33, %v2207_v2  ;;  %v1869_v14 = vmul.f32 %v6848_v56, %v1868_v63  ;;  %v1859_v57 = vmul.f32 %v6843_v51, %v1858_v3  ;;  %vm1875_vm3 = vmor %vm1873_vm14, %vm1874_vm15  ;;  %v6947_v3 = vld [vmem:[%s6617_s23 + $0xa8] sm:$0xff] }
 0x130   : > { %v1846_v13 = vsel %vm6866_vm12, %v6803_v22, %v1842_v4  ;;  %v1693_v15 = vsel %vm1457_vm0, %v1637_v8, 0.0  ;;  %v1518_v63 = vsel %vm1457_vm0, %v6925_v34, 0.0  ;;  %v1512_v4 = vsel %vm1457_vm0, %v6931_v55, 0.0 }
 0x131   : > { %v1687_v17 = vsel %vm1457_vm0, %v1635_v10, 0.0  ;;  %v1499_v18 = vpop.xlane.xlu0 %1498  ;;  %5796 = vmatmul.msk.bf16.vlgmr.msrb.gmra.mxu1 %vm1457_vm0, %v2244_v11  ;;  %1694 = vadd.xlane.f32.xlu0 %v1693_v15  ;;  %v2139_v59 = vmul.f32 %v1846_v13, %v6660_v42  ;;  %v1870_v30 = vmul.f32 0.5, %v1869_v14  ;;  %v1860_v53 = vmul.f32 0.5, %v1859_v57  ;;  %v6964_v15 = vpop.f32.mrf.mxu1 }
 0x132   : > { %v1574_v26 = vmul.f32 %v6633_v20, %v1499_v18  ;;  %1688 = vadd.xlane.f32.xlu2 %v1687_v17  ;;  %1507 = vadd.xlane.f32.xlu1 %v1506_v12  ;;  %v1521_v10 = vsel %vm1457_vm0, %v6947_v3, 0.0  ;;  %v6956_v12 = vld [vmem:[%s6617_s23 + $0xb0] sm:$0xff] }
 0x133   : > { %v2174_v42 = vmul.f32 %v6821_v28, %v2139_v59  ;;  %v1871_v41 = vsub.f32 1.5, %v1870_v30  ;;  %v1861_v46 = vsub.f32 1.5, %v1860_v53 }
 0x134   : > { %v6898_v22 = vsub.f32 %v6717_v7, %v1574_v26  ;;  %v1509_v7 = vsel %vm1457_vm0, %v6905_v31, 0.0 }
 0x135   : > { %v2209_v50 = vadd.f32 %v6841_v36, %v2174_v42  ;;  %v1872_v52 = vmul.f32 %v6848_v56, %v1871_v41  ;;  %v1862_v61 = vmul.f32 %v6843_v51, %v1861_v46 }
 0x136   : > { %v1638_v25 = vmul.f32 %v6898_v22, %v6898_v22 }
 0x137   : > { %v2245_v47 = vpack.c.bf16 %v2210_v21, %v2209_v50  ;;  %v1876_v2 = vsel %vm1875_vm3, %v6848_v56, %v1872_v52  ;;  %v1866_v33 = vsel %vm1865_vm4, %v6843_v51, %v1862_v61 }
 0x138   : > { %v1696_v40 = vsel %vm1457_vm0, %v1638_v25, 0.0  ;;  %v2142_v6 = vmul.f32 %v1876_v2, %v6672_v49  ;;  %v2141_v8 = vmul.f32 %v1866_v33, %v6652_v38  ;;  %v1524_v49 = vsel %vm1457_vm0, %v6956_v12, 0.0 }
 0x139   : > { %v1502_v44 = vpop.xlane.xlu0 %1501  ;;  %1516 = vadd.xlane.f32.xlu0 %v1515_v39  ;;  %v1759_v38 = vmul.f32 %v6833_v43, %v6633_v20  ;;  %v1334_v18 = vpop.f32.mrf.mxu1 }
 0x13a   : > { %v1575_v45 = vmul.f32 %v6633_v20, %v1502_v44  ;;  %1510 = vadd.xlane.f32.xlu2 %v1509_v7  ;;  %1697 = vadd.xlane.f32.xlu1 %v1696_v40  ;;  %v2177_v58 = vmul.f32 %v6821_v28, %v2142_v6  ;;  %v2176_v56 = vmul.f32 %v6821_v28, %v2141_v8 }
 0x13b   : > { %v1791_v14 = vadd.f32 1e-05, %v1759_v38 }
 0x13c   : > { %v6921_v48 = vsub.f32 %v6722_v9, %v1575_v45  ;;  %v2212_v11 = vadd.f32 %v6841_v36, %v2177_v58  ;;  %v2211_v51 = vadd.f32 %v6841_v36, %v2176_v56 }
 0x13d   : > { %6055 = vrsqrt.f32 %v1791_v14  ;;  %vm1883_vm5 = vweird.f32 %v1791_v14 }
 0x13e   : > { %v1639_v9 = vmul.f32 %v6921_v48, %v6921_v48  ;;  %v2246_v13 = vpack.c.bf16 %v2212_v11, %v2211_v51 }
 0x140   : > { %v1699_v5 = vsel %vm1457_vm0, %v1639_v9, 0.0 }
 0x141   : > { %5797 = vmatmul.msk.bf16.gmra.mxu1 %vm1457_vm0, %v2245_v47  ;;  %1519 = vadd.xlane.f32.xlu0 %v1518_v63 }
 0x142   : > { %1513 = vadd.xlane.f32.xlu2 %v1512_v4  ;;  %1700 = vadd.xlane.f32.xlu1 %v1699_v5 }
 0x143   : > { %v6056_v17 = vpop.eup %6055 }
 0x144   : > { %v1878_v26 = vmul.f32 %v6056_v17, %v1791_v14  ;;  %vm1884_vm6 = vweird.f32 %v6056_v17 }
 0x145   : > { %vm6968_vm7 = vmor %vm1883_vm5, %vm1884_vm6 }
 0x146   : > { %v1879_v59 = vmul.f32 %v6056_v17, %v1878_v26 }
 0x148   : > { %v1880_v25 = vmul.f32 0.5, %v1879_v59 }
 0x14a   : > { %1522 = vadd.xlane.f32.xlu1 %v1521_v10  ;;  %v1881_v39 = vsub.f32 1.5, %v1880_v25 }
 0x14c   : > { %v1882_v41 = vmul.f32 %v6056_v17, %v1881_v39 }
 0x14e   : > { %v1886_v9 = vsel %vm6968_vm7, %v6056_v17, %v1882_v41 }
 0x14f   : > { %v2143_v10 = vmul.f32 %v1886_v9, %v6693_v60 }
 0x151   : > { %5798 = vmatmul.msk.bf16.gmra.mxu1 %vm1457_vm0, %v2246_v13  ;;  %v2178_v14 = vmul.f32 %v6821_v28, %v2143_v10 }
 0x152   : > { %1525 = vadd.xlane.f32.xlu1 %v1524_v49 }
 0x18c   : > { %v1680_v27 = vpop.xlane.xlu1 %1679 }
 0x18d   : > { %v1760_v57 = vmul.f32 %v1680_v27, %v6633_v20 }
 0x18f   : > { %v1792_v30 = vadd.f32 1e-05, %v1760_v57 }
 0x191   : > { %6057 = vrsqrt.f32 %v1792_v30  ;;  %vm1893_vm9 = vweird.f32 %v1792_v30 }
 0x194   : > { %v1683_v32 = vpop.xlane.xlu1 %1682 }
 0x195   : > { %v1761_v7 = vmul.f32 %v1683_v32, %v6633_v20 }
 0x197   : > { %v6058_v53 = vpop.eup %6057  ;;  %v1793_v40 = vadd.f32 1e-05, %v1761_v7 }
 0x198   : > { %v1888_v43 = vmul.f32 %v6058_v53, %v1792_v30  ;;  %vm1894_vm8 = vweird.f32 %v6058_v53 }
 0x199   : > { %6059 = vrsqrt.f32 %v1793_v40  ;;  %vm1895_vm10 = vmor %vm1893_vm9, %vm1894_vm8  ;;  %vm1903_vm12 = vweird.f32 %v1793_v40 }
 0x19a   : > { %v1889_v42 = vmul.f32 %v6058_v53, %v1888_v43 }
 0x19c   : > { %v1890_v45 = vmul.f32 0.5, %v1889_v42  ;;  %v1692_v35 = vpop.xlane.xlu0 %1691  ;;  %v1505_v52 = vpop.xlane.xlu1 %1504 }
 0x19d   : > { %v1686_v50 = vpop.xlane.xlu2 %1685  ;;  %v1764_v21 = vmul.f32 %v1692_v35, %v6633_v20  ;;  %v1576_v63 = vmul.f32 %v6633_v20, %v1505_v52 }
 0x19e   : > { %v1891_v46 = vsub.f32 1.5, %v1890_v45  ;;  %v1762_v61 = vmul.f32 %v1686_v50, %v6633_v20 }
 0x19f   : > { %v6977_v4 = vadd.f32 1e-05, %v1764_v21  ;;  %v6979_v5 = vpop.eup %6059  ;;  %v6982_v33 = vsub.f32 %v6812_v24, %v1576_v63 }
 0x1a0   : > { %v1892_v47 = vmul.f32 %v6058_v53, %v1891_v46  ;;  %v1794_v2 = vadd.f32 1e-05, %v1762_v61  ;;  %v1898_v8 = vmul.f32 %v6979_v5, %v1793_v40  ;;  %vm1904_vm11 = vweird.f32 %v6979_v5 }
 0x1a1   : > { %6061 = vrsqrt.f32 %v6977_v4  ;;  %v1640_v58 = vmul.f32 %v6982_v33, %v6982_v33  ;;  %vm7015_vm14 = vmor %vm1903_vm12, %vm1904_vm11  ;;  %vm1933_vm4 = vweird.f32 %v6977_v4 }
 0x1a2   : > { %v1896_v6 = vsel %vm1895_vm10, %v6058_v53, %v1892_v47  ;;  %6063 = vrsqrt.f32 %v1794_v2  ;;  %v1899_v56 = vmul.f32 %v6979_v5, %v1898_v8  ;;  %v2213_v53 = vadd.f32 %v6841_v36, %v2178_v14 }
 0x1a3   : > { %v2144_v11 = vmul.f32 %v1896_v6, %v6764_v37  ;;  %v1702_v51 = vsel %vm1457_vm0, %v1640_v58, 0.0  ;;  %vm1913_vm13 = vweird.f32 %v1794_v2  ;;  %v7043_v58 = vld [vmem:[%s6617_s23 + $0xb8] sm:$0xff] }
 0x1a4   : > { %v1695_v13 = vpop.xlane.xlu0 %1694  ;;  %v1900_v24 = vmul.f32 0.5, %v1899_v56  ;;  %1703 = vadd.xlane.f32.xlu2 %v1702_v51 }
 0x1a5   : > { %v1689_v49 = vpop.xlane.xlu2 %1688  ;;  %v1508_v38 = vpop.xlane.xlu1 %1507  ;;  %v2179_v17 = vmul.f32 %v6821_v28, %v2144_v11  ;;  %v1765_v25 = vmul.f32 %v1695_v13, %v6633_v20 }
 0x1a6   : > { %v1763_v60 = vmul.f32 %v1689_v49, %v6633_v20  ;;  %v1577_v18 = vmul.f32 %v6633_v20, %v1508_v38  ;;  %v1901_v27 = vsub.f32 1.5, %v1900_v24  ;;  %v1527_v38 = vsel %vm1457_vm0, %v7043_v58, 0.0 }
 0x1a7   : > { %v6996_v26 = vpop.eup %6061  ;;  %v2214_v37 = vadd.f32 %v6841_v36, %v2179_v17  ;;  %v7013_v41 = vadd.f32 1e-05, %v1765_v25 }
 0x1a8   : > { %v6064_v57 = vpop.eup %6063  ;;  %v6999_v59 = vadd.f32 1e-05, %v1763_v60  ;;  %v7002_v30 = vsub.f32 %v6861_v1, %v1577_v18  ;;  %v1902_v39 = vmul.f32 %v6979_v5, %v1901_v27  ;;  %v1928_v7 = vmul.f32 %v6996_v26, %v6977_v4 }
 0x1a9   : > { %v1908_v32 = vmul.f32 %v6064_v57, %v1794_v2  ;;  %v2247_v42 = vpack.c.bf16 %v2214_v37, %v2213_v53  ;;  %vm1914_vm15 = vweird.f32 %v6064_v57  ;;  %vm1934_vm5 = vweird.f32 %v6996_v26 }
 0x1aa   : > { %6065 = vrsqrt.f32 %v6999_v59  ;;  %v1641_v1 = vmul.f32 %v7002_v30, %v7002_v30  ;;  %v1906_v40 = vsel %vm7015_vm14, %v6979_v5, %v1902_v39  ;;  %v1929_v9 = vmul.f32 %v6996_v26, %v1928_v7  ;;  %vm7034_vm1 = vmor %vm1913_vm13, %vm1914_vm15 }
 0x1ab   : > { %v1909_v43 = vmul.f32 %v6064_v57, %v1908_v32  ;;  %5799 = vmatmul.msk.bf16.gmra.mxu1 %vm1457_vm0, %v2247_v42  ;;  %6067 = vrsqrt.f32 %v7013_v41  ;;  %v2145_v51 = vmul.f32 %v1906_v40, %v6775_v54  ;;  %vm1923_vm2 = vweird.f32 %v6999_v59  ;;  %vm7102_vm7 = vmor %vm1933_vm4, %vm1934_vm5 }
 0x1ac   : > { %v1517_v44 = vpop.xlane.xlu0 %1516  ;;  %v1705_v50 = vsel %vm1457_vm0, %v1641_v1, 0.0  ;;  %v1930_v2 = vmul.f32 0.5, %v1929_v9  ;;  %vm1943_vm10 = vweird.f32 %v7013_v41 }
 0x1ad   : > { %v1910_v35 = vmul.f32 0.5, %v1909_v43  ;;  %v1511_v46 = vpop.xlane.xlu2 %1510  ;;  %v1698_v52 = vpop.xlane.xlu1 %1697  ;;  %v1580_v21 = vmul.f32 %v6633_v20, %v1517_v44  ;;  %1706 = vadd.xlane.f32.xlu2 %v1705_v50  ;;  %v2180_v25 = vmul.f32 %v6821_v28, %v2145_v51  ;;  %v7083_v44 = vld [vmem:[%s6617_s23 + $0xc0] sm:$0xff] }
 0x1ae   : > { %v1578_v61 = vmul.f32 %v6633_v20, %v1511_v46  ;;  %v1766_v63 = vmul.f32 %v1698_v52, %v6633_v20  ;;  %v1931_v53 = vsub.f32 1.5, %v1930_v2  ;;  %v1530_v9 = vsel %vm1457_vm0, %v7083_v44, 0.0  ;;  %v5952_v2 = vld [vmem:[%s10106_s24 + $0x78] sm:$0xff] }
 0x1af   : > { %v1911_v47 = vsub.f32 1.5, %v1910_v35  ;;  %v7029_v6 = vsub.f32 %v6901_v29, %v1580_v21  ;;  %v2215_v4 = vadd.f32 %v6841_v36, %v2180_v25  ;;  %1271 = vmatpush.bf16.msra.mxu3 %v5952_v2  ;;  %v7183_v21 = vld [vmem:[%s6617_s23 + $0xd0] sm:$0xff] }
 0x1b0   : > { %v7031_v8 = vpop.eup %6065  ;;  %v7040_v5 = vsub.f32 %v6905_v31, %v1578_v61  ;;  %v7047_v29 = vadd.f32 1e-05, %v1766_v63  ;;  %v1932_v46 = vmul.f32 %v6996_v26, %v1931_v53 }
 0x1b1   : > { %v1912_v56 = vmul.f32 %v6064_v57, %v1911_v47  ;;  %v1918_v11 = vmul.f32 %v7031_v8, %v6999_v59  ;;  %v1644_v24 = vmul.f32 %v7029_v6, %v7029_v6  ;;  %v7068_v32 = vpop.eup %6067  ;;  %vm1924_vm3 = vweird.f32 %v7031_v8 }
 0x1b2   : > { %v1642_v13 = vmul.f32 %v7040_v5, %v7040_v5  ;;  %6069 = vrsqrt.f32 %v7047_v29  ;;  %vm7090_vm6 = vmor %vm1923_vm2, %vm1924_vm3  ;;  %v1938_v50 = vmul.f32 %v7068_v32, %v7013_v41  ;;  %vm1953_vm8 = vweird.f32 %v7047_v29  ;;  %v5992_v41 = vld [vmem:[%s10106_s24 + $0x1b8] sm:$0xff] }
 0x1b3   : > { %v1916_v31 = vsel %vm7034_vm1, %v6064_v57, %v1912_v56  ;;  %v1919_v49 = vmul.f32 %v7031_v8, %v1918_v11  ;;  %v1714_v54 = vsel %vm1457_vm0, %v1644_v24, 0.0  ;;  %v1936_v11 = vsel %vm7102_vm7, %v6996_v26, %v1932_v46  ;;  %v5951_v26 = vld [vmem:[%s10106_s24 + $0x70] sm:$0xff]  ;;  %v5942_v46 = vld [vmem:[%s10106_s24 + $0x28] sm:$0xff] }
 0x1b4   : > { %v1708_v14 = vsel %vm1457_vm0, %v1642_v13, 0.0  ;;  %v1520_v17 = vpop.xlane.xlu0 %1519  ;;  %v2146_v60 = vmul.f32 %v1916_v31, %v6809_v23  ;;  %1715 = vadd.xlane.f32.xlu1 %v1714_v54  ;;  %v1939_v51 = vmul.f32 %v7068_v32, %v1938_v50  ;;  %v7126_v13 = vld [vmem:[%s6617_s23 + $0xd8] sm:$0xff]  ;;  %v2148_v54 = vmul.f32 %v1936_v11, %v6799_v19  ;;  %v5959_v19 = vld [vmem:[%s10106_s24 + $0xb0] sm:$0xff]  ;;  %1272 = vmatpush.bf16.msra.mxu3 %v5951_v26  ;;  %v7233_v26 = vld [vmem:[%s6617_s23 + $0xe8] sm:$0xff] }
 0x1b5   : > { %v1920_v18 = vmul.f32 0.5, %v1919_v49  ;;  %1709 = vadd.xlane.f32.xlu0 %v1708_v14  ;;  %v1514_v27 = vpop.xlane.xlu2 %1513  ;;  %v7064_v37 = vpop.xlane.xlu1 %1700  ;;  %v1581_v57 = vmul.f32 %v6633_v20, %v1520_v17  ;;  %1528 = vadd.xlane.f32.xlu2 %v1527_v38  ;;  %v7133_v38 = vld [vmem:[%s6617_s23 + $0xc8] sm:$0xff]  ;;  %v5960_v14 = vld [vmem:[%s10106_s24 + $0xb8] sm:$0xff]  ;;  %vm1944_vm11 = vweird.f32 %v7068_v32 }
 0x1b6   : > { %v1579_v23 = vmul.f32 %v6633_v20, %v1514_v27  ;;  %v2181_v39 = vmul.f32 %v6821_v28, %v2146_v60  ;;  %v1940_v17 = vmul.f32 0.5, %v1939_v51  ;;  %v1539_v60 = vsel %vm1457_vm0, %v7126_v13, 0.0  ;;  %1284 = vmatpush.bf16.msra.mxu2 %v5960_v14  ;;  %vm7202_vm13 = vmor %vm1943_vm10, %vm1944_vm11 }
 0x1b7   : > { %v1921_v7 = vsub.f32 1.5, %v1920_v18  ;;  %v7074_v43 = vsub.f32 %v6925_v34, %v1581_v57  ;;  %v1533_v18 = vsel %vm1457_vm0, %v7133_v38, 0.0  ;;  %v5943_v57 = vld [vmem:[%s10106_s24 + $0x30] sm:$0xff]  ;;  %v1545_v14 = vsel %vm1457_vm0, %v7233_v26, 0.0 }
 0x1b8   : > { %v7079_v42 = vsub.f32 %v6931_v55, %v1579_v23  ;;  %v2216_v1 = vadd.f32 %v6841_v36, %v2181_v39  ;;  %v7085_v45 = vpop.eup %6069  ;;  %v5950_v23 = vld [vmem:[%s10106_s24 + $0x68] sm:$0xff] }
 0x1b9   : > { %v1922_v35 = vmul.f32 %v7031_v8, %v1921_v7  ;;  %v1645_v55 = vmul.f32 %v7074_v43, %v7074_v43  ;;  %v1948_v52 = vmul.f32 %v7085_v45, %v7047_v29  ;;  %v2183_v7 = vmul.f32 %v6821_v28, %v2148_v54  ;;  %1273 = vmatpush.bf16.msra.mxu3 %v5950_v23  ;;  %v5965_v23 = vld [vmem:[%s10106_s24 + $0xe0] sm:$0xff] }
 0x1ba   : > { %v2248_v59 = vpack.c.bf16 %v2216_v1, %v2215_v4  ;;  %v1643_v40 = vmul.f32 %v7079_v42, %v7079_v42  ;;  %v1941_v1 = vsub.f32 1.5, %v1940_v17  ;;  %vm1954_vm9 = vweird.f32 %v7085_v45  ;;  %v7168_v4 = vld [vmem:[%s6617_s23 + $0xe0] sm:$0xff]  ;;  %1285 = vmatpush.bf16.msra.mxu2 %v5959_v19  ;;  %v5939_v17 = vld [vmem:[%s10106_s24 + $0x10] sm:$0xff] }
 0x1bb   : > { %v1926_v61 = vsel %vm7090_vm6, %v7031_v8, %v1922_v35  ;;  %v1949_v63 = vmul.f32 %v7085_v45, %v1948_v52  ;;  %v1717_v47 = vsel %vm1457_vm0, %v1645_v55, 0.0  ;;  %v5958_v55 = vld [vmem:[%s10106_s24 + $0xa8] sm:$0xff]  ;;  %vm7192_vm12 = vmor %vm1953_vm8, %vm1954_vm9  ;;  %v1536_v29 = vsel %vm1457_vm0, %v7183_v21, 0.0 }
 0x1bc   : > { %5800 = vmatmul.msk.bf16.gmra.mxu1 %vm1457_vm0, %v2248_v59  ;;  %v1711_v10 = vsel %vm1457_vm0, %v1643_v40, 0.0  ;;  %1718 = vadd.xlane.f32.xlu1 %v1717_v47  ;;  %v2147_v24 = vmul.f32 %v1926_v61, %v6858_v0  ;;  %v5944_v0 = vld [vmem:[%s10106_s24 + $0x38] sm:$0xff]  ;;  %v5949_v59 = vld [vmem:[%s10106_s24 + $0x60] sm:$0xff]  ;;  %v2218_v40 = vadd.f32 %v6841_v36, %v2183_v7  ;;  %v1542_v61 = vsel %vm1457_vm0, %v7168_v4, 0.0  ;;  %v5963_v7 = vld [vmem:[%s10106_s24 + $0xd0] sm:$0xff] }
 0x1bd   : > { %v1523_v56 = vpop.xlane.xlu1 %1522  ;;  %1712 = vadd.xlane.f32.xlu0 %v1711_v10  ;;  %1531 = vadd.xlane.f32.xlu2 %v1530_v9  ;;  %v1950_v31 = vmul.f32 0.5, %v1949_v63  ;;  %v5957_v10 = vld [vmem:[%s10106_s24 + $0xa0] sm:$0xff]  ;;  %v5976_v63 = vld [vmem:[%s10106_s24 + $0x138] sm:$0xff] }
 0x1be   : > { %v1582_v8 = vmul.f32 %v6633_v20, %v1523_v56  ;;  %v2182_v27 = vmul.f32 %v6821_v28, %v2147_v24  ;;  %1258 = vmatpush.bf16.msra.mxu0 %v5944_v0  ;;  %1286 = vmatpush.bf16.msra.mxu2 %v5958_v55  ;;  %v5941_v56 = vld [vmem:[%s10106_s24 + $0x20] sm:$0xff]  ;;  %v5955_v0 = vld [vmem:[%s10106_s24 + $0x90] sm:$0xff]  ;;  %v5938_v55 = vld [vmem:[%s10106_s24 + $0x8] sm:$0xff] }
 0x1bf   : > { %v1951_v25 = vsub.f32 1.5, %v1950_v31  ;;  %1274 = vmatpush.bf16.msra.mxu3 %v5949_v59  ;;  %v5940_v31 = vld [vmem:[%s10106_s24 + $0x18] sm:$0xff]  ;;  %v851_v59 = vperm.slane %v6748_v16, 1 }
 0x1c0   : > { %v7130_v49 = vsub.f32 %v6947_v3, %v1582_v8  ;;  %v2217_v34 = vadd.f32 %v6841_v36, %v2182_v27  ;;  %v5948_v8 = vld [vmem:[%s10106_s24 + $0x58] sm:$0xff]  ;;  %v5945_v27 = vld [vmem:[%s10106_s24 + $0x40] sm:$0xff] }
 0x1c1   : > { %v1952_v50 = vmul.f32 %v7085_v45, %v1951_v25 }
 0x1c2   : > { %v1646_v3 = vmul.f32 %v7130_v49, %v7130_v49  ;;  %1259 = vmatpush.bf16.msra.mxu0 %v5943_v57  ;;  %v2249_v47 = vpack.c.bf16 %v2218_v40, %v2217_v34  ;;  %1287 = vmatpush.bf16.msra.mxu2 %v5957_v10  ;;  %v5968_v57 = vld [vmem:[%s10106_s24 + $0xf8] sm:$0xff]  ;;  %v5954_v34 = vld [vmem:[%s10106_s24 + $0x88] sm:$0xff]  ;;  %v5937_v40 = vld [vmem:[%s10106_s24] sm:$0xff] }
 0x1c3   : > { %v1956_v11 = vsel %vm7192_vm12, %v7085_v45, %v1952_v50  ;;  %v5956_v45 = vld [vmem:[%s10106_s24 + $0x98] sm:$0xff]  ;;  %1275 = vmatpush.bf16.msra.mxu3 %v5948_v8  ;;  %v5953_v50 = vld [vmem:[%s10106_s24 + $0x80] sm:$0xff]  ;;  %v5991_v10 = vld [vmem:[%s10106_s24 + $0x1b0] sm:$0xff] }
 0x1c4   : > { %v1720_v53 = vsel %vm1457_vm0, %v1646_v3, 0.0  ;;  %1540 = vadd.xlane.f32.xlu1 %v1539_v60  ;;  %v2150_v24 = vmul.f32 %v1956_v11, %v6898_v22  ;;  %v5999_v11 = vld [vmem:[%s10106_s24 + $0x1f0] sm:$0xff]  ;;  %v5974_v8 = vld [vmem:[%s10106_s24 + $0x128] sm:$0xff] }
 0x1c5   : > { %v1526_v39 = vpop.xlane.xlu1 %1525  ;;  %1534 = vadd.xlane.f32.xlu0 %v1533_v18  ;;  %1721 = vadd.xlane.f32.xlu2 %v1720_v53  ;;  %v7254_v18 = vld [vmem:[%s6617_s23 + $0xf0] sm:$0xff] }
 0x1c6   : > { %v1583_v35 = vmul.f32 %v6633_v20, %v1526_v39  ;;  %1260 = vmatpush.bf16.msra.mxu0 %v5942_v46  ;;  %v2185_v54 = vmul.f32 %v6821_v28, %v2150_v24  ;;  %1288 = vmatpush.bf16.msra.mxu2 %v5956_v45  ;;  %v5967_v53 = vld [vmem:[%s10106_s24 + $0xf0] sm:$0xff]  ;;  %v5964_v39 = vld [vmem:[%s10106_s24 + $0xd8] sm:$0xff]  ;;  %v5962_v46 = vld [vmem:[%s10106_s24 + $0xc8] sm:$0xff] }
 0x1c7   : > { %v5989_v45 = vld [vmem:[%s10106_s24 + $0x1a0] sm:$0xff] }
 0x1c8   : > { %v7180_v52 = vsub.f32 %v6956_v12, %v1583_v35  ;;  %v1942_v12 = vmul.f32 %v7068_v32, %v1941_v1  ;;  %v2220_v60 = vadd.f32 %v6841_v36, %v2185_v54  ;;  %v7281_v1 = vpop.f32.mrf.mxu1  ;;  %v850_v54 = vperm.slane %v6748_v16, 0 }
 0x1ca   : > { %v1647_v9 = vmul.f32 %v7180_v52, %v7180_v52  ;;  %v1946_v2 = vsel %vm7202_vm13, %v7068_v32, %v1942_v12  ;;  %1261 = vmatpush.bf16.msra.mxu0 %v5941_v56  ;;  %v5947_v32 = vld [vmem:[%s10106_s24 + $0x50] sm:$0xff]  ;;  %1289 = vmatpush.bf16.msra.mxu2 %v5955_v0  ;;  %v5961_v12 = vld [vmem:[%s10106_s24 + $0xc0] sm:$0xff]  ;;  %v853_v0 = vperm.slane %v6748_v16, 3 }
 0x1cb   : > { %v2149_v22 = vmul.f32 %v1946_v2, %v6851_v62  ;;  %1276 = vmatpush.bf16.msra.mxu3 %v5947_v32  ;;  %v5946_v62 = vld [vmem:[%s10106_s24 + $0x48] sm:$0xff]  ;;  %v5975_v56 = vld [vmem:[%s10106_s24 + $0x130] sm:$0xff]  ;;  %v5973_v32 = vld [vmem:[%s10106_s24 + $0x120] sm:$0xff] }
 0x1cc   : > { %v1723_v51 = vsel %vm1457_vm0, %v1647_v9, 0.0  ;;  %5801 = vmatmul.msk.bf16.gmra.mxu1 %vm1457_vm0, %v2249_v47  ;;  %1543 = vadd.xlane.f32.xlu1 %v1542_v61  ;;  %v867_v9 = vpack.c.bf16 %v851_v59, %v851_v59  ;;  %v6000_v47 = vld [vmem:[%s10106_s24 + $0x1f8] sm:$0xff]  ;;  %v5998_v2 = vld [vmem:[%s10106_s24 + $0x1e8] sm:$0xff]  ;;  %v5985_v59 = vld [vmem:[%s10106_s24 + $0x180] sm:$0xff] }
 0x1cd   : > { %1537 = vadd.xlane.f32.xlu0 %v1536_v29  ;;  %1724 = vadd.xlane.f32.xlu2 %v1723_v51  ;;  %v2184_v3 = vmul.f32 %v6821_v28, %v2149_v22  ;;  %v1548_v28 = vsel %vm1457_vm0, %v7254_v18, 0.0  ;;  %v1767_v29 = vmul.f32 %v7064_v37, %v6633_v20  ;;  %v5990_v37 = vld [vmem:[%s10106_s24 + $0x1a8] sm:$0xff]  ;;  %v5997_v22 = vld [vmem:[%s10106_s24 + $0x1e0] sm:$0xff] }
 0x1ce   : > { %1262 = vmatpush.bf16.msra.mxu0 %v5940_v31  ;;  %1290 = vmatpush.bf16.msra.mxu2 %v5954_v34  ;;  %v852_v31 = vperm.slane %v6748_v16, 2  ;;  %v5996_v16 = vld [vmem:[%s10106_s24 + $0x1d8] sm:$0xff] }
 0x1cf   : > { %1277 = vmatpush.bf16.msra.mxu3 %v5946_v62  ;;  %v2219_v19 = vadd.f32 %v6841_v36, %v2184_v3  ;;  %v5966_v36 = vld [vmem:[%s10106_s24 + $0xe8] sm:$0xff]  ;;  %v7326_v51 = vadd.f32 1e-05, %v1767_v29  ;;  %v866_v3 = vpack.c.bf16 %v850_v54, %v850_v54 }
 0x1d0   : > { %v7283_v35 = vpop.f32.mrf.mxu1 }
 0x1d1   : > { %v2250_v25 = vpack.c.bf16 %v2220_v60, %v2219_v19  ;;  %6071 = vrsqrt.f32 %v7326_v51  ;;  %v869_v60 = vpack.c.bf16 %v853_v0, %v853_v0  ;;  %vm1963_vm14 = vweird.f32 %v7326_v51 }
 0x1d2   : > { %1263 = vmatpush.bf16.msra.mxu0 %v5939_v17  ;;  %1291 = vmatpush.bf16.msra.mxu2 %v5953_v50  ;;  %v5988_v17 = vld [vmem:[%s10106_s24 + $0x198] sm:$0xff] }
 0x1d3   : > { %1278 = vmatpush.bf16.msra.mxu3 %v5945_v27  ;;  %v5972_v27 = vld [vmem:[%s10106_s24 + $0x118] sm:$0xff] }
 0x1d5   : > { %1546 = vadd.xlane.f32.xlu2 %v1545_v14  ;;  %v868_v14 = vpack.c.bf16 %v852_v31, %v852_v31 }
 0x1d6   : > { %1264 = vmatpush.bf16.msra.mxu0 %v5938_v55  ;;  %1336 = vmatpush.bf16.msrb.mxu2 %v5992_v41  ;;  %v5970_v55 = vld [vmem:[%s10106_s24 + $0x108] sm:$0xff]  ;;  %v6431_v41 = vld [vmem:[%s6742_s30] sm:$0xff] }
 0x1d7   : > { %1297 = vmatpush.bf16.msrb.mxu3 %v5968_v57  ;;  %v7355_v62 = vpop.eup %6071  ;;  %1292 = vmatmul.bf16.vlgmr.msra.gmra.mxu2 %v868_v14  ;;  %v5987_v57 = vld [vmem:[%s10106_s24 + $0x190] sm:$0xff]  ;;  %v854_v29 = vperm.slane %v6431_v41, 4 }
 0x1d8   : > { %v7307_v61 = vpop.f32.mrf.mxu1  ;;  %1279 = vmatmul.bf16.vlgmr.msra.gmra.mxu3 %v867_v9  ;;  %v1958_v19 = vmul.f32 %v7355_v62, %v7326_v51  ;;  %v5993_v9 = vld [vmem:[%s10106_s24 + $0x1c0] sm:$0xff]  ;;  %vm1964_vm15 = vweird.f32 %v7355_v62 }
 0x1d9   : > { %vm7403_vm1 = vmor %vm1963_vm14, %vm1964_vm15 }
 0x1da   : > { %1265 = vmatpush.bf16.msra.mxu0 %v5937_v40  ;;  %1337 = vmatpush.bf16.msrb.mxu2 %v5991_v10  ;;  %v856_v40 = vperm.slane %v6431_v41, 6  ;;  %v857_v10 = vperm.slane %v6431_v41, 7 }
 0x1db   : > { %1298 = vmatpush.bf16.msrb.mxu3 %v5967_v53  ;;  %v5971_v53 = vld [vmem:[%s10106_s24 + $0x110] sm:$0xff] }
 0x1dc   : > { %5802 = vmatmul.msk.bf16.gmra.mxu1 %vm1457_vm0, %v2250_v25 }
 0x1dd   : > { %1549 = vadd.xlane.f32.xlu2 %v1548_v28  ;;  %1266 = vmatmul.bf16.vlgmr.msra.gmra.mxu0 %v866_v3 }
 0x1de   : > { %1310 = vmatpush.bf16.msrb.mxu0 %v5976_v63  ;;  %1338 = vmatpush.bf16.msrb.mxu2 %v5990_v37 }
 0x1df   : > { %1299 = vmatpush.bf16.msrb.mxu3 %v5966_v36  ;;  %v5995_v36 = vld [vmem:[%s10106_s24 + $0x1d0] sm:$0xff] }
 0x1e0   : > { %v7338_v24 = vpop.f32.mrf.mxu1 }
 0x1e2   : > { %1311 = vmatpush.bf16.msrb.mxu0 %v5975_v56  ;;  %1339 = vmatpush.bf16.msrb.mxu2 %v5989_v45  ;;  %v873_v45 = vpack.c.bf16 %v857_v10, %v857_v10 }
 0x1e3   : > { %1300 = vmatpush.bf16.msrb.mxu3 %v5965_v23 }
 0x1e6   : > { %1312 = vmatpush.bf16.msrb.mxu0 %v5974_v8  ;;  %1340 = vmatpush.bf16.msrb.mxu2 %v5988_v17 }
 0x1e7   : > { %1301 = vmatpush.bf16.msrb.mxu3 %v5964_v39  ;;  %v1959_v39 = vmul.f32 %v7355_v62, %v1958_v19 }
 0x1e8   : > { %v7368_v25 = vpop.f32.mrf.mxu1 }
 0x1e9   : > { %v1960_v50 = vmul.f32 0.5, %v1959_v39 }
 0x1ea   : > { %1313 = vmatpush.bf16.msrb.mxu0 %v5973_v32  ;;  %1341 = vmatpush.bf16.msrb.mxu2 %v5987_v57 }
 0x1eb   : > { %1302 = vmatpush.bf16.msrb.mxu3 %v5963_v7  ;;  %v5986_v7 = vld [vmem:[%s10106_s24 + $0x188] sm:$0xff]  ;;  %v1961_v56 = vsub.f32 1.5, %v1960_v50 }
 0x1ee   : > { %1314 = vmatpush.bf16.msrb.mxu0 %v5972_v27  ;;  %1342 = vmatpush.bf16.msrb.mxu2 %v5986_v7 }
 0x1ef   : > { %1303 = vmatpush.bf16.msrb.mxu3 %v5962_v46  ;;  %v5994_v46 = vld [vmem:[%s10106_s24 + $0x1c8] sm:$0xff] }
 0x1f2   : > { %1315 = vmatpush.bf16.msrb.mxu0 %v5971_v53  ;;  %1343 = vmatpush.bf16.msrb.mxu2 %v5985_v59 }
 0x1f3   : > { %1304 = vmatpush.bf16.msrb.mxu3 %v5961_v12  ;;  %v5969_v12 = vld [vmem:[%s10106_s24 + $0x100] sm:$0xff] }
 0x1f6   : > { %1305 = vmatmul.bf16.vlgmr.msrb.gmra.mxu3 %v869_v60  ;;  %1316 = vmatpush.bf16.msrb.mxu0 %v5970_v55 }
 0x1f7   : > { %1349 = vmatpush.bf16.msra.mxu3 %v6000_v47  ;;  %v872_v47 = vpack.c.bf16 %v856_v40, %v856_v40 }
 0x1f9   : > { %1344 = vmatmul.bf16.vlgmr.msrb.gmra.mxu2 %v872_v47 }
 0x1fa   : > { %1317 = vmatpush.bf16.msrb.mxu0 %v5969_v12 }
 0x1fb   : > { %1350 = vmatpush.bf16.msra.mxu3 %v5999_v11  ;;  %v7397_v11 = vpop.f32.mrf.mxu1 }
 0x1ff   : > { %1351 = vmatpush.bf16.msra.mxu3 %v5998_v2  ;;  %v870_v2 = vpack.c.bf16 %v854_v29, %v854_v29 }
 0x201   : > { %1318 = vmatmul.bf16.vlgmr.msrb.gmra.mxu0 %v870_v2 }
 0x203   : > { %1352 = vmatpush.bf16.msra.mxu3 %v5997_v22  ;;  %v1962_v22 = vmul.f32 %v7355_v62, %v1961_v56 }
 0x207   : > { %1353 = vmatpush.bf16.msra.mxu3 %v5996_v16  ;;  %v1966_v16 = vsel %vm7403_vm1, %v7355_v62, %v1962_v22 }
 0x208   : > { %v2151_v55 = vmul.f32 %v1966_v16, %v6921_v48  ;;  %v7436_v48 = vld [vmem:[%s10110_s2] ss:$0 sm:$0xff] }
 0x20b   : > { %1354 = vmatpush.bf16.msra.mxu3 %v5995_v36 }
 0x20f   : > { %1355 = vmatpush.bf16.msra.mxu3 %v5994_v46 }
 0x213   : > { %1356 = vmatpush.bf16.msra.mxu3 %v5993_v9 }
 0x216   : > { %1357 = vmatmul.bf16.vlgmr.msra.gmra.mxu3 %v873_v45 }
 0x217   : > { %v1704_v28 = vpop.xlane.xlu2 %1703 }
 0x218   : > { %v1768_v23 = vmul.f32 %v1704_v28, %v6633_v20 }
 0x21a   : > { %v1800_v34 = vadd.f32 1e-05, %v1768_v23 }
 0x21c   : > { %6073 = vrsqrt.f32 %v1800_v34  ;;  %vm1973_vm3 = vweird.f32 %v1800_v34 }
 0x220   : > { %v1707_v63 = vpop.xlane.xlu2 %1706 }
 0x221   : > { %v1769_v37 = vmul.f32 %v1707_v63, %v6633_v20  ;;  %v2186_v63 = vmul.f32 %v7436_v48, %v2151_v55 }
 0x222   : > { %v6074_v8 = vpop.eup %6073 }
 0x223   : > { %v1968_v31 = vmul.f32 %v6074_v8, %v1800_v34  ;;  %v1801_v32 = vadd.f32 1e-05, %v1769_v37  ;;  %vm1974_vm2 = vweird.f32 %v6074_v8 }
 0x224   : > { %vm1975_vm4 = vmor %vm1973_vm3, %vm1974_vm2 }
 0x225   : > { %v1969_v14 = vmul.f32 %v6074_v8, %v1968_v31  ;;  %6075 = vrsqrt.f32 %v1801_v32  ;;  %vm1983_vm6 = vweird.f32 %v1801_v32 }
 0x227   : > { %v1970_v0 = vmul.f32 0.5, %v1969_v14  ;;  %v1716_v17 = vpop.xlane.xlu1 %1715 }
 0x228   : > { %v1710_v3 = vpop.xlane.xlu0 %1709  ;;  %v1529_v60 = vpop.xlane.xlu2 %1528  ;;  %v1772_v51 = vmul.f32 %v1716_v17, %v6633_v20 }
 0x229   : > { %v1770_v27 = vmul.f32 %v1710_v3, %v6633_v20  ;;  %v1971_v19 = vsub.f32 1.5, %v1970_v0  ;;  %v1584_v57 = vmul.f32 %v6633_v20, %v1529_v60  ;;  %v7413_v28 = vpop.f32.mrf.mxu1 }
 0x22a   : > { %v7415_v53 = vadd.f32 1e-05, %v1772_v51 }
 0x22b   : > { %v7417_v36 = vadd.f32 1e-05, %v1770_v27  ;;  %v7419_v23 = vpop.eup %6075  ;;  %v1972_v39 = vmul.f32 %v6074_v8, %v1971_v19  ;;  %v7422_v7 = vsub.f32 %v7043_v58, %v1584_v57 }
 0x22c   : > { %v1978_v62 = vmul.f32 %v7419_v23, %v1801_v32  ;;  %6077 = vrsqrt.f32 %v7415_v53  ;;  %vm1984_vm5 = vweird.f32 %v7419_v23  ;;  %vm2013_vm13 = vweird.f32 %v7415_v53 }
 0x22d   : > { %v1976_v46 = vsel %vm1975_vm4, %v6074_v8, %v1972_v39  ;;  %6079 = vrsqrt.f32 %v7417_v36  ;;  %v1648_v50 = vmul.f32 %v7422_v7, %v7422_v7  ;;  %v7449_v8 = vld [vmem:[%s10060_s7] ss:$0 sm:$0xff]  ;;  %vm7465_vm7 = vmor %vm1983_vm6, %vm1984_vm5  ;;  %vm1993_vm8 = vweird.f32 %v7417_v36 }
 0x22e   : > { %v1979_v59 = vmul.f32 %v7419_v23, %v1978_v62  ;;  %v2152_v34 = vmul.f32 %v1976_v46, %v6982_v33  ;;  %v2221_v17 = vadd.f32 %v7449_v8, %v2186_v63 }
 0x22f   : > { %v1726_v58 = vsel %vm1457_vm0, %v1648_v50, 0.0  ;;  %v1719_v41 = vpop.xlane.xlu1 %1718 }
 0x230   : > { %v1980_v40 = vmul.f32 0.5, %v1979_v59  ;;  %1727 = vadd.xlane.f32.xlu0 %v1726_v58  ;;  %v1532_v12 = vpop.xlane.xlu2 %1531  ;;  %v1713_v9 = vpop.xlane.xlu0 %1712  ;;  %v2187_v47 = vmul.f32 %v7436_v48, %v2152_v34  ;;  %v1773_v22 = vmul.f32 %v1719_v41, %v6633_v20 }
 0x231   : > { %v1585_v29 = vmul.f32 %v6633_v20, %v1532_v12  ;;  %v1771_v33 = vmul.f32 %v1713_v9, %v6633_v20  ;;  %v7442_v10 = vpop.f32.mrf.mxu1 }
 0x232   : > { %v7444_v56 = vpop.eup %6077  ;;  %v1981_v37 = vsub.f32 1.5, %v1980_v40  ;;  %v2222_v2 = vadd.f32 %v7449_v8, %v2187_v47  ;;  %v7470_v27 = vadd.f32 1e-05, %v1773_v22 }
 0x233   : > { %v6080_v45 = vpop.eup %6079  ;;  %v7453_v31 = vsub.f32 %v7083_v44, %v1585_v29  ;;  %v7456_v14 = vadd.f32 1e-05, %v1771_v33  ;;  %v2008_v3 = vmul.f32 %v7444_v56, %v7415_v53  ;;  %v7506_v33 = vld [vmem:[%s6617_s23 + $0xf8] sm:$0xff]  ;;  %vm2014_vm14 = vweird.f32 %v7444_v56 }
 0x234   : > { %v1982_v54 = vmul.f32 %v7419_v23, %v1981_v37  ;;  %v1988_v0 = vmul.f32 %v6080_v45, %v7417_v36  ;;  %v2251_v60 = vpack.c.bf16 %v2222_v2, %v2221_v17  ;;  %vm1994_vm9 = vweird.f32 %v6080_v45  ;;  %vm7558_vm1 = vmor %vm2013_vm13, %vm2014_vm14 }
 0x235   : > { %6081 = vrsqrt.f32 %v7456_v14  ;;  %v1649_v16 = vmul.f32 %v7453_v31, %v7453_v31  ;;  %v2009_v46 = vmul.f32 %v7444_v56, %v2008_v3  ;;  %vm7492_vm10 = vmor %vm1993_vm8, %vm1994_vm9  ;;  %vm2003_vm11 = vweird.f32 %v7456_v14 }
 0x236   : > { %v1989_v44 = vmul.f32 %v6080_v45, %v1988_v0  ;;  %v1986_v57 = vsel %vm7465_vm7, %v7419_v23, %v1982_v54  ;;  %5803 = vmatmul.msk.bf16.gmra.mxu1 %vm1457_vm0, %v2251_v60  ;;  %6083 = vrsqrt.f32 %v7470_v27  ;;  %vm2023_vm4 = vweird.f32 %v7470_v27 }
 0x237   : > { %v1541_v19 = vpop.xlane.xlu1 %1540  ;;  %v1729_v50 = vsel %vm1457_vm0, %v1649_v16, 0.0  ;;  %v2153_v63 = vmul.f32 %v1986_v57, %v7002_v30  ;;  %v2010_v36 = vmul.f32 0.5, %v2009_v46  ;;  %vm1397_vm8 = vcmask 523264  }
 0x238   : > { %v1990_v39 = vmul.f32 0.5, %v1989_v44  ;;  %v1722_v32 = vpop.xlane.xlu2 %1721  ;;  %v1588_v62 = vmul.f32 %v6633_v20, %v1541_v19  ;;  %v1535_v55 = vpop.xlane.xlu0 %1534  ;;  %1730 = vadd.xlane.f32.xlu0 %v1729_v50 }
 0x239   : > { %v1774_v59 = vmul.f32 %v1722_v32, %v6633_v20  ;;  %v1586_v34 = vmul.f32 %v6633_v20, %v1535_v55  ;;  %v7483_v58 = vpop.f32.mrf.mxu1  ;;  %v2188_v17 = vmul.f32 %v7436_v48, %v2153_v63  ;;  %v2011_v19 = vsub.f32 1.5, %v2010_v36 }
 0x23a   : > { %v1991_v23 = vsub.f32 1.5, %v1990_v39  ;;  %v7486_v41 = vsub.f32 %v7126_v13, %v1588_v62 }
 0x23b   : > { %v7488_v40 = vpop.eup %6081  ;;  %v7496_v9 = vadd.f32 1e-05, %v1774_v59  ;;  %v7503_v13 = vsub.f32 %v7133_v38, %v1586_v34  ;;  %v1551_v38 = vsel %vm1457_vm0, %v7506_v33, 0.0  ;;  %v2223_v59 = vadd.f32 %v7449_v8, %v2188_v17 }
 0x23c   : > { %v1992_v47 = vmul.f32 %v6080_v45, %v1991_v23  ;;  %v1998_v29 = vmul.f32 %v7488_v40, %v7456_v14  ;;  %v1652_v30 = vmul.f32 %v7486_v41, %v7486_v41  ;;  %vm2004_vm12 = vweird.f32 %v7488_v40  ;;  %v7531_v32 = vpop.eup %6083 }
 0x23d   : > { %6085 = vrsqrt.f32 %v7496_v9  ;;  %v1650_v22 = vmul.f32 %v7503_v13, %v7503_v13  ;;  %vm7548_vm15 = vmor %vm2003_vm11, %vm2004_vm12  ;;  %v2012_v63 = vmul.f32 %v7444_v56, %v2011_v19  ;;  %vm2033_vm2 = vweird.f32 %v7496_v9 }
 0x23e   : > { %v1996_v37 = vsel %vm7492_vm10, %v6080_v45, %v1992_v47  ;;  %v1999_v2 = vmul.f32 %v7488_v40, %v1998_v29  ;;  %v1738_v44 = vsel %vm1457_vm0, %v1652_v30, 0.0  ;;  %vm2024_vm5 = vweird.f32 %v7531_v32 }
 0x23f   : > { %v1544_v54 = vpop.xlane.xlu1 %1543  ;;  %v2154_v0 = vmul.f32 %v1996_v37, %v7040_v5  ;;  %v1732_v51 = vsel %vm1457_vm0, %v1650_v22, 0.0  ;;  %1739 = vadd.xlane.f32.xlu2 %v1738_v44  ;;  %vm2025_vm7 = vmor %vm2023_vm4, %vm2024_vm5 }
 0x240   : > { %v2000_v3 = vmul.f32 0.5, %v1999_v2  ;;  %v7521_v45 = vpop.xlane.xlu2 %1724  ;;  %v1589_v60 = vmul.f32 %v6633_v20, %v1544_v54  ;;  %v1538_v16 = vpop.xlane.xlu0 %1537  ;;  %1733 = vadd.xlane.f32.xlu1 %v1732_v51  ;;  %1552 = vadd.xlane.f32.xlu0 %v1551_v38  ;;  %v2016_v38 = vsel %vm7558_vm1, %v7444_v56, %v2012_v63 }
 0x241   : > { %v1587_v57 = vmul.f32 %v6633_v20, %v1538_v16  ;;  %v7528_v5 = vpop.f32.mrf.mxu1  ;;  %v2189_v39 = vmul.f32 %v7436_v48, %v2154_v0 }
 0x242   : > { %v2001_v62 = vsub.f32 1.5, %v2000_v3  ;;  %v7535_v55 = vsub.f32 %v7168_v4, %v1589_v60  ;;  %v2156_v60 = vmul.f32 %v2016_v38, %v7029_v6 }
 0x243   : > { %v6086_v46 = vpop.eup %6085  ;;  %v7539_v50 = vsub.f32 %v7183_v21, %v1587_v57  ;;  %v2224_v34 = vadd.f32 %v7449_v8, %v2189_v39  ;;  %v2018_v21 = vmul.f32 %v7531_v32, %v7470_v27 }
 0x244   : > { %v2002_v23 = vmul.f32 %v7488_v40, %v2001_v62  ;;  %v2028_v4 = vmul.f32 %v6086_v46, %v7496_v9  ;;  %v1653_v14 = vmul.f32 %v7535_v55, %v7535_v55  ;;  %v2191_v62 = vmul.f32 %v7436_v48, %v2156_v60 }
 0x245   : > { %v2252_v47 = vpack.c.bf16 %v2224_v34, %v2223_v59  ;;  %v1651_v36 = vmul.f32 %v7539_v50, %v7539_v50  ;;  %v2019_v54 = vmul.f32 %v7531_v32, %v2018_v21  ;;  %vm2034_vm3 = vweird.f32 %v6086_v46 }
 0x246   : > { %v2006_v37 = vsel %vm7548_vm15, %v7488_v40, %v2002_v23  ;;  %v2029_v2 = vmul.f32 %v6086_v46, %v2028_v4  ;;  %v1741_v53 = vsel %vm1457_vm0, %v1653_v14, 0.0  ;;  %vm2035_vm6 = vmor %vm2033_vm2, %vm2034_vm3  ;;  %v2226_v12 = vadd.f32 %v7449_v8, %v2191_v62 }
 0x247   : > { %5804 = vmatmul.msk.bf16.gmra.mxu1 %vm1457_vm0, %v2252_v47  ;;  %v1735_v22 = vsel %vm1457_vm0, %v1651_v36, 0.0  ;;  %v2155_v40 = vmul.f32 %v2006_v37, %v7079_v42  ;;  %v2020_v51 = vmul.f32 0.5, %v2019_v54 }
 0x248   : > { %v1547_v30 = vpop.xlane.xlu2 %1546  ;;  %1736 = vadd.xlane.f32.xlu1 %v1735_v22  ;;  %1742 = vadd.xlane.f32.xlu0 %v1741_v53  ;;  %v2030_v3 = vmul.f32 0.5, %v2029_v2  ;;  %v7615_v22 = vld [vmem:[%s10062_s9] ss:$0 sm:$0xff] }
 0x249   : > { %v1590_v0 = vmul.f32 %v6633_v20, %v1547_v30  ;;  %v7577_v17 = vpop.f32.mrf.mxu1  ;;  %v2190_v16 = vmul.f32 %v7436_v48, %v2155_v40  ;;  %v2021_v59 = vsub.f32 1.5, %v2020_v51  ;;  %v2355_v38 = vadd.f32 %v7615_v22, %v7528_v5 }
 0x24a   : > { %v2031_v19 = vsub.f32 1.5, %v2030_v3  ;;  %v2353_v54 = vadd.f32 %v7615_v22, %v7483_v58  ;;  %v2340_v40 = vadd.f32 %v7615_v22, %v7338_v24  ;;  %v2338_v3 = vadd.f32 %v7615_v22, %v7307_v61  ;;  %v848_v24 = vld [vmem:[%s10139_s29] sm:$0x1] }
 0x24b   : > { %v7581_v44 = vsub.f32 %v7233_v26, %v1590_v0  ;;  %v2225_v6 = vadd.f32 %v7449_v8, %v2190_v16  ;;  %v2022_v9 = vmul.f32 %v7531_v32, %v2021_v59  ;;  %v1775_v58 = vmul.f32 %v7521_v45, %v6633_v20 }
 0x24c   : > { %v2032_v26 = vmul.f32 %v6086_v46, %v2031_v19  ;;  %v7628_v0 = vpack.c.bf16 %v2355_v38, %v2353_v54  ;;  %v7636_v60 = vpack.c.bf16 %v2340_v40, %v2338_v3 }
 0x24d   : > { %v1654_v56 = vmul.f32 %v7581_v44, %v7581_v44  ;;  %v2253_v63 = vpack.c.bf16 %v2226_v12, %v2225_v6  ;;  %v1807_v16 = vadd.f32 1e-05, %v1775_v58 }
 0x24e   : > { %v2036_v21 = vsel %vm2035_vm6, %v6086_v46, %v2032_v26 }
 0x24f   : > { %v1744_v57 = vsel %vm1457_vm0, %v1654_v56, 0.0  ;;  %v2158_v47 = vmul.f32 %v2036_v21, %v7130_v49  ;;  %6087 = vrsqrt.f32 %v1807_v16  ;;  %vm2043_vm9 = vweird.f32 %v1807_v16 }
 0x250   : > { %v1550_v39 = vpop.xlane.xlu2 %1549  ;;  %1745 = vadd.xlane.f32.xlu1 %v1744_v57 }
 0x251   : > { %v1591_v42 = vmul.f32 %v6633_v20, %v1550_v39  ;;  %v7597_v23 = vpop.f32.mrf.mxu1  ;;  %v2193_v36 = vmul.f32 %v7436_v48, %v2158_v47 }
 0x253   : > { %v7595_v34 = vsub.f32 %v7254_v18, %v1591_v42  ;;  %v2026_v18 = vsel %vm2025_vm7, %v7531_v32, %v2022_v9  ;;  %v2228_v2 = vadd.f32 %v7449_v8, %v2193_v36  ;;  %v6004_v42 = vld [vmem:[%s10140_s25 + $0x18] sm:$0xff] }
 0x254   : > { %v2157_v29 = vmul.f32 %v2026_v18, %v7074_v43  ;;  %1405 = vmatpush.bf16.msra.mxu0 %v6004_v42 }
 0x255   : > { %v1655_v4 = vmul.f32 %v7595_v34, %v7595_v34  ;;  %v6088_v26 = vpop.eup %6087 }
 0x256   : > { %v2192_v37 = vmul.f32 %v7436_v48, %v2157_v29  ;;  %vm2044_vm10 = vweird.f32 %v6088_v26 }
 0x257   : > { %v1747_v27 = vsel %vm1457_vm0, %v1655_v4, 0.0  ;;  %5805 = vmatmul.msk.bf16.gmra.mxu1 %vm1457_vm0, %v2253_v63  ;;  %v6003_v4 = vld [vmem:[%s10140_s25 + $0x10] sm:$0xff]  ;;  %v2038_v63 = vmul.f32 %v6088_v26, %v1807_v16  ;;  %vm7663_vm11 = vmor %vm2043_vm9, %vm2044_vm10 }
 0x258   : > { %1748 = vadd.xlane.f32.xlu2 %v1747_v27  ;;  %v2227_v46 = vadd.f32 %v7449_v8, %v2192_v37  ;;  %1406 = vmatpush.bf16.msra.mxu0 %v6003_v4 }
 0x259   : > { %v2362_v14 = vpop.f32.mrf.mxu1  ;;  %v2039_v36 = vmul.f32 %v6088_v26, %v2038_v63 }
 0x25a   : > { %v2254_v30 = vpack.c.bf16 %v2228_v2, %v2227_v46  ;;  %v2363_v49 = vadd.f32 %v7615_v22, %v2362_v14  ;;  %v1267_v56 = vpop.f32.mrf.mxu0  ;;  %v1293_v19 = vpop.f32.mrf.mxu2  ;;  %v6002_v14 = vld [vmem:[%s10140_s25 + $0x8] sm:$0xff] }
 0x25b   : > { %v1280_v5 = vpop.f32.mrf.mxu3  ;;  %v1268_v39 = vadd.f32 %v1267_v56, %v848_v24 }
 0x25c   : > { %1407 = vmatpush.bf16.msra.mxu0 %v6002_v14 }
 0x25d   : > { %v1281_v62 = vadd.f32 %v1280_v5, %v1268_v39 }
 0x25f   : > { %v1294_v6 = vadd.f32 %v1293_v19, %v1281_v62 }
 0x261   : > { %v2364_v53 = vpop.f32.mrf.mxu1 }
 0x262   : > { %v2365_v43 = vadd.f32 %v7615_v22, %v2364_v53  ;;  %v1269_v61 = vpop.f32.mrf.mxu0  ;;  %v1295_v59 = vpop.f32.mrf.mxu2  ;;  %v6001_v53 = vld [vmem:[%s10140_s25] sm:$0xff] }
 0x263   : > { %v1282_v51 = vpop.f32.mrf.mxu3  ;;  %1408 = vmatpush.bf16.msra.mxu0 %v6001_v53 }
 0x264   : > { %v7620_v32 = vpack.c.bf16 %v2365_v43, %v2363_v49  ;;  %v2040_v49 = vmul.f32 0.5, %v2039_v36 }
 0x266   : > { %v2041_v5 = vsub.f32 1.5, %v2040_v49 }
 0x267   : > { %5806 = vmatmul.msk.bf16.gmra.mxu1 %vm1457_vm0, %v2254_v30 }
 0x268   : > { %v2042_v24 = vmul.f32 %v6088_v26, %v2041_v5 }
 0x270   : > { %2456 = vrot.lane.b32.xlu2 %v7620_v32, %s6483_s0 }
 0x278   : > { %2452 = vrot.lane.b32.xlu2 %v7628_v0, %s6483_s0 }
 0x279   : > { %v1306_v57 = vpop.f32.mrf.mxu3 }
 0x27a   : > { %v1307_v45 = vadd.f32 %v1306_v57, %v1294_v6 }
 0x27c   : > { %v1345_v29 = vpop.f32.mrf.mxu2 }
 0x27e   : > { %v1319_v9 = vpop.f32.mrf.mxu0 }
 0x27f   : > { %v1320_v21 = vadd.f32 %v1319_v9, %v1307_v45  ;;  %v2046_v9 = vsel %vm7663_vm11, %v6088_v26, %v2042_v24 }
 0x280   : > { %2446 = vrot.lane.b32.xlu2 %v7636_v60, %s6483_s0 }
 0x281   : > { %v1308_v12 = vpop.f32.mrf.mxu3  ;;  %v1333_v47 = vadd.f32 %v6964_v15, %v1320_v21 }
 0x283   : > { %v1346_v2 = vadd.f32 %v1345_v29, %v1333_v47  ;;  %v2159_v29 = vmul.f32 %v2046_v9, %v7180_v52 }
 0x284   : > { %v1347_v40 = vpop.f32.mrf.mxu2 }
 0x286   : > { %v1321_v43 = vpop.f32.mrf.mxu0 }
 0x299   : > { %v1358_v46 = vpop.f32.mrf.mxu3 }
 0x29a   : > { %v1359_v30 = vadd.f32 %v1358_v46, %v1346_v2 }
 0x29c   : > { %v1362_v38 = vmax.f32 %v1359_v30, 0.0 }
 0x29e   : > { %v1372_v54 = vpack.c.bf16 %v1362_v38, %v1362_v38  ;;  %v2194_v38 = vmul.f32 %v7436_v48, %v2159_v29 }
 0x2a0   : > { %5787 = vmatmul.msk.bf16.vlgmr.msra.gmra.mxu0 %vm1397_vm8, %v1372_v54  ;;  %v2229_v24 = vadd.f32 %v7449_v8, %v2194_v38 }
 0x2a1   : > { %v1360_v19 = vpop.f32.mrf.mxu3 }
 0x2a3   : > { %v1728_v27 = vpop.xlane.xlu0 %1727 }
 0x2a4   : > { %v1776_v18 = vmul.f32 %v1728_v27, %v6633_v20 }
 0x2a6   : > { %v1808_v37 = vadd.f32 1e-05, %v1776_v18 }
 0x2a8   : > { %6089 = vrsqrt.f32 %v1808_v37  ;;  %vm2053_vm13 = vweird.f32 %v1808_v37 }
 0x2ab   : > { %v1731_v15 = vpop.xlane.xlu0 %1730 }
 0x2ac   : > { %v1777_v51 = vmul.f32 %v1731_v15, %v6633_v20 }
 0x2ae   : > { %v6090_v3 = vpop.eup %6089  ;;  %v7660_v56 = vadd.f32 1e-05, %v1777_v51 }
 0x2af   : > { %v2048_v58 = vmul.f32 %v6090_v3, %v1808_v37  ;;  %vm2054_vm12 = vweird.f32 %v6090_v3 }
 0x2b0   : > { %6091 = vrsqrt.f32 %v7660_v56  ;;  %vm2055_vm14 = vmor %vm2053_vm13, %vm2054_vm12  ;;  %vm2063_vm1 = vweird.f32 %v7660_v56 }
 0x2b1   : > { %v2049_v57 = vmul.f32 %v6090_v3, %v2048_v58 }
 0x2b2   : > { %v1740_v62 = vpop.xlane.xlu2 %1739 }
 0x2b3   : > { %v2050_v39 = vmul.f32 0.5, %v2049_v57  ;;  %v1734_v59 = vpop.xlane.xlu1 %1733  ;;  %v1780_v6 = vmul.f32 %v1740_v62, %v6633_v20  ;;  %v1553_v45 = vpop.xlane.xlu0 %1552 }
 0x2b4   : > { %v1778_v16 = vmul.f32 %v1734_v59, %v6633_v20  ;;  %v2367_v12 = vpop.f32.mrf.mxu1  ;;  %v1592_v4 = vmul.f32 %v6633_v20, %v1553_v45 }
 0x2b5   : > { %v2051_v42 = vsub.f32 1.5, %v2050_v39  ;;  %v7672_v21 = vadd.f32 1e-05, %v1780_v6  ;;  %v2368_v15 = vadd.f32 %v7615_v22, %v2367_v12 }
 0x2b6   : > { %v1810_v27 = vadd.f32 1e-05, %v1778_v16  ;;  %v6092_v18 = vpop.eup %6091  ;;  %v7675_v47 = vsub.f32 %v7506_v33, %v1592_v4  ;;  %v2348_v4 = vadd.f32 %v7615_v22, %v7413_v28 }
 0x2b7   : > { %v2052_v63 = vmul.f32 %v6090_v3, %v2051_v42  ;;  %v2058_v36 = vmul.f32 %v6092_v18, %v7660_v56  ;;  %6093 = vrsqrt.f32 %v7672_v21  ;;  %vm2064_vm15 = vweird.f32 %v6092_v18 }
 0x2b8   : > { %6095 = vrsqrt.f32 %v1810_v27  ;;  %v1656_v37 = vmul.f32 %v7675_v47, %v7675_v47  ;;  %v2350_v42 = vadd.f32 %v7615_v22, %v7442_v10  ;;  %vm7705_vm2 = vmor %vm2063_vm1, %vm2064_vm15  ;;  %vm2073_vm3 = vweird.f32 %v1810_v27 }
 0x2b9   : > { %v2056_v14 = vsel %vm2055_vm14, %v6090_v3, %v2052_v63  ;;  %v2059_v2 = vmul.f32 %v6092_v18, %v2058_v36  ;;  %vm2093_vm8 = vweird.f32 %v7672_v21 }
 0x2ba   : > { %v2160_v26 = vmul.f32 %v2056_v14, %v7422_v7  ;;  %v1750_v52 = vsel %vm1457_vm0, %v1656_v37, 0.0  ;;  %v7718_v36 = vpack.c.bf16 %v2350_v42, %v2348_v4 }
 0x2bb   : > { %v1737_v46 = vpop.xlane.xlu1 %1736  ;;  %v2060_v53 = vmul.f32 0.5, %v2059_v2  ;;  %v1743_v43 = vpop.xlane.xlu0 %1742  ;;  %1751 = vadd.xlane.f32.xlu0 %v1750_v52  ;;  %v2358_v52 = vadd.f32 %v7615_v22, %v7577_v17 }
 0x2bc   : > { %v2195_v30 = vmul.f32 %v7436_v48, %v2160_v26  ;;  %v1779_v33 = vmul.f32 %v1737_v46, %v6633_v20  ;;  %v2369_v49 = vpop.f32.mrf.mxu1  ;;  %v1781_v58 = vmul.f32 %v1743_v43, %v6633_v20  ;;  %v2360_v46 = vadd.f32 %v7615_v22, %v7597_v23 }
 0x2bd   : > { %v2370_v7 = vadd.f32 %v7615_v22, %v2369_v49  ;;  %v7689_v54 = vpop.eup %6093  ;;  %v2061_v40 = vsub.f32 1.5, %v2060_v53 }
 0x2be   : > { %v1811_v3 = vadd.f32 1e-05, %v1779_v33  ;;  %v2230_v5 = vadd.f32 %v7449_v8, %v2195_v30  ;;  %v6096_v51 = vpop.eup %6095  ;;  %v2088_v39 = vmul.f32 %v7689_v54, %v7672_v21  ;;  %v7703_v6 = vadd.f32 1e-05, %v1781_v58 }
 0x2bf   : > { %v7693_v19 = vpack.c.bf16 %v2370_v7, %v2368_v15  ;;  %v2068_v57 = vmul.f32 %v6096_v51, %v1810_v27  ;;  %v2062_v61 = vmul.f32 %v6092_v18, %v2061_v40  ;;  %vm2074_vm4 = vweird.f32 %v6096_v51 }
 0x2c0   : > { %6097 = vrsqrt.f32 %v1811_v3  ;;  %v2255_v59 = vpack.c.bf16 %v2230_v5, %v2229_v24  ;;  %v2089_v56 = vmul.f32 %v7689_v54, %v2088_v39  ;;  %vm2075_vm5 = vmor %vm2073_vm3, %vm2074_vm4  ;;  %vm2083_vm6 = vweird.f32 %v1811_v3 }
 0x2c1   : > { %10143 = vst [vmem:[#allocation3_spill] sm:$0xff] %v7693_v19  ;;  %2458 = vrot.lane.b32.xlu1 %v7693_v19, %s6483_s0  ;;  %v2069_v62 = vmul.f32 %v6096_v51, %v2068_v57  ;;  %v2066_v10 = vsel %vm7705_vm2, %v6092_v18, %v2062_v61  ;;  %6099 = vrsqrt.f32 %v7703_v6  ;;  %v2335_v18 = vadd.f32 %v7615_v22, %v7283_v35 }
 0x2c2   : > { %5807 = vmatmul.msk.bf16.gmra.mxu1 %vm1457_vm0, %v2255_v59  ;;  %v2161_v26 = vmul.f32 %v2066_v10, %v7453_v31  ;;  %v2090_v28 = vmul.f32 0.5, %v2089_v56  ;;  %v2333_v31 = vadd.f32 %v7615_v22, %v7281_v1  ;;  %vm2094_vm9 = vweird.f32 %v7689_v54 }
 0x2c3   : > { %v1746_v16 = vpop.xlane.xlu1 %1745  ;;  %v2070_v12 = vmul.f32 0.5, %v2069_v62  ;;  %vm2095_vm11 = vmor %vm2093_vm8, %vm2094_vm9  ;;  %v2345_v57 = vadd.f32 %v7615_v22, %v7397_v11  ;;  %v2343_v39 = vadd.f32 %v7615_v22, %v7368_v25  ;;  %vm2103_vm14 = vweird.f32 %v7703_v6 }
 0x2c4   : > { %v1782_v9 = vmul.f32 %v1746_v16, %v6633_v20  ;;  %v2196_v43 = vmul.f32 %v7436_v48, %v2161_v26  ;;  %v2091_v38 = vsub.f32 1.5, %v2090_v28  ;;  %v7736_v7 = vpack.c.bf16 %v2335_v18, %v2333_v31 }
 0x2c5   : > { %v2071_v29 = vsub.f32 1.5, %v2070_v12  ;;  %v7764_v16 = vpack.c.bf16 %v2345_v57, %v2343_v39  ;;  %vm1421_vm4 = vcmask 253952  }
 0x2c6   : > { %v6098_v63 = vpop.eup %6097  ;;  %v7716_v14 = vadd.f32 1e-05, %v1782_v9 }
 0x2c7   : > { %v2078_v27 = vmul.f32 %v6098_v63, %v1811_v3  ;;  %v2072_v2 = vmul.f32 %v6096_v51, %v2071_v29  ;;  %v6100_v49 = vpop.eup %6099  ;;  %vm2084_vm7 = vweird.f32 %v6098_v63  ;;  %v2231_v3 = vadd.f32 %v7449_v8, %v2196_v43  ;;  %v1371_v43 = vld [vmem:[%s10148_s26] sm:$0x1] }
 0x2c8   : > { %6101 = vrsqrt.f32 %v7716_v14  ;;  %vm7743_vm10 = vmor %vm2083_vm6, %vm2084_vm7  ;;  %v2098_v58 = vmul.f32 %v6100_v49, %v7703_v6  ;;  %vm2113_vm12 = vweird.f32 %v7716_v14  ;;  %vm2104_vm15 = vweird.f32 %v6100_v49 }
 0x2c9   : > { %v2079_v37 = vmul.f32 %v6098_v63, %v2078_v27  ;;  %2450 = vrot.lane.b32.xlu1 %v7718_v36, %s6483_s0  ;;  %v2076_v30 = vsel %vm2075_vm5, %v6096_v51, %v2072_v2  ;;  %v2092_v51 = vmul.f32 %v7689_v54, %v2091_v38  ;;  %vm2105_vm2 = vmor %vm2103_vm14, %vm2104_vm15 }
 0x2ca   : > { %v2162_v53 = vmul.f32 %v2076_v30, %v7503_v13  ;;  %v7738_v13 = vpack.c.bf16 %v2360_v46, %v2358_v52  ;;  %v2099_v59 = vmul.f32 %v6100_v49, %v2098_v58  ;;  %v7783_v46 = vpop.f32.mrf.mxu1 }
 0x2cb   : > { %v2080_v33 = vmul.f32 0.5, %v2079_v37  ;;  %v2096_v62 = vsel %vm2095_vm11, %v7689_v54, %v2092_v51 }
 0x2cc   : > { %v2197_v35 = vmul.f32 %v7436_v48, %v2162_v53  ;;  %v2164_v12 = vmul.f32 %v2096_v62, %v7486_v41  ;;  %v2100_v11 = vmul.f32 0.5, %v2099_v59  ;;  %v1749_v53 = vpop.xlane.xlu2 %1748 }
 0x2cd   : > { %v2081_v15 = vsub.f32 1.5, %v2080_v33 }
 0x2ce   : > { %v6102_v23 = vpop.eup %6101  ;;  %v2232_v5 = vadd.f32 %v7449_v8, %v2197_v35  ;;  %v2199_v10 = vmul.f32 %v7436_v48, %v2164_v12  ;;  %v2101_v25 = vsub.f32 1.5, %v2100_v11  ;;  %v1414_v35 = vlaneseq }
 0x2cf   : > { %v2082_v1 = vmul.f32 %v6098_v63, %v2081_v15  ;;  %v2108_v17 = vmul.f32 %v6102_v23, %v7716_v14  ;;  %2454 = vrot.lane.b32.xlu0 %v7738_v13, %s6483_s0  ;;  %vm2114_vm13 = vweird.f32 %v6102_v23 }
 0x2d0   : > { %v2256_v21 = vpack.c.bf16 %v2232_v5, %v2231_v3  ;;  %vm2115_vm1 = vmor %vm2113_vm12, %vm2114_vm13  ;;  %v2234_v41 = vadd.f32 %v7449_v8, %v2199_v10  ;;  %v2102_v56 = vmul.f32 %v6100_v49, %v2101_v25  ;;  %v1415_v51 = vand.u32 127, %v1414_v35 }
 0x2d1   : > { %2444 = vrot.lane.b32.xlu1 %v7736_v7, %s6483_s0  ;;  %v2086_v24 = vsel %vm7743_vm10, %v6098_v63, %v2082_v1  ;;  %v2109_v61 = vmul.f32 %v6102_v23, %v2108_v17 }
 0x2d2   : > { %5808 = vmatmul.msk.bf16.gmra.mxu1 %vm1457_vm0, %v2256_v21  ;;  %v2163_v42 = vmul.f32 %v2086_v24, %v7539_v50  ;;  %v2106_v27 = vsel %vm2105_vm2, %v6100_v49, %v2102_v56  ;;  %v7785_v30 = vpop.f32.mrf.mxu1  ;;  %vm1416_vm3 = vcmp.lt.s32.totalorder %v1415_v51, 16 }
 0x2d3   : > { %v2110_v45 = vmul.f32 0.5, %v2109_v61  ;;  %v2165_v14 = vmul.f32 %v2106_v27, %v7535_v55 }
 0x2d4   : > { %v2198_v9 = vmul.f32 %v7436_v48, %v2163_v42  ;;  %v2457_v59 = vpop.permute.xlu2 %2456 }
 0x2d5   : > { %v2111_v4 = vsub.f32 1.5, %v2110_v45  ;;  %v2200_v6 = vmul.f32 %v7436_v48, %v2165_v14 }
 0x2d6   : > { %v2233_v50 = vadd.f32 %v7449_v8, %v2198_v9  ;;  %v7811_v9 = vsel %vm1457_vm0, %v2457_v59, 0 }
 0x2d7   : > { %2448 = vrot.lane.b32.xlu0 %v7764_v16, %s6483_s0  ;;  %v2112_v54 = vmul.f32 %v6102_v23, %v2111_v4  ;;  %v2235_v37 = vadd.f32 %v7449_v8, %v2200_v6 }
 0x2d8   : > { %v2257_v63 = vpack.c.bf16 %v2234_v41, %v2233_v50 }
 0x2d9   : > { %v2116_v29 = vsel %vm2115_vm1, %v6102_v23, %v2112_v54 }
 0x2da   : > { %v2166_v26 = vmul.f32 %v2116_v29, %v7581_v44  ;;  %v1783_v44 = vmul.f32 %v1749_v53, %v6633_v20  ;;  %v7788_v33 = vpop.f32.mrf.mxu1 }
 0x2dc   : > { %v2201_v2 = vmul.f32 %v7436_v48, %v2166_v26  ;;  %v1815_v55 = vadd.f32 1e-05, %v1783_v44  ;;  %v2453_v6 = vpop.permute.xlu2 %2452 }
 0x2dd   : > { %v7831_v53 = vsel %vm1457_vm0, %v2453_v6, 0 }
 0x2de   : > { %v2236_v28 = vadd.f32 %v7449_v8, %v2201_v2  ;;  %6103 = vrsqrt.f32 %v1815_v55  ;;  %vm2123_vm5 = vweird.f32 %v1815_v55 }
 0x2e0   : > { %v2258_v18 = vpack.c.bf16 %v2236_v28, %v2235_v37 }
 0x2e2   : > { %5809 = vmatmul.msk.bf16.gmra.mxu1 %vm1457_vm0, %v2257_v63  ;;  %v7790_v31 = vpop.f32.mrf.mxu1 }
 0x2e4   : > { %v6104_v52 = vpop.eup %6103 }
 0x2e5   : > { %v2118_v38 = vmul.f32 %v6104_v52, %v1815_v55  ;;  %vm2124_vm6 = vweird.f32 %v6104_v52 }
 0x2e6   : > { %vm2125_vm7 = vmor %vm2123_vm5, %vm2124_vm6 }
 0x2e7   : > { %v2119_v17 = vmul.f32 %v6104_v52, %v2118_v38 }
 0x2e9   : > { %v2120_v24 = vmul.f32 0.5, %v2119_v17 }
 0x2ea   : > { %v7795_v1 = vpop.f32.mrf.mxu1 }
 0x2eb   : > { %v2121_v62 = vsub.f32 1.5, %v2120_v24  ;;  %v2383_v24 = vadd.f32 %v7615_v22, %v7795_v1 }
 0x2ed   : > { %v2122_v11 = vmul.f32 %v6104_v52, %v2121_v62 }
 0x2ef   : > { %v2126_v25 = vsel %vm2125_vm7, %v6104_v52, %v2122_v11 }
 0x2f0   : > { %v2167_v56 = vmul.f32 %v2126_v25, %v7595_v34  ;;  %v2373_v25 = vadd.f32 %v7615_v22, %v7783_v46 }
 0x2f2   : > { %5810 = vmatmul.msk.bf16.gmra.mxu1 %vm1457_vm0, %v2258_v18  ;;  %v7808_v42 = vpop.f32.mrf.mxu1  ;;  %v2202_v2 = vmul.f32 %v7436_v48, %v2167_v56 }
 0x2f4   : > { %v2237_v37 = vadd.f32 %v7449_v8, %v2202_v2 }
 0x31d   : > { %v1410_v49 = vpop.f32.mrf.mxu0 }
 0x31e   : > { %v1411_v15 = vadd.f32 %v1410_v49, %v1371_v43  ;;  %v2447_v49 = vpop.permute.xlu2 %2446 }
 0x320   : > { %v1417_v23 = vmul.f32 0.5, %v1411_v15 }
 0x322   : > { %v1418_v3 = vmul.f32 1.442695, %v1417_v23 }
 0x324   : > { %6105 = vpow2.f32 %v1418_v3 }
 0x325   : > { %v1412_v57 = vpop.f32.mrf.mxu0 }
 0x32a   : > { %v6106_v39 = vpop.eup %6105 }
 0x32b   : > { %v1420_v45 = vsel %vm1416_vm3, %v1411_v15, %v6106_v39  ;;  %v7850_v15 = vsel %vm1457_vm0, %v2447_v49, 0 }
 0x32c   : > { %1422 = vst.msk [vmem:[%s709_s1] sm:$0x1] %vm1421_vm4, %v1420_v45 }
 0x32e   : > { %v1752_v40 = vpop.xlane.xlu0 %1751 }
 0x32f   : > { %v1784_v5 = vmul.f32 %v1752_v40, %v6633_v20 }
 0x331   : > { %v1816_v58 = vadd.f32 1e-05, %v1784_v5 }
 0x333   : > { %v2459_v21 = vpop.permute.xlu1 %2458  ;;  %6107 = vrsqrt.f32 %v1816_v58  ;;  %vm2133_vm9 = vweird.f32 %v1816_v58 }
 0x334   : > { %v7799_v61 = vsel %vm1457_vm0, %v2459_v21, 0 }
 0x335   : > { %2536 = vmatpush.bf16.xpose.msrb.mxu3 %v7799_v61  ;;  %2840 = vmatpush.bf16.xpose.msra.mxu2 %v7799_v61 }
 0x336   : > { %3352 = vmatpush.bf16.xpose.msra.mxu1 %v7799_v61 }
 0x339   : > { %v6108_v12 = vpop.eup %6107 }
 0x33a   : > { %v2128_v4 = vmul.f32 %v6108_v12, %v1816_v58  ;;  %vm2134_vm8 = vweird.f32 %v6108_v12  ;;  %v2385_v58 = vadd.f32 %v7615_v22, %v7808_v42 }
 0x33b   : > { %vm2135_vm10 = vmor %vm2133_vm9, %vm2134_vm8 }
 0x33c   : > { %v2129_v10 = vmul.f32 %v6108_v12, %v2128_v4  ;;  %v7875_v62 = vpack.c.bf16 %v2385_v58, %v2383_v24 }
 0x33d   : > { %2537 = vmatpush.bf16.xpose.msrb.mxu3 %v7811_v9  ;;  %2841 = vmatpush.bf16.xpose.msra.mxu2 %v7811_v9 }
 0x33e   : > { %3353 = vmatpush.bf16.xpose.msra.mxu1 %v7811_v9  ;;  %v2130_v50 = vmul.f32 0.5, %v2129_v10  ;;  %v2375_v10 = vadd.f32 %v7615_v22, %v7785_v30 }
 0x33f   : > { %v7816_v54 = vpop.f32.mrf.mxu1 }
 0x340   : > { %v2131_v41 = vsub.f32 1.5, %v2130_v50  ;;  %v2388_v11 = vadd.f32 %v7615_v22, %v7816_v54  ;;  %v7910_v50 = vpack.c.bf16 %v2375_v10, %v2373_v25 }
 0x341   : > { %v2455_v63 = vpop.permute.xlu0 %2454 }
 0x342   : > { %v2132_v29 = vmul.f32 %v6108_v12, %v2131_v41  ;;  %v7820_v27 = vsel %vm1457_vm0, %v2455_v63, 0  ;;  %v2380_v63 = vadd.f32 %v7615_v22, %v7790_v31 }
 0x344   : > { %v2136_v26 = vsel %vm2135_vm10, %v6108_v12, %v2132_v29  ;;  %v2378_v29 = vadd.f32 %v7615_v22, %v7788_v33 }
 0x345   : > { %2538 = vmatpush.bf16.xpose.msrb.mxu3 %v7820_v27  ;;  %2842 = vmatpush.bf16.xpose.msra.mxu2 %v7820_v27  ;;  %v2168_v14 = vmul.f32 %v2136_v26, %v7675_v47  ;;  %v2451_v47 = vpop.permute.xlu1 %2450 }
 0x346   : > { %3354 = vmatpush.bf16.xpose.msra.mxu1 %v7820_v27  ;;  %v7940_v26 = vpack.c.bf16 %v2380_v63, %v2378_v29 }
 0x347   : > { %v2389_v34 = vpop.f32.mrf.mxu1  ;;  %v2203_v28 = vmul.f32 %v7436_v48, %v2168_v14  ;;  %v7838_v48 = vsel %vm1457_vm0, %v2451_v47, 0 }
 0x348   : > { %v2390_v12 = vadd.f32 %v7615_v22, %v2389_v34 }
 0x349   : > { %v2238_v18 = vadd.f32 %v7449_v8, %v2203_v28  ;;  %v2449_v8 = vpop.permute.xlu0 %2448 }
 0x34a   : > { %v7844_v43 = vsel %vm1457_vm0, %v2449_v8, 0  ;;  %v7896_v4 = vpack.c.bf16 %v2390_v12, %v2388_v11 }
 0x34b   : > { %v2259_v44 = vpack.c.bf16 %v2238_v18, %v2237_v37 }
 0x34d   : > { %2539 = vmatpush.bf16.xpose.msrb.mxu3 %v7831_v53  ;;  %2843 = vmatpush.bf16.xpose.msra.mxu2 %v7831_v53  ;;  %v2445_v35 = vpop.permute.xlu1 %2444 }
 0x34e   : > { %3355 = vmatpush.bf16.xpose.msra.mxu1 %v7831_v53  ;;  %v7858_v3 = vsel %vm1457_vm0, %v2445_v35, 0 }
 0x34f   : > { %5811 = vmatmul.msk.bf16.gmra.mxu1 %vm1457_vm0, %v2259_v44  ;;  %v2392_v55 = vpop.f32.mrf.mxu1 }
 0x350   : > { %v2393_v21 = vadd.f32 %v7615_v22, %v2392_v55 }
 0x355   : > { %2540 = vmatpush.bf16.xpose.msrb.mxu3 %v7838_v48  ;;  %2844 = vmatpush.bf16.xpose.msra.mxu2 %v7838_v48 }
 0x356   : > { %3356 = vmatpush.bf16.xpose.msra.mxu1 %v7838_v48 }
 0x357   : > { %v2394_v52 = vpop.f32.mrf.mxu1 }
 0x358   : > { %v2395_v51 = vadd.f32 %v7615_v22, %v2394_v52 }
 0x35a   : > { %v7873_v39 = vpack.c.bf16 %v2395_v51, %v2393_v21 }
 0x35d   : > { %2541 = vmatpush.bf16.xpose.msrb.mxu3 %v7844_v43  ;;  %2845 = vmatpush.bf16.xpose.msra.mxu2 %v7844_v43 }
 0x35e   : > { %3357 = vmatpush.bf16.xpose.msra.mxu1 %v7844_v43 }
 0x35f   : > { %v2397_v38 = vpop.f32.mrf.mxu1 }
 0x360   : > { %v2398_v17 = vadd.f32 %v7615_v22, %v2397_v38 }
 0x365   : > { %2542 = vmatpush.bf16.xpose.msrb.mxu3 %v7850_v15  ;;  %2846 = vmatpush.bf16.xpose.msra.mxu2 %v7850_v15 }
 0x366   : > { %3358 = vmatpush.bf16.xpose.msra.mxu1 %v7850_v15 }
 0x367   : > { %v2399_v23 = vpop.f32.mrf.mxu1 }
 0x368   : > { %v2400_v40 = vadd.f32 %v7615_v22, %v2399_v23 }
 0x36a   : > { %v7860_v5 = vpack.c.bf16 %v2400_v40, %v2398_v17 }
 0x36c   : > { %2470 = vrot.lane.b32.xlu1 %v7860_v5, %s6483_s0 }
 0x36d   : > { %2543 = vmatpush.bf16.xpose.msrb.mxu3 %v7858_v3  ;;  %2847 = vmatpush.bf16.xpose.msra.mxu2 %v7858_v3 }
 0x36e   : > { %3359 = vmatpush.bf16.xpose.msra.mxu1 %v7858_v3 }
 0x36f   : > { %v2402_v57 = vpop.f32.mrf.mxu1 }
 0x370   : > { %v2403_v42 = vadd.f32 %v7615_v22, %v2402_v57 }
 0x374   : > { %5812 = vmatmul.msk.bf16.vlgmr.msrb.gmra.mxu3 %vm1457_vm0, %v7736_v7  ;;  %5820 = vmatmul.msk.bf16.vlgmr.msra.gmra.mxu2 %vm1457_vm0, %v7628_v0 }
 0x375   : > { %5836 = vmatmul.msk.bf16.vlgmr.msra.gmra.mxu1 %vm1457_vm0, %v7873_v39  ;;  %2464 = vrot.lane.b32.xlu1 %v7875_v62, %s6483_s0 }
 0x377   : > { %v2404_v59 = vpop.f32.mrf.mxu1 }
 0x378   : > { %v2405_v1 = vadd.f32 %v7615_v22, %v2404_v59 }
 0x37a   : > { %v7887_v45 = vpack.c.bf16 %v2405_v1, %v2403_v42 }
 0x37c   : > { %2472 = vrot.lane.b32.xlu2 %v7887_v45, %s6483_s0 }
 0x37d   : > { %2736 = vrot.lane.b32.xlu1 %v7693_v19, %s6484_s5 }
 0x384   : > { %5813 = vmatmul.msk.bf16.gmra.mxu3 %vm1457_vm0, %v7636_v60  ;;  %5821 = vmatmul.msk.bf16.gmra.mxu2 %vm1457_vm0, %v7738_v13 }
 0x385   : > { %5837 = vmatmul.msk.bf16.gmra.mxu1 %vm1457_vm0, %v7860_v5  ;;  %2466 = vrot.lane.b32.xlu2 %v7896_v4, %s6483_s0 }
 0x38d   : > { %2460 = vrot.lane.b32.xlu2 %v7910_v50, %s6483_s0 }
 0x394   : > { %5814 = vmatmul.msk.bf16.gmra.mxu3 %vm1457_vm0, %v7764_v16  ;;  %5822 = vmatmul.msk.bf16.gmra.mxu2 %vm1457_vm0, %v7620_v32 }
 0x395   : > { %5838 = vmatmul.msk.bf16.gmra.mxu1 %vm1457_vm0, %v7887_v45  ;;  %2732 = vrot.lane.b32.xlu2 %v7738_v13, %s6484_s5 }
 0x3a4   : > { %5815 = vmatmul.msk.bf16.gmra.mxu3 %vm1457_vm0, %v7718_v36  ;;  %5823 = vmatmul.msk.bf16.gmra.mxu2 %vm1457_vm0, %v7693_v19 }
 0x3cc   : > { %v2407_v46 = vpop.f32.mrf.mxu1 }
 0x3cd   : > { %v2408_v54 = vadd.f32 %v7615_v22, %v2407_v46 }
 0x3d4   : > { %v2409_v30 = vpop.f32.mrf.mxu1 }
 0x3d5   : > { %v2410_v41 = vadd.f32 %v7615_v22, %v2409_v30 }
 0x3d6   : > { %v2473_v31 = vpop.permute.xlu2 %2472 }
 0x3d7   : > { %v7928_v56 = vpack.c.bf16 %v2410_v41, %v2408_v54  ;;  %v7953_v22 = vsel %vm1457_vm0, %v2473_v31, 0 }
 0x3d9   : > { %10149 = vst [vmem:[#allocation4_spill] sm:$0xff] %v7928_v56  ;;  %2474 = vrot.lane.b32.xlu0 %v7928_v56, %s6483_s0  ;;  %5839 = vmatmul.msk.bf16.gmra.mxu1 %vm1457_vm0, %v7928_v56 }
 0x3de   : > { %v2471_v33 = vpop.permute.xlu1 %2470 }
 0x3df   : > { %v7957_v6 = vsel %vm1457_vm0, %v2471_v33, 0  ;;  %v2467_v37 = vpop.permute.xlu2 %2466 }
 0x3e0   : > { %v7965_v18 = vsel %vm1457_vm0, %v2467_v37, 0 }
 0x3e1   : > { %2468 = vrot.lane.b32.xlu0 %v7873_v39, %s6483_s0 }
 0x3e7   : > { %v2465_v44 = vpop.permute.xlu1 %2464  ;;  %v2461_v52 = vpop.permute.xlu2 %2460 }
 0x3e8   : > { %v7969_v47 = vsel %vm1457_vm0, %v2465_v44, 0  ;;  %v7977_v49 = vsel %vm1457_vm0, %v2461_v52, 0 }
 0x3e9   : > { %2462 = vrot.lane.b32.xlu0 %v7940_v26, %s6483_s0 }
 0x3ef   : > { %v7979_v38 = vpop.permute.xlu1 %2736  ;;  %v7988_v23 = vpop.permute.xlu2 %2732 }
 0x3f1   : > { %2734 = vrot.lane.b32.xlu0 %v7620_v32, %s6484_s5 }
 0x3f7   : > { %v2545_v40 = vpop.f32.mrf.mxu3 }
 0x3f9   : > { %2730 = vrot.lane.b32.xlu0 %v7628_v0, %s6484_s5 }
 0x3ff   : > { %v2547_v51 = vpop.f32.mrf.mxu3 }
 0x407   : > { %v2550_v58 = vpop.f32.mrf.mxu3 }
 0x40f   : > { %v8000_v21 = vpop.f32.mrf.mxu3 }
 0x417   : > { %v8002_v57 = vpop.f32.mrf.mxu3 }
 0x41f   : > { %v8004_v24 = vpop.f32.mrf.mxu3 }
 0x427   : > { %v8006_v59 = vpop.f32.mrf.mxu3 }
 0x42f   : > { %v8008_v42 = vpop.f32.mrf.mxu3 }
 0x44b   : > { %v2475_v14 = vpop.permute.xlu0 %2474 }
 0x44c   : > { %v7949_v2 = vsel %vm1457_vm0, %v2475_v14, 0 }
 0x44d   : > { %2565 = vmatpush.bf16.xpose.msra.mxu3 %v7949_v2 }
 0x453   : > { %v2469_v34 = vpop.permute.xlu0 %2468 }
 0x454   : > { %v7961_v28 = vsel %vm1457_vm0, %v2469_v34, 0 }
 0x455   : > { %2566 = vmatpush.bf16.xpose.msra.mxu3 %v7953_v22 }
 0x45b   : > { %v2463_v55 = vpop.permute.xlu0 %2462 }
 0x45c   : > { %v7973_v8 = vsel %vm1457_vm0, %v2463_v55, 0 }
 0x45d   : > { %2567 = vmatpush.bf16.xpose.msra.mxu3 %v7957_v6 }
 0x463   : > { %v7983_v35 = vpop.permute.xlu0 %2734 }
 0x465   : > { %2568 = vmatpush.bf16.xpose.msra.mxu3 %v7961_v28 }
 0x46b   : > { %v7991_v17 = vpop.permute.xlu0 %2730 }
 0x46d   : > { %2569 = vmatpush.bf16.xpose.msra.mxu3 %v7965_v18 }
 0x475   : > { %2570 = vmatpush.bf16.xpose.msra.mxu3 %v7969_v47 }
 0x47d   : > { %2571 = vmatpush.bf16.xpose.msra.mxu3 %v7973_v8 }
 0x485   : > { %2572 = vmatpush.bf16.xpose.msra.mxu3 %v7977_v49 }
 0x48c   : > { %5816 = vmatmul.msk.bf16.vlgmr.msra.gmra.mxu3 %vm1457_vm0, %v7736_v7 }
 0x48d   : > { %2770 = vmatpush.bf16.msrb.mxu3 %v7979_v38 }
 0x491   : > { %2771 = vmatpush.bf16.msrb.mxu3 %v7983_v35 }
 0x495   : > { %2772 = vmatpush.bf16.msrb.mxu3 %v7988_v23 }
 0x499   : > { %2773 = vmatpush.bf16.msrb.mxu3 %v7991_v17 }
 0x49c   : > { %5817 = vmatmul.msk.bf16.gmra.mxu3 %vm1457_vm0, %v7636_v60 }
 0x4ac   : > { %5818 = vmatmul.msk.bf16.gmra.mxu3 %vm1457_vm0, %v7764_v16 }
 0x4bc   : > { %5819 = vmatmul.msk.bf16.gmra.mxu3 %vm1457_vm0, %v7718_v36 }
 0x50f   : > { %v2574_v1 = vpop.f32.mrf.mxu3 }
 0x510   : > { %v2594_v12 = vmax.f32 %v2545_v40, %v2574_v1 }
 0x512   : > { %2595 = vmax.xlane.f32.xlu1 %v2594_v12 }
 0x517   : > { %v2576_v11 = vpop.f32.mrf.mxu3 }
 0x518   : > { %v2597_v10 = vmax.f32 %v2547_v51, %v2576_v11 }
 0x51a   : > { %2598 = vmax.xlane.f32.xlu0 %v2597_v10 }
 0x51f   : > { %v2579_v25 = vpop.f32.mrf.mxu3 }
 0x520   : > { %v2600_v46 = vmax.f32 %v2550_v58, %v2579_v25 }
 0x522   : > { %2601 = vmax.xlane.f32.xlu2 %v2600_v46 }
 0x527   : > { %v8010_v30 = vpop.f32.mrf.mxu3 }
 0x528   : > { %v2603_v54 = vmax.f32 %v8000_v21, %v8010_v30 }
 0x52a   : > { %2604 = vmax.xlane.f32.xlu1 %v2603_v54 }
 0x52e   : > { %2728 = vrot.lane.b32.xlu0 %v7718_v36, %s6484_s5 }
 0x52f   : > { %v8016_v41 = vpop.f32.mrf.mxu3 }
 0x530   : > { %v2606_v36 = vmax.f32 %v8002_v57, %v8016_v41 }
 0x537   : > { %v2586_v63 = vpop.f32.mrf.mxu3 }
 0x538   : > { %v2609_v29 = vmax.f32 %v8004_v24, %v2586_v63 }
 0x53a   : > { %2610 = vmax.xlane.f32.xlu2 %v2609_v29 }
 0x53f   : > { %v8019_v14 = vpop.f32.mrf.mxu3 }
 0x540   : > { %v2612_v31 = vmax.f32 %v8006_v59, %v8019_v14 }
 0x542   : > { %2613 = vmax.xlane.f32.xlu1 %v2612_v31 }
 0x547   : > { %v8023_v33 = vpop.f32.mrf.mxu3 }
 0x548   : > { %v2615_v34 = vmax.f32 %v8008_v42, %v8023_v33 }
 0x54a   : > { %2616 = vmax.xlane.f32.xlu2 %v2615_v34 }
 0x558   : > { %2607 = vmax.xlane.f32.xlu0 %v2606_v36 }
 0x562   : > { %2726 = vrot.lane.b32.xlu2 %v7764_v16, %s6484_s5 }
 0x585   : > { %v2596_v37 = vpop.xlane.xlu1 %2595 }
 0x586   : > { %v2618_v44 = vsub.f32 %v2545_v40, %v2596_v37  ;;  %v2619_v55 = vsub.f32 %v2574_v1, %v2596_v37 }
 0x588   : > { %v2634_v52 = vmul.f32 1.442695, %v2618_v44  ;;  %v2636_v12 = vmul.f32 1.442695, %v2619_v55 }
 0x58a   : > { %6109 = vpow2.f32 %v2634_v52 }
 0x58b   : > { %6111 = vpow2.f32 %v2636_v12 }
 0x58d   : > { %v2599_v10 = vpop.xlane.xlu0 %2598 }
 0x58e   : > { %v2620_v46 = vsub.f32 %v2547_v51, %v2599_v10  ;;  %v2621_v54 = vsub.f32 %v2576_v11, %v2599_v10 }
 0x590   : > { %v8031_v29 = vpop.eup %6109  ;;  %v2638_v31 = vmul.f32 1.442695, %v2620_v46  ;;  %v2640_v34 = vmul.f32 1.442695, %v2621_v54 }
 0x591   : > { %v8033_v20 = vpop.eup %6111 }
 0x592   : > { %6113 = vpow2.f32 %v2638_v31  ;;  %v2666_v16 = vadd.f32 %v8033_v20, %v8031_v29 }
 0x593   : > { %6115 = vpow2.f32 %v2640_v34 }
 0x594   : > { %2667 = vadd.xlane.f32.xlu0 %v2666_v16 }
 0x595   : > { %v2602_v40 = vpop.xlane.xlu2 %2601 }
 0x596   : > { %v2622_v1 = vsub.f32 %v2550_v58, %v2602_v40  ;;  %v2623_v36 = vsub.f32 %v2579_v25, %v2602_v40 }
 0x598   : > { %v8037_v37 = vpop.eup %6113  ;;  %v2642_v44 = vmul.f32 1.442695, %v2622_v1  ;;  %v2644_v51 = vmul.f32 1.442695, %v2623_v36 }
 0x599   : > { %v8039_v11 = vpop.eup %6115 }
 0x59a   : > { %6117 = vpow2.f32 %v2642_v44  ;;  %v2669_v55 = vadd.f32 %v8039_v11, %v8037_v37 }
 0x59b   : > { %6119 = vpow2.f32 %v2644_v51 }
 0x59c   : > { %2670 = vadd.xlane.f32.xlu1 %v2669_v55 }
 0x5a0   : > { %v8043_v52 = vpop.eup %6117  ;;  %v8045_v12 = vpop.permute.xlu0 %2728 }
 0x5a1   : > { %v8047_v10 = vpop.eup %6119  ;;  %2774 = vmatpush.bf16.msrb.mxu3 %v8045_v12 }
 0x5a2   : > { %v2672_v58 = vadd.f32 %v8047_v10, %v8043_v52 }
 0x5a4   : > { %2673 = vadd.xlane.f32.xlu2 %v2672_v58 }
 0x5a8   : > { %2722 = vrot.lane.b32.xlu0 %v7736_v7, %s6484_s5 }
 0x5ad   : > { %v2611_v25 = vpop.xlane.xlu2 %2610 }
 0x5ae   : > { %v2628_v46 = vsub.f32 %v8004_v24, %v2611_v25  ;;  %v2629_v54 = vsub.f32 %v2586_v63, %v2611_v25  ;;  %v2605_v24 = vpop.xlane.xlu1 %2604 }
 0x5af   : > { %v2624_v63 = vsub.f32 %v8000_v21, %v2605_v24  ;;  %v2625_v51 = vsub.f32 %v8010_v30, %v2605_v24 }
 0x5b0   : > { %v2654_v31 = vmul.f32 1.442695, %v2628_v46  ;;  %v2656_v34 = vmul.f32 1.442695, %v2629_v54 }
 0x5b1   : > { %v2646_v54 = vmul.f32 1.442695, %v2624_v63 }
 0x5b2   : > { %6121 = vpow2.f32 %v2654_v31 }
 0x5b3   : > { %6123 = vpow2.f32 %v2656_v34  ;;  %v2648_v34 = vmul.f32 1.442695, %v2625_v51 }
 0x5b5   : > { %2724 = vrot.lane.b32.xlu1 %v7636_v60, %s6484_s5 }
 0x5b8   : > { %v8057_v16 = vpop.eup %6121 }
 0x5b9   : > { %v8059_v40 = vpop.eup %6123 }
 0x5ba   : > { %v2681_v1 = vadd.f32 %v8059_v40, %v8057_v16 }
 0x5bc   : > { %2682 = vadd.xlane.f32.xlu2 %v2681_v1  ;;  %v2614_v1 = vpop.xlane.xlu1 %2613 }
 0x5bd   : > { %v2617_v7 = vpop.xlane.xlu2 %2616  ;;  %v2630_v21 = vsub.f32 %v8006_v59, %v2614_v1 }
 0x5be   : > { %v2632_v58 = vsub.f32 %v8008_v42, %v2617_v7  ;;  %v2633_v31 = vsub.f32 %v8023_v33, %v2617_v7 }
 0x5bf   : > { %v2658_v33 = vmul.f32 1.442695, %v2630_v21 }
 0x5c0   : > { %v2662_v19 = vmul.f32 1.442695, %v2632_v58  ;;  %v2664_v30 = vmul.f32 1.442695, %v2633_v31 }
 0x5c5   : > { %v8063_v36 = vpop.permute.xlu2 %2726 }
 0x5c6   : > { %2775 = vmatpush.bf16.msrb.mxu3 %v8063_v36 }
 0x5cb   : > { %v2608_v44 = vpop.xlane.xlu0 %2607 }
 0x5cc   : > { %v2626_v60 = vsub.f32 %v8002_v57, %v2608_v44  ;;  %v2627_v55 = vsub.f32 %v8016_v41, %v2608_v44  ;;  %v2631_v57 = vsub.f32 %v8019_v14, %v2614_v1 }
 0x5ce   : > { %v2650_v25 = vmul.f32 1.442695, %v2626_v60  ;;  %v2652_v46 = vmul.f32 1.442695, %v2627_v55  ;;  %v2660_v7 = vmul.f32 1.442695, %v2631_v57 }
 0x5d0   : > { %6125 = vpow2.f32 %v2650_v25 }
 0x5d1   : > { %6127 = vpow2.f32 %v2652_v46 }
 0x5d2   : > { %6129 = vpow2.f32 %v2646_v54 }
 0x5d3   : > { %6131 = vpow2.f32 %v2648_v34 }
 0x5d4   : > { %2752 = vrot.lane.b32.xlu2 %v7928_v56, %s6484_s5  ;;  %6133 = vpow2.f32 %v2662_v19 }
 0x5d5   : > { %6135 = vpow2.f32 %v2664_v30 }
 0x5d6   : > { %v8076_v42 = vpop.eup %6125  ;;  %6137 = vpow2.f32 %v2658_v33 }
 0x5d7   : > { %v8078_v41 = vpop.eup %6127  ;;  %6139 = vpow2.f32 %v2660_v7 }
 0x5d8   : > { %v2678_v24 = vadd.f32 %v8078_v41, %v8076_v42  ;;  %v8082_v63 = vpop.eup %6129 }
 0x5d9   : > { %v8084_v59 = vpop.eup %6131 }
 0x5da   : > { %2679 = vadd.xlane.f32.xlu0 %v2678_v24  ;;  %v8086_v14 = vpop.eup %6133  ;;  %v2675_v44 = vadd.f32 %v8084_v59, %v8082_v63 }
 0x5db   : > { %v8090_v19 = vpop.eup %6135 }
 0x5dc   : > { %2746 = vrot.lane.b32.xlu2 %v7873_v39, %s6484_s5  ;;  %v2687_v51 = vadd.f32 %v8090_v19, %v8086_v14  ;;  %v8096_v60 = vpop.eup %6137 }
 0x5dd   : > { %v8098_v55 = vpop.eup %6139 }
 0x5de   : > { %v2684_v58 = vadd.f32 %v8098_v55, %v8096_v60 }
 0x5df   : > { %2676 = vadd.xlane.f32.xlu1 %v2675_v44 }
 0x5e2   : > { %2688 = vadd.xlane.f32.xlu0 %v2687_v51 }
 0x5e4   : > { %2740 = vrot.lane.b32.xlu2 %v7940_v26, %s6484_s5 }
 0x5e7   : > { %2685 = vadd.xlane.f32.xlu1 %v2684_v58 }
 0x5f6   : > { %2748 = vrot.lane.b32.xlu0 %v7860_v5, %s6484_s5 }
 0x5fe   : > { %2744 = vrot.lane.b32.xlu0 %v7896_v4, %s6484_s5 }
 0x600   : > { %2750 = vrot.lane.b32.xlu1 %v7887_v45, %s6484_s5 }
 0x606   : > { %2738 = vrot.lane.b32.xlu0 %v7910_v50, %s6484_s5 }
 0x607   : > { %v2668_v25 = vpop.xlane.xlu0 %2667 }
 0x608   : > { %2742 = vrot.lane.b32.xlu1 %v7875_v62, %s6484_s5  ;;  %6141 = vrcp.f32 %v2668_v25 }
 0x60e   : > { %v6142_v54 = vpop.eup %6141 }
 0x60f   : > { %v2671_v46 = vpop.xlane.xlu1 %2670  ;;  %v8115_v34 = vmul.f32 %v6142_v54, %v8033_v20  ;;  %v2698_v7 = vmul.f32 %v6142_v54, %v8031_v29 }
 0x610   : > { %6143 = vrcp.f32 %v2671_v46 }
 0x616   : > { %v6144_v31 = vpop.eup %6143 }
 0x617   : > { %v8118_v1 = vmul.f32 %v6144_v31, %v8039_v11  ;;  %v2674_v30 = vpop.xlane.xlu2 %2673  ;;  %v2700_v33 = vmul.f32 %v6144_v31, %v8037_v37 }
 0x619   : > { %v2714_v20 = vpack.c.bf16 %v2700_v33, %v2698_v7 }
 0x61a   : > { %v8127_v24 = vpop.permute.xlu0 %2722 }
 0x627   : > { %v8122_v57 = vpop.permute.xlu1 %2724 }
 0x628   : > { %2776 = vmatpush.bf16.msrb.mxu3 %v8122_v57 }
 0x62c   : > { %2777 = vmatpush.bf16.msrb.mxu3 %v8127_v24 }
 0x62f   : > { %2778 = vmatmul.bf16.vlgmr.msrb.gmra.mxu3 %v2714_v20  ;;  %v2683_v11 = vpop.xlane.xlu2 %2682 }
 0x630   : > { %2869 = vmatpush.bf16.xpose.msra.mxu3 %v7949_v2  ;;  %6145 = vrcp.f32 %v2683_v11 }
 0x636   : > { %v6146_v37 = vpop.eup %6145 }
 0x637   : > { %v8132_v44 = vpop.permute.xlu2 %2752  ;;  %v8144_v46 = vmul.f32 %v6146_v37, %v8059_v40 }
 0x638   : > { %2870 = vmatpush.bf16.xpose.msra.mxu3 %v7953_v22  ;;  %2799 = vmatpush.bf16.msrb.mxu0 %v8132_v44 }
 0x639   : > { %3055 = vmatpush.bf16.msrb.mxu2 %v8132_v44 }
 0x640   : > { %2871 = vmatpush.bf16.xpose.msra.mxu3 %v7957_v6 }
 0x648   : > { %2872 = vmatpush.bf16.xpose.msra.mxu3 %v7961_v28 }
 0x64d   : > { %v2680_v29 = vpop.xlane.xlu0 %2679 }
 0x64e   : > { %6147 = vrcp.f32 %v2680_v29 }
 0x64f   : > { %6149 = vrcp.f32 %v2674_v30 }
 0x650   : > { %2873 = vmatpush.bf16.xpose.msra.mxu3 %v7965_v18 }
 0x652   : > { %v2677_v51 = vpop.xlane.xlu1 %2676 }
 0x653   : > { %6151 = vrcp.f32 %v2677_v51 }
 0x654   : > { %v6148_v58 = vpop.eup %6147 }
 0x655   : > { %v8141_v25 = vmul.f32 %v6148_v58, %v8078_v41  ;;  %v2689_v54 = vpop.xlane.xlu0 %2688  ;;  %v6150_v31 = vpop.eup %6149 }
 0x656   : > { %6153 = vrcp.f32 %v2689_v54  ;;  %v2702_v20 = vmul.f32 %v6150_v31, %v8043_v52  ;;  %v2703_v29 = vmul.f32 %v6150_v31, %v8047_v10  ;;  %v2706_v10 = vmul.f32 %v6148_v58, %v8076_v42 }
 0x658   : > { %2874 = vmatpush.bf16.xpose.msra.mxu3 %v7969_v47 }
 0x659   : > { %v6152_v7 = vpop.eup %6151 }
 0x65a   : > { %v2686_v30 = vpop.xlane.xlu1 %2685  ;;  %v2704_v11 = vmul.f32 %v6152_v7, %v8082_v63  ;;  %v2705_v41 = vmul.f32 %v6152_v7, %v8084_v59  ;;  %v2708_v63 = vmul.f32 %v6146_v37, %v8057_v16  ;;  %v8176_v16 = vpop.permute.xlu2 %2746 }
 0x65b   : > { %6155 = vrcp.f32 %v2686_v30 }
 0x65c   : > { %v2716_v51 = vpack.c.bf16 %v2704_v11, %v2702_v20  ;;  %v2717_v40 = vpack.c.bf16 %v2705_v41, %v2703_v29  ;;  %v6154_v21 = vpop.eup %6153  ;;  %v2718_v59 = vpack.c.bf16 %v2708_v63, %v2706_v10 }
 0x65d   : > { %v8157_v54 = vmul.f32 %v6154_v21, %v8090_v19 }
 0x65e   : > { %2783 = vmatmul.bf16.gmra.mxu3 %v2716_v51 }
 0x660   : > { %2875 = vmatpush.bf16.xpose.msra.mxu3 %v7973_v8 }
 0x661   : > { %v6156_v56 = vpop.eup %6155 }
 0x662   : > { %v8154_v33 = vmul.f32 %v6156_v56, %v8098_v55 }
 0x664   : > { %v2721_v52 = vpack.c.bf16 %v8157_v54, %v8154_v33 }
 0x668   : > { %2876 = vmatpush.bf16.xpose.msra.mxu3 %v7977_v49  ;;  %v8170_v19 = vpop.permute.xlu0 %2748 }
 0x66e   : > { %2788 = vmatmul.bf16.gmra.mxu3 %v2718_v59 }
 0x670   : > { %3096 = vmatpush.bf16.xpose.msrb.mxu3 %v7799_v61  ;;  %v2710_v61 = vmul.f32 %v6156_v56, %v8096_v60  ;;  %v8181_v37 = vpop.permute.xlu0 %2744  ;;  %v2741_v56 = vpop.permute.xlu2 %2740 }
 0x672   : > { %v8166_v55 = vpop.permute.xlu1 %2750 }
 0x673   : > { %2800 = vmatpush.bf16.msrb.mxu0 %v8166_v55  ;;  %3056 = vmatpush.bf16.msrb.mxu2 %v8166_v55 }
 0x677   : > { %2801 = vmatpush.bf16.msrb.mxu0 %v8170_v19  ;;  %3057 = vmatpush.bf16.msrb.mxu2 %v8170_v19 }
 0x678   : > { %3097 = vmatpush.bf16.xpose.msrb.mxu3 %v7811_v9  ;;  %v2712_v9 = vmul.f32 %v6154_v21, %v8086_v14  ;;  %v2739_v14 = vpop.permute.xlu0 %2738 }
 0x67a   : > { %v2720_v42 = vpack.c.bf16 %v2712_v9, %v2710_v61 }
 0x67b   : > { %2802 = vmatpush.bf16.msrb.mxu0 %v8176_v16  ;;  %3058 = vmatpush.bf16.msrb.mxu2 %v8176_v16 }
 0x67e   : > { %2793 = vmatmul.bf16.gmra.mxu3 %v2720_v42 }
 0x67f   : > { %2803 = vmatpush.bf16.msrb.mxu0 %v8181_v37  ;;  %3059 = vmatpush.bf16.msrb.mxu2 %v8181_v37 }
 0x680   : > { %3098 = vmatpush.bf16.xpose.msrb.mxu3 %v7820_v27  ;;  %v2743_v27 = vpop.permute.xlu1 %2742 }
 0x683   : > { %2804 = vmatpush.bf16.msrb.mxu0 %v2743_v27  ;;  %3060 = vmatpush.bf16.msrb.mxu2 %v2743_v27 }
 0x687   : > { %2805 = vmatpush.bf16.msrb.mxu0 %v2741_v56  ;;  %3061 = vmatpush.bf16.msrb.mxu2 %v2741_v56 }
 0x688   : > { %3099 = vmatpush.bf16.xpose.msrb.mxu3 %v7831_v53  ;;  %v10150_v53 = vpack.c.bf16 %v8118_v1, %v8115_v34  ;;  %v6007_v34 = vld [vmem:[%s10063_s10] sm:$0xff] }
 0x68b   : > { %2806 = vmatpush.bf16.msrb.mxu0 %v2739_v14  ;;  %3062 = vmatpush.bf16.msrb.mxu2 %v2739_v14 }
 0x68e   : > { %2807 = vmatmul.bf16.vlgmr.msrb.gmra.mxu0 %v10150_v53  ;;  %5824 = vmatmul.msk.bf16.vlgmr.msra.gmra.mxu3 %vm1457_vm0, %v7628_v0  ;;  %v10151_v0 = vpack.c.bf16 %v8144_v46, %v8141_v25 }
 0x68f   : > { %3026 = vmatpush.bf16.msra.mxu0 %v7979_v38  ;;  %3282 = vmatpush.bf16.msra.mxu2 %v7979_v38 }
 0x690   : > { %3100 = vmatpush.bf16.xpose.msrb.mxu3 %v7838_v48 }
 0x693   : > { %3027 = vmatpush.bf16.msra.mxu0 %v7983_v35  ;;  %3283 = vmatpush.bf16.msra.mxu2 %v7983_v35 }
 0x697   : > { %3028 = vmatpush.bf16.msra.mxu0 %v7988_v23  ;;  %3284 = vmatpush.bf16.msra.mxu2 %v7988_v23 }
 0x698   : > { %3101 = vmatpush.bf16.xpose.msrb.mxu3 %v7844_v43 }
 0x69b   : > { %3029 = vmatpush.bf16.msra.mxu0 %v7991_v17  ;;  %3285 = vmatpush.bf16.msra.mxu2 %v7991_v17 }
 0x69e   : > { %2812 = vmatmul.bf16.gmra.mxu0 %v2717_v40  ;;  %5825 = vmatmul.msk.bf16.gmra.mxu3 %vm1457_vm0, %v7738_v13  ;;  %v10152_v13 = vld [vmem:[#allocation3_spill] sm:$0xff] }
 0x69f   : > { %3030 = vmatpush.bf16.msra.mxu0 %v8045_v12  ;;  %3286 = vmatpush.bf16.msra.mxu2 %v8045_v12 }
 0x6a0   : > { %3102 = vmatpush.bf16.xpose.msrb.mxu3 %v7850_v15 }
 0x6a3   : > { %3031 = vmatpush.bf16.msra.mxu0 %v8063_v36  ;;  %3287 = vmatpush.bf16.msra.mxu2 %v8063_v36 }
 0x6a7   : > { %3032 = vmatpush.bf16.msra.mxu0 %v8122_v57  ;;  %3288 = vmatpush.bf16.msra.mxu2 %v8122_v57 }
 0x6a8   : > { %3103 = vmatpush.bf16.xpose.msrb.mxu3 %v7858_v3  ;;  %v6008_v3 = vld [vmem:[%s10063_s10 + $0x8] sm:$0xff] }
 0x6a9   : > { %3686 = vmatpush.bf16.msrb.mxu1 %v6008_v3 }
 0x6ab   : > { %3033 = vmatpush.bf16.msra.mxu0 %v8127_v24  ;;  %3289 = vmatpush.bf16.msra.mxu2 %v8127_v24 }
 0x6ad   : > { %3687 = vmatpush.bf16.msrb.mxu1 %v6007_v34 }
 0x6ae   : > { %2817 = vmatmul.bf16.gmra.mxu0 %v10151_v0  ;;  %5826 = vmatmul.msk.bf16.gmra.mxu3 %vm1457_vm0, %v7620_v32 }
 0x6af   : > { %3125 = vmatpush.bf16.xpose.msrb.mxu0 %v7949_v2 }
 0x6b0   : > { %3311 = vmatpush.bf16.msra.mxu3 %v8132_v44 }
 0x6b2   : > { %v2779_v32 = vpop.f32.mrf.mxu3 }
 0x6b4   : > { %3312 = vmatpush.bf16.msra.mxu3 %v8166_v55 }
 0x6b7   : > { %3126 = vmatpush.bf16.xpose.msrb.mxu0 %v7953_v22 }
 0x6b8   : > { %3313 = vmatpush.bf16.msra.mxu3 %v8170_v19 }
 0x6ba   : > { %v2781_v48 = vpop.f32.mrf.mxu3 }
 0x6bc   : > { %3314 = vmatpush.bf16.msra.mxu3 %v8176_v16 }
 0x6be   : > { %2822 = vmatmul.bf16.gmra.mxu0 %v2721_v52  ;;  %5827 = vmatmul.msk.bf16.gmra.mxu3 %vm1457_vm0, %v10152_v13 }
 0x6bf   : > { %3127 = vmatpush.bf16.xpose.msrb.mxu0 %v7957_v6 }
 0x6c0   : > { %3315 = vmatpush.bf16.msra.mxu3 %v8181_v37 }
 0x6c4   : > { %3316 = vmatpush.bf16.msra.mxu3 %v2743_v27 }
 0x6c7   : > { %3128 = vmatpush.bf16.xpose.msrb.mxu0 %v7961_v28 }
 0x6c8   : > { %3317 = vmatpush.bf16.msra.mxu3 %v2741_v56 }
 0x6cc   : > { %3318 = vmatpush.bf16.msra.mxu3 %v2739_v14 }
 0x6ce   : > { %5828 = vmatmul.msk.bf16.vlgmr.msrb.gmra.mxu3 %vm1457_vm0, %v7910_v50 }
 0x6cf   : > { %3129 = vmatpush.bf16.xpose.msrb.mxu0 %v7965_v18 }
 0x6d0   : > { %3567 = vmatpush.bf16.msrb.mxu3 %v8132_v44  ;;  %v2849_v44 = vpop.f32.mrf.mxu2 }
 0x6d4   : > { %3568 = vmatpush.bf16.msrb.mxu3 %v8166_v55 }
 0x6d7   : > { %3130 = vmatpush.bf16.xpose.msrb.mxu0 %v7969_v47 }
 0x6d8   : > { %3569 = vmatpush.bf16.msrb.mxu3 %v8170_v19  ;;  %v8255_v46 = vpop.f32.mrf.mxu2 }
 0x6dc   : > { %3570 = vmatpush.bf16.msrb.mxu3 %v8176_v16 }
 0x6de   : > { %5829 = vmatmul.msk.bf16.gmra.mxu3 %vm1457_vm0, %v7940_v26 }
 0x6df   : > { %3131 = vmatpush.bf16.xpose.msrb.mxu0 %v7973_v8 }
 0x6e0   : > { %3571 = vmatpush.bf16.msrb.mxu3 %v8181_v37  ;;  %v8257_v29 = vpop.f32.mrf.mxu2 }
 0x6e1   : > { %v2784_v43 = vpop.f32.mrf.mxu3 }
 0x6e4   : > { %3572 = vmatpush.bf16.msrb.mxu3 %v2743_v27 }
 0x6e7   : > { %3132 = vmatpush.bf16.xpose.msrb.mxu0 %v7977_v49 }
 0x6e8   : > { %3573 = vmatpush.bf16.msrb.mxu3 %v2741_v56  ;;  %v8261_v54 = vpop.f32.mrf.mxu2 }
 0x6e9   : > { %v2786_v15 = vpop.f32.mrf.mxu3 }
 0x6ec   : > { %3574 = vmatpush.bf16.msrb.mxu3 %v2739_v14 }
 0x6ee   : > { %5830 = vmatmul.msk.bf16.gmra.mxu3 %vm1457_vm0, %v7875_v62 }
 0x6f0   : > { %v8269_v9 = vpop.f32.mrf.mxu2 }
 0x6f1   : > { %v2789_v60 = vpop.f32.mrf.mxu3 }
 0x6f8   : > { %v8275_v0 = vpop.f32.mrf.mxu2 }
 0x6f9   : > { %v2791_v1 = vpop.f32.mrf.mxu3 }
 0x6fe   : > { %5831 = vmatmul.msk.bf16.gmra.mxu3 %vm1457_vm0, %v7896_v4 }
 0x701   : > { %v2794_v21 = vpop.f32.mrf.mxu3 }
 0x709   : > { %v2796_v58 = vpop.f32.mrf.mxu3 }
 0x70b   : > { %v2808_v25 = vpop.f32.mrf.mxu0 }
 0x70c   : > { %v2809_v30 = vadd.f32 %v2808_v25, %v2779_v32 }
 0x711   : > { %v2878_v31 = vpop.f32.mrf.mxu3 }
 0x712   : > { %v2898_v33 = vmax.f32 %v2849_v44, %v2878_v31 }
 0x713   : > { %v2810_v7 = vpop.f32.mrf.mxu0 }
 0x714   : > { %v2811_v20 = vadd.f32 %v2810_v7, %v2781_v48  ;;  %2899 = vmax.xlane.f32.xlu1 %v2898_v33 }
 0x716   : > { %v3601_v11 = vpack.c.bf16 %v2811_v20, %v2809_v30 }
 0x718   : > { %5852 = vmatmul.msk.bf16.vlgmr.msrb.gmra.mxu1 %vm1457_vm0, %v3601_v11 }
 0x719   : > { %v2880_v41 = vpop.f32.mrf.mxu3 }
 0x71a   : > { %v2901_v51 = vmax.f32 %v8255_v46, %v2880_v41 }
 0x71b   : > { %v2813_v40 = vpop.f32.mrf.mxu0 }
 0x71c   : > { %2902 = vmax.xlane.f32.xlu2 %v2901_v51  ;;  %v2814_v59 = vadd.f32 %v2813_v40, %v2784_v43 }
 0x721   : > { %v2883_v52 = vpop.f32.mrf.mxu3 }
 0x722   : > { %v2904_v10 = vmax.f32 %v8257_v29, %v2883_v52 }
 0x723   : > { %v2815_v63 = vpop.f32.mrf.mxu0 }
 0x724   : > { %v2816_v55 = vadd.f32 %v2815_v63, %v2786_v15  ;;  %2905 = vmax.xlane.f32.xlu0 %v2904_v10  ;;  %v8282_v15 = vpop.f32.mrf.mxu2 }
 0x726   : > { %v3602_v19 = vpack.c.bf16 %v2816_v55, %v2814_v59 }
 0x728   : > { %5853 = vmatmul.msk.bf16.gmra.mxu1 %vm1457_vm0, %v3602_v19 }
 0x729   : > { %v8265_v61 = vpop.f32.mrf.mxu3 }
 0x72a   : > { %v2907_v16 = vmax.f32 %v8261_v54, %v8265_v61 }
 0x72b   : > { %v2818_v42 = vpop.f32.mrf.mxu0 }
 0x72c   : > { %2908 = vmax.xlane.f32.xlu1 %v2907_v16  ;;  %v2819_v14 = vadd.f32 %v2818_v42, %v2789_v60  ;;  %v8289_v7 = vpop.f32.mrf.mxu2 }
 0x731   : > { %v8271_v37 = vpop.f32.mrf.mxu3 }
 0x732   : > { %v2910_v27 = vmax.f32 %v8269_v9, %v8271_v37 }
 0x733   : > { %v2820_v56 = vpop.f32.mrf.mxu0 }
 0x734   : > { %v2821_v53 = vadd.f32 %v2820_v56, %v2791_v1  ;;  %2911 = vmax.xlane.f32.xlu2 %v2910_v27 }
 0x736   : > { %v3603_v13 = vpack.c.bf16 %v2821_v53, %v2819_v14 }
 0x738   : > { %5854 = vmatmul.msk.bf16.gmra.mxu1 %vm1457_vm0, %v3603_v13 }
 0x739   : > { %v8278_v32 = vpop.f32.mrf.mxu3 }
 0x73a   : > { %v2913_v48 = vmax.f32 %v8275_v0, %v8278_v32 }
 0x73b   : > { %v2823_v43 = vpop.f32.mrf.mxu0 }
 0x73c   : > { %2914 = vmax.xlane.f32.xlu0 %v2913_v48  ;;  %v2824_v1 = vadd.f32 %v2823_v43, %v2794_v21 }
 0x741   : > { %v8284_v3 = vpop.f32.mrf.mxu3 }
 0x742   : > { %v2916_v60 = vmax.f32 %v8282_v15, %v8284_v3 }
 0x743   : > { %v2825_v34 = vpop.f32.mrf.mxu0 }
 0x744   : > { %v2826_v25 = vadd.f32 %v2825_v34, %v2796_v58  ;;  %2917 = vmax.xlane.f32.xlu1 %v2916_v60 }
 0x746   : > { %v3604_v33 = vpack.c.bf16 %v2826_v25, %v2824_v1 }
 0x748   : > { %5855 = vmatmul.msk.bf16.gmra.mxu1 %vm1457_vm0, %v3604_v33 }
 0x749   : > { %v8291_v30 = vpop.f32.mrf.mxu3 }
 0x74a   : > { %v2919_v20 = vmax.f32 %v8289_v7, %v8291_v30 }
 0x74c   : > { %2920 = vmax.xlane.f32.xlu2 %v2919_v20 }
 0x787   : > { %v2900_v11 = vpop.xlane.xlu1 %2899 }
 0x788   : > { %v2922_v51 = vsub.f32 %v2849_v44, %v2900_v11  ;;  %v2923_v40 = vsub.f32 %v2878_v31, %v2900_v11 }
 0x78a   : > { %v2938_v10 = vmul.f32 1.442695, %v2922_v51  ;;  %v2940_v63 = vmul.f32 1.442695, %v2923_v40 }
 0x78c   : > { %6157 = vpow2.f32 %v2938_v10 }
 0x78d   : > { %6159 = vpow2.f32 %v2940_v63 }
 0x78f   : > { %v2903_v21 = vpop.xlane.xlu2 %2902 }
 0x790   : > { %v2924_v58 = vsub.f32 %v8255_v46, %v2903_v21  ;;  %v2925_v59 = vsub.f32 %v2880_v41, %v2903_v21 }
 0x792   : > { %v8296_v55 = vpop.eup %6157  ;;  %v2942_v19 = vmul.f32 1.442695, %v2924_v58  ;;  %v2944_v16 = vmul.f32 1.442695, %v2925_v59 }
 0x793   : > { %v8298_v42 = vpop.eup %6159 }
 0x794   : > { %6161 = vpow2.f32 %v2942_v19  ;;  %v2970_v27 = vadd.f32 %v8298_v42, %v8296_v55 }
 0x795   : > { %6163 = vpow2.f32 %v2944_v16 }
 0x796   : > { %2971 = vadd.xlane.f32.xlu0 %v2970_v27 }
 0x797   : > { %v2906_v44 = vpop.xlane.xlu0 %2905 }
 0x798   : > { %v2926_v31 = vsub.f32 %v8257_v29, %v2906_v44  ;;  %v2927_v56 = vsub.f32 %v2883_v52, %v2906_v44 }
 0x79a   : > { %v8303_v14 = vpop.eup %6161  ;;  %v2946_v46 = vmul.f32 1.442695, %v2926_v31  ;;  %v2948_v41 = vmul.f32 1.442695, %v2927_v56 }
 0x79b   : > { %v8305_v53 = vpop.eup %6163 }
 0x79c   : > { %6165 = vpow2.f32 %v2946_v46  ;;  %v2973_v13 = vadd.f32 %v8305_v53, %v8303_v14 }
 0x79d   : > { %6167 = vpow2.f32 %v2948_v41 }
 0x79e   : > { %2974 = vadd.xlane.f32.xlu1 %v2973_v13 }
 0x79f   : > { %v2909_v48 = vpop.xlane.xlu1 %2908 }
 0x7a0   : > { %v2928_v43 = vsub.f32 %v8261_v54, %v2909_v48  ;;  %v2929_v60 = vsub.f32 %v8265_v61, %v2909_v48 }
 0x7a2   : > { %v8311_v34 = vpop.eup %6165  ;;  %v2950_v29 = vmul.f32 1.442695, %v2928_v43  ;;  %v2952_v52 = vmul.f32 1.442695, %v2929_v60 }
 0x7a3   : > { %v8313_v1 = vpop.eup %6167 }
 0x7a4   : > { %6169 = vpow2.f32 %v2950_v29  ;;  %v2976_v25 = vadd.f32 %v8313_v1, %v8311_v34 }
 0x7a5   : > { %6171 = vpow2.f32 %v2952_v52 }
 0x7a6   : > { %2977 = vadd.xlane.f32.xlu2 %v2976_v25 }
 0x7a7   : > { %v2912_v33 = vpop.xlane.xlu2 %2911 }
 0x7a8   : > { %v2930_v20 = vsub.f32 %v8269_v9, %v2912_v33  ;;  %v2931_v11 = vsub.f32 %v8271_v37, %v2912_v33 }
 0x7aa   : > { %v8319_v54 = vpop.eup %6169  ;;  %v2954_v61 = vmul.f32 1.442695, %v2930_v20  ;;  %v2956_v51 = vmul.f32 1.442695, %v2931_v11 }
 0x7ab   : > { %v8321_v40 = vpop.eup %6171 }
 0x7ac   : > { %6173 = vpow2.f32 %v2954_v61  ;;  %v2979_v10 = vadd.f32 %v8321_v40, %v8319_v54 }
 0x7ad   : > { %6175 = vpow2.f32 %v2956_v51 }
 0x7ae   : > { %2980 = vadd.xlane.f32.xlu0 %v2979_v10 }
 0x7af   : > { %v2915_v63 = vpop.xlane.xlu0 %2914 }
 0x7b0   : > { %v2932_v21 = vsub.f32 %v8275_v0, %v2915_v63  ;;  %v2933_v58 = vsub.f32 %v8278_v32, %v2915_v63 }
 0x7b2   : > { %v8327_v9 = vpop.eup %6173  ;;  %v2958_v37 = vmul.f32 1.442695, %v2932_v21  ;;  %v2960_v59 = vmul.f32 1.442695, %v2933_v58 }
 0x7b3   : > { %v8329_v19 = vpop.eup %6175 }
 0x7b4   : > { %6177 = vpow2.f32 %v2958_v37  ;;  %v2982_v16 = vadd.f32 %v8329_v19, %v8327_v9 }
 0x7b5   : > { %6179 = vpow2.f32 %v2960_v59 }
 0x7b6   : > { %2983 = vadd.xlane.f32.xlu1 %v2982_v16 }
 0x7b7   : > { %v2918_v27 = vpop.xlane.xlu1 %2917 }
 0x7b8   : > { %v2934_v44 = vsub.f32 %v8282_v15, %v2918_v27  ;;  %v2935_v31 = vsub.f32 %v8284_v3, %v2918_v27 }
 0x7ba   : > { %v8335_v0 = vpop.eup %6177  ;;  %v2962_v32 = vmul.f32 1.442695, %v2934_v44  ;;  %v2964_v56 = vmul.f32 1.442695, %v2935_v31 }
 0x7bb   : > { %v8337_v46 = vpop.eup %6179 }
 0x7bc   : > { %6181 = vpow2.f32 %v2962_v32  ;;  %v2985_v41 = vadd.f32 %v8337_v46, %v8335_v0 }
 0x7bd   : > { %6183 = vpow2.f32 %v2964_v56 }
 0x7be   : > { %2986 = vadd.xlane.f32.xlu2 %v2985_v41 }
 0x7bf   : > { %v2921_v13 = vpop.xlane.xlu2 %2920 }
 0x7c0   : > { %v2936_v48 = vsub.f32 %v8289_v7, %v2921_v13  ;;  %v2937_v43 = vsub.f32 %v8291_v30, %v2921_v13 }
 0x7c2   : > { %v8343_v15 = vpop.eup %6181  ;;  %v2966_v3 = vmul.f32 1.442695, %v2936_v48  ;;  %v2968_v60 = vmul.f32 1.442695, %v2937_v43 }
 0x7c3   : > { %v8345_v29 = vpop.eup %6183 }
 0x7c4   : > { %6185 = vpow2.f32 %v2966_v3  ;;  %v2988_v52 = vadd.f32 %v8345_v29, %v8343_v15 }
 0x7c5   : > { %6187 = vpow2.f32 %v2968_v60 }
 0x7c6   : > { %2989 = vadd.xlane.f32.xlu0 %v2988_v52 }
 0x7ca   : > { %v8349_v25 = vpop.eup %6185 }
 0x7cb   : > { %v8351_v33 = vpop.eup %6187 }
 0x7cc   : > { %v2991_v7 = vadd.f32 %v8351_v33, %v8349_v25 }
 0x7ce   : > { %2992 = vadd.xlane.f32.xlu1 %v2991_v7  ;;  %v3105_v7 = vpop.f32.mrf.mxu3 }
 0x809   : > { %v2972_v30 = vpop.xlane.xlu0 %2971 }
 0x80a   : > { %6189 = vrcp.f32 %v2972_v30  ;;  %v10153_v30 = vld [vmem:[#allocation4_spill] sm:$0xff] }
 0x810   : > { %v6190_v11 = vpop.eup %6189 }
 0x811   : > { %v2975_v20 = vpop.xlane.xlu1 %2974  ;;  %v3002_v51 = vmul.f32 %v6190_v11, %v8296_v55  ;;  %v3003_v10 = vmul.f32 %v6190_v11, %v8298_v42 }
 0x812   : > { %6191 = vrcp.f32 %v2975_v20 }
 0x818   : > { %v6192_v61 = vpop.eup %6191 }
 0x819   : > { %v3004_v63 = vmul.f32 %v6192_v61, %v8303_v14  ;;  %v3005_v21 = vmul.f32 %v6192_v61, %v8305_v53  ;;  %v2978_v59 = vpop.xlane.xlu2 %2977  ;;  %v3107_v61 = vpop.f32.mrf.mxu3 }
 0x81a   : > { %6193 = vrcp.f32 %v2978_v59 }
 0x81b   : > { %v3018_v58 = vpack.c.bf16 %v3004_v63, %v3002_v51  ;;  %v3019_v37 = vpack.c.bf16 %v3005_v21, %v3003_v10 }
 0x81d   : > { %3034 = vmatmul.bf16.vlgmr.msra.gmra.mxu0 %v3018_v58  ;;  %3063 = vmatmul.bf16.vlgmr.msrb.gmra.mxu2 %v3019_v37 }
 0x81e   : > { %3381 = vmatpush.bf16.xpose.msra.mxu0 %v7949_v2  ;;  %3538 = vmatpush.bf16.msrb.mxu2 %v7979_v38 }
 0x820   : > { %v6194_v55 = vpop.eup %6193 }
 0x821   : > { %v2981_v16 = vpop.xlane.xlu0 %2980  ;;  %v3006_v14 = vmul.f32 %v6194_v55, %v8311_v34  ;;  %v3007_v27 = vmul.f32 %v6194_v55, %v8313_v1  ;;  %v3110_v37 = vpop.f32.mrf.mxu3 }
 0x822   : > { %6195 = vrcp.f32 %v2981_v16  ;;  %3539 = vmatpush.bf16.msrb.mxu2 %v7983_v35 }
 0x826   : > { %3382 = vmatpush.bf16.xpose.msra.mxu0 %v7953_v22  ;;  %3540 = vmatpush.bf16.msrb.mxu2 %v7988_v23 }
 0x828   : > { %v6196_v42 = vpop.eup %6195 }
 0x829   : > { %v3008_v53 = vmul.f32 %v6196_v42, %v8319_v54  ;;  %v3009_v2 = vmul.f32 %v6196_v42, %v8321_v40  ;;  %v2984_v31 = vpop.xlane.xlu1 %2983  ;;  %v8407_v55 = vpop.f32.mrf.mxu3 }
 0x82a   : > { %3541 = vmatpush.bf16.msrb.mxu2 %v7991_v17  ;;  %6197 = vrcp.f32 %v2984_v31 }
 0x82b   : > { %v3020_v38 = vpack.c.bf16 %v3008_v53, %v3006_v14  ;;  %v3021_v44 = vpack.c.bf16 %v3009_v2, %v3007_v27 }
 0x82d   : > { %3039 = vmatmul.bf16.gmra.mxu0 %v3020_v38  ;;  %3068 = vmatmul.bf16.gmra.mxu2 %v3021_v44 }
 0x82e   : > { %3383 = vmatpush.bf16.xpose.msra.mxu0 %v7957_v6  ;;  %3542 = vmatpush.bf16.msrb.mxu2 %v8045_v12 }
 0x830   : > { %v6198_v35 = vpop.eup %6197 }
 0x831   : > { %v2987_v22 = vpop.xlane.xlu2 %2986  ;;  %v3010_v17 = vmul.f32 %v6198_v35, %v8327_v9  ;;  %v3011_v1 = vmul.f32 %v6198_v35, %v8329_v19  ;;  %v8413_v2 = vpop.f32.mrf.mxu3 }
 0x832   : > { %3543 = vmatpush.bf16.msrb.mxu2 %v8063_v36  ;;  %6199 = vrcp.f32 %v2987_v22 }
 0x836   : > { %3384 = vmatpush.bf16.xpose.msra.mxu0 %v7961_v28  ;;  %3544 = vmatpush.bf16.msrb.mxu2 %v8122_v57 }
 0x838   : > { %v6200_v23 = vpop.eup %6199 }
 0x839   : > { %v3012_v34 = vmul.f32 %v6200_v23, %v8335_v0  ;;  %v3013_v6 = vmul.f32 %v6200_v23, %v8337_v46  ;;  %v2990_v36 = vpop.xlane.xlu0 %2989  ;;  %v8419_v31 = vpop.f32.mrf.mxu3 }
 0x83a   : > { %3545 = vmatpush.bf16.msrb.mxu2 %v8127_v24  ;;  %6201 = vrcp.f32 %v2990_v36 }
 0x83b   : > { %v3022_v12 = vpack.c.bf16 %v3012_v34, %v3010_v17  ;;  %v3023_v54 = vpack.c.bf16 %v3013_v6, %v3011_v1 }
 0x83d   : > { %3044 = vmatmul.bf16.gmra.mxu0 %v3022_v12  ;;  %3073 = vmatmul.bf16.gmra.mxu2 %v3023_v54  ;;  %v8437_v54 = vpop.f32.mrf.mxu1 }
 0x83e   : > { %3385 = vmatpush.bf16.xpose.msra.mxu0 %v7965_v18 }
 0x840   : > { %v6202_v57 = vpop.eup %6201 }
 0x841   : > { %v2993_v28 = vpop.xlane.xlu1 %2992  ;;  %v3014_v9 = vmul.f32 %v6202_v57, %v8343_v15  ;;  %v3015_v24 = vmul.f32 %v6202_v57, %v8345_v29  ;;  %v8425_v23 = vpop.f32.mrf.mxu3 }
 0x842   : > { %6203 = vrcp.f32 %v2993_v28 }
 0x846   : > { %3386 = vmatpush.bf16.xpose.msra.mxu0 %v7969_v47 }
 0x848   : > { %v6204_v40 = vpop.eup %6203 }
 0x849   : > { %v3016_v19 = vmul.f32 %v6204_v40, %v8349_v25  ;;  %v3017_v0 = vmul.f32 %v6204_v40, %v8351_v33  ;;  %v8431_v1 = vpop.f32.mrf.mxu3 }
 0x84b   : > { %v3024_v32 = vpack.c.bf16 %v3016_v19, %v3014_v9  ;;  %v3025_v56 = vpack.c.bf16 %v3017_v0, %v3015_v24 }
 0x84d   : > { %3049 = vmatmul.bf16.gmra.mxu0 %v3024_v32  ;;  %3078 = vmatmul.bf16.gmra.mxu2 %v3025_v56 }
 0x84e   : > { %3387 = vmatpush.bf16.xpose.msra.mxu0 %v7973_v8 }
 0x856   : > { %3388 = vmatpush.bf16.xpose.msra.mxu0 %v7977_v49 }
 0x85d   : > { %5832 = vmatmul.msk.bf16.vlgmr.msrb.gmra.mxu0 %vm1457_vm0, %v7910_v50 }
 0x86d   : > { %5833 = vmatmul.msk.bf16.gmra.mxu0 %vm1457_vm0, %v7940_v26 }
 0x87d   : > { %5834 = vmatmul.msk.bf16.gmra.mxu0 %vm1457_vm0, %v7875_v62 }
 0x88d   : > { %5835 = vmatmul.msk.bf16.gmra.mxu0 %vm1457_vm0, %v7896_v4 }
 0x89a   : > { %v3035_v18 = vpop.f32.mrf.mxu0 }
 0x89d   : > { %5840 = vmatmul.msk.bf16.vlgmr.msra.gmra.mxu0 %vm1457_vm0, %v7873_v39 }
 0x8a0   : > { %v3064_v47 = vpop.f32.mrf.mxu2 }
 0x8a1   : > { %v3065_v49 = vadd.f32 %v3064_v47, %v3035_v18  ;;  %v8445_v47 = vpop.f32.mrf.mxu1 }
 0x8a2   : > { %v3037_v8 = vpop.f32.mrf.mxu0 }
 0x8a8   : > { %v3066_v46 = vpop.f32.mrf.mxu2 }
 0x8a9   : > { %v3067_v41 = vadd.f32 %v3066_v46, %v3037_v8 }
 0x8aa   : > { %v3040_v13 = vpop.f32.mrf.mxu0 }
 0x8ab   : > { %v3605_v50 = vpack.c.bf16 %v3067_v41, %v3065_v49 }
 0x8ad   : > { %5841 = vmatmul.msk.bf16.gmra.mxu0 %vm1457_vm0, %v7860_v5  ;;  %5856 = vmatmul.msk.bf16.gmra.mxu1 %vm1457_vm0, %v3605_v50 }
 0x8b0   : > { %v3069_v62 = vpop.f32.mrf.mxu2 }
 0x8b1   : > { %v3070_v4 = vadd.f32 %v3069_v62, %v3040_v13 }
 0x8b2   : > { %v3042_v26 = vpop.f32.mrf.mxu0 }
 0x8b8   : > { %v3071_v48 = vpop.f32.mrf.mxu2 }
 0x8b9   : > { %v3072_v43 = vadd.f32 %v3071_v48, %v3042_v26 }
 0x8ba   : > { %v3045_v15 = vpop.f32.mrf.mxu0 }
 0x8bb   : > { %v3606_v3 = vpack.c.bf16 %v3072_v43, %v3070_v4 }
 0x8bd   : > { %5842 = vmatmul.msk.bf16.gmra.mxu0 %vm1457_vm0, %v7887_v45  ;;  %5857 = vmatmul.msk.bf16.gmra.mxu1 %vm1457_vm0, %v3606_v3 }
 0x8c0   : > { %v3074_v39 = vpop.f32.mrf.mxu2 }
 0x8c1   : > { %v3075_v52 = vadd.f32 %v3074_v39, %v3045_v15  ;;  %v8459_v39 = vpop.f32.mrf.mxu1 }
 0x8c2   : > { %v3047_v60 = vpop.f32.mrf.mxu0 }
 0x8c8   : > { %v3076_v29 = vpop.f32.mrf.mxu2 }
 0x8c9   : > { %v3077_v25 = vadd.f32 %v3076_v29, %v3047_v60 }
 0x8ca   : > { %v3050_v5 = vpop.f32.mrf.mxu0 }
 0x8cb   : > { %v3607_v33 = vpack.c.bf16 %v3077_v25, %v3075_v52 }
 0x8cd   : > { %5843 = vmatmul.msk.bf16.gmra.mxu0 %vm1457_vm0, %v10153_v30  ;;  %5858 = vmatmul.msk.bf16.gmra.mxu1 %vm1457_vm0, %v3607_v33 }
 0x8d0   : > { %v3079_v20 = vpop.f32.mrf.mxu2 }
 0x8d1   : > { %v3080_v45 = vadd.f32 %v3079_v20, %v3050_v5 }
 0x8d2   : > { %v3052_v11 = vpop.f32.mrf.mxu0 }
 0x8d8   : > { %v3081_v51 = vpop.f32.mrf.mxu2 }
 0x8d9   : > { %v3082_v10 = vadd.f32 %v3081_v51, %v3052_v11 }
 0x8da   : > { %v3134_v63 = vpop.f32.mrf.mxu0 }
 0x8db   : > { %v3608_v21 = vpack.c.bf16 %v3082_v10, %v3080_v45  ;;  %v3154_v58 = vmax.f32 %v3105_v7, %v3134_v63  ;;  %v8477_v45 = vpop.f32.mrf.mxu1 }
 0x8dd   : > { %3155 = vmax.xlane.f32.xlu2 %v3154_v58  ;;  %5859 = vmatmul.msk.bf16.gmra.mxu1 %vm1457_vm0, %v3608_v21 }
 0x8e2   : > { %v3136_v59 = vpop.f32.mrf.mxu0 }
 0x8e3   : > { %v3157_v16 = vmax.f32 %v3107_v61, %v3136_v59 }
 0x8e5   : > { %3158 = vmax.xlane.f32.xlu0 %v3157_v16 }
 0x8ea   : > { %v3139_v42 = vpop.f32.mrf.mxu0 }
 0x8eb   : > { %v3160_v14 = vmax.f32 %v3110_v37, %v3139_v42 }
 0x8ed   : > { %3161 = vmax.xlane.f32.xlu1 %v3160_v14 }
 0x8f2   : > { %v8409_v53 = vpop.f32.mrf.mxu0 }
 0x8f3   : > { %v3163_v27 = vmax.f32 %v8407_v55, %v8409_v53 }
 0x8f5   : > { %3164 = vmax.xlane.f32.xlu2 %v3163_v27 }
 0x8fa   : > { %v8415_v38 = vpop.f32.mrf.mxu0 }
 0x8fb   : > { %v3166_v44 = vmax.f32 %v8413_v2, %v8415_v38 }
 0x8fd   : > { %3167 = vmax.xlane.f32.xlu0 %v3166_v44 }
 0x902   : > { %v8421_v22 = vpop.f32.mrf.mxu0 }
 0x903   : > { %v3169_v35 = vmax.f32 %v8419_v31, %v8421_v22 }
 0x905   : > { %3170 = vmax.xlane.f32.xlu1 %v3169_v35 }
 0x90a   : > { %v8427_v17 = vpop.f32.mrf.mxu0 }
 0x90b   : > { %v3172_v34 = vmax.f32 %v8425_v23, %v8427_v17 }
 0x90d   : > { %3173 = vmax.xlane.f32.xlu2 %v3172_v34 }
 0x912   : > { %v8433_v6 = vpop.f32.mrf.mxu0 }
 0x913   : > { %v3175_v12 = vmax.f32 %v8431_v1, %v8433_v6 }
 0x915   : > { %3176 = vmax.xlane.f32.xlu0 %v3175_v12 }
 0x91a   : > { %v8439_v36 = vpop.f32.mrf.mxu0 }
 0x91b   : > { %v3410_v28 = vmax.f32 %v8437_v54, %v8439_v36 }
 0x91d   : > { %3411 = vmax.xlane.f32.xlu0 %v3410_v28 }
 0x922   : > { %v8443_v0 = vpop.f32.mrf.mxu0 }
 0x923   : > { %v3413_v29 = vmax.f32 %v8445_v47, %v8443_v0 }
 0x92a   : > { %v8453_v50 = vpop.f32.mrf.mxu0 }
 0x92b   : > { %v3416_v51 = vmax.f32 %v8459_v39, %v8453_v50 }
 0x932   : > { %v8467_v33 = vpop.f32.mrf.mxu0 }
 0x950   : > { %v3156_v57 = vpop.xlane.xlu2 %3155 }
 0x951   : > { %v3178_v40 = vsub.f32 %v3105_v7, %v3156_v57  ;;  %v3179_v9 = vsub.f32 %v3134_v63, %v3156_v57 }
 0x953   : > { %v3194_v19 = vmul.f32 1.442695, %v3178_v40  ;;  %v3196_v24 = vmul.f32 1.442695, %v3179_v9 }
 0x955   : > { %6205 = vpow2.f32 %v3194_v19 }
 0x956   : > { %6207 = vpow2.f32 %v3196_v24 }
 0x958   : > { %v3159_v32 = vpop.xlane.xlu0 %3158 }
 0x959   : > { %v3180_v56 = vsub.f32 %v3107_v61, %v3159_v32  ;;  %v3181_v18 = vsub.f32 %v3136_v59, %v3159_v32 }
 0x95b   : > { %v8447_v8 = vpop.eup %6205  ;;  %v3198_v46 = vmul.f32 1.442695, %v3180_v56  ;;  %v3200_v49 = vmul.f32 1.442695, %v3181_v18 }
 0x95c   : > { %v8449_v41 = vpop.eup %6207 }
 0x95d   : > { %6209 = vpow2.f32 %v3198_v46  ;;  %v3226_v13 = vadd.f32 %v8449_v41, %v8447_v8 }
 0x95e   : > { %6211 = vpow2.f32 %v3200_v49 }
 0x95f   : > { %3227 = vadd.xlane.f32.xlu1 %v3226_v13 }
 0x960   : > { %v3162_v62 = vpop.xlane.xlu1 %3161 }
 0x961   : > { %v3182_v26 = vsub.f32 %v3110_v37, %v3162_v62  ;;  %v3183_v48 = vsub.f32 %v3139_v42, %v3162_v62  ;;  %v3419_v42 = vmax.f32 %v8477_v45, %v8467_v33 }
 0x963   : > { %v8455_v4 = vpop.eup %6209  ;;  %v3202_v43 = vmul.f32 1.442695, %v3182_v26  ;;  %v3204_v15 = vmul.f32 1.442695, %v3183_v48 }
 0x964   : > { %v8457_v3 = vpop.eup %6211 }
 0x965   : > { %6213 = vpow2.f32 %v3202_v43  ;;  %v3229_v60 = vadd.f32 %v8457_v3, %v8455_v4 }
 0x966   : > { %6215 = vpow2.f32 %v3204_v15 }
 0x967   : > { %3230 = vadd.xlane.f32.xlu2 %v3229_v60  ;;  %3414 = vmax.xlane.f32.xlu1 %v3413_v29 }
 0x968   : > { %v3165_v52 = vpop.xlane.xlu2 %3164 }
 0x969   : > { %v3184_v25 = vsub.f32 %v8407_v55, %v3165_v52  ;;  %v3185_v5 = vsub.f32 %v8409_v53, %v3165_v52  ;;  %v8485_v55 = vpop.f32.mrf.mxu0  ;;  %v8491_v53 = vpop.f32.mrf.mxu1 }
 0x96a   : > { %v3422_v28 = vmax.f32 %v8491_v53, %v8485_v55 }
 0x96b   : > { %v8469_v7 = vpop.eup %6213  ;;  %v3206_v30 = vmul.f32 1.442695, %v3184_v25  ;;  %v3208_v20 = vmul.f32 1.442695, %v3185_v5 }
 0x96c   : > { %v8471_v11 = vpop.eup %6215 }
 0x96d   : > { %6217 = vpow2.f32 %v3206_v30  ;;  %v3232_v61 = vadd.f32 %v8471_v11, %v8469_v7 }
 0x96e   : > { %6219 = vpow2.f32 %v3208_v20 }
 0x96f   : > { %3233 = vadd.xlane.f32.xlu2 %v3232_v61  ;;  %3417 = vmax.xlane.f32.xlu1 %v3416_v51 }
 0x970   : > { %v3168_v10 = vpop.xlane.xlu0 %3167 }
 0x971   : > { %v3186_v63 = vsub.f32 %v8413_v2, %v3168_v10  ;;  %v3187_v21 = vsub.f32 %v8415_v38, %v3168_v10  ;;  %v8503_v40 = vpop.f32.mrf.mxu0  ;;  %v8507_v19 = vpop.f32.mrf.mxu1 }
 0x972   : > { %v3425_v46 = vmax.f32 %v8507_v19, %v8503_v40 }
 0x973   : > { %v8481_v58 = vpop.eup %6217  ;;  %v3210_v37 = vmul.f32 1.442695, %v3186_v63  ;;  %v3212_v59 = vmul.f32 1.442695, %v3187_v21 }
 0x974   : > { %v8483_v16 = vpop.eup %6219 }
 0x975   : > { %6221 = vpow2.f32 %v3210_v37  ;;  %v3235_v14 = vadd.f32 %v8483_v16, %v8481_v58 }
 0x976   : > { %6223 = vpow2.f32 %v3212_v59 }
 0x977   : > { %3420 = vmax.xlane.f32.xlu2 %v3419_v42  ;;  %3236 = vadd.xlane.f32.xlu0 %v3235_v14 }
 0x978   : > { %v3171_v27 = vpop.xlane.xlu1 %3170 }
 0x979   : > { %v3188_v2 = vsub.f32 %v8419_v31, %v3171_v27  ;;  %v3189_v38 = vsub.f32 %v8421_v22, %v3171_v27  ;;  %v8521_v26 = vpop.f32.mrf.mxu1 }
 0x97b   : > { %v8495_v44 = vpop.eup %6221  ;;  %v3214_v35 = vmul.f32 1.442695, %v3188_v2  ;;  %v3216_v34 = vmul.f32 1.442695, %v3189_v38 }
 0x97c   : > { %v8497_v12 = vpop.eup %6223 }
 0x97d   : > { %6225 = vpow2.f32 %v3214_v35  ;;  %v3238_v57 = vadd.f32 %v8497_v12, %v8495_v44 }
 0x97e   : > { %6227 = vpow2.f32 %v3216_v34 }
 0x97f   : > { %3423 = vmax.xlane.f32.xlu2 %v3422_v28  ;;  %3239 = vadd.xlane.f32.xlu0 %v3238_v57 }
 0x980   : > { %v3174_v31 = vpop.xlane.xlu2 %3173 }
 0x981   : > { %v3190_v22 = vsub.f32 %v8425_v23, %v3174_v31  ;;  %v3191_v9 = vsub.f32 %v8427_v17, %v3174_v31  ;;  %v8517_v23 = vpop.f32.mrf.mxu0  ;;  %v8539_v10 = vpop.f32.mrf.mxu1 }
 0x982   : > { %v3428_v29 = vmax.f32 %v8521_v26, %v8517_v23 }
 0x983   : > { %v8509_v24 = vpop.eup %6225  ;;  %v3218_v32 = vmul.f32 1.442695, %v3190_v22  ;;  %v3220_v56 = vmul.f32 1.442695, %v3191_v9 }
 0x984   : > { %v8511_v18 = vpop.eup %6227 }
 0x985   : > { %6229 = vpow2.f32 %v3218_v32  ;;  %v3241_v49 = vadd.f32 %v8511_v18, %v8509_v24 }
 0x986   : > { %6231 = vpow2.f32 %v3220_v56 }
 0x987   : > { %3242 = vadd.xlane.f32.xlu1 %v3241_v49  ;;  %3426 = vmax.xlane.f32.xlu0 %v3425_v46 }
 0x988   : > { %v3177_v17 = vpop.xlane.xlu0 %3176 }
 0x989   : > { %v3192_v13 = vsub.f32 %v8431_v1, %v3177_v17  ;;  %v3193_v62 = vsub.f32 %v8433_v6, %v3177_v17  ;;  %v8533_v5 = vpop.f32.mrf.mxu0 }
 0x98a   : > { %v3431_v63 = vmax.f32 %v8539_v10, %v8533_v5 }
 0x98b   : > { %v8523_v48 = vpop.eup %6229  ;;  %v3222_v43 = vmul.f32 1.442695, %v3192_v13  ;;  %v3224_v15 = vmul.f32 1.442695, %v3193_v62 }
 0x98c   : > { %v8525_v60 = vpop.eup %6231 }
 0x98d   : > { %6233 = vpow2.f32 %v3222_v43  ;;  %v3244_v52 = vadd.f32 %v8525_v60, %v8523_v48 }
 0x98e   : > { %6235 = vpow2.f32 %v3224_v15 }
 0x98f   : > { %3245 = vadd.xlane.f32.xlu1 %v3244_v52  ;;  %3429 = vmax.xlane.f32.xlu0 %v3428_v29 }
 0x990   : > { %v3412_v1 = vpop.xlane.xlu0 %3411 }
 0x991   : > { %v3434_v6 = vsub.f32 %v8437_v54, %v3412_v1  ;;  %v3435_v25 = vsub.f32 %v8439_v36, %v3412_v1 }
 0x993   : > { %v8535_v30 = vpop.eup %6233  ;;  %v3450_v20 = vmul.f32 1.442695, %v3434_v6  ;;  %v3452_v61 = vmul.f32 1.442695, %v3435_v25 }
 0x994   : > { %v8537_v51 = vpop.eup %6235 }
 0x995   : > { %6237 = vpow2.f32 %v3450_v20  ;;  %v3247_v21 = vadd.f32 %v8537_v51, %v8535_v30 }
 0x996   : > { %6239 = vpow2.f32 %v3452_v61 }
 0x997   : > { %3432 = vmax.xlane.f32.xlu1 %v3431_v63  ;;  %3248 = vadd.xlane.f32.xlu2 %v3247_v21 }
 0x99b   : > { %v8545_v54 = vpop.eup %6237 }
 0x99c   : > { %v8547_v36 = vpop.eup %6239 }
 0x99d   : > { %v3482_v37 = vadd.f32 %v8547_v36, %v8545_v54 }
 0x99f   : > { %3483 = vadd.xlane.f32.xlu2 %v3482_v37 }
 0x9d2   : > { %v3228_v59 = vpop.xlane.xlu1 %3227 }
 0x9d3   : > { %6241 = vrcp.f32 %v3228_v59 }
 0x9d9   : > { %v6242_v34 = vpop.eup %6241 }
 0x9da   : > { %v3231_v42 = vpop.xlane.xlu2 %3230  ;;  %v3415_v14 = vpop.xlane.xlu1 %3414  ;;  %v3258_v57 = vmul.f32 %v6242_v34, %v8447_v8  ;;  %v3259_v31 = vmul.f32 %v6242_v34, %v8449_v41 }
 0x9db   : > { %6243 = vrcp.f32 %v3231_v42  ;;  %v3436_v27 = vsub.f32 %v8445_v47, %v3415_v14  ;;  %v3437_v2 = vsub.f32 %v8443_v0, %v3415_v14  ;;  %v8565_v41 = vpop.f32.mrf.mxu1 }
 0x9dd   : > { %v3454_v38 = vmul.f32 1.442695, %v3436_v27  ;;  %v3456_v35 = vmul.f32 1.442695, %v3437_v2 }
 0x9df   : > { %6245 = vpow2.f32 %v3454_v38 }
 0x9e0   : > { %6247 = vpow2.f32 %v3456_v35 }
 0x9e1   : > { %v6244_v28 = vpop.eup %6243 }
 0x9e2   : > { %v3260_v22 = vmul.f32 %v6244_v28, %v8455_v4  ;;  %v3261_v9 = vmul.f32 %v6244_v28, %v8457_v3  ;;  %v3234_v32 = vpop.xlane.xlu2 %3233  ;;  %v3418_v56 = vpop.xlane.xlu1 %3417 }
 0x9e3   : > { %v3438_v47 = vsub.f32 %v8459_v39, %v3418_v56  ;;  %v3439_v0 = vsub.f32 %v8453_v50, %v3418_v56  ;;  %v8579_v59 = vpop.f32.mrf.mxu1 }
 0x9e4   : > { %v3275_v46 = vpack.c.bf16 %v3261_v9, %v3259_v31  ;;  %v3274_v49 = vpack.c.bf16 %v3260_v22, %v3258_v57 }
 0x9e5   : > { %v8559_v17 = vpop.eup %6245  ;;  %v3458_v13 = vmul.f32 1.442695, %v3438_v47  ;;  %v3460_v62 = vmul.f32 1.442695, %v3439_v0 }
 0x9e6   : > { %v8561_v43 = vpop.eup %6247  ;;  %3290 = vmatmul.bf16.vlgmr.msra.gmra.mxu2 %v3274_v49  ;;  %3319 = vmatmul.bf16.vlgmr.msra.gmra.mxu3 %v3275_v46 }
 0x9e7   : > { %6249 = vpow2.f32 %v3458_v13  ;;  %v3485_v8 = vadd.f32 %v8561_v43, %v8559_v17 }
 0x9e8   : > { %6251 = vpow2.f32 %v3460_v62 }
 0x9e9   : > { %6253 = vrcp.f32 %v3234_v32  ;;  %3486 = vadd.xlane.f32.xlu0 %v3485_v8 }
 0x9ea   : > { %v3421_v50 = vpop.xlane.xlu2 %3420  ;;  %v3237_v4 = vpop.xlane.xlu0 %3236 }
 0x9eb   : > { %v3440_v3 = vsub.f32 %v8477_v45, %v3421_v50  ;;  %v3441_v39 = vsub.f32 %v8467_v33, %v3421_v50  ;;  %6255 = vrcp.f32 %v3237_v4  ;;  %v8593_v57 = vpop.f32.mrf.mxu1  ;;  %v8608_v50 = vld [vmem:[%s10064_s11] ss:$0 sm:$0xff] }
 0x9ed   : > { %v8569_v15 = vpop.eup %6249  ;;  %v3462_v29 = vmul.f32 1.442695, %v3440_v3  ;;  %v3464_v52 = vmul.f32 1.442695, %v3441_v39 }
 0x9ee   : > { %v8571_v1 = vpop.eup %6251 }
 0x9ef   : > { %v6254_v6 = vpop.eup %6253  ;;  %6257 = vpow2.f32 %v3462_v29  ;;  %v3488_v25 = vadd.f32 %v8571_v1, %v8569_v15 }
 0x9f0   : > { %6259 = vpow2.f32 %v3464_v52  ;;  %v3262_v45 = vmul.f32 %v6254_v6, %v8469_v7  ;;  %v3263_v21 = vmul.f32 %v6254_v6, %v8471_v11 }
 0x9f1   : > { %v6256_v20 = vpop.eup %6255  ;;  %3489 = vadd.xlane.f32.xlu1 %v3488_v25 }
 0x9f2   : > { %v3424_v61 = vpop.xlane.xlu2 %3423  ;;  %v3240_v63 = vpop.xlane.xlu0 %3239  ;;  %v3264_v33 = vmul.f32 %v6256_v20, %v8481_v58  ;;  %v3265_v37 = vmul.f32 %v6256_v20, %v8483_v16  ;;  %v6434_v20 = vld [vmem:[%s6617_s23] sm:$0xff] }
 0x9f3   : > { %v3442_v42 = vsub.f32 %v8491_v53, %v3424_v61  ;;  %v3443_v14 = vsub.f32 %v8485_v55, %v3424_v61 }
 0x9f4   : > { %v3276_v27 = vpack.c.bf16 %v3264_v33, %v3262_v45  ;;  %v3277_v2 = vpack.c.bf16 %v3265_v37, %v3263_v21 }
 0x9f5   : > { %v8583_v38 = vpop.eup %6257  ;;  %v3466_v35 = vmul.f32 1.442695, %v3442_v42  ;;  %v3468_v34 = vmul.f32 1.442695, %v3443_v14 }
 0x9f6   : > { %v8585_v28 = vpop.eup %6259  ;;  %3295 = vmatmul.bf16.gmra.mxu2 %v3276_v27  ;;  %3324 = vmatmul.bf16.gmra.mxu3 %v3277_v2 }
 0x9f7   : > { %6261 = vpow2.f32 %v3466_v35  ;;  %v3491_v7 = vadd.f32 %v8585_v28, %v8583_v38 }
 0x9f8   : > { %6263 = vpow2.f32 %v3468_v34 }
 0x9f9   : > { %6265 = vrcp.f32 %v3240_v63  ;;  %3492 = vadd.xlane.f32.xlu2 %v3491_v7 }
 0x9fa   : > { %v3243_v11 = vpop.xlane.xlu1 %3242  ;;  %v3427_v58 = vpop.xlane.xlu0 %3426 }
 0x9fb   : > { %6267 = vrcp.f32 %v3243_v11  ;;  %v3444_v16 = vsub.f32 %v8507_v19, %v3427_v58  ;;  %v3445_v55 = vsub.f32 %v8503_v40, %v3427_v58 }
 0x9fd   : > { %v8591_v53 = vpop.eup %6261  ;;  %v3470_v31 = vmul.f32 1.442695, %v3444_v16  ;;  %v3472_v22 = vmul.f32 1.442695, %v3445_v55 }
 0x9fe   : > { %v8595_v9 = vpop.eup %6263 }
 0x9ff   : > { %v6266_v32 = vpop.eup %6265  ;;  %6269 = vpow2.f32 %v3470_v31  ;;  %v3494_v56 = vadd.f32 %v8595_v9, %v8591_v53  ;;  %v6436_v31 = vld [vmem:[%s6617_s23 + $0x18] sm:$0xff] }
 0xa00   : > { %6271 = vpow2.f32 %v3472_v22  ;;  %v3266_v40 = vmul.f32 %v6266_v32, %v8495_v44  ;;  %v3267_v49 = vmul.f32 %v6266_v32, %v8497_v12  ;;  %v3696_v12 = vpop.f32.mrf.mxu1 }
 0xa01   : > { %v6268_v47 = vpop.eup %6267  ;;  %3495 = vadd.xlane.f32.xlu0 %v3494_v56  ;;  %v3697_v14 = vadd.f32 %v8608_v50, %v3696_v12 }
 0xa02   : > { %v3246_v0 = vpop.xlane.xlu1 %3245  ;;  %v3430_v19 = vpop.xlane.xlu0 %3429  ;;  %v3268_v46 = vmul.f32 %v6268_v47, %v8509_v24  ;;  %v3269_v13 = vmul.f32 %v6268_v47, %v8511_v18 }
 0xa03   : > { %v3446_v62 = vsub.f32 %v8521_v26, %v3430_v19  ;;  %v3447_v8 = vsub.f32 %v8517_v23, %v3430_v19  ;;  %v3690_v23 = vadd.f32 %v8608_v50, %v8565_v41  ;;  %v8644_v22 = vadd.f32 %v6436_v31, %v3697_v14 }
 0xa04   : > { %v3278_v4 = vpack.c.bf16 %v3268_v46, %v3266_v40  ;;  %v3279_v3 = vpack.c.bf16 %v3269_v13, %v3267_v49  ;;  %v6438_v40 = vld [vmem:[%s6617_s23 + $0x20] sm:$0xff] }
 0xa05   : > { %v8610_v39 = vpop.eup %6269  ;;  %v3474_v44 = vmul.f32 1.442695, %v3446_v62  ;;  %v3476_v29 = vmul.f32 1.442695, %v3447_v8  ;;  %v8621_v61 = vadd.f32 %v6434_v20, %v3690_v23  ;;  %v3812_v56 = vsel %vm1457_vm0, %v8644_v22, 0.0  ;;  %v6439_v62 = vld [vmem:[%s6617_s23 + $0x28] sm:$0xff] }
 0xa06   : > { %v8612_v24 = vpop.eup %6271  ;;  %3300 = vmatmul.bf16.gmra.mxu2 %v3278_v4  ;;  %3329 = vmatmul.bf16.gmra.mxu3 %v3279_v3 }
 0xa07   : > { %6273 = vpow2.f32 %v3474_v44  ;;  %v3497_v18 = vadd.f32 %v8612_v24, %v8610_v39 }
 0xa08   : > { %6275 = vpow2.f32 %v3476_v29  ;;  %v3699_v27 = vpop.f32.mrf.mxu1  ;;  %v6440_v29 = vld [vmem:[%s6617_s23 + $0x30] sm:$0xff] }
 0xa09   : > { %6277 = vrcp.f32 %v3246_v0  ;;  %3498 = vadd.xlane.f32.xlu1 %v3497_v18  ;;  %v6437_v0 = vld [vmem:[%s6617_s23 + $0x10] sm:$0xff] }
 0xa0a   : > { %v3433_v26 = vpop.xlane.xlu1 %3432  ;;  %v3249_v52 = vpop.xlane.xlu2 %3248 }
 0xa0b   : > { %v3448_v6 = vsub.f32 %v8539_v10, %v3433_v26  ;;  %v3449_v25 = vsub.f32 %v8533_v5, %v3433_v26  ;;  %6279 = vrcp.f32 %v3249_v52  ;;  %v3692_v10 = vadd.f32 %v8608_v50, %v8579_v59  ;;  %v6435_v59 = vld [vmem:[%s6617_s23 + $0x8] sm:$0xff] }
 0xa0c   : > { %v3803_v5 = vsel %vm1457_vm0, %v8621_v61, 0.0 }
 0xa0d   : > { %v8623_v63 = vpop.eup %6273  ;;  %v3478_v45 = vmul.f32 1.442695, %v3448_v6  ;;  %v3480_v33 = vmul.f32 1.442695, %v3449_v25  ;;  %v8639_v11 = vadd.f32 %v6435_v59, %v3692_v10 }
 0xa0e   : > { %v8625_v21 = vpop.eup %6275 }
 0xa0f   : > { %v6278_v41 = vpop.eup %6277  ;;  %6281 = vpow2.f32 %v3478_v45  ;;  %v3500_v37 = vadd.f32 %v8625_v21, %v8623_v63 }
 0xa10   : > { %6283 = vpow2.f32 %v3480_v33  ;;  %v3270_v2 = vmul.f32 %v6278_v41, %v8523_v48  ;;  %v3271_v34 = vmul.f32 %v6278_v41, %v8525_v60  ;;  %v3695_v60 = vadd.f32 %v8608_v50, %v8593_v57  ;;  %v3701_v47 = vpop.f32.mrf.mxu1 }
 0xa11   : > { %v6280_v42 = vpop.eup %6279  ;;  %3501 = vadd.xlane.f32.xlu2 %v3500_v37  ;;  %3804 = vadd.xlane.f32.xlu1 %v3803_v5  ;;  %v3702_v57 = vadd.f32 %v8608_v50, %v3701_v47 }
 0xa12   : > { %v3272_v35 = vmul.f32 %v6280_v42, %v8535_v30  ;;  %v3273_v7 = vmul.f32 %v6280_v42, %v8537_v51  ;;  %v3700_v30 = vadd.f32 %v8608_v50, %v3699_v27  ;;  %v3806_v51 = vsel %vm1457_vm0, %v8639_v11, 0.0  ;;  %v3484_v23 = vpop.xlane.xlu2 %3483 }
 0xa13   : > { %v8658_v19 = vadd.f32 %v6437_v0, %v3695_v60  ;;  %v8669_v8 = vadd.f32 %v6439_v62, %v3702_v57  ;;  %6285 = vrcp.f32 %v3484_v23 }
 0xa14   : > { %v3280_v58 = vpack.c.bf16 %v3272_v35, %v3270_v2  ;;  %v3281_v16 = vpack.c.bf16 %v3273_v7, %v3271_v34  ;;  %v8661_v46 = vadd.f32 %v6438_v40, %v3700_v30 }
 0xa15   : > { %v8641_v55 = vpop.eup %6281  ;;  %v3809_v49 = vsel %vm1457_vm0, %v8658_v19, 0.0  ;;  %v3818_v44 = vsel %vm1457_vm0, %v8669_v8, 0.0 }
 0xa16   : > { %v8646_v32 = vpop.eup %6283  ;;  %3305 = vmatmul.bf16.gmra.mxu2 %v3280_v58  ;;  %3334 = vmatmul.bf16.gmra.mxu3 %v3281_v16  ;;  %v3815_v13 = vsel %vm1457_vm0, %v8661_v46, 0.0 }
 0xa17   : > { %v3503_v48 = vadd.f32 %v8646_v32, %v8641_v55 }
 0xa18   : > { %v3704_v4 = vpop.f32.mrf.mxu1 }
 0xa19   : > { %3504 = vadd.xlane.f32.xlu0 %v3503_v48  ;;  %3807 = vadd.xlane.f32.xlu2 %v3806_v51  ;;  %v3705_v3 = vadd.f32 %v8608_v50, %v3704_v4  ;;  %v6286_v52 = vpop.eup %6285 }
 0xa1a   : > { %3813 = vadd.xlane.f32.xlu1 %v3812_v56  ;;  %v3514_v25 = vmul.f32 %v6286_v52, %v8545_v54  ;;  %v3515_v20 = vmul.f32 %v6286_v52, %v8547_v36 }
 0xa1b   : > { %v8675_v12 = vadd.f32 %v6440_v29, %v3705_v3 }
 0xa1d   : > { %v3821_v18 = vsel %vm1457_vm0, %v8675_v12, 0.0 }
 0xa20   : > { %v3706_v14 = vpop.f32.mrf.mxu1 }
 0xa21   : > { %3810 = vadd.xlane.f32.xlu0 %v3809_v49  ;;  %3816 = vadd.xlane.f32.xlu2 %v3815_v13 }
 0xa29   : > { %3819 = vadd.xlane.f32.xlu0 %v3818_v44 }
 0xa31   : > { %3822 = vadd.xlane.f32.xlu0 %v3821_v18  ;;  %v10154_v18 = vld [vmem:[#allocation2_spill] sm:$0xff] }
 0xa5c   : > { %v3487_v26 = vpop.xlane.xlu0 %3486 }
 0xa5d   : > { %6287 = vrcp.f32 %v3487_v26 }
 0xa63   : > { %v6288_v6 = vpop.eup %6287 }
 0xa64   : > { %v3516_v45 = vmul.f32 %v6288_v6, %v8559_v17  ;;  %v3517_v33 = vmul.f32 %v6288_v6, %v8561_v43  ;;  %v3490_v10 = vpop.xlane.xlu1 %3489  ;;  %v8684_v43 = vpop.f32.mrf.mxu1 }
 0xa65   : > { %6289 = vrcp.f32 %v3490_v10  ;;  %v6441_v10 = vld [vmem:[%s6617_s23 + $0x38] sm:$0xff] }
 0xa66   : > { %v3530_v41 = vpack.c.bf16 %v3516_v45, %v3514_v25  ;;  %v3531_v37 = vpack.c.bf16 %v3517_v33, %v3515_v20 }
 0xa68   : > { %3546 = vmatmul.bf16.vlgmr.msrb.gmra.mxu2 %v3530_v41  ;;  %3575 = vmatmul.bf16.vlgmr.msrb.gmra.mxu3 %v3531_v37 }
 0xa69   : > { %v3291_v5 = vpop.f32.mrf.mxu2  ;;  %v3320_v42 = vpop.f32.mrf.mxu3 }
 0xa6a   : > { %v3321_v34 = vadd.f32 %v3320_v42, %v3291_v5 }
 0xa6b   : > { %v6290_v2 = vpop.eup %6289 }
 0xa6c   : > { %v3493_v27 = vpop.xlane.xlu2 %3492  ;;  %v3518_v17 = vmul.f32 %v6290_v2, %v8569_v15  ;;  %v3519_v16 = vmul.f32 %v6290_v2, %v8571_v1  ;;  %v8690_v47 = vpop.f32.mrf.mxu1 }
 0xa6d   : > { %6291 = vrcp.f32 %v3493_v27 }
 0xa71   : > { %v3293_v35 = vpop.f32.mrf.mxu2  ;;  %v3322_v54 = vpop.f32.mrf.mxu3 }
 0xa72   : > { %v3323_v36 = vadd.f32 %v3322_v54, %v3293_v35 }
 0xa73   : > { %v6292_v7 = vpop.eup %6291 }
 0xa74   : > { %v3609_v59 = vpack.c.bf16 %v3323_v36, %v3321_v34  ;;  %v3520_v58 = vmul.f32 %v6292_v7, %v8583_v38  ;;  %v3521_v31 = vmul.f32 %v6292_v7, %v8585_v28  ;;  %v3496_v30 = vpop.xlane.xlu0 %3495 }
 0xa75   : > { %6293 = vrcp.f32 %v3496_v30 }
 0xa76   : > { %5860 = vmatmul.msk.bf16.gmra.mxu1 %vm1457_vm0, %v3609_v59  ;;  %v3532_v48 = vpack.c.bf16 %v3520_v58, %v3518_v17  ;;  %v3533_v60 = vpack.c.bf16 %v3521_v31, %v3519_v16  ;;  %v3710_v31 = vadd.f32 %v8608_v50, %v8684_v43 }
 0xa78   : > { %3551 = vmatmul.bf16.gmra.mxu2 %v3532_v48  ;;  %3580 = vmatmul.bf16.gmra.mxu3 %v3533_v60 }
 0xa79   : > { %v3296_v51 = vpop.f32.mrf.mxu2  ;;  %v3325_v56 = vpop.f32.mrf.mxu3 }
 0xa7a   : > { %v3326_v1 = vadd.f32 %v3325_v56, %v3296_v51 }
 0xa7b   : > { %v6294_v0 = vpop.eup %6293 }
 0xa7c   : > { %v3499_v15 = vpop.xlane.xlu1 %3498  ;;  %v3522_v49 = vmul.f32 %v6294_v0, %v8591_v53  ;;  %v3523_v44 = vmul.f32 %v6294_v0, %v8595_v9  ;;  %v8701_v53 = vpop.f32.mrf.mxu1 }
 0xa7d   : > { %6295 = vrcp.f32 %v3499_v15 }
 0xa81   : > { %v3298_v38 = vpop.f32.mrf.mxu2  ;;  %v3327_v40 = vpop.f32.mrf.mxu3 }
 0xa82   : > { %v3328_v57 = vadd.f32 %v3327_v40, %v3298_v38 }
 0xa83   : > { %v6296_v28 = vpop.eup %6295 }
 0xa84   : > { %v3610_v13 = vpack.c.bf16 %v3328_v57, %v3326_v1  ;;  %v3502_v62 = vpop.xlane.xlu2 %3501  ;;  %v3805_v4 = vpop.xlane.xlu1 %3804  ;;  %v3524_v3 = vmul.f32 %v6296_v28, %v8610_v39  ;;  %v3525_v29 = vmul.f32 %v6296_v28, %v8612_v24  ;;  %v3707_v24 = vadd.f32 %v8608_v50, %v3706_v14  ;;  %v6442_v57 = vld [vmem:[%s6617_s23 + $0x40] sm:$0xff] }
 0xa85   : > { %v3899_v23 = vmul.f32 %v3805_v4, %v10154_v18  ;;  %6297 = vrcp.f32 %v3502_v62  ;;  %v3716_v36 = vpop.f32.mrf.mxu1  ;;  %v8736_v28 = vadd.f32 %v6442_v57, %v3710_v31 }
 0xa86   : > { %5861 = vmatmul.msk.bf16.gmra.mxu1 %vm1457_vm0, %v3610_v13  ;;  %v3534_v26 = vpack.c.bf16 %v3524_v3, %v3522_v49  ;;  %v3535_v52 = vpack.c.bf16 %v3525_v29, %v3523_v44  ;;  %v8709_v5 = vadd.f32 %v6441_v10, %v3707_v24  ;;  %v3712_v3 = vadd.f32 %v8608_v50, %v8690_v47 }
 0xa87   : > { %v8699_v6 = vsub.f32 %v8621_v61, %v3899_v23  ;;  %v3827_v29 = vsel %vm1457_vm0, %v8736_v28, 0.0 }
 0xa88   : > { %3556 = vmatmul.bf16.gmra.mxu2 %v3534_v26  ;;  %3585 = vmatmul.bf16.gmra.mxu3 %v3535_v52  ;;  %v3824_v59 = vsel %vm1457_vm0, %v8709_v5, 0.0  ;;  %v3717_v26 = vadd.f32 %v8608_v50, %v3716_v36 }
 0xa89   : > { %v3301_v25 = vpop.f32.mrf.mxu2  ;;  %v3330_v39 = vpop.f32.mrf.mxu3  ;;  %v3963_v9 = vmul.f32 %v8699_v6, %v8699_v6 }
 0xa8a   : > { %v3331_v7 = vadd.f32 %v3330_v39, %v3301_v25 }
 0xa8b   : > { %v3995_v20 = vsel %vm1457_vm0, %v3963_v9, 0.0  ;;  %v6298_v2 = vpop.eup %6297  ;;  %v6443_v9 = vld [vmem:[%s6617_s23 + $0x48] sm:$0xff] }
 0xa8c   : > { %v3505_v45 = vpop.xlane.xlu0 %3504  ;;  %v3808_v33 = vpop.xlane.xlu2 %3807  ;;  %3996 = vadd.xlane.f32.xlu1 %v3995_v20  ;;  %v3526_v60 = vmul.f32 %v6298_v2, %v8623_v63  ;;  %v3527_v30 = vmul.f32 %v6298_v2, %v8625_v21  ;;  %v8757_v24 = vadd.f32 %v6443_v9, %v3712_v3  ;;  %v6444_v20 = vld [vmem:[%s6617_s23 + $0x58] sm:$0xff]  ;;  %v3715_v2 = vadd.f32 %v8608_v50, %v8701_v53 }
 0xa8d   : > { %6299 = vrcp.f32 %v3505_v45  ;;  %v3900_v41 = vmul.f32 %v3808_v33, %v10154_v18  ;;  %v3814_v37 = vpop.xlane.xlu1 %3813  ;;  %v3719_v52 = vpop.f32.mrf.mxu1  ;;  %v8763_v45 = vadd.f32 %v6444_v20, %v3717_v26  ;;  %v6010_v20 = vld [vmem:[%s10067_s14 + $0x8] sm:$0xff] }
 0xa8e   : > { %v3902_v42 = vmul.f32 %v3814_v37, %v10154_v18  ;;  %10155 = vst [vmem:[#allocation3_spill] sm:$0xff] %v8757_v24  ;;  %4667 = vmatpush.bf16.msrb.mxu0 %v6010_v20 }
 0xa8f   : > { %v8713_v27 = vsub.f32 %v8639_v11, %v3900_v41  ;;  %10156 = vst [vmem:[#allocation4_spill] sm:$0xff] %v8763_v45 }
 0xa90   : > { %v8716_v14 = vsub.f32 %v8644_v22, %v3902_v42 }
 0xa91   : > { %v3303_v35 = vpop.f32.mrf.mxu2  ;;  %v3332_v54 = vpop.f32.mrf.mxu3  ;;  %v3964_v34 = vmul.f32 %v8713_v27, %v8713_v27 }
 0xa92   : > { %v3333_v17 = vadd.f32 %v3332_v54, %v3303_v35  ;;  %v3966_v58 = vmul.f32 %v8716_v14, %v8716_v14  ;;  %v3830_v35 = vsel %vm1457_vm0, %v8757_v24, 0.0 }
 0xa93   : > { %v6300_v16 = vpop.eup %6299  ;;  %v3998_v48 = vsel %vm1457_vm0, %v3964_v34, 0.0  ;;  %v3720_v34 = vadd.f32 %v8608_v50, %v3719_v52 }
 0xa94   : > { %v3611_v51 = vpack.c.bf16 %v3333_v17, %v3331_v7  ;;  %v3811_v56 = vpop.xlane.xlu0 %3810  ;;  %3999 = vadd.xlane.f32.xlu2 %v3998_v48  ;;  %v3817_v15 = vpop.xlane.xlu2 %3816  ;;  %3825 = vadd.xlane.f32.xlu1 %v3824_v59  ;;  %v4004_v0 = vsel %vm1457_vm0, %v3966_v58, 0.0  ;;  %v3528_v38 = vmul.f32 %v6300_v16, %v8641_v55  ;;  %v3529_v40 = vmul.f32 %v6300_v16, %v8646_v32  ;;  %v6445_v58 = vld [vmem:[%s6617_s23 + $0x50] sm:$0xff]  ;;  %v6446_v48 = vld [vmem:[%s6617_s23 + $0x60] sm:$0xff] }
 0xa95   : > { %v3901_v43 = vmul.f32 %v3811_v56, %v10154_v18  ;;  %v3903_v1 = vmul.f32 %v3817_v15, %v10154_v18  ;;  %4005 = vadd.xlane.f32.xlu0 %v4004_v0  ;;  %v3836_v17 = vsel %vm1457_vm0, %v8763_v45, 0.0  ;;  %v3721_v53 = vpop.f32.mrf.mxu1  ;;  %v8778_v16 = vadd.f32 %v6445_v58, %v3715_v2 }
 0xa96   : > { %5862 = vmatmul.msk.bf16.gmra.mxu1 %vm1457_vm0, %v3611_v51  ;;  %v3536_v63 = vpack.c.bf16 %v3528_v38, %v3526_v60  ;;  %v3537_v21 = vpack.c.bf16 %v3529_v40, %v3527_v30  ;;  %v8784_v60 = vadd.f32 %v6446_v48, %v3720_v34  ;;  %v3722_v51 = vadd.f32 %v8608_v50, %v3721_v53  ;;  %v6447_v38 = vld [vmem:[%s6617_s23 + $0x68] sm:$0xff] }
 0xa97   : > { %v8739_v49 = vsub.f32 %v8658_v19, %v3901_v43  ;;  %v8742_v13 = vsub.f32 %v8661_v46, %v3903_v1  ;;  %10157 = vst [vmem:[#allocation2_spill] sm:$0xff] %v8778_v16  ;;  %v3833_v56 = vsel %vm1457_vm0, %v8778_v16, 0.0 }
 0xa98   : > { %3561 = vmatmul.bf16.gmra.mxu2 %v3536_v63  ;;  %3590 = vmatmul.bf16.gmra.mxu3 %v3537_v21  ;;  %10158 = vst [vmem:[#allocation5_spill] sm:$0xff] %v8784_v60  ;;  %v3839_v0 = vsel %vm1457_vm0, %v8784_v60, 0.0  ;;  %v8795_v40 = vadd.f32 %v6447_v38, %v3722_v51  ;;  %v6448_v21 = vld [vmem:[%s6617_s23 + $0x70] sm:$0xff] }
 0xa99   : > { %v3306_v55 = vpop.f32.mrf.mxu2  ;;  %v3335_v32 = vpop.f32.mrf.mxu3  ;;  %v3965_v62 = vmul.f32 %v8739_v49, %v8739_v49  ;;  %v3967_v4 = vmul.f32 %v8742_v13, %v8742_v13 }
 0xa9a   : > { %v3336_v10 = vadd.f32 %v3335_v32, %v3306_v55  ;;  %10159 = vst [vmem:[#allocation6_spill] sm:$0xff] %v8795_v40  ;;  %v3842_v63 = vsel %vm1457_vm0, %v8795_v40, 0.0 }
 0xa9b   : > { %v4001_v44 = vsel %vm1457_vm0, %v3965_v62, 0.0  ;;  %v4007_v23 = vsel %vm1457_vm0, %v3967_v4, 0.0 }
 0xa9c   : > { %v3820_v25 = vpop.xlane.xlu0 %3819  ;;  %4002 = vadd.xlane.f32.xlu2 %v4001_v44  ;;  %3828 = vadd.xlane.f32.xlu1 %v3827_v29 }
 0xa9d   : > { %v3904_v39 = vmul.f32 %v3820_v25, %v10154_v18  ;;  %4008 = vadd.xlane.f32.xlu0 %v4007_v23  ;;  %v3724_v43 = vpop.f32.mrf.mxu1 }
 0xa9e   : > { %v3725_v1 = vadd.f32 %v8608_v50, %v3724_v43 }
 0xa9f   : > { %v8760_v47 = vsub.f32 %v8669_v8, %v3904_v39 }
 0xaa0   : > { %v8801_v57 = vadd.f32 %v6448_v21, %v3725_v1 }
 0xaa1   : > { %v3308_v33 = vpop.f32.mrf.mxu2  ;;  %v3337_v41 = vpop.f32.mrf.mxu3  ;;  %v3968_v37 = vmul.f32 %v8760_v47, %v8760_v47 }
 0xaa2   : > { %v3338_v42 = vadd.f32 %v3337_v41, %v3308_v33  ;;  %10160 = vst [vmem:[#allocation7_spill] sm:$0xff] %v8801_v57  ;;  %v3845_v55 = vsel %vm1457_vm0, %v8801_v57, 0.0 }
 0xaa3   : > { %v4010_v54 = vsel %vm1457_vm0, %v3968_v37, 0.0 }
 0xaa4   : > { %v3612_v36 = vpack.c.bf16 %v3338_v42, %v3336_v10  ;;  %v3823_v7 = vpop.xlane.xlu0 %3822  ;;  %3831 = vadd.xlane.f32.xlu2 %v3830_v35  ;;  %4011 = vadd.xlane.f32.xlu1 %v4010_v54  ;;  %v6009_v54 = vld [vmem:[%s10067_s14] sm:$0xff] }
 0xaa5   : > { %v3905_v59 = vmul.f32 %v3823_v7, %v10154_v18  ;;  %3837 = vadd.xlane.f32.xlu0 %v3836_v17  ;;  %v3726_v26 = vpop.f32.mrf.mxu1  ;;  %4668 = vmatpush.bf16.msrb.mxu0 %v6009_v54 }
 0xaa6   : > { %5863 = vmatmul.msk.bf16.gmra.mxu1 %vm1457_vm0, %v3612_v36 }
 0xaa7   : > { %v8781_v31 = vsub.f32 %v8675_v12, %v3905_v59 }
 0xaa9   : > { %v3969_v30 = vmul.f32 %v8781_v31, %v8781_v31 }
 0xaab   : > { %v4013_v15 = vsel %vm1457_vm0, %v3969_v30, 0.0 }
 0xaac   : > { %3834 = vadd.xlane.f32.xlu2 %v3833_v56  ;;  %4014 = vadd.xlane.f32.xlu1 %v4013_v15 }
 0xaad   : > { %3840 = vadd.xlane.f32.xlu0 %v3839_v0 }
 0xab4   : > { %3843 = vadd.xlane.f32.xlu1 %v3842_v63 }
 0xabc   : > { %3846 = vadd.xlane.f32.xlu1 %v3845_v55 }
 0xaeb   : > { %v3547_v32 = vpop.f32.mrf.mxu2  ;;  %v3576_v62 = vpop.f32.mrf.mxu3 }
 0xaec   : > { %v3577_v44 = vadd.f32 %v3576_v62, %v3547_v32 }
 0xaf3   : > { %v3549_v4 = vpop.f32.mrf.mxu2  ;;  %v3578_v3 = vpop.f32.mrf.mxu3 }
 0xaf4   : > { %v3579_v29 = vadd.f32 %v3578_v3, %v3549_v4  ;;  %v8810_v33 = vpop.f32.mrf.mxu1 }
 0xaf6   : > { %v3613_v23 = vpack.c.bf16 %v3579_v29, %v3577_v44 }
 0xaf8   : > { %5864 = vmatmul.msk.bf16.gmra.mxu1 %vm1457_vm0, %v3613_v23 }
 0xafb   : > { %v3552_v52 = vpop.f32.mrf.mxu2  ;;  %v3581_v25 = vpop.f32.mrf.mxu3 }
 0xafc   : > { %v3582_v42 = vadd.f32 %v3581_v25, %v3552_v52  ;;  %v8826_v38 = vpop.f32.mrf.mxu1 }
 0xaff   : > { %v3997_v39 = vpop.xlane.xlu1 %3996 }
 0xb00   : > { %v4091_v9 = vmul.f32 %v3997_v39, %v10154_v18 }
 0xb02   : > { %v4123_v41 = vadd.f32 1e-05, %v4091_v9 }
 0xb03   : > { %v3554_v37 = vpop.f32.mrf.mxu2  ;;  %v3583_v10 = vpop.f32.mrf.mxu3 }
 0xb04   : > { %6301 = vrsqrt.f32 %v4123_v41  ;;  %v3584_v2 = vadd.f32 %v3583_v10, %v3554_v37  ;;  %vm4161_vm12 = vweird.f32 %v4123_v41 }
 0xb06   : > { %v3614_v35 = vpack.c.bf16 %v3584_v2, %v3582_v42 }
 0xb07   : > { %v4000_v34 = vpop.xlane.xlu2 %3999  ;;  %v3826_v36 = vpop.xlane.xlu1 %3825 }
 0xb08   : > { %v4092_v7 = vmul.f32 %v4000_v34, %v10154_v18  ;;  %v4006_v17 = vpop.xlane.xlu0 %4005  ;;  %v3906_v59 = vmul.f32 %v3826_v36, %v10154_v18  ;;  %5865 = vmatmul.msk.bf16.gmra.mxu1 %vm1457_vm0, %v3614_v35  ;;  %v3727_v34 = vadd.f32 %v8608_v50, %v3726_v26  ;;  %v8856_v36 = vpop.f32.mrf.mxu1 }
 0xb09   : > { %v4094_v53 = vmul.f32 %v4006_v17, %v10154_v18 }
 0xb0a   : > { %v6302_v58 = vpop.eup %6301  ;;  %v8819_v48 = vadd.f32 1e-05, %v4092_v7  ;;  %v8822_v30 = vsub.f32 %v8709_v5, %v3906_v59 }
 0xb0b   : > { %v4156_v51 = vmul.f32 %v6302_v58, %v4123_v41  ;;  %v8824_v56 = vadd.f32 1e-05, %v4094_v53  ;;  %v3557_v15 = vpop.f32.mrf.mxu2  ;;  %v3586_v0 = vpop.f32.mrf.mxu3  ;;  %vm4162_vm11 = vweird.f32 %v6302_v58 }
 0xb0c   : > { %6303 = vrsqrt.f32 %v8819_v48  ;;  %v3970_v43 = vmul.f32 %v8822_v30, %v8822_v30  ;;  %vm8844_vm13 = vmor %vm4161_vm12, %vm4162_vm11  ;;  %v3587_v17 = vadd.f32 %v3586_v0, %v3557_v15  ;;  %vm4171_vm15 = vweird.f32 %v8819_v48 }
 0xb0d   : > { %v4157_v1 = vmul.f32 %v6302_v58, %v4156_v51  ;;  %6305 = vrsqrt.f32 %v8824_v56  ;;  %vm4191_vm5 = vweird.f32 %v8824_v56 }
 0xb0e   : > { %v4016_v63 = vsel %vm1457_vm0, %v3970_v43, 0.0 }
 0xb0f   : > { %v4158_v21 = vmul.f32 0.5, %v4157_v1  ;;  %v4003_v55 = vpop.xlane.xlu2 %4002  ;;  %4017 = vadd.xlane.f32.xlu2 %v4016_v63  ;;  %v3829_v32 = vpop.xlane.xlu1 %3828 }
 0xb10   : > { %v4093_v62 = vmul.f32 %v4003_v55, %v10154_v18  ;;  %v4009_v4 = vpop.xlane.xlu0 %4008  ;;  %v3907_v3 = vmul.f32 %v3829_v32, %v10154_v18 }
 0xb11   : > { %v4159_v44 = vsub.f32 1.5, %v4158_v21  ;;  %v4095_v29 = vmul.f32 %v4009_v4, %v10154_v18  ;;  %v6449_v4 = vld [vmem:[%s6617_s23 + $0x78] sm:$0xff] }
 0xb12   : > { %v6304_v23 = vpop.eup %6303  ;;  %v8836_v52 = vadd.f32 1e-05, %v4093_v62  ;;  %v8842_v20 = vsub.f32 %v8736_v28, %v3907_v3  ;;  %v8874_v3 = vadd.f32 %v6449_v4, %v3727_v34 }
 0xb13   : > { %v8838_v25 = vpop.eup %6305  ;;  %v4160_v39 = vmul.f32 %v6302_v58, %v4159_v44  ;;  %v4166_v9 = vmul.f32 %v6304_v23, %v8819_v48  ;;  %v3559_v37 = vpop.f32.mrf.mxu2  ;;  %v8851_v35 = vadd.f32 1e-05, %v4095_v29  ;;  %vm4172_vm14 = vweird.f32 %v6304_v23 }
 0xb14   : > { %v3588_v10 = vpop.f32.mrf.mxu3  ;;  %v4186_v2 = vmul.f32 %v8838_v25, %v8824_v56  ;;  %6307 = vrsqrt.f32 %v8836_v52  ;;  %v3971_v43 = vmul.f32 %v8842_v20, %v8842_v20  ;;  %10163 = vst [vmem:[#allocation8_spill] sm:$0xff] %v8874_v3  ;;  %vm4173_vm1 = vmor %vm4171_vm15, %vm4172_vm14  ;;  %vm4192_vm2 = vweird.f32 %v8838_v25 }
 0xb15   : > { %v4164_v41 = vsel %vm8844_vm13, %v6302_v58, %v4160_v39  ;;  %v4167_v54 = vmul.f32 %v6304_v23, %v4166_v9  ;;  %v3589_v59 = vadd.f32 %v3588_v10, %v3559_v37  ;;  %v8864_v58 = vld [vmem:[%s10065_s12] ss:$0 sm:$0xff]  ;;  %6309 = vrsqrt.f32 %v8851_v35  ;;  %vm4193_vm7 = vmor %vm4191_vm5, %vm4192_vm2 }
 0xb16   : > { %v4187_v7 = vmul.f32 %v8838_v25, %v4186_v2  ;;  %v4475_v26 = vmul.f32 %v4164_v41, %v8699_v6  ;;  %v4019_v32 = vsel %vm1457_vm0, %v3971_v43, 0.0  ;;  %v8884_v10 = vld [vmem:[%s10066_s13] ss:$0 sm:$0xff]  ;;  %vm4181_vm3 = vweird.f32 %v8836_v52 }
 0xb17   : > { %v4168_v53 = vmul.f32 0.5, %v4167_v54  ;;  %v3832_v51 = vpop.xlane.xlu2 %3831  ;;  %v4012_v1 = vpop.xlane.xlu1 %4011  ;;  %v3615_v63 = vpack.c.bf16 %v3589_v59, %v3587_v17  ;;  %4020 = vadd.xlane.f32.xlu2 %v4019_v32  ;;  %v3730_v17 = vadd.f32 %v8608_v50, %v8810_v33  ;;  %vm4201_vm12 = vweird.f32 %v8851_v35 }
 0xb18   : > { %v3838_v15 = vpop.xlane.xlu0 %3837  ;;  %v3908_v21 = vmul.f32 %v3832_v51, %v10154_v18  ;;  %v4188_v44 = vmul.f32 0.5, %v4187_v7  ;;  %v4096_v6 = vmul.f32 %v4012_v1, %v10154_v18  ;;  %v4510_v42 = vmul.f32 %v8864_v58, %v4475_v26 }
 0xb19   : > { %v4169_v0 = vsub.f32 1.5, %v4168_v53  ;;  %v3910_v55 = vmul.f32 %v3838_v15, %v10154_v18  ;;  %5866 = vmatmul.msk.bf16.gmra.mxu1 %vm1457_vm0, %v3615_v63  ;;  %v3848_v51 = vsel %vm1457_vm0, %v8874_v3, 0.0  ;;  %v3736_v63 = vpop.f32.mrf.mxu1 }
 0xb1a   : > { %v8871_v62 = vpop.eup %6307  ;;  %v8889_v2 = vsub.f32 %v8757_v24, %v3908_v21  ;;  %v8895_v34 = vadd.f32 1e-05, %v4096_v6  ;;  %v4189_v53 = vsub.f32 1.5, %v4188_v44  ;;  %v4545_v26 = vadd.f32 %v8884_v10, %v4510_v42 }
 0xb1b   : > { %v4170_v29 = vmul.f32 %v6304_v23, %v4169_v0  ;;  %v4176_v39 = vmul.f32 %v8871_v62, %v8836_v52  ;;  %v3562_v9 = vpop.f32.mrf.mxu2  ;;  %v8893_v54 = vsub.f32 %v8763_v45, %v3910_v55  ;;  %v8897_v7 = vpop.eup %6309  ;;  %vm4182_vm4 = vweird.f32 %v8871_v62 }
 0xb1c   : > { %v3591_v37 = vpop.f32.mrf.mxu3  ;;  %6311 = vrsqrt.f32 %v8895_v34  ;;  %v3972_v21 = vmul.f32 %v8889_v2, %v8889_v2  ;;  %v4190_v44 = vmul.f32 %v8838_v25, %v4189_v53  ;;  %v4196_v6 = vmul.f32 %v8897_v7, %v8851_v35  ;;  %vm8939_vm6 = vmor %vm4181_vm3, %vm4182_vm4 }
 0xb1d   : > { %v4174_v41 = vsel %vm4173_vm1, %v6304_v23, %v4170_v29  ;;  %v4177_v48 = vmul.f32 %v8871_v62, %v4176_v39  ;;  %v3974_v55 = vmul.f32 %v8893_v54, %v8893_v54  ;;  %vm4202_vm9 = vweird.f32 %v8897_v7 }
 0xb1e   : > { %v4476_v59 = vmul.f32 %v4174_v41, %v8713_v27  ;;  %v4022_v42 = vsel %vm1457_vm0, %v3972_v21, 0.0  ;;  %v4194_v21 = vsel %vm4193_vm7, %v8838_v25, %v4190_v44  ;;  %vm4211_vm10 = vweird.f32 %v8895_v34  ;;  %vm4203_vm13 = vmor %vm4201_vm12, %vm4202_vm9 }
 0xb1f   : > { %v4178_v23 = vmul.f32 0.5, %v4177_v48  ;;  %v3835_v43 = vpop.xlane.xlu2 %3834  ;;  %v8907_v1 = vpop.xlane.xlu1 %4014  ;;  %3849 = vadd.xlane.f32.xlu2 %v3848_v51  ;;  %v4028_v41 = vsel %vm1457_vm0, %v3974_v55, 0.0  ;;  %4023 = vadd.xlane.f32.xlu0 %v4022_v42  ;;  %v4197_v55 = vmul.f32 %v8897_v7, %v4196_v6  ;;  %v4478_v44 = vmul.f32 %v4194_v21, %v8716_v14 }
 0xb20   : > { %v4511_v33 = vmul.f32 %v8864_v58, %v4476_v59  ;;  %v3909_v27 = vmul.f32 %v3835_v43, %v10154_v18  ;;  %v3841_v15 = vpop.xlane.xlu0 %3840  ;;  %v6450_v43 = vld [vmem:[%s6617_s23 + $0x80] sm:$0xff]  ;;  %4029 = vadd.xlane.f32.xlu1 %v4028_v41 }
 0xb21   : > { %v4179_v0 = vsub.f32 1.5, %v4178_v23  ;;  %v3911_v32 = vmul.f32 %v3841_v15, %v10154_v18  ;;  %v8932_v53 = vadd.f32 %v6450_v43, %v3730_v17  ;;  %v3739_v6 = vpop.f32.mrf.mxu1 }
 0xb22   : > { %v4546_v4 = vadd.f32 %v8884_v10, %v4511_v33  ;;  %v8923_v29 = vsub.f32 %v8778_v16, %v3909_v27  ;;  %v8943_v15 = vpop.eup %6311 }
 0xb23   : > { %v4180_v39 = vmul.f32 %v8871_v62, %v4179_v0  ;;  %v8929_v48 = vsub.f32 %v8784_v60, %v3911_v32  ;;  %v3564_v59 = vpop.f32.mrf.mxu2  ;;  %10164 = vst [vmem:[#allocation9_spill] sm:$0xff] %v8932_v53  ;;  %v4206_v0 = vmul.f32 %v8943_v15, %v8895_v34  ;;  %vm4212_vm8 = vweird.f32 %v8943_v15  ;;  %v6453_v34 = vld [vmem:[%s6617_s23 + $0x90] sm:$0xff] }
 0xb24   : > { %v3593_v23 = vpop.f32.mrf.mxu3  ;;  %v4582_v33 = vpack.c.bf16 %v4546_v4, %v4545_v26  ;;  %v3592_v26 = vadd.f32 %v3591_v37, %v3562_v9  ;;  %v3973_v56 = vmul.f32 %v8923_v29, %v8923_v29  ;;  %v3851_v4 = vsel %vm1457_vm0, %v8932_v53, 0.0  ;;  %vm9003_vm11 = vmor %vm4211_vm10, %vm4212_vm8 }
 0xb25   : > { %v3594_v27 = vadd.f32 %v3593_v23, %v3564_v59  ;;  %v4184_v17 = vsel %vm8939_vm6, %v8871_v62, %v4180_v39  ;;  %v3975_v52 = vmul.f32 %v8929_v48, %v8929_v48  ;;  %v4207_v32 = vmul.f32 %v8943_v15, %v4206_v0 }
 0xb26   : > { %5876 = vmatmul.msk.bf16.vlgmr.msrb.gmra.mxu0 %vm1457_vm0, %v4582_v33  ;;  %v4477_v37 = vmul.f32 %v4184_v17, %v8739_v49  ;;  %v3732_v39 = vadd.f32 %v8608_v50, %v8826_v38  ;;  %v4025_v42 = vsel %vm1457_vm0, %v3973_v56, 0.0  ;;  %v3737_v49 = vadd.f32 %v8608_v50, %v3736_v63  ;;  %v6451_v33 = vld [vmem:[%s6617_s23 + $0x88] sm:$0xff]  ;;  %v6452_v63 = vld [vmem:[%s6617_s23 + $0x98] sm:$0xff] }
 0xb27   : > { %v3616_v62 = vpack.c.bf16 %v3594_v27, %v3592_v26  ;;  %v3844_v9 = vpop.xlane.xlu1 %3843  ;;  %v4031_v41 = vsel %vm1457_vm0, %v3975_v52, 0.0  ;;  %v4208_v59 = vmul.f32 0.5, %v4207_v32  ;;  %3852 = vadd.xlane.f32.xlu2 %v3851_v4  ;;  %v4198_v23 = vmul.f32 0.5, %v4197_v55  ;;  %4026 = vadd.xlane.f32.xlu0 %v4025_v42 }
 0xb28   : > { %v3912_v25 = vmul.f32 %v3844_v9, %v10154_v18  ;;  %4032 = vadd.xlane.f32.xlu1 %v4031_v41  ;;  %v4512_v38 = vmul.f32 %v8864_v58, %v4477_v37  ;;  %v8976_v51 = vadd.f32 %v6451_v33, %v3732_v39  ;;  %v8981_v17 = vadd.f32 %v6452_v63, %v3737_v49 }
 0xb29   : > { %5867 = vmatmul.msk.bf16.gmra.mxu1 %vm1457_vm0, %v3616_v62  ;;  %v4209_v27 = vsub.f32 1.5, %v4208_v59  ;;  %v4513_v26 = vmul.f32 %v8864_v58, %v4478_v44  ;;  %v4199_v56 = vsub.f32 1.5, %v4198_v23  ;;  %v3735_v37 = vadd.f32 %v8608_v50, %v8856_v36 }
 0xb2a   : > { %v8972_v43 = vsub.f32 %v8795_v40, %v3912_v25  ;;  %10167 = vst [vmem:[#allocation10_spill] sm:$0xff] %v8976_v51  ;;  %v4547_v55 = vadd.f32 %v8884_v10, %v4512_v38  ;;  %v3854_v9 = vsel %vm1457_vm0, %v8976_v51, 0.0  ;;  %v3860_v32 = vsel %vm1457_vm0, %v8981_v17, 0.0  ;;  %v3741_v25 = vpop.f32.mrf.mxu1  ;;  %v6454_v38 = vld [vmem:[%s6617_s23 + $0xa0] sm:$0xff] }
 0xb2b   : > { %10168 = vst [vmem:[#allocation11_spill] sm:$0xff] %v8981_v17  ;;  %v4210_v62 = vmul.f32 %v8943_v15, %v4209_v27  ;;  %v4548_v39 = vadd.f32 %v8884_v10, %v4513_v26  ;;  %v4200_v42 = vmul.f32 %v8897_v7, %v4199_v56  ;;  %v3740_v41 = vadd.f32 %v8608_v50, %v3739_v6  ;;  %v6455_v56 = vld [vmem:[%s6617_s23 + $0xa8] sm:$0xff] }
 0xb2c   : > { %v3976_v14 = vmul.f32 %v8972_v43, %v8972_v43  ;;  %v9015_v6 = vadd.f32 %v6453_v34, %v3735_v37  ;;  %v6456_v37 = vld [vmem:[%s6617_s23 + $0xb0] sm:$0xff] }
 0xb2d   : > { %v4583_v44 = vpack.c.bf16 %v4548_v39, %v4547_v55  ;;  %v4214_v59 = vsel %vm9003_vm11, %v8943_v15, %v4210_v62  ;;  %v4204_v23 = vsel %vm4203_vm13, %v8897_v7, %v4200_v42  ;;  %v9019_v33 = vadd.f32 %v6454_v38, %v3740_v41 }
 0xb2e   : > { %v4034_v52 = vsel %vm1457_vm0, %v3976_v14, 0.0  ;;  %10171 = vst [vmem:[#allocation12_spill] sm:$0xff] %v9015_v6  ;;  %v4480_v35 = vmul.f32 %v4214_v59, %v8760_v47  ;;  %v3742_v14 = vadd.f32 %v8608_v50, %v3741_v25  ;;  %v4479_v15 = vmul.f32 %v4204_v23, %v8742_v13 }
 0xb2f   : > { %v3847_v0 = vpop.xlane.xlu1 %3846  ;;  %4035 = vadd.xlane.f32.xlu2 %v4034_v52  ;;  %3855 = vadd.xlane.f32.xlu0 %v3854_v9  ;;  %10172 = vst [vmem:[#allocation13_spill] sm:$0xff] %v9019_v33  ;;  %v3857_v63 = vsel %vm1457_vm0, %v9015_v6, 0.0  ;;  %v3863_v26 = vsel %vm1457_vm0, %v9019_v33, 0.0  ;;  %v4097_v42 = vmul.f32 %v8907_v1, %v10154_v18 }
 0xb30   : > { %v3913_v21 = vmul.f32 %v3847_v0, %v10154_v18  ;;  %3861 = vadd.xlane.f32.xlu1 %v3860_v32  ;;  %v4515_v7 = vmul.f32 %v8864_v58, %v4480_v35  ;;  %v9031_v52 = vadd.f32 %v6455_v56, %v3742_v14  ;;  %v4514_v0 = vmul.f32 %v8864_v58, %v4479_v15 }
 0xb32   : > { %v8996_v4 = vsub.f32 %v8801_v57, %v3913_v21  ;;  %v3744_v47 = vpop.f32.mrf.mxu1  ;;  %v4550_v13 = vadd.f32 %v8884_v10, %v4515_v7  ;;  %v3866_v55 = vsel %vm1457_vm0, %v9031_v52, 0.0  ;;  %v4549_v62 = vadd.f32 %v8884_v10, %v4514_v0 }
 0xb33   : > { %v3745_v21 = vadd.f32 %v8608_v50, %v3744_v47  ;;  %v4129_v50 = vadd.f32 1e-05, %v4097_v42 }
 0xb34   : > { %v3977_v49 = vmul.f32 %v8996_v4, %v8996_v4  ;;  %v4584_v9 = vpack.c.bf16 %v4550_v13, %v4549_v62  ;;  %v6017_v13 = vld [vmem:[%s10069_s16 + $0x30] sm:$0xff] }
 0xb35   : > { %v9040_v32 = vadd.f32 %v6456_v37, %v3745_v21  ;;  %6313 = vrsqrt.f32 %v4129_v50  ;;  %vm4221_vm15 = vweird.f32 %v4129_v50 }
 0xb36   : > { %5877 = vmatmul.msk.bf16.gmra.mxu0 %vm1457_vm0, %v4583_v44  ;;  %v4037_v27 = vsel %vm1457_vm0, %v3977_v49, 0.0 }
 0xb37   : > { %4038 = vadd.xlane.f32.xlu2 %v4037_v27  ;;  %3858 = vadd.xlane.f32.xlu0 %v3857_v63  ;;  %v3869_v39 = vsel %vm1457_vm0, %v9040_v32, 0.0  ;;  %v6018_v63 = vld [vmem:[%s10069_s16 + $0x38] sm:$0xff] }
 0xb38   : > { %3864 = vadd.xlane.f32.xlu1 %v3863_v26  ;;  %5122 = vmatpush.bf16.msra.mxu2 %v6018_v63  ;;  %v6015_v63 = vld [vmem:[%s10069_s16 + $0x20] sm:$0xff] }
 0xb3a   : > { %v9048_v23 = vpop.f32.mrf.mxu1 }
 0xb3b   : > { %v6314_v41 = vpop.eup %6313 }
 0xb3c   : > { %v4216_v36 = vmul.f32 %v6314_v41, %v4129_v50  ;;  %vm4222_vm14 = vweird.f32 %v6314_v41  ;;  %5123 = vmatpush.bf16.msra.mxu2 %v6017_v13  ;;  %v6016_v50 = vld [vmem:[%s10069_s16 + $0x28] sm:$0xff] }
 0xb3d   : > { %vm4223_vm1 = vmor %vm4221_vm15, %vm4222_vm14 }
 0xb3e   : > { %v4217_v25 = vmul.f32 %v6314_v41, %v4216_v36 }
 0xb3f   : > { %3867 = vadd.xlane.f32.xlu2 %v3866_v55 }
 0xb40   : > { %v4218_v34 = vmul.f32 0.5, %v4217_v25  ;;  %5124 = vmatpush.bf16.msra.mxu2 %v6016_v50 }
 0xb42   : > { %v4219_v38 = vsub.f32 1.5, %v4218_v34 }
 0xb44   : > { %v4220_v14 = vmul.f32 %v6314_v41, %v4219_v38  ;;  %5125 = vmatpush.bf16.msra.mxu2 %v6015_v63 }
 0xb46   : > { %5878 = vmatmul.msk.bf16.gmra.mxu0 %vm1457_vm0, %v4584_v9  ;;  %v4224_v47 = vsel %vm4223_vm1, %v6314_v41, %v4220_v14 }
 0xb47   : > { %3870 = vadd.xlane.f32.xlu2 %v3869_v39  ;;  %v4481_v55 = vmul.f32 %v4224_v47, %v8781_v31 }
 0xb49   : > { %v4516_v34 = vmul.f32 %v8864_v58, %v4481_v55 }
 0xb4b   : > { %v4551_v47 = vadd.f32 %v8884_v10, %v4516_v34 }
 0xb75   : > { %v9054_v26 = vpop.f32.mrf.mxu1 }
 0xb7d   : > { %v9078_v38 = vpop.f32.mrf.mxu1 }
 0xb82   : > { %v4018_v44 = vpop.xlane.xlu2 %4017 }
 0xb83   : > { %v4098_v49 = vmul.f32 %v4018_v44, %v10154_v18 }
 0xb85   : > { %v4130_v59 = vadd.f32 1e-05, %v4098_v49 }
 0xb87   : > { %6315 = vrsqrt.f32 %v4130_v59  ;;  %vm4231_vm3 = vweird.f32 %v4130_v59 }
 0xb8a   : > { %v4021_v35 = vpop.xlane.xlu2 %4020 }
 0xb8b   : > { %v4099_v1 = vmul.f32 %v4021_v35, %v10154_v18 }
 0xb8d   : > { %v6316_v27 = vpop.eup %6315  ;;  %v9056_v56 = vadd.f32 1e-05, %v4099_v1 }
 0xb8e   : > { %v4226_v15 = vmul.f32 %v6316_v27, %v4130_v59  ;;  %vm4232_vm2 = vweird.f32 %v6316_v27 }
 0xb8f   : > { %6317 = vrsqrt.f32 %v9056_v56  ;;  %vm4233_vm4 = vmor %vm4231_vm3, %vm4232_vm2  ;;  %vm4241_vm6 = vweird.f32 %v9056_v56 }
 0xb90   : > { %v4227_v7 = vmul.f32 %v6316_v27, %v4226_v15 }
 0xb92   : > { %v4228_v0 = vmul.f32 0.5, %v4227_v7  ;;  %v3850_v62 = vpop.xlane.xlu2 %3849  ;;  %v4024_v39 = vpop.xlane.xlu0 %4023 }
 0xb93   : > { %v3914_v37 = vmul.f32 %v3850_v62, %v10154_v18  ;;  %v4030_v42 = vpop.xlane.xlu1 %4029  ;;  %v4100_v25 = vmul.f32 %v4024_v39, %v10154_v18 }
 0xb94   : > { %v4229_v21 = vsub.f32 1.5, %v4228_v0  ;;  %v4102_v44 = vmul.f32 %v4030_v42, %v10154_v18  ;;  %v6014_v42 = vld [vmem:[%s10069_s16 + $0x18] sm:$0xff] }
 0xb95   : > { %v9067_v41 = vpop.eup %6317  ;;  %v9071_v31 = vsub.f32 %v8874_v3, %v3914_v37  ;;  %v9080_v35 = vadd.f32 1e-05, %v4100_v25  ;;  %5126 = vmatpush.bf16.msra.mxu2 %v6014_v42 }
 0xb96   : > { %v4230_v9 = vmul.f32 %v6316_v27, %v4229_v21  ;;  %v4236_v59 = vmul.f32 %v9067_v41, %v9056_v56  ;;  %vm4242_vm5 = vweird.f32 %v9067_v41 }
 0xb97   : > { %v3978_v14 = vmul.f32 %v9071_v31, %v9071_v31  ;;  %6319 = vrsqrt.f32 %v9080_v35  ;;  %vm9169_vm8 = vmor %vm4241_vm6, %vm4242_vm5  ;;  %vm4251_vm9 = vweird.f32 %v9080_v35 }
 0xb98   : > { %v4234_v36 = vsel %vm4233_vm4, %v6316_v27, %v4230_v9  ;;  %v9082_v27 = vadd.f32 1e-05, %v4102_v44  ;;  %v4237_v1 = vmul.f32 %v9067_v41, %v4236_v59  ;;  %v9114_v44 = vld [vmem:[%s10068_s15] ss:$0 sm:$0xff] }
 0xb99   : > { %v4482_v49 = vmul.f32 %v4234_v36, %v8822_v30  ;;  %v4040_v30 = vsel %vm1457_vm0, %v3978_v14, 0.0  ;;  %v9120_v14 = vpop.f32.mrf.mxu1 }
 0xb9a   : > { %4041 = vadd.xlane.f32.xlu0 %v4040_v30  ;;  %v3853_v7 = vpop.xlane.xlu2 %3852  ;;  %6321 = vrsqrt.f32 %v9082_v27  ;;  %v4027_v21 = vpop.xlane.xlu0 %4026  ;;  %v4238_v9 = vmul.f32 0.5, %v4237_v1  ;;  %v6013_v1 = vld [vmem:[%s10069_s16 + $0x10] sm:$0xff]  ;;  %v9129_v30 = vld [vmem:[%s10064_s11] ss:$0 sm:$0xff]  ;;  %vm4271_vm14 = vweird.f32 %v9082_v27 }
 0xb9b   : > { %v4517_v15 = vmul.f32 %v8864_v58, %v4482_v49  ;;  %v3915_v13 = vmul.f32 %v3853_v7, %v10154_v18  ;;  %v4033_v55 = vpop.xlane.xlu1 %4032  ;;  %v4101_v37 = vmul.f32 %v4027_v21, %v10154_v18  ;;  %v3747_v63 = vadd.f32 %v9129_v30, %v9048_v23  ;;  %5127 = vmatpush.bf16.msra.mxu2 %v6013_v1  ;;  %v6458_v1 = vld [vmem:[%s6617_s23 + $0xb8] sm:$0xff] }
 0xb9c   : > { %v3755_v24 = vadd.f32 %v9129_v30, %v9120_v14 }
 0xb9d   : > { %v4552_v0 = vadd.f32 %v8884_v10, %v4517_v15  ;;  %v9099_v39 = vsub.f32 %v8932_v53, %v3915_v13  ;;  %v9105_v50 = vpop.eup %6319  ;;  %v9107_v36 = vadd.f32 1e-05, %v4101_v37  ;;  %v4239_v15 = vsub.f32 1.5, %v4238_v9 }
 0xb9e   : > { %v4246_v49 = vmul.f32 %v9105_v50, %v9080_v35  ;;  %v3750_v53 = vadd.f32 %v9129_v30, %v9054_v26  ;;  %vm4252_vm7 = vweird.f32 %v9105_v50 }
 0xb9f   : > { %v4585_v62 = vpack.c.bf16 %v4552_v0, %v4551_v47  ;;  %v3979_v25 = vmul.f32 %v9099_v39, %v9099_v39  ;;  %6323 = vrsqrt.f32 %v9107_v36  ;;  %v4103_v0 = vmul.f32 %v4033_v55, %v10154_v18  ;;  %vm9186_vm10 = vmor %vm4251_vm9, %vm4252_vm7 }
 0xba0   : > { %v9118_v34 = vpop.eup %6321  ;;  %v4247_v7 = vmul.f32 %v9105_v50, %v4246_v49  ;;  %v4240_v55 = vmul.f32 %v9067_v41, %v4239_v15  ;;  %vm4261_vm12 = vweird.f32 %v9107_v36 }
 0xba1   : > { %5879 = vmatmul.msk.bf16.gmra.mxu0 %vm1457_vm0, %v4585_v62  ;;  %v4043_v13 = vsel %vm1457_vm0, %v3979_v25, 0.0  ;;  %v4266_v23 = vmul.f32 %v9118_v34, %v9082_v27  ;;  %vm4272_vm11 = vweird.f32 %v9118_v34 }
 0xba2   : > { %v4036_v47 = vpop.xlane.xlu2 %4035  ;;  %v4248_v9 = vmul.f32 0.5, %v4247_v7  ;;  %v3856_v37 = vpop.xlane.xlu0 %3855  ;;  %4044 = vadd.xlane.f32.xlu0 %v4043_v13  ;;  %v9152_v7 = vadd.f32 %v6458_v1, %v3747_v63  ;;  %vm9279_vm1 = vmor %vm4271_vm14, %vm4272_vm11 }
 0xba3   : > { %v4670_v59 = vpop.f32.mrf.mxu0  ;;  %v4104_v21 = vmul.f32 %v4036_v47, %v10154_v18  ;;  %v3862_v42 = vpop.xlane.xlu1 %3861  ;;  %v3916_v49 = vmul.f32 %v3856_v37, %v10154_v18  ;;  %v4267_v56 = vmul.f32 %v9118_v34, %v4266_v23 }
 0xba4   : > { %v9138_v62 = vadd.f32 %v9114_v44, %v4670_v59  ;;  %v3918_v47 = vmul.f32 %v3862_v42, %v10154_v18  ;;  %v6012_v59 = vld [vmem:[%s10069_s16 + $0x8] sm:$0xff]  ;;  %v4249_v13 = vsub.f32 1.5, %v4248_v9  ;;  %v4244_v42 = vsel %vm9169_vm8, %v9067_v41, %v4240_v55  ;;  %v6459_v55 = vld [vmem:[%s6617_s23 + $0xc0] sm:$0xff] }
 0xba5   : > { %v9145_v25 = vadd.f32 1e-05, %v4104_v21  ;;  %v9158_v3 = vpop.eup %6323  ;;  %v9162_v21 = vadd.f32 1e-05, %v4103_v0  ;;  %v9165_v37 = vsub.f32 %v8976_v51, %v3916_v49  ;;  %5128 = vmatpush.bf16.msra.mxu2 %v6012_v59  ;;  %v9198_v26 = vadd.f32 %v6459_v55, %v3750_v53 }
 0xba6   : > { %v4750_v15 = vmul.f32 %v9138_v62, %v9138_v62  ;;  %v4250_v63 = vmul.f32 %v9105_v50, %v4249_v13  ;;  %v4256_v0 = vmul.f32 %v9158_v3, %v9107_v36  ;;  %v9183_v49 = vsub.f32 %v8981_v17, %v3918_v47  ;;  %v3756_v47 = vpop.f32.mrf.mxu1  ;;  %v6460_v36 = vld [vmem:[%s6617_s23 + $0xc8] sm:$0xff] }
 0xba7   : > { %6325 = vrsqrt.f32 %v9145_v25  ;;  %v3980_v23 = vmul.f32 %v9165_v37, %v9165_v37  ;;  %v3872_v13 = vsel %vm1457_vm0, %v9152_v7, 0.0  ;;  %v4268_v51 = vmul.f32 0.5, %v4267_v56 }
 0xba8   : > { %v4782_v59 = vmul.f32 %v4750_v15, %v9138_v62  ;;  %v4257_v35 = vmul.f32 %v9158_v3, %v4256_v0  ;;  %v4254_v15 = vsel %vm9186_vm10, %v9105_v50, %v4250_v63  ;;  %6327 = vrsqrt.f32 %v9162_v21  ;;  %v6011_v50 = vld [vmem:[%s10069_s16] sm:$0xff] }
 0xba9   : > { %v4483_v0 = vmul.f32 %v4244_v42, %v8842_v20  ;;  %v4046_v40 = vsel %vm1457_vm0, %v3980_v23, 0.0  ;;  %v3982_v55 = vmul.f32 %v9183_v49, %v9183_v49  ;;  %v4484_v63 = vmul.f32 %v4254_v15, %v8889_v2  ;;  %5129 = vmatpush.bf16.msra.mxu2 %v6011_v50 }
 0xbaa   : > { %v9195_v41 = vpop.xlane.xlu2 %4038  ;;  %v4814_v17 = vmul.f32 0.044715, %v4782_v59  ;;  %v4258_v57 = vmul.f32 0.5, %v4257_v35  ;;  %v3859_v60 = vpop.xlane.xlu0 %3858  ;;  %3873 = vadd.xlane.f32.xlu0 %v3872_v13  ;;  %4047 = vadd.xlane.f32.xlu1 %v4046_v40  ;;  %v3752_v40 = vadd.f32 %v9129_v30, %v9078_v38  ;;  %v3757_v35 = vadd.f32 %v9129_v30, %v3756_v47 }
 0xbab   : > { %v4672_v9 = vpop.f32.mrf.mxu0  ;;  %v3917_v53 = vmul.f32 %v3859_v60, %v10154_v18  ;;  %v3865_v59 = vpop.xlane.xlu1 %3864  ;;  %v4052_v1 = vsel %vm1457_vm0, %v3982_v55, 0.0  ;;  %v3875_v60 = vsel %vm1457_vm0, %v9198_v26, 0.0  ;;  %v4269_v23 = vsub.f32 1.5, %v4268_v51 }
 0xbac   : > { %v4259_v56 = vsub.f32 1.5, %v4258_v57  ;;  %v4846_v42 = vadd.f32 %v4814_v17, %v9138_v62  ;;  %4053 = vadd.xlane.f32.xlu2 %v4052_v1  ;;  %v4518_v2 = vmul.f32 %v8864_v58, %v4483_v0  ;;  %v3919_v17 = vmul.f32 %v3865_v59, %v10154_v18 }
 0xbad   : > { %v9213_v20 = vpop.eup %6325  ;;  %v9227_v57 = vsub.f32 %v9015_v6, %v3917_v53  ;;  %v9231_v55 = vadd.f32 %v9114_v44, %v4672_v9  ;;  %vm4262_vm13 = vweird.f32 %v9158_v3  ;;  %v4519_v38 = vmul.f32 %v8864_v58, %v4484_v63 }
 0xbae   : > { %v9223_v15 = vpop.eup %6327  ;;  %v4286_v51 = vmul.f32 %v9213_v20, %v9145_v25  ;;  %v4260_v0 = vmul.f32 %v9158_v3, %v4259_v56  ;;  %v4878_v50 = vmul.f32 0.7978846, %v4846_v42  ;;  %v9240_v53 = vsub.f32 %v9019_v33, %v3919_v17  ;;  %v3759_v63 = vpop.f32.mrf.mxu1  ;;  %vm9260_vm15 = vmor %vm4261_vm12, %vm4262_vm13 }
 0xbaf   : > { %v4751_v9 = vmul.f32 %v9231_v55, %v9231_v55  ;;  %v4270_v59 = vmul.f32 %v9118_v34, %v4269_v23  ;;  %v4276_v1 = vmul.f32 %v9223_v15, %v9162_v21  ;;  %v4553_v6 = vadd.f32 %v8884_v10, %v4518_v2 }
 0xbb0   : > { %v4554_v45 = vadd.f32 %v8884_v10, %v4519_v38  ;;  %v3981_v42 = vmul.f32 %v9227_v57, %v9227_v57  ;;  %v3983_v23 = vmul.f32 %v9240_v53, %v9240_v53  ;;  %6329 = vtanh.f32 %v4878_v50  ;;  %v6461_v50 = vld [vmem:[%s6617_s23 + $0xd8] sm:$0xff] }
 0xbb1   : > { %v4783_v56 = vmul.f32 %v4751_v9, %v9231_v55  ;;  %v9273_v16 = vadd.f32 %v6460_v36, %v3752_v40  ;;  %v4274_v40 = vsel %vm9279_vm1, %v9118_v34, %v4270_v59  ;;  %v4277_v14 = vmul.f32 %v9223_v15, %v4276_v1 }
 0xbb2   : > { %v3868_v47 = vpop.xlane.xlu2 %3867  ;;  %3876 = vadd.xlane.f32.xlu0 %v3875_v60  ;;  %v4287_v60 = vmul.f32 %v9213_v20, %v4286_v51  ;;  %v4586_v38 = vpack.c.bf16 %v4554_v45, %v4553_v6  ;;  %v4049_v33 = vsel %vm1457_vm0, %v3981_v42, 0.0  ;;  %v4055_v6 = vsel %vm1457_vm0, %v3983_v23, 0.0 }
 0xbb3   : > { %v4675_v13 = vpop.f32.mrf.mxu0  ;;  %v3920_v17 = vmul.f32 %v3868_v47, %v10154_v18  ;;  %v4264_v47 = vsel %vm9260_vm15, %v9158_v3, %v4260_v0  ;;  %v4815_v27 = vmul.f32 0.044715, %v4783_v56  ;;  %4050 = vadd.xlane.f32.xlu1 %v4049_v33  ;;  %v9296_v33 = vadd.f32 %v6461_v50, %v3757_v35 }
 0xbb4   : > { %v9266_v9 = vadd.f32 %v9114_v44, %v4675_v13  ;;  %5880 = vmatmul.msk.bf16.gmra.mxu0 %vm1457_vm0, %v4586_v38  ;;  %4056 = vadd.xlane.f32.xlu2 %v4055_v6  ;;  %v4485_v56 = vmul.f32 %v4264_v47, %v8923_v29  ;;  %v4288_v34 = vmul.f32 0.5, %v4287_v60  ;;  %v4486_v38 = vmul.f32 %v4274_v40, %v8893_v54 }
 0xbb5   : > { %v9285_v3 = vsub.f32 %v9031_v52, %v3920_v17  ;;  %v4847_v51 = vadd.f32 %v4815_v27, %v9231_v55  ;;  %10181 = vst [vmem:[#allocation14_spill] sm:$0xff] %v9296_v33  ;;  %v3760_v35 = vadd.f32 %v9129_v30, %v3759_v63  ;;  %v4278_v36 = vmul.f32 0.5, %v4277_v14 }
 0xbb6   : > { %v4752_v0 = vmul.f32 %v9266_v9, %v9266_v9  ;;  %v6330_v27 = vpop.eup %6329  ;;  %v3878_v6 = vsel %vm1457_vm0, %v9273_v16, 0.0  ;;  %v4520_v63 = vmul.f32 %v8864_v58, %v4485_v56  ;;  %v6463_v56 = vld [vmem:[%s6617_s23 + $0xe0] sm:$0xff]  ;;  %vm4291_vm2 = vweird.f32 %v9145_v25 }
 0xbb7   : > { %v3984_v42 = vmul.f32 %v9285_v3, %v9285_v3  ;;  %v4879_v59 = vmul.f32 0.7978846, %v4847_v51  ;;  %v3761_v51 = vpop.f32.mrf.mxu1  ;;  %vm4292_vm3 = vweird.f32 %v9213_v20  ;;  %vm4282_vm4 = vweird.f32 %v9223_v15 }
 0xbb8   : > { %v4784_v1 = vmul.f32 %v4752_v0, %v9266_v9  ;;  %v4289_v0 = vsub.f32 1.5, %v4288_v34  ;;  %vm9346_vm5 = vmor %vm4291_vm2, %vm4292_vm3  ;;  %vm4281_vm6 = vweird.f32 %v9162_v21 }
 0xbb9   : > { %v4058_v29 = vsel %vm1457_vm0, %v3984_v42, 0.0  ;;  %6331 = vtanh.f32 %v4879_v59  ;;  %v4942_v42 = vadd.f32 1.0, %v6330_v27  ;;  %vm9358_vm7 = vmor %vm4281_vm6, %vm4282_vm4 }
 0xbba   : > { %v3871_v17 = vpop.xlane.xlu2 %3870  ;;  %v4816_v45 = vmul.f32 0.044715, %v4784_v1  ;;  %4059 = vadd.xlane.f32.xlu0 %v4058_v29  ;;  %v4521_v1 = vmul.f32 %v8864_v58, %v4486_v38  ;;  %v9328_v29 = vadd.f32 %v6463_v56, %v3760_v35  ;;  %v4290_v38 = vmul.f32 %v9213_v20, %v4289_v0 }
 0xbbb   : > { %v4677_v13 = vpop.f32.mrf.mxu0  ;;  %v3921_v2 = vmul.f32 %v3871_v17, %v10154_v18  ;;  %3879 = vadd.xlane.f32.xlu1 %v3878_v6  ;;  %v3884_v17 = vsel %vm1457_vm0, %v9296_v33, 0.0  ;;  %v4555_v6 = vadd.f32 %v8884_v10, %v4520_v63 }
 0xbbc   : > { %v9302_v23 = vadd.f32 %v9114_v44, %v4677_v13  ;;  %v6462_v13 = vld [vmem:[%s6617_s23 + $0xd0] sm:$0xff]  ;;  %v4848_v14 = vadd.f32 %v4816_v45, %v9266_v9  ;;  %3885 = vadd.xlane.f32.xlu2 %v3884_v17  ;;  %v3762_v45 = vadd.f32 %v9129_v30, %v3761_v51  ;;  %v4556_v51 = vadd.f32 %v8884_v10, %v4521_v1 }
 0xbbd   : > { %v9312_v60 = vsub.f32 %v9040_v32, %v3921_v2  ;;  %v9319_v40 = vadd.f32 %v6462_v13, %v3755_v24  ;;  %v4279_v24 = vsub.f32 1.5, %v4278_v36  ;;  %v4974_v36 = vmul.f32 0.5, %v4942_v42 }
 0xbbe   : > { %v4753_v47 = vmul.f32 %v9302_v23, %v9302_v23  ;;  %v4294_v42 = vsel %vm9346_vm5, %v9213_v20, %v4290_v38 }
 0xbbf   : > { %v3985_v50 = vmul.f32 %v9312_v60, %v9312_v60  ;;  %v6332_v13 = vpop.eup %6331  ;;  %v4280_v63 = vmul.f32 %v9223_v15, %v4279_v24  ;;  %v3881_v1 = vsel %vm1457_vm0, %v9319_v40, 0.0  ;;  %v6464_v24 = vld [vmem:[%s6617_s23 + $0xe8] sm:$0xff] }
 0xbc0   : > { %v4785_v54 = vmul.f32 %v4753_v47, %v9302_v23  ;;  %v4880_v47 = vmul.f32 0.7978846, %v4848_v14  ;;  %v4943_v14 = vadd.f32 1.0, %v6332_v13  ;;  %v3764_v13 = vpop.f32.mrf.mxu1 }
 0xbc2   : > { %v4817_v59 = vmul.f32 0.044715, %v4785_v54  ;;  %v4061_v54 = vsel %vm1457_vm0, %v3985_v50, 0.0  ;;  %6333 = vtanh.f32 %v4880_v47  ;;  %v4975_v50 = vmul.f32 0.5, %v4943_v14 }
 0xbc3   : > { %v4680_v2 = vpop.f32.mrf.mxu0  ;;  %4062 = vadd.xlane.f32.xlu0 %v4061_v54  ;;  %v9363_v47 = vadd.f32 %v6464_v24, %v3762_v45  ;;  %3882 = vadd.xlane.f32.xlu1 %v3881_v1  ;;  %v4284_v54 = vsel %vm9358_vm7, %v9223_v15, %v4280_v63  ;;  %v4488_v45 = vmul.f32 %v4294_v42, %v8972_v43 }
 0xbc4   : > { %v9331_v34 = vadd.f32 %v9114_v44, %v4680_v2  ;;  %v4849_v27 = vadd.f32 %v4817_v59, %v9302_v23  ;;  %v4587_v59 = vpack.c.bf16 %v4556_v51, %v4555_v6  ;;  %v3887_v2 = vsel %vm1457_vm0, %v9328_v29, 0.0 }
 0xbc5   : > { %v5007_v21 = vmul.f32 %v4975_v50, %v9231_v55  ;;  %3888 = vadd.xlane.f32.xlu2 %v3887_v2  ;;  %v4487_v14 = vmul.f32 %v4284_v54, %v8929_v48  ;;  %v3890_v15 = vsel %vm1457_vm0, %v9363_v47, 0.0  ;;  %v4523_v43 = vmul.f32 %v8864_v58, %v4488_v45 }
 0xbc6   : > { %v4754_v35 = vmul.f32 %v9331_v34, %v9331_v34  ;;  %v4881_v17 = vmul.f32 0.7978846, %v4849_v27  ;;  %v5006_v27 = vmul.f32 %v4974_v36, %v9138_v62  ;;  %5881 = vmatmul.msk.bf16.gmra.mxu0 %vm1457_vm0, %v4587_v59  ;;  %v6465_v59 = vld [vmem:[%s6617_s23 + $0xf0] sm:$0xff] }
 0xbc7   : > { %v4522_v48 = vmul.f32 %v8864_v58, %v4487_v14  ;;  %v4558_v24 = vadd.f32 %v8884_v10, %v4523_v43 }
 0xbc8   : > { %v4786_v0 = vmul.f32 %v4754_v35, %v9331_v34  ;;  %6335 = vtanh.f32 %v4881_v17  ;;  %v5055_v35 = vpack.c.bf16 %v5007_v21, %v5006_v27  ;;  %v6334_v62 = vpop.eup %6333  ;;  %v3765_v17 = vadd.f32 %v9129_v30, %v3764_v13 }
 0xbc9   : > { %v4944_v25 = vadd.f32 1.0, %v6334_v62 }
 0xbca   : > { %v4818_v20 = vmul.f32 0.044715, %v4786_v0  ;;  %5130 = vmatmul.bf16.vlgmr.msra.gmra.mxu2 %v5055_v35  ;;  %v9380_v42 = vadd.f32 %v6465_v59, %v3765_v17 }
 0xbcb   : > { %v4682_v6 = vpop.f32.mrf.mxu0  ;;  %3891 = vadd.xlane.f32.xlu0 %v3890_v15  ;;  %v4976_v27 = vmul.f32 0.5, %v4944_v25 }
 0xbcc   : > { %v4683_v38 = vadd.f32 %v9114_v44, %v4682_v6  ;;  %v4850_v51 = vadd.f32 %v4818_v20, %v9331_v34  ;;  %v4557_v20 = vadd.f32 %v8884_v10, %v4522_v48  ;;  %v3893_v6 = vsel %vm1457_vm0, %v9380_v42, 0.0 }
 0xbcd   : > { %v5008_v45 = vmul.f32 %v4976_v27, %v9266_v9 }
 0xbce   : > { %v4755_v36 = vmul.f32 %v4683_v38, %v4683_v38  ;;  %v6336_v55 = vpop.eup %6335  ;;  %v4882_v1 = vmul.f32 0.7978846, %v4850_v51  ;;  %v4588_v13 = vpack.c.bf16 %v4558_v24, %v4557_v20 }
 0xbcf   : > { %v4945_v0 = vadd.f32 1.0, %v6336_v55 }
 0xbd0   : > { %v4787_v63 = vmul.f32 %v4755_v36, %v4683_v38  ;;  %6337 = vtanh.f32 %v4882_v1 }
 0xbd1   : > { %v4977_v2 = vmul.f32 0.5, %v4945_v0 }
 0xbd2   : > { %v4819_v50 = vmul.f32 0.044715, %v4787_v63 }
 0xbd3   : > { %v5009_v54 = vmul.f32 %v4977_v2, %v9302_v23  ;;  %3894 = vadd.xlane.f32.xlu0 %v3893_v6  ;;  %v4105_v23 = vmul.f32 %v9195_v41, %v10154_v18 }
 0xbd4   : > { %v4851_v56 = vadd.f32 %v4819_v50, %v4683_v38 }
 0xbd5   : > { %v5056_v58 = vpack.c.bf16 %v5009_v54, %v5008_v45  ;;  %v4137_v63 = vadd.f32 1e-05, %v4105_v23 }
 0xbd6   : > { %v4883_v21 = vmul.f32 0.7978846, %v4851_v56  ;;  %5882 = vmatmul.msk.bf16.gmra.mxu0 %vm1457_vm0, %v4588_v13  ;;  %v6338_v35 = vpop.eup %6337 }
 0xbd7   : > { %v4946_v55 = vadd.f32 1.0, %v6338_v35  ;;  %vm4301_vm9 = vweird.f32 %v4137_v63 }
 0xbd8   : > { %6339 = vtanh.f32 %v4883_v21 }
 0xbd9   : > { %v4978_v10 = vmul.f32 0.5, %v4946_v55  ;;  %6341 = vrsqrt.f32 %v4137_v63 }
 0xbda   : > { %5135 = vmatmul.bf16.gmra.mxu2 %v5056_v58 }
 0xbdb   : > { %v5010_v51 = vmul.f32 %v4978_v10, %v9331_v34 }
 0xbde   : > { %v6340_v62 = vpop.eup %6339 }
 0xbdf   : > { %v4947_v36 = vadd.f32 1.0, %v6340_v62  ;;  %v6342_v9 = vpop.eup %6341 }
 0xbe0   : > { %v4296_v0 = vmul.f32 %v6342_v9, %v4137_v63  ;;  %vm4302_vm8 = vweird.f32 %v6342_v9 }
 0xbe1   : > { %v4979_v14 = vmul.f32 0.5, %v4947_v36  ;;  %vm4303_vm10 = vmor %vm4301_vm9, %vm4302_vm8 }
 0xbe2   : > { %v4297_v43 = vmul.f32 %v6342_v9, %v4296_v0 }
 0xbe3   : > { %v5011_v17 = vmul.f32 %v4979_v14, %v4683_v38 }
 0xbe4   : > { %v4298_v59 = vmul.f32 0.5, %v4297_v43 }
 0xbe5   : > { %v5057_v15 = vpack.c.bf16 %v5011_v17, %v5010_v51 }
 0xbe6   : > { %v4299_v48 = vsub.f32 1.5, %v4298_v59 }
 0xbe8   : > { %v4300_v38 = vmul.f32 %v6342_v9, %v4299_v48 }
 0xbea   : > { %5140 = vmatmul.bf16.gmra.mxu2 %v5057_v15  ;;  %v4304_v27 = vsel %vm4303_vm10, %v6342_v9, %v4300_v38 }
 0xbeb   : > { %v4489_v13 = vmul.f32 %v4304_v27, %v8996_v4  ;;  %v9414_v4 = vld [vmem:[%s10065_s12] ss:$0 sm:$0xff] }
 0xbec   : > { %v9438_v27 = vld [vmem:[%s10066_s13] ss:$0 sm:$0xff] }
 0xbed   : > { %v4524_v51 = vmul.f32 %v9414_v4, %v4489_v13 }
 0xc0d   : > { %v4042_v25 = vpop.xlane.xlu0 %4041 }
 0xc0e   : > { %v4106_v50 = vmul.f32 %v4042_v25, %v10154_v18 }
 0xc10   : > { %v4138_v1 = vadd.f32 1e-05, %v4106_v50 }
 0xc12   : > { %6343 = vrsqrt.f32 %v4138_v1  ;;  %vm4311_vm12 = vweird.f32 %v4138_v1 }
 0xc15   : > { %v4045_v34 = vpop.xlane.xlu0 %4044 }
 0xc16   : > { %v4107_v56 = vmul.f32 %v4045_v34, %v10154_v18 }
 0xc18   : > { %v6344_v2 = vpop.eup %6343  ;;  %v9395_v24 = vadd.f32 1e-05, %v4107_v56 }
 0xc19   : > { %v4306_v41 = vmul.f32 %v6344_v2, %v4138_v1  ;;  %vm4312_vm11 = vweird.f32 %v6344_v2 }
 0xc1a   : > { %6345 = vrsqrt.f32 %v9395_v24  ;;  %vm4313_vm13 = vmor %vm4311_vm12, %vm4312_vm11  ;;  %vm4321_vm15 = vweird.f32 %v9395_v24 }
 0xc1b   : > { %v4307_v21 = vmul.f32 %v6344_v2, %v4306_v41 }
 0xc1d   : > { %v4308_v54 = vmul.f32 0.5, %v4307_v21  ;;  %v3874_v58 = vpop.xlane.xlu0 %3873  ;;  %v4048_v36 = vpop.xlane.xlu1 %4047  ;;  %v4559_v21 = vadd.f32 %v9438_v27, %v4524_v51 }
 0xc1e   : > { %v4685_v20 = vpop.f32.mrf.mxu0  ;;  %v3922_v62 = vmul.f32 %v3874_v58, %v10154_v18  ;;  %v4108_v14 = vmul.f32 %v4048_v36, %v10154_v18 }
 0xc1f   : > { %v9399_v6 = vadd.f32 %v9114_v44, %v4685_v20  ;;  %v4309_v45 = vsub.f32 1.5, %v4308_v54  ;;  %v4054_v63 = vpop.xlane.xlu2 %4053 }
 0xc20   : > { %v9406_v10 = vpop.eup %6345  ;;  %v9409_v17 = vsub.f32 %v9152_v7, %v3922_v62  ;;  %v9419_v9 = vadd.f32 1e-05, %v4108_v14  ;;  %v4110_v50 = vmul.f32 %v4054_v63, %v10154_v18 }
 0xc21   : > { %v4756_v35 = vmul.f32 %v9399_v6, %v9399_v6  ;;  %v4310_v55 = vmul.f32 %v6344_v2, %v4309_v45  ;;  %v4316_v23 = vmul.f32 %v9406_v10, %v9395_v24  ;;  %v3766_v45 = vpop.f32.mrf.mxu1  ;;  %vm4322_vm14 = vweird.f32 %v9406_v10 }
 0xc22   : > { %v3986_v59 = vmul.f32 %v9409_v17, %v9409_v17  ;;  %6347 = vrsqrt.f32 %v9419_v9  ;;  %v9431_v38 = vadd.f32 1e-05, %v4110_v50  ;;  %vm4323_vm1 = vmor %vm4321_vm15, %vm4322_vm14  ;;  %vm4331_vm3 = vweird.f32 %v9419_v9 }
 0xc23   : > { %v4314_v15 = vsel %vm4313_vm13, %v6344_v2, %v4310_v55  ;;  %v4788_v0 = vmul.f32 %v4756_v35, %v9399_v6  ;;  %v4317_v1 = vmul.f32 %v9406_v10, %v4316_v23 }
 0xc24   : > { %v4490_v25 = vmul.f32 %v4314_v15, %v9071_v31  ;;  %v4064_v34 = vsel %vm1457_vm0, %v3986_v59, 0.0  ;;  %6349 = vrsqrt.f32 %v9431_v38  ;;  %vm4351_vm8 = vweird.f32 %v9431_v38 }
 0xc25   : > { %v4318_v56 = vmul.f32 0.5, %v4317_v1  ;;  %v4820_v31 = vmul.f32 0.044715, %v4788_v0  ;;  %4065 = vadd.xlane.f32.xlu1 %v4064_v34  ;;  %v3877_v41 = vpop.xlane.xlu0 %3876 }
 0xc26   : > { %v4687_v43 = vpop.f32.mrf.mxu0  ;;  %v4525_v2 = vmul.f32 %v9414_v4, %v4490_v25  ;;  %v3923_v20 = vmul.f32 %v3877_v41, %v10154_v18  ;;  %v4051_v14 = vpop.xlane.xlu1 %4050 }
 0xc27   : > { %v9429_v48 = vadd.f32 %v9114_v44, %v4687_v43  ;;  %v4319_v58 = vsub.f32 1.5, %v4318_v56  ;;  %v4852_v55 = vadd.f32 %v4820_v31, %v9399_v6  ;;  %v4057_v15 = vpop.xlane.xlu2 %4056  ;;  %v4109_v23 = vmul.f32 %v4051_v14, %v10154_v18 }
 0xc28   : > { %v4560_v13 = vadd.f32 %v9438_v27, %v4525_v2  ;;  %v9447_v35 = vsub.f32 %v9198_v26, %v3923_v20  ;;  %v6348_v36 = vpop.eup %6347  ;;  %v3767_v43 = vadd.f32 %v9129_v30, %v3766_v45  ;;  %v4111_v56 = vmul.f32 %v4057_v15, %v10154_v18  ;;  %v6468_v20 = vld [vmem:[%s6617_s23 + $0xf8] sm:$0xff] }
 0xc29   : > { %v4757_v54 = vmul.f32 %v9429_v48, %v9429_v48  ;;  %v4326_v51 = vmul.f32 %v6348_v36, %v9419_v9  ;;  %v4320_v50 = vmul.f32 %v9406_v10, %v4319_v58  ;;  %v9461_v1 = vadd.f32 1e-05, %v4109_v23 }
 0xc2a   : > { %v4589_v62 = vpack.c.bf16 %v4560_v13, %v4559_v21  ;;  %v3987_v0 = vmul.f32 %v9447_v35, %v9447_v35  ;;  %v9458_v25 = vpop.eup %6349  ;;  %v4884_v31 = vmul.f32 0.7978846, %v4852_v55  ;;  %vm4332_vm2 = vweird.f32 %v6348_v36 }
 0xc2b   : > { %v4789_v63 = vmul.f32 %v4757_v54, %v9429_v48  ;;  %v4327_v59 = vmul.f32 %v6348_v36, %v4326_v51  ;;  %v4346_v2 = vmul.f32 %v9458_v25, %v9431_v38  ;;  %6351 = vrsqrt.f32 %v9461_v1  ;;  %vm4333_vm4 = vmor %vm4331_vm3, %vm4332_vm2 }
 0xc2c   : > { %5883 = vmatmul.msk.bf16.gmra.mxu0 %vm1457_vm0, %v4589_v62  ;;  %v4067_v34 = vsel %vm1457_vm0, %v3987_v0, 0.0  ;;  %v9470_v54 = vadd.f32 %v6468_v20, %v3767_v43  ;;  %v4324_v13 = vsel %vm4323_vm1, %v9406_v10, %v4320_v50  ;;  %v9478_v62 = vadd.f32 1e-05, %v4111_v56 }
 0xc2d   : > { %4068 = vadd.xlane.f32.xlu1 %v4067_v34  ;;  %v4328_v30 = vmul.f32 0.5, %v4327_v59  ;;  %v4821_v41 = vmul.f32 0.044715, %v4789_v63  ;;  %v4060_v21 = vpop.xlane.xlu0 %4059  ;;  %v4347_v45 = vmul.f32 %v9458_v25, %v4346_v2  ;;  %6353 = vtanh.f32 %v4884_v31 }
 0xc2e   : > { %v4112_v24 = vmul.f32 %v4060_v21, %v10154_v18  ;;  %v3880_v14 = vpop.xlane.xlu1 %3879  ;;  %v4491_v10 = vmul.f32 %v4324_v13, %v9099_v39  ;;  %v3896_v43 = vsel %vm1457_vm0, %v9470_v54, 0.0  ;;  %vm4352_vm5 = vweird.f32 %v9458_v25 }
 0xc2f   : > { %v4329_v58 = vsub.f32 1.5, %v4328_v30  ;;  %v4853_v15 = vadd.f32 %v4821_v41, %v9429_v48  ;;  %v3886_v23 = vpop.xlane.xlu2 %3885  ;;  %v3924_v63 = vmul.f32 %v3880_v14, %v10154_v18  ;;  %v4348_v59 = vmul.f32 0.5, %v4347_v45  ;;  %vm9562_vm10 = vmor %vm4351_vm8, %vm4352_vm5 }
 0xc30   : > { %v9480_v55 = vadd.f32 1e-05, %v4112_v24  ;;  %v3926_v0 = vmul.f32 %v3886_v23, %v10154_v18  ;;  %v4526_v24 = vmul.f32 %v9414_v4, %v4491_v10  ;;  %vm4341_vm6 = vweird.f32 %v9461_v1 }
 0xc31   : > { %v4330_v51 = vmul.f32 %v6348_v36, %v4329_v58  ;;  %v4690_v9 = vpop.f32.mrf.mxu0  ;;  %v9489_v50 = vpop.eup %6351  ;;  %v9492_v2 = vsub.f32 %v9273_v16, %v3924_v63  ;;  %v4885_v31 = vmul.f32 0.7978846, %v4853_v15  ;;  %v4349_v45 = vsub.f32 1.5, %v4348_v59 }
 0xc32   : > { %6355 = vrsqrt.f32 %v9480_v55  ;;  %v9495_v56 = vadd.f32 %v9114_v44, %v4690_v9  ;;  %v4336_v30 = vmul.f32 %v9489_v50, %v9461_v1  ;;  %v9502_v41 = vsub.f32 %v9296_v33, %v3926_v0 }
 0xc33   : > { %v4334_v34 = vsel %vm4333_vm4, %v6348_v36, %v4330_v51  ;;  %6357 = vrsqrt.f32 %v9478_v62  ;;  %v6354_v13 = vpop.eup %6353  ;;  %vm4342_vm7 = vweird.f32 %v9489_v50  ;;  %vm4371_vm12 = vweird.f32 %v9480_v55 }
 0xc34   : > { %v4492_v39 = vmul.f32 %v4334_v34, %v9165_v37  ;;  %v4758_v36 = vmul.f32 %v9495_v56, %v9495_v56  ;;  %v4337_v20 = vmul.f32 %v9489_v50, %v4336_v30  ;;  %v3988_v37 = vmul.f32 %v9492_v2, %v9492_v2  ;;  %vm9544_vm9 = vmor %vm4341_vm6, %vm4342_vm7 }
 0xc35   : > { %3897 = vadd.xlane.f32.xlu1 %v3896_v43  ;;  %v3990_v14 = vmul.f32 %v9502_v41, %v9502_v41  ;;  %6359 = vtanh.f32 %v4885_v31  ;;  %vm4361_vm15 = vweird.f32 %v9478_v62 }
 0xc36   : > { %v9506_v21 = vpop.xlane.xlu0 %4062  ;;  %v4790_v58 = vmul.f32 %v4758_v36, %v9495_v56  ;;  %v4338_v15 = vmul.f32 0.5, %v4337_v20  ;;  %v4070_v23 = vsel %vm1457_vm0, %v3988_v37, 0.0  ;;  %v4527_v63 = vmul.f32 %v9414_v4, %v4492_v39  ;;  %v3883_v43 = vpop.xlane.xlu1 %3882 }
 0xc37   : > { %4071 = vadd.xlane.f32.xlu2 %v4070_v23  ;;  %v4076_v30 = vsel %vm1457_vm0, %v3990_v14, 0.0  ;;  %v4561_v39 = vadd.f32 %v9438_v27, %v4526_v24  ;;  %v4350_v20 = vmul.f32 %v9458_v25, %v4349_v45  ;;  %v4948_v23 = vadd.f32 1.0, %v6354_v13 }
 0xc38   : > { %v9515_v51 = vpop.eup %6355  ;;  %v4822_v0 = vmul.f32 0.044715, %v4790_v58  ;;  %v3889_v9 = vpop.xlane.xlu2 %3888  ;;  %v4339_v34 = vsub.f32 1.5, %v4338_v15  ;;  %4077 = vadd.xlane.f32.xlu0 %v4076_v30  ;;  %v3925_v33 = vmul.f32 %v3883_v43, %v10154_v18  ;;  %v4562_v14 = vadd.f32 %v9438_v27, %v4527_v63 }
 0xc39   : > { %v4366_v10 = vmul.f32 %v9515_v51, %v9480_v55  ;;  %v9523_v59 = vpop.eup %6357  ;;  %v4692_v36 = vpop.f32.mrf.mxu0  ;;  %v3927_v58 = vmul.f32 %v3889_v9, %v10154_v18  ;;  %vm4372_vm11 = vweird.f32 %v9515_v51 }
 0xc3a   : > { %v4854_v37 = vadd.f32 %v4822_v0, %v9495_v56  ;;  %v4340_v31 = vmul.f32 %v9489_v50, %v4339_v34  ;;  %v9534_v15 = vadd.f32 %v9114_v44, %v4692_v36  ;;  %v4356_v24 = vmul.f32 %v9523_v59, %v9478_v62  ;;  %vm9623_vm14 = vmor %vm4371_vm12, %vm4372_vm11 }
 0xc3b   : > { %v4367_v45 = vmul.f32 %v9515_v51, %v4366_v10  ;;  %v9550_v0 = vsub.f32 %v9328_v29, %v3927_v58  ;;  %v9556_v63 = vsub.f32 %v9319_v40, %v3925_v33  ;;  %v4590_v43 = vpack.c.bf16 %v4562_v14, %v4561_v39  ;;  %v6360_v34 = vpop.eup %6359 }
 0xc3c   : > { %v4344_v38 = vsel %vm9544_vm9, %v9489_v50, %v4340_v31  ;;  %v4759_v1 = vmul.f32 %v9534_v15, %v9534_v15  ;;  %v4886_v30 = vmul.f32 0.7978846, %v4854_v37  ;;  %v4980_v36 = vmul.f32 0.5, %v4948_v23 }
 0xc3d   : > { %v4354_v50 = vsel %vm9562_vm10, %v9458_v25, %v4350_v20  ;;  %5884 = vmatmul.msk.bf16.gmra.mxu0 %vm1457_vm0, %v4590_v43  ;;  %v3991_v39 = vmul.f32 %v9550_v0, %v9550_v0  ;;  %v4357_v31 = vmul.f32 %v9523_v59, %v4356_v24  ;;  %v4493_v14 = vmul.f32 %v4344_v38, %v9227_v57 }
 0xc3e   : > { %v3892_v9 = vpop.xlane.xlu0 %3891  ;;  %v4791_v33 = vmul.f32 %v4759_v1, %v9534_v15  ;;  %v4368_v13 = vmul.f32 0.5, %v4367_v45  ;;  %v3989_v37 = vmul.f32 %v9556_v63, %v9556_v63  ;;  %v4949_v43 = vadd.f32 1.0, %v6360_v34 }
 0xc3f   : > { %v3928_v58 = vmul.f32 %v3892_v9, %v10154_v18  ;;  %v4079_v20 = vsel %vm1457_vm0, %v3991_v39, 0.0  ;;  %6361 = vtanh.f32 %v4886_v30  ;;  %v4494_v57 = vmul.f32 %v4354_v50, %v9183_v49 }
 0xc40   : > { %v4823_v23 = vmul.f32 0.044715, %v4791_v33  ;;  %4080 = vadd.xlane.f32.xlu1 %v4079_v20  ;;  %v4073_v9 = vsel %vm1457_vm0, %v3989_v37, 0.0  ;;  %v4981_v38 = vmul.f32 0.5, %v4949_v43  ;;  %v5012_v10 = vmul.f32 %v4980_v36, %v9399_v6 }
 0xc41   : > { %v9579_v25 = vsub.f32 %v9363_v47, %v3928_v58  ;;  %4074 = vadd.xlane.f32.xlu2 %v4073_v9  ;;  %v4358_v33 = vmul.f32 0.5, %v4357_v31  ;;  %v4369_v58 = vsub.f32 1.5, %v4368_v13  ;;  %v4528_v50 = vmul.f32 %v9414_v4, %v4493_v14 }
 0xc42   : > { %v4855_v45 = vadd.f32 %v4823_v23, %v9534_v15  ;;  %v5013_v20 = vmul.f32 %v4981_v38, %v9429_v48  ;;  %v4529_v31 = vmul.f32 %v9414_v4, %v4494_v57  ;;  %v9605_v48 = vld [vmem:[%s10070_s17] ss:$0 sm:$0xff]  ;;  %vm4362_vm13 = vweird.f32 %v9523_v59 }
 0xc43   : > { %v4695_v1 = vpop.f32.mrf.mxu0  ;;  %v3992_v39 = vmul.f32 %v9579_v25, %v9579_v25  ;;  %v4370_v14 = vmul.f32 %v9515_v51, %v4369_v58  ;;  %v4563_v38 = vadd.f32 %v9438_v27, %v4528_v50  ;;  %vm4363_vm1 = vmor %vm4361_vm15, %vm4362_vm13 }
 0xc44   : > { %v9584_v24 = vadd.f32 %v9114_v44, %v4695_v1  ;;  %v4887_v37 = vmul.f32 0.7978846, %v4855_v45  ;;  %v5058_v6 = vpack.c.bf16 %v5013_v20, %v5012_v10  ;;  %v4359_v1 = vsub.f32 1.5, %v4358_v33 }
 0xc45   : > { %v6362_v13 = vpop.eup %6361  ;;  %v4082_v9 = vsel %vm1457_vm0, %v3992_v39, 0.0  ;;  %v4564_v58 = vadd.f32 %v9438_v27, %v4529_v31 }
 0xc46   : > { %v4760_v34 = vmul.f32 %v9584_v24, %v9584_v24  ;;  %v3895_v30 = vpop.xlane.xlu0 %3894  ;;  %6363 = vtanh.f32 %v4887_v37  ;;  %5145 = vmatmul.bf16.gmra.mxu2 %v5058_v6  ;;  %v4950_v39 = vadd.f32 1.0, %v6362_v13  ;;  %v4360_v37 = vmul.f32 %v9523_v59, %v4359_v1 }
 0xc47   : > { %v3929_v49 = vmul.f32 %v3895_v30, %v10154_v18  ;;  %v4591_v6 = vpack.c.bf16 %v4564_v58, %v4563_v38 }
 0xc48   : > { %v4792_v23 = vmul.f32 %v4760_v34, %v9584_v24 }
 0xc49   : > { %v9598_v36 = vsub.f32 %v9380_v42, %v3929_v49  ;;  %4083 = vadd.xlane.f32.xlu2 %v4082_v9  ;;  %v4982_v9 = vmul.f32 0.5, %v4950_v39 }
 0xc4a   : > { %v4824_v43 = vmul.f32 0.044715, %v4792_v23  ;;  %v4374_v23 = vsel %vm9623_vm14, %v9515_v51, %v4370_v14 }
 0xc4b   : > { %v4697_v45 = vpop.f32.mrf.mxu0  ;;  %v3993_v57 = vmul.f32 %v9598_v36, %v9598_v36 }
 0xc4c   : > { %v4856_v10 = vadd.f32 %v4824_v43, %v9584_v24  ;;  %v9614_v33 = vadd.f32 %v9114_v44, %v4697_v45  ;;  %v6364_v50 = vpop.eup %6363  ;;  %v4364_v45 = vsel %vm4363_vm1, %v9523_v59, %v4360_v37  ;;  %v5014_v59 = vmul.f32 %v4982_v9, %v9495_v56 }
 0xc4d   : > { %v5131_v34 = vpop.f32.mrf.mxu2  ;;  %v4085_v30 = vsel %vm1457_vm0, %v3993_v57, 0.0  ;;  %v4951_v43 = vadd.f32 1.0, %v6364_v50  ;;  %5885 = vmatmul.msk.bf16.gmra.mxu0 %vm1457_vm0, %v4591_v6 }
 0xc4e   : > { %v4761_v55 = vmul.f32 %v9614_v33, %v9614_v33  ;;  %v5132_v49 = vadd.f32 %v9605_v48, %v5131_v34  ;;  %4086 = vadd.xlane.f32.xlu0 %v4085_v30  ;;  %v4888_v31 = vmul.f32 0.7978846, %v4856_v10  ;;  %v4496_v34 = vmul.f32 %v4374_v23, %v9285_v3 }
 0xc4f   : > { %v4983_v62 = vmul.f32 0.5, %v4951_v43  ;;  %v4495_v10 = vmul.f32 %v4364_v45, %v9240_v53 }
 0xc50   : > { %v4793_v13 = vmul.f32 %v4761_v55, %v9614_v33  ;;  %v5211_v1 = vadd.f32 %v5132_v49, %v8621_v61  ;;  %6365 = vtanh.f32 %v4888_v31  ;;  %v4531_v20 = vmul.f32 %v9414_v4, %v4496_v34 }
 0xc51   : > { %v5015_v61 = vmul.f32 %v4983_v62, %v9534_v15  ;;  %v4530_v55 = vmul.f32 %v9414_v4, %v4495_v10 }
 0xc52   : > { %v4825_v57 = vmul.f32 0.044715, %v4793_v13  ;;  %5243 = vst.msk [vmem:[%s9635_s4] sm:$0xff] %vm1457_vm0, %v5211_v1  ;;  %v5275_v49 = vsel %vm1457_vm0, %v5211_v1, 0.0  ;;  %v4566_v31 = vadd.f32 %v9438_v27, %v4531_v20 }
 0xc53   : > { %v4700_v51 = vpop.f32.mrf.mxu0  ;;  %v5059_v37 = vpack.c.bf16 %v5015_v61, %v5014_v59  ;;  %v4565_v9 = vadd.f32 %v9438_v27, %v4530_v55 }
 0xc54   : > { %v4857_v14 = vadd.f32 %v4825_v57, %v9614_v33  ;;  %v9650_v38 = vadd.f32 %v9114_v44, %v4700_v51 }
 0xc55   : > { %v5133_v58 = vpop.f32.mrf.mxu2  ;;  %v4592_v51 = vpack.c.bf16 %v4566_v31, %v4565_v9 }
 0xc56   : > { %v4889_v30 = vmul.f32 0.7978846, %v4857_v14  ;;  %v4762_v39 = vmul.f32 %v9650_v38, %v9650_v38  ;;  %v5134_v3 = vadd.f32 %v9605_v48, %v5133_v58  ;;  %v6366_v53 = vpop.eup %6365  ;;  %5150 = vmatmul.bf16.gmra.mxu2 %v5059_v37 }
 0xc57   : > { %v4952_v45 = vadd.f32 1.0, %v6366_v53 }
 0xc58   : > { %6367 = vtanh.f32 %v4889_v30  ;;  %v4794_v44 = vmul.f32 %v4762_v39, %v9650_v38  ;;  %v5212_v15 = vadd.f32 %v5134_v3, %v8639_v11  ;;  %v9671_v11 = vld [vmem:[%s10068_s15] ss:$0 sm:$0xff] }
 0xc59   : > { %v4984_v59 = vmul.f32 0.5, %v4952_v45 }
 0xc5a   : > { %v4826_v56 = vmul.f32 0.044715, %v4794_v44  ;;  %5244 = vst.msk [vmem:[%s9635_s4 + $0x8] sm:$0xff] %vm1457_vm0, %v5212_v15  ;;  %v5276_v50 = vsel %vm1457_vm0, %v5212_v15, 0.0 }
 0xc5b   : > { %v5277_v23 = vadd.f32 %v5276_v50, %v5275_v49  ;;  %v4702_v6 = vpop.f32.mrf.mxu0  ;;  %v5016_v55 = vmul.f32 %v4984_v59, %v9584_v24 }
 0xc5c   : > { %v4858_v13 = vadd.f32 %v4826_v56, %v9650_v38  ;;  %v4703_v43 = vadd.f32 %v9671_v11, %v4702_v6 }
 0xc5d   : > { %v5136_v1 = vpop.f32.mrf.mxu2  ;;  %5886 = vmatmul.msk.bf16.gmra.mxu0 %vm1457_vm0, %v4592_v51 }
 0xc5e   : > { %v6368_v57 = vpop.eup %6367  ;;  %v4763_v62 = vmul.f32 %v4703_v43, %v4703_v43  ;;  %v5137_v34 = vadd.f32 %v9605_v48, %v5136_v1  ;;  %v4890_v61 = vmul.f32 0.7978846, %v4858_v13 }
 0xc5f   : > { %v4953_v14 = vadd.f32 1.0, %v6368_v57 }
 0xc60   : > { %v4795_v10 = vmul.f32 %v4763_v62, %v4703_v43  ;;  %v5213_v58 = vadd.f32 %v5137_v34, %v8658_v19  ;;  %6369 = vtanh.f32 %v4890_v61 }
 0xc61   : > { %v4985_v30 = vmul.f32 0.5, %v4953_v14 }
 0xc62   : > { %v4827_v39 = vmul.f32 0.044715, %v4795_v10  ;;  %5245 = vst.msk [vmem:[%s9635_s4 + $0x10] sm:$0xff] %vm1457_vm0, %v5213_v58  ;;  %v5278_v3 = vsel %vm1457_vm0, %v5213_v58, 0.0 }
 0xc63   : > { %v5279_v37 = vadd.f32 %v5278_v3, %v5277_v23  ;;  %v5017_v20 = vmul.f32 %v4985_v30, %v9614_v33  ;;  %v4113_v30 = vmul.f32 %v9506_v21, %v10154_v18 }
 0xc64   : > { %v4859_v44 = vadd.f32 %v4827_v39, %v4703_v43 }
 0xc65   : > { %v5138_v15 = vpop.f32.mrf.mxu2  ;;  %v5060_v49 = vpack.c.bf16 %v5017_v20, %v5016_v55  ;;  %v4145_v39 = vadd.f32 1e-05, %v4113_v30 }
 0xc66   : > { %v4891_v53 = vmul.f32 0.7978846, %v4859_v44  ;;  %v5139_v19 = vadd.f32 %v9605_v48, %v5138_v15  ;;  %v6370_v50 = vpop.eup %6369 }
 0xc67   : > { %5155 = vmatmul.bf16.gmra.mxu2 %v5060_v49  ;;  %v4954_v31 = vadd.f32 1.0, %v6370_v50  ;;  %vm4381_vm3 = vweird.f32 %v4145_v39 }
 0xc68   : > { %6371 = vtanh.f32 %v4891_v53  ;;  %v5214_v56 = vadd.f32 %v5139_v19, %v8644_v22 }
 0xc69   : > { %v4986_v45 = vmul.f32 0.5, %v4954_v31  ;;  %6373 = vrsqrt.f32 %v4145_v39 }
 0xc6a   : > { %5246 = vst.msk [vmem:[%s9635_s4 + $0x18] sm:$0xff] %vm1457_vm0, %v5214_v56  ;;  %v5280_v23 = vsel %vm1457_vm0, %v5214_v56, 0.0 }
 0xc6b   : > { %v5281_v6 = vadd.f32 %v5280_v23, %v5279_v37  ;;  %v5018_v14 = vmul.f32 %v4986_v45, %v9650_v38 }
 0xc6d   : > { %v5141_v33 = vpop.f32.mrf.mxu2 }
 0xc6e   : > { %v6372_v13 = vpop.eup %6371  ;;  %v5142_v24 = vadd.f32 %v9605_v48, %v5141_v33 }
 0xc6f   : > { %v4955_v1 = vadd.f32 1.0, %v6372_v13 }
 0xc70   : > { %v5215_v9 = vadd.f32 %v5142_v24, %v8661_v46 }
 0xc71   : > { %v4987_v57 = vmul.f32 0.5, %v4955_v1 }
 0xc72   : > { %5247 = vst.msk [vmem:[%s9635_s4 + $0x20] sm:$0xff] %vm1457_vm0, %v5215_v9  ;;  %v5282_v22 = vsel %vm1457_vm0, %v5215_v9, 0.0 }
 0xc73   : > { %v5283_v62 = vadd.f32 %v5282_v22, %v5281_v6  ;;  %v5019_v34 = vmul.f32 %v4987_v57, %v4703_v43  ;;  %v6374_v43 = vpop.eup %6373 }
 0xc74   : > { %v4376_v3 = vmul.f32 %v6374_v43, %v4145_v39  ;;  %vm4382_vm2 = vweird.f32 %v6374_v43 }
 0xc75   : > { %v5143_v51 = vpop.f32.mrf.mxu2  ;;  %v5061_v10 = vpack.c.bf16 %v5019_v34, %v5018_v14  ;;  %vm4383_vm4 = vmor %vm4381_vm3, %vm4382_vm2 }
 0xc76   : > { %v5144_v61 = vadd.f32 %v9605_v48, %v5143_v51  ;;  %v4377_v38 = vmul.f32 %v6374_v43, %v4376_v3 }
 0xc77   : > { %5160 = vmatmul.bf16.gmra.mxu2 %v5061_v10 }
 0xc78   : > { %v5216_v58 = vadd.f32 %v5144_v61, %v8669_v8  ;;  %v4378_v8 = vmul.f32 0.5, %v4377_v38 }
 0xc7a   : > { %5248 = vst.msk [vmem:[%s9635_s4 + $0x28] sm:$0xff] %vm1457_vm0, %v5216_v58  ;;  %v5284_v46 = vsel %vm1457_vm0, %v5216_v58, 0.0  ;;  %v4379_v15 = vsub.f32 1.5, %v4378_v8 }
 0xc7b   : > { %v9699_v59 = vadd.f32 %v5284_v46, %v5283_v62 }
 0xc7c   : > { %v4380_v56 = vmul.f32 %v6374_v43, %v4379_v15 }
 0xc7e   : > { %v4384_v6 = vsel %vm4383_vm4, %v6374_v43, %v4380_v56 }
 0xc7f   : > { %v4497_v57 = vmul.f32 %v4384_v6, %v9312_v60 }
 0xc81   : > { %v4532_v38 = vmul.f32 %v9414_v4, %v4497_v57 }
 0xc83   : > { %v4567_v56 = vadd.f32 %v9438_v27, %v4532_v38 }
 0xc98   : > { %v4066_v37 = vpop.xlane.xlu1 %4065 }
 0xc99   : > { %v4114_v20 = vmul.f32 %v4066_v37, %v10154_v18 }
 0xc9b   : > { %v4146_v44 = vadd.f32 1e-05, %v4114_v20 }
 0xc9d   : > { %6375 = vrsqrt.f32 %v4146_v44  ;;  %vm4391_vm6 = vweird.f32 %v4146_v44 }
 0xca0   : > { %v4069_v55 = vpop.xlane.xlu1 %4068 }
 0xca1   : > { %v4115_v53 = vmul.f32 %v4069_v55, %v10154_v18 }
 0xca3   : > { %v6376_v19 = vpop.eup %6375  ;;  %v9705_v49 = vadd.f32 1e-05, %v4115_v53 }
 0xca4   : > { %v4386_v21 = vmul.f32 %v6376_v19, %v4146_v44  ;;  %vm4392_vm5 = vweird.f32 %v6376_v19 }
 0xca5   : > { %6377 = vrsqrt.f32 %v9705_v49  ;;  %vm4393_vm7 = vmor %vm4391_vm6, %vm4392_vm5  ;;  %vm4401_vm9 = vweird.f32 %v9705_v49 }
 0xca6   : > { %v4387_v50 = vmul.f32 %v6376_v19, %v4386_v21 }
 0xca8   : > { %v4388_v33 = vmul.f32 0.5, %v4387_v50  ;;  %v3898_v31 = vpop.xlane.xlu1 %3897 }
 0xca9   : > { %v4705_v23 = vpop.f32.mrf.mxu0  ;;  %v3930_v24 = vmul.f32 %v3898_v31, %v10154_v18 }
 0xcaa   : > { %v9709_v13 = vadd.f32 %v9671_v11, %v4705_v23  ;;  %v4389_v1 = vsub.f32 1.5, %v4388_v33  ;;  %v4072_v14 = vpop.xlane.xlu2 %4071 }
 0xcab   : > { %v6378_v45 = vpop.eup %6377  ;;  %v9716_v22 = vsub.f32 %v9470_v54, %v3930_v24  ;;  %v4116_v46 = vmul.f32 %v4072_v14, %v10154_v18  ;;  %v4078_v39 = vpop.xlane.xlu0 %4077 }
 0xcac   : > { %v4764_v9 = vmul.f32 %v9709_v13, %v9709_v13  ;;  %v4390_v62 = vmul.f32 %v6376_v19, %v4389_v1  ;;  %v4396_v34 = vmul.f32 %v6378_v45, %v9705_v49  ;;  %v4118_v20 = vmul.f32 %v4078_v39, %v10154_v18 }
 0xcad   : > { %v3994_v61 = vmul.f32 %v9716_v22, %v9716_v22  ;;  %v4148_v44 = vadd.f32 1e-05, %v4116_v46  ;;  %vm4402_vm8 = vweird.f32 %v6378_v45 }
 0xcae   : > { %v4796_v51 = vmul.f32 %v4764_v9, %v9709_v13  ;;  %v4394_v10 = vsel %vm4393_vm7, %v6376_v19, %v4390_v62  ;;  %v4397_v58 = vmul.f32 %v6378_v45, %v4396_v34  ;;  %v9731_v55 = vadd.f32 1e-05, %v4118_v20  ;;  %vm4403_vm10 = vmor %vm4401_vm9, %vm4402_vm8 }
 0xcaf   : > { %v4498_v60 = vmul.f32 %v4394_v10, %v9409_v17  ;;  %v4088_v43 = vsel %vm1457_vm0, %v3994_v61, 0.0  ;;  %6379 = vrsqrt.f32 %v4148_v44  ;;  %vm4411_vm12 = vweird.f32 %v4148_v44 }
 0xcb0   : > { %v4828_v30 = vmul.f32 0.044715, %v4796_v51  ;;  %v4398_v37 = vmul.f32 0.5, %v4397_v58  ;;  %4089 = vadd.xlane.f32.xlu1 %v4088_v43  ;;  %6381 = vrsqrt.f32 %v9731_v55  ;;  %vm4431_vm1 = vweird.f32 %v9731_v55 }
 0xcb1   : > { %v4707_v3 = vpop.f32.mrf.mxu0  ;;  %v4533_v15 = vmul.f32 %v9414_v4, %v4498_v60 }
 0xcb2   : > { %v9728_v8 = vadd.f32 %v9671_v11, %v4707_v3  ;;  %v4860_v17 = vadd.f32 %v4828_v30, %v9709_v13  ;;  %v4399_v53 = vsub.f32 1.5, %v4398_v37 }
 0xcb3   : > { %v4568_v21 = vadd.f32 %v9438_v27, %v4533_v15  ;;  %v4081_v31 = vpop.xlane.xlu1 %4080 }
 0xcb4   : > { %v4765_v19 = vmul.f32 %v9728_v8, %v9728_v8  ;;  %v4892_v6 = vmul.f32 0.7978846, %v4860_v17  ;;  %v4400_v33 = vmul.f32 %v6378_v45, %v4399_v53  ;;  %v4075_v9 = vpop.xlane.xlu2 %4074  ;;  %v4119_v57 = vmul.f32 %v4081_v31, %v10154_v18 }
 0xcb5   : > { %v4593_v23 = vpack.c.bf16 %v4568_v21, %v4567_v56  ;;  %v6380_v1 = vpop.eup %6379  ;;  %v4117_v34 = vmul.f32 %v4075_v9, %v10154_v18 }
 0xcb6   : > { %v4797_v50 = vmul.f32 %v4765_v19, %v9728_v8  ;;  %v4406_v62 = vmul.f32 %v6380_v1, %v4148_v44  ;;  %v9745_v14 = vpop.eup %6381  ;;  %6383 = vtanh.f32 %v4892_v6  ;;  %v4404_v61 = vsel %vm4403_vm10, %v6378_v45, %v4400_v33 }
 0xcb7   : > { %5887 = vmatmul.msk.bf16.gmra.mxu0 %vm1457_vm0, %v4593_v23  ;;  %v4426_v10 = vmul.f32 %v9745_v14, %v9731_v55  ;;  %v4149_v46 = vadd.f32 1e-05, %v4117_v34  ;;  %v9749_v30 = vadd.f32 1e-05, %v4119_v57  ;;  %v4499_v43 = vmul.f32 %v4404_v61, %v9447_v35 }
 0xcb8   : > { %v4829_v24 = vmul.f32 0.044715, %v4797_v50  ;;  %v4407_v58 = vmul.f32 %v6380_v1, %v4406_v62  ;;  %vm4412_vm11 = vweird.f32 %v6380_v1  ;;  %vm4432_vm14 = vweird.f32 %v9745_v14 }
 0xcb9   : > { %v4427_v49 = vmul.f32 %v9745_v14, %v4426_v10  ;;  %6385 = vrsqrt.f32 %v4149_v46  ;;  %vm4413_vm13 = vmor %vm4411_vm12, %vm4412_vm11  ;;  %v4534_v21 = vmul.f32 %v9414_v4, %v4499_v43  ;;  %vm4421_vm2 = vweird.f32 %v4149_v46 }
 0xcba   : > { %v4861_v51 = vadd.f32 %v4829_v24, %v9728_v8  ;;  %v4408_v39 = vmul.f32 0.5, %v4407_v58  ;;  %v4710_v3 = vpop.f32.mrf.mxu0  ;;  %vm9786_vm3 = vmor %vm4431_vm1, %vm4432_vm14  ;;  %vm4441_vm9 = vweird.f32 %v9749_v30 }
 0xcbb   : > { %v9754_v45 = vadd.f32 %v9671_v11, %v4710_v3  ;;  %v4428_v15 = vmul.f32 0.5, %v4427_v49  ;;  %v4569_v34 = vadd.f32 %v9438_v27, %v4534_v21 }
 0xcbc   : > { %v4893_v60 = vmul.f32 0.7978846, %v4861_v51  ;;  %v4409_v38 = vsub.f32 1.5, %v4408_v39  ;;  %v6384_v37 = vpop.eup %6383  ;;  %v4084_v20 = vpop.xlane.xlu2 %4083 }
 0xcbd   : > { %v4120_v53 = vmul.f32 %v4084_v20, %v10154_v18  ;;  %v4766_v19 = vmul.f32 %v9754_v45, %v9754_v45  ;;  %v4956_v50 = vadd.f32 1.0, %v6384_v37  ;;  %v4429_v31 = vsub.f32 1.5, %v4428_v15 }
 0xcbe   : > { %6387 = vtanh.f32 %v4893_v60  ;;  %v4410_v17 = vmul.f32 %v6380_v1, %v4409_v38 }
 0xcbf   : > { %6389 = vrsqrt.f32 %v9749_v30  ;;  %v6386_v35 = vpop.eup %6385  ;;  %v9762_v44 = vadd.f32 1e-05, %v4120_v53  ;;  %v4798_v24 = vmul.f32 %v4766_v19, %v9754_v45  ;;  %v4988_v51 = vmul.f32 0.5, %v4956_v50 }
 0xcc0   : > { %v4414_v56 = vsel %vm4413_vm13, %v6380_v1, %v4410_v17  ;;  %v4416_v6 = vmul.f32 %v6386_v35, %v4149_v46  ;;  %v4430_v60 = vmul.f32 %v9745_v14, %v4429_v31  ;;  %vm4422_vm15 = vweird.f32 %v6386_v35 }
 0xcc1   : > { %v4500_v23 = vmul.f32 %v4414_v56, %v9492_v2  ;;  %6391 = vrsqrt.f32 %v9762_v44  ;;  %v4830_v1 = vmul.f32 0.044715, %v4798_v24  ;;  %vm4423_vm4 = vmor %vm4421_vm2, %vm4422_vm15  ;;  %v5020_v31 = vmul.f32 %v4988_v51, %v9709_v13 }
 0xcc2   : > { %v4417_v57 = vmul.f32 %v6386_v35, %v4416_v6  ;;  %v4712_v62 = vpop.f32.mrf.mxu0  ;;  %v4434_v46 = vsel %vm9786_vm3, %v9745_v14, %v4430_v60  ;;  %vm4451_vm7 = vweird.f32 %v9762_v44  ;;  %vm5386_vm3 = vcmask 319488  }
 0xcc3   : > { %v9771_v61 = vadd.f32 %v9671_v11, %v4712_v62  ;;  %v4535_v10 = vmul.f32 %v9414_v4, %v4500_v23  ;;  %v4862_v39 = vadd.f32 %v4830_v1, %v9754_v45  ;;  %v4502_v13 = vmul.f32 %v4434_v46, %v9502_v41 }
 0xcc4   : > { %v6388_v33 = vpop.eup %6387  ;;  %v4418_v2 = vmul.f32 0.5, %v4417_v57 }
 0xcc5   : > { %v9765_v9 = vpop.eup %6389  ;;  %v4957_v58 = vadd.f32 1.0, %v6388_v33  ;;  %v4767_v3 = vmul.f32 %v9771_v61, %v9771_v61  ;;  %v4570_v38 = vadd.f32 %v9438_v27, %v4535_v10  ;;  %v4894_v20 = vmul.f32 0.7978846, %v4862_v39 }
 0xcc6   : > { %v4436_v49 = vmul.f32 %v9765_v9, %v9749_v30  ;;  %v4419_v43 = vsub.f32 1.5, %v4418_v2  ;;  %vm4442_vm6 = vweird.f32 %v9765_v9 }
 0xcc7   : > { %v4989_v37 = vmul.f32 0.5, %v4957_v58  ;;  %v9782_v15 = vpop.eup %6391  ;;  %v4799_v19 = vmul.f32 %v4767_v3, %v9771_v61  ;;  %v4594_v56 = vpack.c.bf16 %v4570_v38, %v4569_v34  ;;  %6393 = vtanh.f32 %v4894_v20  ;;  %vm4443_vm10 = vmor %vm4441_vm9, %vm4442_vm6 }
 0xcc8   : > { %v4420_v53 = vmul.f32 %v6386_v35, %v4419_v43  ;;  %v4446_v55 = vmul.f32 %v9782_v15, %v9762_v44  ;;  %v4437_v23 = vmul.f32 %v9765_v9, %v4436_v49  ;;  %vm4452_vm5 = vweird.f32 %v9782_v15 }
 0xcc9   : > { %v5021_v21 = vmul.f32 %v4989_v37, %v9728_v8  ;;  %v5146_v6 = vpop.f32.mrf.mxu2  ;;  %5888 = vmatmul.msk.bf16.gmra.mxu0 %vm1457_vm0, %v4594_v56  ;;  %v4831_v24 = vmul.f32 0.044715, %v4799_v19  ;;  %v4537_v37 = vmul.f32 %v9414_v4, %v4502_v13  ;;  %vm9838_vm8 = vmor %vm4451_vm7, %vm4452_vm5 }
 0xcca   : > { %v4424_v50 = vsel %vm4423_vm4, %v6386_v35, %v4420_v53  ;;  %v4715_v33 = vpop.f32.mrf.mxu0  ;;  %v4447_v8 = vmul.f32 %v9782_v15, %v4446_v55  ;;  %v5147_v57 = vadd.f32 %v9605_v48, %v5146_v6  ;;  %v4438_v10 = vmul.f32 0.5, %v4437_v23 }
 0xccb   : > { %v4501_v62 = vmul.f32 %v4424_v50, %v9556_v63  ;;  %v9805_v14 = vadd.f32 %v9671_v11, %v4715_v33  ;;  %v5062_v35 = vpack.c.bf16 %v5021_v21, %v5020_v31  ;;  %v4863_v34 = vadd.f32 %v4831_v24, %v9771_v61 }
 0xccc   : > { %v4448_v1 = vmul.f32 0.5, %v4447_v8  ;;  %v5217_v2 = vadd.f32 %v5147_v57, %v8675_v12  ;;  %v4439_v20 = vsub.f32 1.5, %v4438_v10  ;;  %v4572_v50 = vadd.f32 %v9438_v27, %v4537_v37 }
 0xccd   : > { %v4768_v51 = vmul.f32 %v9805_v14, %v9805_v14  ;;  %5165 = vmatmul.bf16.gmra.mxu2 %v5062_v35  ;;  %v4895_v58 = vmul.f32 0.7978846, %v4863_v34  ;;  %v4536_v39 = vmul.f32 %v9414_v4, %v4501_v62  ;;  %v6394_v43 = vpop.eup %6393 }
 0xcce   : > { %5249 = vst.msk [vmem:[%s9635_s4 + $0x30] sm:$0xff] %vm1457_vm0, %v5217_v2  ;;  %v5286_v63 = vsel %vm1457_vm0, %v5217_v2, 0.0  ;;  %v4449_v12 = vsub.f32 1.5, %v4448_v1  ;;  %v4958_v56 = vadd.f32 1.0, %v6394_v43  ;;  %v4440_v6 = vmul.f32 %v9765_v9, %v4439_v20 }
 0xccf   : > { %v5287_v60 = vadd.f32 %v5286_v63, %v9699_v59  ;;  %v4800_v49 = vmul.f32 %v4768_v51, %v9805_v14  ;;  %6395 = vtanh.f32 %v4895_v58  ;;  %v4571_v19 = vadd.f32 %v9438_v27, %v4536_v39 }
 0xcd0   : > { %v4450_v21 = vmul.f32 %v9782_v15, %v4449_v12  ;;  %v4990_v62 = vmul.f32 0.5, %v4958_v56  ;;  %v4444_v2 = vsel %vm4443_vm10, %v9765_v9, %v4440_v6 }
 0xcd1   : > { %v4832_v41 = vmul.f32 0.044715, %v4800_v49  ;;  %v5148_v3 = vpop.f32.mrf.mxu2  ;;  %v4595_v24 = vpack.c.bf16 %v4572_v50, %v4571_v19  ;;  %v4503_v9 = vmul.f32 %v4444_v2, %v9550_v0  ;;  %v9879_v19 = vld [vmem:[%s10066_s13] ss:$0 sm:$0xff] }
 0xcd2   : > { %v4717_v38 = vpop.f32.mrf.mxu0  ;;  %v5149_v17 = vadd.f32 %v9605_v48, %v5148_v3  ;;  %v4454_v27 = vsel %vm9838_vm8, %v9782_v15, %v4450_v21  ;;  %v5022_v10 = vmul.f32 %v4990_v62, %v9754_v45 }
 0xcd3   : > { %v9821_v53 = vadd.f32 %v9671_v11, %v4717_v38  ;;  %v4864_v59 = vadd.f32 %v4832_v41, %v9805_v14  ;;  %v4504_v15 = vmul.f32 %v4454_v27, %v9579_v25 }
 0xcd4   : > { %v5218_v55 = vadd.f32 %v5149_v17, %v8709_v5 }
 0xcd5   : > { %v4769_v4 = vmul.f32 %v9821_v53, %v9821_v53  ;;  %v4896_v46 = vmul.f32 0.7978846, %v4864_v59  ;;  %v6396_v23 = vpop.eup %6395 }
 0xcd6   : > { %5250 = vst.msk [vmem:[%s9635_s4 + $0x38] sm:$0xff] %vm1457_vm0, %v5218_v55  ;;  %v5288_v33 = vsel %vm1457_vm0, %v5218_v55, 0.0  ;;  %v4959_v57 = vadd.f32 1.0, %v6396_v23 }
 0xcd7   : > { %v4801_v31 = vmul.f32 %v4769_v4, %v9821_v53  ;;  %v5289_v8 = vadd.f32 %v5288_v33, %v5287_v60  ;;  %6397 = vtanh.f32 %v4896_v46  ;;  %v10197_v4 = vld [vmem:[#allocation3_spill] sm:$0xff] }
 0xcd8   : > { %v4991_v34 = vmul.f32 0.5, %v4959_v57 }
 0xcd9   : > { %v4833_v44 = vmul.f32 0.044715, %v4801_v31  ;;  %v5151_v35 = vpop.f32.mrf.mxu2  ;;  %5889 = vmatmul.msk.bf16.gmra.mxu0 %vm1457_vm0, %v4595_v24 }
 0xcda   : > { %v4720_v1 = vpop.f32.mrf.mxu0  ;;  %v5152_v30 = vadd.f32 %v9605_v48, %v5151_v35  ;;  %v5023_v58 = vmul.f32 %v4991_v34, %v9771_v61 }
 0xcdb   : > { %v4865_v13 = vadd.f32 %v4833_v44, %v9821_v53  ;;  %v9853_v51 = vadd.f32 %v9671_v11, %v4720_v1 }
 0xcdc   : > { %v5219_v60 = vadd.f32 %v5152_v30, %v8736_v28  ;;  %v5063_v39 = vpack.c.bf16 %v5023_v58, %v5022_v10  ;;  %v9869_v28 = vld [vmem:[%s10065_s12] ss:$0 sm:$0xff] }
 0xcdd   : > { %v4897_v63 = vmul.f32 0.7978846, %v4865_v13  ;;  %v4770_v49 = vmul.f32 %v9853_v51, %v9853_v51  ;;  %v6398_v43 = vpop.eup %6397  ;;  %v4539_v61 = vmul.f32 %v9869_v28, %v4504_v15  ;;  %v4538_v38 = vmul.f32 %v9869_v28, %v4503_v9  ;;  %v10198_v30 = vld [vmem:[#allocation2_spill] sm:$0xff]  ;;  %v10199_v9 = vld [vmem:[#allocation4_spill] sm:$0xff] }
 0xcde   : > { %5251 = vst.msk [vmem:[%s9635_s4 + $0x40] sm:$0xff] %vm1457_vm0, %v5219_v60  ;;  %v5290_v12 = vsel %vm1457_vm0, %v5219_v60, 0.0  ;;  %5170 = vmatmul.bf16.gmra.mxu2 %v5063_v39  ;;  %v4960_v37 = vadd.f32 1.0, %v6398_v43 }
 0xcdf   : > { %6399 = vtanh.f32 %v4897_v63  ;;  %v4802_v25 = vmul.f32 %v4770_v49, %v9853_v51  ;;  %v5291_v45 = vadd.f32 %v5290_v12, %v5289_v8  ;;  %v4574_v56 = vadd.f32 %v9879_v19, %v4539_v61 }
 0xce0   : > { %v4573_v23 = vadd.f32 %v9879_v19, %v4538_v38  ;;  %v4992_v33 = vmul.f32 0.5, %v4960_v37 }
 0xce1   : > { %v4834_v41 = vmul.f32 0.044715, %v4802_v25  ;;  %v5153_v0 = vpop.f32.mrf.mxu2 }
 0xce2   : > { %v4722_v3 = vpop.f32.mrf.mxu0  ;;  %v5154_v17 = vadd.f32 %v9605_v48, %v5153_v0  ;;  %v4596_v24 = vpack.c.bf16 %v4574_v56, %v4573_v23  ;;  %v5024_v44 = vmul.f32 %v4992_v33, %v9805_v14  ;;  %v4087_v23 = vpop.xlane.xlu0 %4086 }
 0xce3   : > { %v4866_v20 = vadd.f32 %v4834_v41, %v9853_v51  ;;  %v4723_v59 = vadd.f32 %v9671_v11, %v4722_v3 }
 0xce4   : > { %v5220_v46 = vadd.f32 %v5154_v17, %v10197_v4 }
 0xce5   : > { %v6400_v21 = vpop.eup %6399  ;;  %v4898_v55 = vmul.f32 0.7978846, %v4866_v20  ;;  %v4771_v50 = vmul.f32 %v4723_v59, %v4723_v59  ;;  %v10200_v20 = vld [vmem:[#allocation5_spill] sm:$0xff] }
 0xce6   : > { %v4961_v6 = vadd.f32 1.0, %v6400_v21  ;;  %5252 = vst.msk [vmem:[%s9635_s4 + $0x48] sm:$0xff] %vm1457_vm0, %v5220_v46  ;;  %v5292_v31 = vsel %vm1457_vm0, %v5220_v46, 0.0  ;;  %v10201_v46 = vld [vmem:[#allocation6_spill] sm:$0xff] }
 0xce7   : > { %v4803_v5 = vmul.f32 %v4771_v50, %v4723_v59  ;;  %v5293_v8 = vadd.f32 %v5292_v31, %v5291_v45  ;;  %6401 = vtanh.f32 %v4898_v55 }
 0xce8   : > { %v4993_v57 = vmul.f32 0.5, %v4961_v6  ;;  %v4121_v6 = vmul.f32 %v4087_v23, %v10154_v18 }
 0xce9   : > { %v4835_v62 = vmul.f32 0.044715, %v4803_v5  ;;  %5890 = vmatmul.msk.bf16.gmra.mxu0 %vm1457_vm0, %v4596_v24 }
 0xcea   : > { %v5156_v27 = vpop.f32.mrf.mxu2  ;;  %v5025_v35 = vmul.f32 %v4993_v57, %v9821_v53  ;;  %v4153_v33 = vadd.f32 1e-05, %v4121_v6 }
 0xceb   : > { %v4867_v1 = vadd.f32 %v4835_v62, %v4723_v59  ;;  %v5157_v34 = vadd.f32 %v9605_v48, %v5156_v27 }
 0xcec   : > { %v5064_v2 = vpack.c.bf16 %v5025_v35, %v5024_v44  ;;  %vm4461_vm12 = vweird.f32 %v4153_v33 }
 0xced   : > { %v4899_v13 = vmul.f32 0.7978846, %v4867_v1  ;;  %v5221_v15 = vadd.f32 %v5157_v34, %v10198_v30  ;;  %v6402_v10 = vpop.eup %6401 }
 0xcee   : > { %5175 = vmatmul.bf16.gmra.mxu2 %v5064_v2  ;;  %v4962_v14 = vadd.f32 1.0, %v6402_v10 }
 0xcef   : > { %6403 = vtanh.f32 %v4899_v13  ;;  %5253 = vst.msk [vmem:[%s9635_s4 + $0x50] sm:$0xff] %vm1457_vm0, %v5221_v15  ;;  %v5294_v58 = vsel %vm1457_vm0, %v5221_v15, 0.0 }
 0xcf0   : > { %v5295_v63 = vadd.f32 %v5294_v58, %v5293_v8  ;;  %v4994_v12 = vmul.f32 0.5, %v4962_v14  ;;  %6405 = vrsqrt.f32 %v4153_v33 }
 0xcf2   : > { %v5158_v60 = vpop.f32.mrf.mxu2  ;;  %v5026_v0 = vmul.f32 %v4994_v12, %v9853_v51 }
 0xcf3   : > { %v5159_v53 = vadd.f32 %v9605_v48, %v5158_v60 }
 0xcf5   : > { %v6404_v49 = vpop.eup %6403  ;;  %v5222_v39 = vadd.f32 %v5159_v53, %v10199_v9 }
 0xcf6   : > { %v4963_v43 = vadd.f32 1.0, %v6404_v49  ;;  %v6406_v31 = vpop.eup %6405 }
 0xcf7   : > { %5254 = vst.msk [vmem:[%s9635_s4 + $0x58] sm:$0xff] %vm1457_vm0, %v5222_v39  ;;  %v5296_v25 = vsel %vm1457_vm0, %v5222_v39, 0.0  ;;  %v4456_v5 = vmul.f32 %v6406_v31, %v4153_v33  ;;  %vm4462_vm11 = vweird.f32 %v6406_v31 }
 0xcf8   : > { %v5297_v45 = vadd.f32 %v5296_v25, %v5295_v63  ;;  %v4995_v61 = vmul.f32 0.5, %v4963_v43  ;;  %vm4463_vm13 = vmor %vm4461_vm12, %vm4462_vm11 }
 0xcf9   : > { %v4457_v8 = vmul.f32 %v6406_v31, %v4456_v5 }
 0xcfa   : > { %v5161_v41 = vpop.f32.mrf.mxu2  ;;  %v5027_v3 = vmul.f32 %v4995_v61, %v4723_v59 }
 0xcfb   : > { %v5162_v38 = vadd.f32 %v9605_v48, %v5161_v41  ;;  %v4458_v27 = vmul.f32 0.5, %v4457_v8 }
 0xcfc   : > { %v5065_v37 = vpack.c.bf16 %v5027_v3, %v5026_v0 }
 0xcfd   : > { %v5223_v17 = vadd.f32 %v5162_v38, %v10200_v20  ;;  %v4459_v44 = vsub.f32 1.5, %v4458_v27 }
 0xcfe   : > { %5180 = vmatmul.bf16.gmra.mxu2 %v5065_v37 }
 0xcff   : > { %5255 = vst.msk [vmem:[%s9635_s4 + $0x60] sm:$0xff] %vm1457_vm0, %v5223_v17  ;;  %v5298_v56 = vsel %vm1457_vm0, %v5223_v17, 0.0  ;;  %v4460_v1 = vmul.f32 %v6406_v31, %v4459_v44 }
 0xd00   : > { %v5299_v21 = vadd.f32 %v5298_v56, %v5297_v45 }
 0xd01   : > { %v4464_v13 = vsel %vm4463_vm13, %v6406_v31, %v4460_v1  ;;  %v10202_v1 = vld [vmem:[#allocation7_spill] sm:$0xff] }
 0xd02   : > { %v5163_v55 = vpop.f32.mrf.mxu2 }
 0xd03   : > { %v5164_v4 = vadd.f32 %v9605_v48, %v5163_v55 }
 0xd05   : > { %v5224_v50 = vadd.f32 %v5164_v4, %v10201_v46 }
 0xd07   : > { %5256 = vst.msk [vmem:[%s9635_s4 + $0x68] sm:$0xff] %vm1457_vm0, %v5224_v50  ;;  %v5300_v51 = vsel %vm1457_vm0, %v5224_v50, 0.0 }
 0xd08   : > { %v9911_v59 = vadd.f32 %v5300_v51, %v5299_v21 }
 0xd23   : > { %v4090_v24 = vpop.xlane.xlu1 %4089 }
 0xd24   : > { %v4122_v57 = vmul.f32 %v4090_v24, %v10154_v18  ;;  %v4505_v18 = vmul.f32 %v4464_v13, %v9598_v36 }
 0xd26   : > { %v4154_v62 = vadd.f32 1e-05, %v4122_v57  ;;  %v4540_v9 = vmul.f32 %v9869_v28, %v4505_v18 }
 0xd28   : > { %6407 = vrsqrt.f32 %v4154_v62  ;;  %vm4471_vm15 = vweird.f32 %v4154_v62  ;;  %v4575_v61 = vadd.f32 %v9879_v19, %v4540_v9  ;;  %v10203_v9 = vld [vmem:[#allocation8_spill] sm:$0xff] }
 0xd2e   : > { %v6408_v35 = vpop.eup %6407 }
 0xd2f   : > { %v4466_v34 = vmul.f32 %v6408_v35, %v4154_v62  ;;  %vm4472_vm14 = vweird.f32 %v6408_v35 }
 0xd30   : > { %vm4473_vm1 = vmor %vm4471_vm15, %vm4472_vm14 }
 0xd31   : > { %v4467_v2 = vmul.f32 %v6408_v35, %v4466_v34 }
 0xd33   : > { %v4468_v30 = vmul.f32 0.5, %v4467_v2 }
 0xd34   : > { %v4725_v15 = vpop.f32.mrf.mxu0 }
 0xd35   : > { %v4469_v10 = vsub.f32 1.5, %v4468_v30  ;;  %v4726_v58 = vadd.f32 %v9671_v11, %v4725_v15 }
 0xd37   : > { %v4470_v63 = vmul.f32 %v6408_v35, %v4469_v10  ;;  %v4772_v60 = vmul.f32 %v4726_v58, %v4726_v58 }
 0xd39   : > { %v4474_v14 = vsel %vm4473_vm1, %v6408_v35, %v4470_v63  ;;  %v4804_v53 = vmul.f32 %v4772_v60, %v4726_v58 }
 0xd3a   : > { %v4506_v49 = vmul.f32 %v4474_v14, %v9716_v22 }
 0xd3b   : > { %v4836_v39 = vmul.f32 0.044715, %v4804_v53 }
 0xd3c   : > { %v4727_v43 = vpop.f32.mrf.mxu0  ;;  %v4541_v12 = vmul.f32 %v9869_v28, %v4506_v49 }
 0xd3d   : > { %v4868_v25 = vadd.f32 %v4836_v39, %v4726_v58  ;;  %v4728_v45 = vadd.f32 %v9671_v11, %v4727_v43 }
 0xd3e   : > { %v4576_v36 = vadd.f32 %v9879_v19, %v4541_v12 }
 0xd3f   : > { %v4900_v41 = vmul.f32 0.7978846, %v4868_v25  ;;  %v4773_v0 = vmul.f32 %v4728_v45, %v4728_v45 }
 0xd40   : > { %v4597_v3 = vpack.c.bf16 %v4576_v36, %v4575_v61 }
 0xd41   : > { %v4805_v38 = vmul.f32 %v4773_v0, %v4728_v45  ;;  %6409 = vtanh.f32 %v4900_v41 }
 0xd42   : > { %5891 = vmatmul.msk.bf16.gmra.mxu0 %vm1457_vm0, %v4597_v3 }
 0xd43   : > { %v4837_v22 = vmul.f32 0.044715, %v4805_v38 }
 0xd45   : > { %v4869_v37 = vadd.f32 %v4837_v22, %v4728_v45 }
 0xd46   : > { %v4730_v28 = vpop.f32.mrf.mxu0 }
 0xd47   : > { %v4901_v20 = vmul.f32 0.7978846, %v4869_v37  ;;  %v6410_v17 = vpop.eup %6409  ;;  %v4731_v56 = vadd.f32 %v9671_v11, %v4730_v28 }
 0xd48   : > { %v4964_v21 = vadd.f32 1.0, %v6410_v17 }
 0xd49   : > { %6411 = vtanh.f32 %v4901_v20  ;;  %v4774_v55 = vmul.f32 %v4731_v56, %v4731_v56  ;;  %v9948_v20 = vld [vmem:[%s10070_s17] ss:$0 sm:$0xff] }
 0xd4a   : > { %v4996_v50 = vmul.f32 0.5, %v4964_v21 }
 0xd4b   : > { %v4806_v46 = vmul.f32 %v4774_v55, %v4731_v56  ;;  %v10204_v55 = vld [vmem:[#allocation9_spill] sm:$0xff] }
 0xd4c   : > { %v5028_v5 = vmul.f32 %v4996_v50, %v4726_v58 }
 0xd4d   : > { %v4838_v23 = vmul.f32 0.044715, %v4806_v46 }
 0xd4e   : > { %v4732_v6 = vpop.f32.mrf.mxu0 }
 0xd4f   : > { %v6412_v4 = vpop.eup %6411  ;;  %v4870_v33 = vadd.f32 %v4838_v23, %v4731_v56  ;;  %v4733_v31 = vadd.f32 %v9671_v11, %v4732_v6 }
 0xd50   : > { %v4965_v19 = vadd.f32 1.0, %v6412_v4  ;;  %v5166_v24 = vpop.f32.mrf.mxu2 }
 0xd51   : > { %v4902_v57 = vmul.f32 0.7978846, %v4870_v33  ;;  %v4775_v62 = vmul.f32 %v4733_v31, %v4733_v31  ;;  %v5167_v27 = vadd.f32 %v9605_v48, %v5166_v24 }
 0xd52   : > { %v4997_v51 = vmul.f32 0.5, %v4965_v19 }
 0xd53   : > { %v4807_v35 = vmul.f32 %v4775_v62, %v4733_v31  ;;  %v5225_v34 = vadd.f32 %v5167_v27, %v10202_v1  ;;  %6413 = vtanh.f32 %v4902_v57 }
 0xd54   : > { %v5029_v8 = vmul.f32 %v4997_v51, %v4728_v45 }
 0xd55   : > { %v4839_v2 = vmul.f32 0.044715, %v4807_v35  ;;  %5257 = vst.msk [vmem:[%s9635_s4 + $0x70] sm:$0xff] %vm1457_vm0, %v5225_v34  ;;  %v5302_v13 = vsel %vm1457_vm0, %v5225_v34, 0.0 }
 0xd56   : > { %v5066_v44 = vpack.c.bf16 %v5029_v8, %v5028_v5  ;;  %v5303_v30 = vadd.f32 %v5302_v13, %v9911_v59  ;;  %v4735_v15 = vpop.f32.mrf.mxu0 }
 0xd57   : > { %v4871_v10 = vadd.f32 %v4839_v2, %v4733_v31  ;;  %v9933_v58 = vadd.f32 %v9671_v11, %v4735_v15 }
 0xd58   : > { %5185 = vmatmul.bf16.gmra.mxu2 %v5066_v44  ;;  %v5168_v18 = vpop.f32.mrf.mxu2  ;;  %v10205_v44 = vld [vmem:[#allocation10_spill] sm:$0xff] }
 0xd59   : > { %v4903_v63 = vmul.f32 0.7978846, %v4871_v10  ;;  %v4776_v60 = vmul.f32 %v9933_v58, %v9933_v58  ;;  %v5169_v14 = vadd.f32 %v9605_v48, %v5168_v18  ;;  %v6414_v53 = vpop.eup %6413 }
 0xd5a   : > { %v4966_v45 = vadd.f32 1.0, %v6414_v53 }
 0xd5b   : > { %6415 = vtanh.f32 %v4903_v63  ;;  %v4808_v49 = vmul.f32 %v4776_v60, %v9933_v58  ;;  %v5226_v39 = vadd.f32 %v5169_v14, %v10203_v9 }
 0xd5c   : > { %v4998_v22 = vmul.f32 0.5, %v4966_v45 }
 0xd5d   : > { %v4840_v43 = vmul.f32 0.044715, %v4808_v49  ;;  %5258 = vst.msk [vmem:[%s9635_s4 + $0x78] sm:$0xff] %vm1457_vm0, %v5226_v39  ;;  %v5304_v59 = vsel %vm1457_vm0, %v5226_v39, 0.0 }
 0xd5e   : > { %v5305_v12 = vadd.f32 %v5304_v59, %v5303_v30  ;;  %v4737_v25 = vpop.f32.mrf.mxu0  ;;  %v5030_v19 = vmul.f32 %v4998_v22, %v4731_v56  ;;  %v10206_v59 = vld [vmem:[#allocation12_spill] sm:$0xff] }
 0xd5f   : > { %v4872_v61 = vadd.f32 %v4840_v43, %v9933_v58  ;;  %v4738_v36 = vadd.f32 %v9671_v11, %v4737_v25 }
 0xd61   : > { %v6416_v41 = vpop.eup %6415  ;;  %v4904_v48 = vmul.f32 0.7978846, %v4872_v61  ;;  %v4777_v0 = vmul.f32 %v4738_v36, %v4738_v36  ;;  %v5171_v3 = vpop.f32.mrf.mxu2 }
 0xd62   : > { %v4967_v38 = vadd.f32 1.0, %v6416_v41  ;;  %v5172_v17 = vadd.f32 %v9948_v20, %v5171_v3 }
 0xd63   : > { %v4809_v37 = vmul.f32 %v4777_v0, %v4738_v36  ;;  %6417 = vtanh.f32 %v4904_v48 }
 0xd64   : > { %v4999_v28 = vmul.f32 0.5, %v4967_v38  ;;  %v5227_v4 = vadd.f32 %v5172_v17, %v10204_v55 }
 0xd65   : > { %v4841_v21 = vmul.f32 0.044715, %v4809_v37  ;;  %v10207_v37 = vld [vmem:[#allocation11_spill] sm:$0xff] }
 0xd66   : > { %v4740_v46 = vpop.f32.mrf.mxu0  ;;  %v5031_v50 = vmul.f32 %v4999_v28, %v4733_v31  ;;  %5259 = vst.msk [vmem:[%s9635_s4 + $0x80] sm:$0xff] %vm1457_vm0, %v5227_v4  ;;  %v5306_v51 = vsel %vm1457_vm0, %v5227_v4, 0.0 }
 0xd67   : > { %v4873_v23 = vadd.f32 %v4841_v21, %v4738_v36  ;;  %v4741_v6 = vadd.f32 %v9671_v11, %v4740_v46  ;;  %v5307_v33 = vadd.f32 %v5306_v51, %v5305_v12 }
 0xd68   : > { %v5067_v5 = vpack.c.bf16 %v5031_v50, %v5030_v19 }
 0xd69   : > { %v4905_v8 = vmul.f32 0.7978846, %v4873_v23  ;;  %v4778_v24 = vmul.f32 %v4741_v6, %v4741_v6  ;;  %v5173_v57 = vpop.f32.mrf.mxu2  ;;  %v6418_v62 = vpop.eup %6417  ;;  %v10208_v23 = vld [vmem:[#allocation13_spill] sm:$0xff] }
 0xd6a   : > { %5190 = vmatmul.bf16.gmra.mxu2 %v5067_v5  ;;  %v5174_v56 = vadd.f32 %v9948_v20, %v5173_v57  ;;  %v4968_v34 = vadd.f32 1.0, %v6418_v62 }
 0xd6b   : > { %6419 = vtanh.f32 %v4905_v8  ;;  %v4810_v27 = vmul.f32 %v4778_v24, %v4741_v6 }
 0xd6c   : > { %v5228_v35 = vadd.f32 %v5174_v56, %v10205_v44  ;;  %v5000_v53 = vmul.f32 0.5, %v4968_v34 }
 0xd6d   : > { %v4842_v31 = vmul.f32 0.044715, %v4810_v27 }
 0xd6e   : > { %v4742_v1 = vpop.f32.mrf.mxu0  ;;  %5260 = vst.msk [vmem:[%s9635_s4 + $0x88] sm:$0xff] %vm1457_vm0, %v5228_v35  ;;  %v5308_v13 = vsel %vm1457_vm0, %v5228_v35, 0.0  ;;  %v5032_v25 = vmul.f32 %v5000_v53, %v9933_v58 }
 0xd6f   : > { %v4874_v2 = vadd.f32 %v4842_v31, %v4741_v6  ;;  %v4743_v30 = vadd.f32 %v9671_v11, %v4742_v1  ;;  %v5309_v15 = vadd.f32 %v5308_v13, %v5307_v33 }
 0xd71   : > { %v6420_v10 = vpop.eup %6419  ;;  %v4906_v18 = vmul.f32 0.7978846, %v4874_v2  ;;  %v4779_v63 = vmul.f32 %v4743_v30, %v4743_v30  ;;  %v5176_v60 = vpop.f32.mrf.mxu2 }
 0xd72   : > { %v4969_v14 = vadd.f32 1.0, %v6420_v10  ;;  %v5177_v9 = vadd.f32 %v9948_v20, %v5176_v60 }
 0xd73   : > { %v4811_v49 = vmul.f32 %v4779_v63, %v4743_v30  ;;  %6421 = vtanh.f32 %v4906_v18 }
 0xd74   : > { %v5001_v39 = vmul.f32 0.5, %v4969_v14  ;;  %v5229_v12 = vadd.f32 %v5177_v9, %v10206_v59 }
 0xd75   : > { %v4843_v43 = vmul.f32 0.044715, %v4811_v49 }
 0xd76   : > { %v5033_v11 = vmul.f32 %v5001_v39, %v4738_v36  ;;  %5261 = vst.msk [vmem:[%s9635_s4 + $0x90] sm:$0xff] %vm1457_vm0, %v5229_v12  ;;  %v5310_v61 = vsel %vm1457_vm0, %v5229_v12, 0.0 }
 0xd77   : > { %v4875_v45 = vadd.f32 %v4843_v43, %v4743_v30  ;;  %v5311_v41 = vadd.f32 %v5310_v61, %v5309_v15 }
 0xd78   : > { %v5068_v48 = vpack.c.bf16 %v5033_v11, %v5032_v25 }
 0xd79   : > { %v4907_v0 = vmul.f32 0.7978846, %v4875_v45  ;;  %v5178_v3 = vpop.f32.mrf.mxu2  ;;  %v6422_v38 = vpop.eup %6421 }
 0xd7a   : > { %5195 = vmatmul.bf16.gmra.mxu2 %v5068_v48  ;;  %v5179_v22 = vadd.f32 %v9948_v20, %v5178_v3  ;;  %v4970_v28 = vadd.f32 1.0, %v6422_v38 }
 0xd7b   : > { %6423 = vtanh.f32 %v4907_v0 }
 0xd7c   : > { %v5230_v17 = vadd.f32 %v5179_v22, %v10207_v37  ;;  %v5002_v46 = vmul.f32 0.5, %v4970_v28 }
 0xd7e   : > { %5262 = vst.msk [vmem:[%s9635_s4 + $0x98] sm:$0xff] %vm1457_vm0, %v5230_v17  ;;  %v5312_v58 = vsel %vm1457_vm0, %v5230_v17, 0.0  ;;  %v5034_v33 = vmul.f32 %v5002_v46, %v4741_v6  ;;  %v6473_v6 = vld [vmem:[%s10068_s15] ss:$0 sm:$0xff] }
 0xd7f   : > { %v5313_v36 = vadd.f32 %v5312_v58, %v5311_v41 }
 0xd81   : > { %v6424_v21 = vpop.eup %6423  ;;  %v5181_v55 = vpop.f32.mrf.mxu2 }
 0xd82   : > { %v4971_v4 = vadd.f32 1.0, %v6424_v21  ;;  %v5182_v19 = vadd.f32 %v9948_v20, %v5181_v55 }
 0xd84   : > { %v5003_v50 = vmul.f32 0.5, %v4971_v4  ;;  %v5231_v51 = vadd.f32 %v5182_v19, %v10208_v23 }
 0xd86   : > { %v5035_v5 = vmul.f32 %v5003_v50, %v4743_v30  ;;  %5263 = vst.msk [vmem:[%s9635_s4 + $0xa0] sm:$0xff] %vm1457_vm0, %v5231_v51  ;;  %v5314_v8 = vsel %vm1457_vm0, %v5231_v51, 0.0 }
 0xd87   : > { %v5315_v24 = vadd.f32 %v5314_v8, %v5313_v36 }
 0xd88   : > { %v5069_v57 = vpack.c.bf16 %v5035_v5, %v5034_v33 }
 0xd89   : > { %v5183_v62 = vpop.f32.mrf.mxu2 }
 0xd8a   : > { %5200 = vmatmul.bf16.gmra.mxu2 %v5069_v57  ;;  %v5184_v27 = vadd.f32 %v9948_v20, %v5183_v62  ;;  %v10209_v57 = vld [vmem:[#allocation14_spill] sm:$0xff] }
 0xd8c   : > { %v5232_v56 = vadd.f32 %v5184_v27, %v9031_v52 }
 0xd8e   : > { %5264 = vst.msk [vmem:[%s9635_s4 + $0xa8] sm:$0xff] %vm1457_vm0, %v5232_v56  ;;  %v5316_v31 = vsel %vm1457_vm0, %v5232_v56, 0.0 }
 0xd8f   : > { %v5317_v44 = vadd.f32 %v5316_v31, %v5315_v24 }
 0xdbf   : > { %v4745_v35 = vpop.f32.mrf.mxu0 }
 0xdc0   : > { %v4746_v1 = vadd.f32 %v6473_v6, %v4745_v35 }
 0xdc2   : > { %v4780_v34 = vmul.f32 %v4746_v1, %v4746_v1 }
 0xdc4   : > { %v4812_v2 = vmul.f32 %v4780_v34, %v4746_v1 }
 0xdc6   : > { %v4844_v13 = vmul.f32 0.044715, %v4812_v2 }
 0xdc7   : > { %v4747_v30 = vpop.f32.mrf.mxu0 }
 0xdc8   : > { %v4876_v15 = vadd.f32 %v4844_v13, %v4746_v1  ;;  %v4748_v10 = vadd.f32 %v6473_v6, %v4747_v30 }
 0xdca   : > { %v4908_v18 = vmul.f32 0.7978846, %v4876_v15  ;;  %v4781_v63 = vmul.f32 %v4748_v10, %v4748_v10 }
 0xdcc   : > { %v4813_v52 = vmul.f32 %v4781_v63, %v4748_v10  ;;  %6425 = vtanh.f32 %v4908_v18 }
 0xdce   : > { %v4845_v60 = vmul.f32 0.044715, %v4813_v52 }
 0xdd0   : > { %v4877_v14 = vadd.f32 %v4845_v60, %v4748_v10 }
 0xdd2   : > { %v4909_v53 = vmul.f32 0.7978846, %v4877_v14  ;;  %v6426_v49 = vpop.eup %6425 }
 0xdd3   : > { %v4972_v9 = vadd.f32 1.0, %v6426_v49 }
 0xdd4   : > { %6427 = vtanh.f32 %v4909_v53 }
 0xdd5   : > { %v5004_v12 = vmul.f32 0.5, %v4972_v9 }
 0xdd7   : > { %v5036_v61 = vmul.f32 %v5004_v12, %v4746_v1 }
 0xdda   : > { %v6428_v39 = vpop.eup %6427 }
 0xddb   : > { %v5186_v43 = vpop.f32.mrf.mxu2  ;;  %v4973_v59 = vadd.f32 1.0, %v6428_v39 }
 0xddc   : > { %v5187_v25 = vadd.f32 %v9948_v20, %v5186_v43 }
 0xddd   : > { %v5005_v11 = vmul.f32 0.5, %v4973_v59 }
 0xdde   : > { %v5233_v45 = vadd.f32 %v5187_v25, %v9040_v32 }
 0xddf   : > { %v5037_v41 = vmul.f32 %v5005_v11, %v4748_v10  ;;  %v6485_v10 = vmov 256.0  }
 0xde0   : > { %5265 = vst.msk [vmem:[%s9635_s4 + $0xb0] sm:$0xff] %vm1457_vm0, %v5233_v45  ;;  %v5318_v48 = vsel %vm1457_vm0, %v5233_v45, 0.0  ;;  %6429 = vrcp.f32 %v6485_v10 }
 0xde1   : > { %v5319_v0 = vadd.f32 %v5318_v48, %v5317_v44  ;;  %v5070_v3 = vpack.c.bf16 %v5037_v41, %v5036_v61 }
 0xde3   : > { %v5188_v38 = vpop.f32.mrf.mxu2  ;;  %5205 = vmatmul.bf16.gmra.mxu2 %v5070_v3  ;;  %v5356_v3 = vld [vmem:[%s10072_s19] sm:$0x1] }
 0xde4   : > { %v5189_v22 = vadd.f32 %v9948_v20, %v5188_v38 }
 0xde6   : > { %v5234_v37 = vadd.f32 %v5189_v22, %v9152_v7 }
 0xde8   : > { %5266 = vst.msk [vmem:[%s9635_s4 + $0xb8] sm:$0xff] %vm1457_vm0, %v5234_v37  ;;  %v5320_v32 = vsel %vm1457_vm0, %v5234_v37, 0.0 }
 0xde9   : > { %v5321_v17 = vadd.f32 %v5320_v32, %v5319_v0 }
 0xded   : > { %v5191_v28 = vpop.f32.mrf.mxu2 }
 0xdee   : > { %v5192_v58 = vadd.f32 %v9948_v20, %v5191_v28 }
 0xdf0   : > { %v5235_v36 = vadd.f32 %v5192_v58, %v9198_v26  ;;  %v6020_v26 = vld [vmem:[%s10071_s18 + $0x8] sm:$0xff] }
 0xdf1   : > { %5379 = vmatpush.bf16.msra.mxu3 %v6020_v26 }
 0xdf2   : > { %5267 = vst.msk [vmem:[%s9635_s4 + $0xc0] sm:$0xff] %vm1457_vm0, %v5235_v36  ;;  %v5322_v21 = vsel %vm1457_vm0, %v5235_v36, 0.0 }
 0xdf3   : > { %v5323_v55 = vadd.f32 %v5322_v21, %v5321_v17 }
 0xdf5   : > { %v5193_v4 = vpop.f32.mrf.mxu2 }
 0xdf6   : > { %v5194_v46 = vadd.f32 %v9948_v20, %v5193_v4 }
 0xdf8   : > { %v5236_v7 = vadd.f32 %v5194_v46, %v9273_v16 }
 0xdfa   : > { %5268 = vst.msk [vmem:[%s9635_s4 + $0xc8] sm:$0xff] %vm1457_vm0, %v5236_v7  ;;  %v5324_v19 = vsel %vm1457_vm0, %v5236_v7, 0.0 }
 0xdfb   : > { %v5325_v50 = vadd.f32 %v5324_v19, %v5323_v55 }
 0xdfd   : > { %v5196_v23 = vpop.f32.mrf.mxu2 }
 0xdfe   : > { %v5197_v51 = vadd.f32 %v9948_v20, %v5196_v23 }
 0xe00   : > { %v5237_v33 = vadd.f32 %v5197_v51, %v9319_v40 }
 0xe02   : > { %5269 = vst.msk [vmem:[%s9635_s4 + $0xd0] sm:$0xff] %vm1457_vm0, %v5237_v33  ;;  %v5326_v16 = vsel %vm1457_vm0, %v5237_v33, 0.0 }
 0xe03   : > { %v5327_v5 = vadd.f32 %v5326_v16, %v5325_v50 }
 0xe05   : > { %v5198_v8 = vpop.f32.mrf.mxu2 }
 0xe06   : > { %v5199_v24 = vadd.f32 %v9948_v20, %v5198_v8 }
 0xe08   : > { %v5238_v62 = vadd.f32 %v5199_v24, %v10209_v57 }
 0xe0a   : > { %5270 = vst.msk [vmem:[%s9635_s4 + $0xd8] sm:$0xff] %vm1457_vm0, %v5238_v62  ;;  %v5328_v27 = vsel %vm1457_vm0, %v5238_v62, 0.0 }
 0xe0b   : > { %v5329_v56 = vadd.f32 %v5328_v27, %v5327_v5 }
 0xe0d   : > { %v5201_v31 = vpop.f32.mrf.mxu2 }
 0xe0e   : > { %v5202_v44 = vadd.f32 %v9948_v20, %v5201_v31 }
 0xe10   : > { %v5239_v40 = vadd.f32 %v5202_v44, %v9328_v29  ;;  %v6019_v29 = vld [vmem:[%s10071_s18] sm:$0xff] }
 0xe11   : > { %5380 = vmatpush.bf16.msra.mxu3 %v6019_v29 }
 0xe12   : > { %5271 = vst.msk [vmem:[%s9635_s4 + $0xe0] sm:$0xff] %vm1457_vm0, %v5239_v40  ;;  %v5330_v35 = vsel %vm1457_vm0, %v5239_v40, 0.0 }
 0xe13   : > { %v5331_v6 = vadd.f32 %v5330_v35, %v5329_v56 }
 0xe15   : > { %v5203_v1 = vpop.f32.mrf.mxu2 }
 0xe16   : > { %v5204_v34 = vadd.f32 %v9948_v20, %v5203_v1 }
 0xe18   : > { %v5240_v2 = vadd.f32 %v5204_v34, %v9363_v47  ;;  %v6430_v47 = vpop.eup %6429 }
 0xe19   : > { %v5345_v53 = vmul.f32 256.0, %v6430_v47  ;;  %vm5349_vm2 = vweird.f32 %v6430_v47 }
 0xe1a   : > { %5272 = vst.msk [vmem:[%s9635_s4 + $0xe8] sm:$0xff] %vm1457_vm0, %v5240_v2  ;;  %v5332_v13 = vsel %vm1457_vm0, %v5240_v2, 0.0 }
 0xe1b   : > { %v5333_v30 = vadd.f32 %v5332_v13, %v5331_v6  ;;  %v5346_v43 = vsub.f32 1.0, %v5345_v53 }
 0xe1d   : > { %v5347_v12 = vmul.f32 %v6430_v47, %v5346_v43 }
 0xe1f   : > { %v5348_v45 = vadd.f32 %v6430_v47, %v5347_v12 }
 0xe66   : > { %v5206_v15 = vpop.f32.mrf.mxu2 }
 0xe67   : > { %v5207_v18 = vadd.f32 %v9948_v20, %v5206_v15 }
 0xe69   : > { %v5241_v63 = vadd.f32 %v5207_v18, %v9380_v42 }
 0xe6b   : > { %5273 = vst.msk [vmem:[%s9635_s4 + $0xf0] sm:$0xff] %vm1457_vm0, %v5241_v63  ;;  %v5334_v60 = vsel %vm1457_vm0, %v5241_v63, 0.0 }
 0xe6c   : > { %v5335_v9 = vadd.f32 %v5334_v60, %v5333_v30 }
 0xe6e   : > { %v5208_v52 = vpop.f32.mrf.mxu2 }
 0xe6f   : > { %v5209_v14 = vadd.f32 %v9948_v20, %v5208_v52  ;;  %v5350_v20 = vsel %vm5349_vm2, %v6430_v47, %v5348_v45 }
 0xe71   : > { %v5242_v49 = vadd.f32 %v5209_v14, %v9470_v54 }
 0xe73   : > { %5274 = vst.msk [vmem:[%s9635_s4 + $0xf8] sm:$0xff] %vm1457_vm0, %v5242_v49  ;;  %v5336_v39 = vsel %vm1457_vm0, %v5242_v49, 0.0 }
 0xe74   : > { %v5337_v59 = vadd.f32 %v5336_v39, %v5335_v9 }
 0xe76   : > { %v5338_v42 = vrot.slane %v5337_v59, 4 }
 0xe78   : > { %v5339_v25 = vadd.f32 %v5338_v42, %v5337_v59 }
 0xe7a   : > { %v5340_v11 = vrot.slane %v5339_v25, 2 }
 0xe7c   : > { %v5341_v61 = vadd.f32 %v5340_v11, %v5339_v25 }
 0xe7e   : > { %v5342_v41 = vrot.slane %v5341_v61, 1 }
 0xe80   : > { %v5343_v48 = vadd.f32 %v5342_v41, %v5341_v61 }
 0xe82   : > { %v5351_v0 = vmul.f32 %v5350_v20, %v5343_v48 }
 0xe84   : > { %v5357_v54 = vpack.c.bf16 %v5351_v0, %v5351_v0 }
 0xe86   : > { %5932 = vmatmul.msk.bf16.vlgmr.msra.gmra.mxu3 %vm1457_vm0, %v5357_v54 }
 0xf09   : > { %v5382_v38 = vpop.f32.mrf.mxu3 }
 0xf0a   : > { %v5383_v22 = vadd.f32 %v5382_v38, %v5356_v3 }
 0xf0c   : > { %5387 = vst.msk [vmem:[%s717_s27] sm:$0x1] %vm5386_vm3, %v5383_v22 }
 0xf11   : > { %v5384_v37 = vpop.f32.mrf.mxu3 }
 0xf12 PF: > { %s33_s3 = sadd.s32 1, %s6480_s3  }
 0xf13   : > { %p30_p4 = scmp.ge.s32.totalorder %s33_s3, 4  }
 0xf15   :  { %32 = sbr.rel (!%p30_p4) target bundleno = 8 (0x8), region = 157 }

</bundles_post_ra>
